<compile_context>
chip_gen: v6e
topology: v6e:2x2x1
jax: 0.10.0
libtpu: 0.0.40
codegen_flags: <defaults>
</compile_context>

<pallas_src>
import functools

import jax
import jax.numpy as jnp
from jax.experimental import pallas as pl
from jax.experimental.pallas import tpu as pltpu


# ----------------------------------------------------------------------------
# Fused forward kernel.
#
#   ts_ref : (T*B, F)  time-series input, t-major rows (row = t*B + b)
#   tb_ref : (B, 73)   table input
#   out_ref: (B, T*F)  decoder output slab (reshaped to (B, T, F) outside)
# ----------------------------------------------------------------------------
def fused_forward_kernel(
        ts_ref, tb_ref,
        wih1_ref, whh1_ref, b1_ref,          # encoder rnn1
        ln_g_ref, ln_b_ref,                  # encoder LayerNorm
        wih2_ref, whh2_ref, b2_ref,          # encoder rnn2 layer 0
        wih3_ref, whh3_ref, b3_ref,          # encoder rnn2 layer 1
        tw1_ref, tb1_ref, tw2_ref, tb2_ref,  # table encoder MLP
        wq_ref, bq_ref, wk_ref, bk_ref,      # self-attention projections
        wv_ref, bv_ref, wo_ref, bo_ref,
        fw1_ref, fb1_ref, fw2_ref, fb2_ref,  # encoder FFN
        gw1_ref, gb1_ref, gw2_ref, gb2_ref,  # bimodal FFN
        dwih_ref, dwhh_ref, db_ref,          # decoder LSTM
        out_ref,
        *, seq_len, batch):
    T, B = seq_len, batch
    D = whh1_ref.shape[0]

    def lstm_scan(gates_x, whh, H, collect_seq):
        """Serial LSTM recurrence.  gates_x = (T*B, 4H) pre-computed
        x @ W_ih + b (t-major).  Only h @ W_hh remains in the loop.
        T is small and static, so a static unroll is used.
        # TODO(synk): switch to a fori_loop + VMEM scratch carry if T grows."""
        h = jnp.zeros((B, H), jnp.float32)
        c = jnp.zeros((B, H), jnp.float32)
        hs = []
        for t in range(T):
            g_x = gates_x[t * B:(t + 1) * B, :]
            gates = g_x + jnp.dot(h, whh, preferred_element_type=jnp.float32)
            i_g = jax.nn.sigmoid(gates[:, 0 * H:1 * H])
            f_g = jax.nn.sigmoid(gates[:, 1 * H:2 * H])
            g_g = jnp.tanh(gates[:, 2 * H:3 * H])
            o_g = jax.nn.sigmoid(gates[:, 3 * H:4 * H])
            c = f_g * c + i_g * g_g
            h = o_g * jnp.tanh(c)
            if collect_seq:
                hs.append(h)
        return hs, c

    # ---------------- LSTM_Encoder ----------------
    # rnn1: hoisted input projection (one (T*B, F) @ (F, 4D) matmul).
    gx1 = jnp.dot(ts_ref[...], wih1_ref[...],
                  preferred_element_type=jnp.float32) + b1_ref[...]
    h1_list, _ = lstm_scan(gx1, whh1_ref[...], D, collect_seq=True)

    # dropout(p=0.1) -> identity; LayerNorm over the feature dim (eps=1e-5).
    h1_seq = jnp.concatenate(h1_list, axis=0)                        # (T*B, D)
    mu = jnp.mean(h1_seq, axis=-1, keepdims=True)
    var = jnp.mean(jnp.square(h1_seq - mu), axis=-1, keepdims=True)
    h1_norm = ((h1_seq - mu) * jax.lax.rsqrt(var + 1e-5)
               * ln_g_ref[...] + ln_b_ref[...])

    # rnn2 layer 0.
    gx2 = jnp.dot(h1_norm, wih2_ref[...],
                  preferred_element_type=jnp.float32) + b2_ref[...]
    h2_list, _ = lstm_scan(gx2, whh2_ref[...], D, collect_seq=True)

    # rnn2 layer 1 — only its final cell state (cell[-1]) is used downstream.
    h2_seq = jnp.concatenate(h2_list, axis=0)                        # (T*B, D)
    gx3 = jnp.dot(h2_seq, wih3_ref[...],
                  preferred_element_type=jnp.float32) + b3_ref[...]
    _, c_last = lstm_scan(gx3, whh3_ref[...], D, collect_seq=False)
    ts_emb = c_last                                                  # (B, D)

    # ---------------- table_encoder ----------------
    th = jnp.dot(tb_ref[...], tw1_ref[...],
                 preferred_element_type=jnp.float32) + tb1_ref[...]
    th = jnp.maximum(th, 0.0)
    tb_emb = jnp.dot(th, tw2_ref[...],
                     preferred_element_type=jnp.float32) + tb2_ref[...]  # (B, D)

    # ---------------- self-attention over the 2-token sequence ----------------
    # Tokens stacked as rows: rows [0, B) = ts token, rows [B, 2B) = table token
    # (matches torch.cat((ts, tb), -2) ordering).  Single Q/K/V/O matmuls.
    xcat = jnp.concatenate([ts_emb, tb_emb], axis=0)                 # (2B, D)
    q = jnp.dot(xcat, wq_ref[...], preferred_element_type=jnp.float32) + bq_ref[...]
    k = jnp.dot(xcat, wk_ref[...], preferred_element_type=jnp.float32) + bk_ref[...]
    v = jnp.dot(xcat, wv_ref[...], preferred_element_type=jnp.float32) + bv_ref[...]
    scale = 1.0 / (float(D) ** 0.5)
    q0, q1 = q[0:B, :], q[B:2 * B, :]
    k0, k1 = k[0:B, :], k[B:2 * B, :]
    v0, v1 = v[0:B, :], v[B:2 * B, :]

    s00 = jnp.sum(q0 * k0, axis=-1, keepdims=True) * scale
    s01 = jnp.sum(q0 * k1, axis=-1, keepdims=True) * scale
    s10 = jnp.sum(q1 * k0, axis=-1, keepdims=True) * scale
    s11 = jnp.sum(q1 * k1, axis=-1, keepdims=True) * scale

    # numerically stable row-wise softmax over the 2 keys
    m0 = jnp.maximum(s00, s01)
    e00, e01 = jnp.exp(s00 - m0), jnp.exp(s01 - m0)
    inv_d0 = 1.0 / (e00 + e01)
    m1 = jnp.maximum(s10, s11)
    e10, e11 = jnp.exp(s10 - m1), jnp.exp(s11 - m1)
    inv_d1 = 1.0 / (e10 + e11)

    a0 = (e00 * inv_d0) * v0 + (e01 * inv_d0) * v1
    a1 = (e10 * inv_d1) * v0 + (e11 * inv_d1) * v1
    attn = jnp.concatenate([a0, a1], axis=0)                         # (2B, D)
    attn = jnp.dot(attn, wo_ref[...],
                   preferred_element_type=jnp.float32) + bo_ref[...]

    # dropout -> identity; FFN applied to both tokens in one stacked matmul.
    fh = jnp.dot(attn, fw1_ref[...],
                 preferred_element_type=jnp.float32) + fb1_ref[...]
    fh = jnp.maximum(fh, 0.0)
    ff = jnp.dot(fh, fw2_ref[...],
                 preferred_element_type=jnp.float32) + fb2_ref[...]  # (2B, D)

    # MaxPoolLayer over the 2-token sequence.
    enc_out = jnp.maximum(ff[0:B, :], ff[B:2 * B, :])                # (B, D)

    # ---------------- Bimodal_AE FFN ----------------
    gh = jnp.dot(enc_out, gw1_ref[...],
                 preferred_element_type=jnp.float32) + gb1_ref[...]
    gh = jnp.maximum(gh, 0.0)
    bimodal = jnp.dot(gh, gw2_ref[...],
                      preferred_element_type=jnp.float32) + gb2_ref[...]  # (B, D)

    # ---------------- LSTM_Decoder ----------------
    # Input is the latent at t=0 and zeros afterwards -> compute the input
    # projection once; later steps only add the (hoisted) bias.
    dH = dwhh_ref.shape[0]                                           # n_features
    dwhh = dwhh_ref[...]                                             # hoist load
    gx0 = jnp.dot(bimodal, dwih_ref[...], preferred_element_type=jnp.float32)
    db_full = jnp.broadcast_to(db_ref[...], (B, 4 * dH))             # hoisted
    gx_first = gx0 + db_full

    h = jnp.zeros((B, dH), jnp.float32)
    c = jnp.zeros((B, dH), jnp.float32)
    outs = []
    for t in range(T):
        g_x = gx_first if t == 0 else db_full
        gates = g_x + jnp.dot(h, dwhh, preferred_element_type=jnp.float32)
        i_g = jax.nn.sigmoid(gates[:, 0 * dH:1 * dH])
        f_g = jax.nn.sigmoid(gates[:, 1 * dH:2 * dH])
        g_g = jnp.tanh(gates[:, 2 * dH:3 * dH])
        o_g = jax.nn.sigmoid(gates[:, 3 * dH:4 * dH])
        c = f_g * c + i_g * g_g
        h = o_g * jnp.tanh(c)
        outs.append(h)

    # Single whole-tile store of a (B, T*dH) slab (avoids T masked sub-stores).
    out_ref[...] = jnp.concatenate(outs, axis=-1)


# ----------------------------------------------------------------------------
# Wrapper: one pallas_call for the entire forward pass.
# ----------------------------------------------------------------------------
def bimodal_ae_forward(ts_x, tb_x, params):
    B, T, F = ts_x.shape
    # Present the time-series input as a t-major (T*B, F) slab so the hoisted
    # x @ W_ih is a single matmul and per-step slices are static row slices.
    ts2d = jnp.transpose(ts_x, (1, 0, 2)).reshape(T * B, F)

    args = (ts2d, tb_x,
            *params["enc_rnn1"], *params["enc_norm"],
            *params["enc_rnn2_l0"], *params["enc_rnn2_l1"],
            *params["tb_enc"], *params["attn"],
            *params["enc_ffn"], *params["bimodal_ffn"],
            *params["dec_rnn"])

    vmem = pl.BlockSpec(memory_space=pltpu.MemorySpace.VMEM)
    out_slab = pl.pallas_call(
        functools.partial(fused_forward_kernel, seq_len=T, batch=B),
        out_shape=jax.ShapeDtypeStruct((B, T * F), jnp.float32),
        in_specs=[vmem] * len(args),
        out_specs=vmem,
    )(*args)
    return out_slab.reshape(B, T, F)


# ----------------------------------------------------------------------------
# Pure-JAX reference (same math, standard XLA ops) for a correctness check.
# ----------------------------------------------------------------------------
def reference_forward(ts_x, tb_x, params):
    B, T, F = ts_x.shape
    wih1, whh1, b1 = params["enc_rnn1"]
    ln_g, ln_b = params["enc_norm"]
    wih2, whh2, b2 = params["enc_rnn2_l0"]
    wih3, whh3, b3 = params["enc_rnn2_l1"]
    tw1, tb1, tw2, tb2 = params["tb_enc"]
    wq, bq, wk, bk, wv, bv, wo, bo = params["attn"]
    fw1, fb1, fw2, fb2 = params["enc_ffn"]
    gw1, gb1, gw2, gb2 = params["bimodal_ffn"]
    dwih, dwhh, db = params["dec_rnn"]
    D = whh1.shape[0]

    def lstm(x_seq, wih, whh, b, H):
        h = jnp.zeros((B, H), jnp.float32)
        c = jnp.zeros((B, H), jnp.float32)
        hs = []
        for t in range(x_seq.shape[0]):
            g = x_seq[t] @ wih + b + h @ whh
            i = jax.nn.sigmoid(g[:, :H]); f = jax.nn.sigmoid(g[:, H:2 * H])
            gg = jnp.tanh(g[:, 2 * H:3 * H]); o = jax.nn.sigmoid(g[:, 3 * H:])
            c = f * c + i * gg
            h = o * jnp.tanh(c)
            hs.append(h)
        return jnp.stack(hs, 0), c

    ts_t = jnp.transpose(ts_x, (1, 0, 2))                            # (T, B, F)
    h1, _ = lstm(ts_t, wih1, whh1, b1, D)
    mu = jnp.mean(h1, -1, keepdims=True)
    var = jnp.mean(jnp.square(h1 - mu), -1, keepdims=True)
    h1n = (h1 - mu) * jax.lax.rsqrt(var + 1e-5) * ln_g + ln_b
    h2, _ = lstm(h1n, wih2, whh2, b2, D)
    _, c_last = lstm(h2, wih3, whh3, b3, D)
    ts_emb = c_last

    th = jnp.maximum(tb_x @ tw1 + tb1, 0.0)
    tb_emb = th @ tw2 + tb2

    x = jnp.stack([ts_emb, tb_emb], axis=1)                          # (B, 2, D)
    q = x @ wq + bq; k = x @ wk + bk; v = x @ wv + bv
    s = jnp.einsum("bqd,bkd->bqk", q, k) / jnp.sqrt(jnp.float32(D))
    a = jax.nn.softmax(s, axis=-1)
    att = jnp.einsum("bqk,bkd->bqd", a, v) @ wo + bo
    ff = jnp.maximum(att @ fw1 + fb1, 0.0) @ fw2 + fb2
    enc = jnp.max(ff, axis=1)                                        # (B, D)

    bim = jnp.maximum(enc @ gw1 + gb1, 0.0) @ gw2 + gb2              # (B, D)

    dH = dwhh.shape[0]
    dec_in = jnp.concatenate(
        [bim[:, None, :], jnp.zeros((B, T - 1, D), jnp.float32)], axis=1)
    hs, _ = lstm(jnp.transpose(dec_in, (1, 0, 2)), dwih, dwhh, db, dH)
    return jnp.transpose(hs, (1, 0, 2))                              # (B, T, F)


# ----------------------------------------------------------------------------
# Deterministic parameter initialization (synthetic weights, no checkpoint).
# Linear / LSTM weights are stored pre-transposed as (in_features, out_features).
# ----------------------------------------------------------------------------
def init_params(key, n_features, d_model, d_ff):
    keys = iter(jax.random.split(key, 80))

    def linear(din, dout):
        w = jax.random.normal(next(keys), (din, dout), jnp.float32) / jnp.sqrt(float(din))
        b = jax.random.normal(next(keys), (1, dout), jnp.float32) * 0.01
        return w, b

    def lstm(din, h):
        wih = jax.random.normal(next(keys), (din, 4 * h), jnp.float32) / jnp.sqrt(float(h))
        whh = jax.random.normal(next(keys), (h, 4 * h), jnp.float32) / jnp.sqrt(float(h))
        b = jax.random.normal(next(keys), (1, 4 * h), jnp.float32) * 0.01
        return wih, whh, b

    wq, bq = linear(d_model, d_model)
    wk, bk = linear(d_model, d_model)
    wv, bv = linear(d_model, d_model)
    wo, bo = linear(d_model, d_model)

    tb_w1, tb_b1 = linear(73, 64)
    tb_w2, tb_b2 = linear(64, d_model)

    ef_w1, ef_b1 = linear(d_model, d_ff)
    ef_w2, ef_b2 = linear(d_ff, d_model)
    bf_w1, bf_b1 = linear(d_model, d_ff)
    bf_w2, bf_b2 = linear(d_ff, d_model)

    return {
        "enc_rnn1": lstm(n_features, d_model),
        "enc_norm": (jnp.ones((1, d_model), jnp.float32),
                     jnp.zeros((1, d_model), jnp.float32)),
        "enc_rnn2_l0": lstm(d_model, d_model),
        "enc_rnn2_l1": lstm(d_model, d_model),
        "tb_enc": (tb_w1, tb_b1, tb_w2, tb_b2),
        "attn": (wq, bq, wk, bk, wv, bv, wo, bo),
        "enc_ffn": (ef_w1, ef_b1, ef_w2, ef_b2),
        "bimodal_ffn": (bf_w1, bf_b1, bf_w2, bf_b2),
        "dec_rnn": lstm(d_model, n_features),
    }


if __name__ == "__main__":
    B = 2          # batch
    T = 8          # seq_len
    F = 8          # n_features
    D = 128        # ts_embedding_dim (d_model)
    DFF = 4 * D    # FFN hidden

    key = jax.random.PRNGKey(0)
    k_ts, k_tb, k_p = jax.random.split(key, 3)
    ts_x = jax.random.normal(k_ts, (B, T, F), jnp.float32)
    tb_x = jax.random.normal(k_tb, (B, 73), jnp.float32)
    params = init_params(k_p, F, D, DFF)

    fwd = jax.jit(functools.partial(bimodal_ae_forward, params=params))
    out = fwd(ts_x, tb_x)
    out = jax.block_until_ready(out)
    assert out.shape == (B, T, F), out.shape
    assert bool(jnp.all(jnp.isfinite(out)))

    # Sanity-check against a pure-JAX reference of the same math.
    with jax.default_matmul_precision("highest"):
        ref = jax.block_until_ready(reference_forward(ts_x, tb_x, params))
    max_err = float(jnp.max(jnp.abs(out - ref)))
    assert max_err < 1e-2, f"kernel/reference mismatch, max abs err = {max_err}"

    print("KERNEL_OK")
</pallas_src>

<mosaic_0001>
module attributes {stable_mosaic.version = 11 : i64} {
  func.func @fused_forward_kernel(%arg0: memref<16x8xf32, #tpu.memory_space<vmem>>, %arg1: memref<2x73xf32, #tpu.memory_space<vmem>>, %arg2: memref<8x512xf32, #tpu.memory_space<vmem>>, %arg3: memref<128x512xf32, #tpu.memory_space<vmem>>, %arg4: memref<1x512xf32, #tpu.memory_space<vmem>>, %arg5: memref<1x128xf32, #tpu.memory_space<vmem>>, %arg6: memref<1x128xf32, #tpu.memory_space<vmem>>, %arg7: memref<128x512xf32, #tpu.memory_space<vmem>>, %arg8: memref<128x512xf32, #tpu.memory_space<vmem>>, %arg9: memref<1x512xf32, #tpu.memory_space<vmem>>, %arg10: memref<128x512xf32, #tpu.memory_space<vmem>>, %arg11: memref<128x512xf32, #tpu.memory_space<vmem>>, %arg12: memref<1x512xf32, #tpu.memory_space<vmem>>, %arg13: memref<73x64xf32, #tpu.memory_space<vmem>>, %arg14: memref<1x64xf32, #tpu.memory_space<vmem>>, %arg15: memref<64x128xf32, #tpu.memory_space<vmem>>, %arg16: memref<1x128xf32, #tpu.memory_space<vmem>>, %arg17: memref<128x128xf32, #tpu.memory_space<vmem>>, %arg18: memref<1x128xf32, #tpu.memory_space<vmem>>, %arg19: memref<128x128xf32, #tpu.memory_space<vmem>>, %arg20: memref<1x128xf32, #tpu.memory_space<vmem>>, %arg21: memref<128x128xf32, #tpu.memory_space<vmem>>, %arg22: memref<1x128xf32, #tpu.memory_space<vmem>>, %arg23: memref<128x128xf32, #tpu.memory_space<vmem>>, %arg24: memref<1x128xf32, #tpu.memory_space<vmem>>, %arg25: memref<128x512xf32, #tpu.memory_space<vmem>>, %arg26: memref<1x512xf32, #tpu.memory_space<vmem>>, %arg27: memref<512x128xf32, #tpu.memory_space<vmem>>, %arg28: memref<1x128xf32, #tpu.memory_space<vmem>>, %arg29: memref<128x512xf32, #tpu.memory_space<vmem>>, %arg30: memref<1x512xf32, #tpu.memory_space<vmem>>, %arg31: memref<512x128xf32, #tpu.memory_space<vmem>>, %arg32: memref<1x128xf32, #tpu.memory_space<vmem>>, %arg33: memref<128x32xf32, #tpu.memory_space<vmem>>, %arg34: memref<8x32xf32, #tpu.memory_space<vmem>>, %arg35: memref<1x32xf32, #tpu.memory_space<vmem>>, %arg36: memref<2x64xf32, #tpu.memory_space<vmem>>) attributes {dimension_semantics = [], scalar_prefetch = 0 : i64, scratch_operands = 0 : i64, tpu.core_type = #tpu.core_type<tc>} {
    %c0 = arith.constant 0 : index
    %c0_0 = arith.constant 0 : index
    %0 = vector.load %arg0[%c0, %c0_0] : memref<16x8xf32, #tpu.memory_space<vmem>>, vector<16x8xf32>
    %c0_1 = arith.constant 0 : index
    %c0_2 = arith.constant 0 : index
    %1 = vector.load %arg2[%c0_1, %c0_2] : memref<8x512xf32, #tpu.memory_space<vmem>>, vector<8x512xf32>
    %cst = arith.constant dense<0.000000e+00> : vector<16x512xf32>
    %2 = tpu.matmul %0, %1, %cst {dimension_numbers = #tpu.dot_dimension_numbers<[1], [0], [0], [1], [0, 0, 1, 1], [], []>} : vector<16x8xf32>, vector<8x512xf32>, vector<16x512xf32> -> vector<16x512xf32>
    %c0_3 = arith.constant 0 : index
    %c0_4 = arith.constant 0 : index
    %3 = vector.load %arg4[%c0_3, %c0_4] : memref<1x512xf32, #tpu.memory_space<vmem>>, vector<1x512xf32>
    %4 = vector.broadcast %3 : vector<1x512xf32> to vector<16x512xf32>
    %5 = arith.addf %2, %4 : vector<16x512xf32>
    %c0_5 = arith.constant 0 : index
    %c0_6 = arith.constant 0 : index
    %6 = vector.load %arg3[%c0_5, %c0_6] : memref<128x512xf32, #tpu.memory_space<vmem>>, vector<128x512xf32>
    %cst_7 = arith.constant 0.000000e+00 : f32
    %7 = vector.broadcast %cst_7 : f32 to vector<2x128xf32>
    %cst_8 = arith.constant 0.000000e+00 : f32
    %8 = vector.broadcast %cst_8 : f32 to vector<2x128xf32>
    %9 = vector.extract_strided_slice %5 {offsets = [0, 0], sizes = [2, 512], strides = [1, 1]} : vector<16x512xf32> to vector<2x512xf32>
    %cst_9 = arith.constant dense<0.000000e+00> : vector<2x512xf32>
    %10 = tpu.matmul %7, %6, %cst_9 {dimension_numbers = #tpu.dot_dimension_numbers<[1], [0], [0], [1], [0, 0, 1, 1], [], []>} : vector<2x128xf32>, vector<128x512xf32>, vector<2x512xf32> -> vector<2x512xf32>
    %11 = arith.addf %9, %10 : vector<2x512xf32>
    %12 = vector.extract_strided_slice %11 {offsets = [0, 0], sizes = [2, 128], strides = [1, 1]} : vector<2x512xf32> to vector<2x128xf32>
    %13 = arith.negf %12 : vector<2x128xf32>
    %14 = math.exp %13 : vector<2x128xf32>
    %cst_10 = arith.constant 1.000000e+00 : f32
    %15 = vector.broadcast %cst_10 : f32 to vector<2x128xf32>
    %16 = arith.addf %15, %14 : vector<2x128xf32>
    %17 = arith.divf %15, %16 : vector<2x128xf32>
    %18 = vector.extract_strided_slice %11 {offsets = [0, 128], sizes = [2, 128], strides = [1, 1]} : vector<2x512xf32> to vector<2x128xf32>
    %19 = arith.negf %18 : vector<2x128xf32>
    %20 = math.exp %19 : vector<2x128xf32>
    %cst_11 = arith.constant 1.000000e+00 : f32
    %21 = vector.broadcast %cst_11 : f32 to vector<2x128xf32>
    %22 = arith.addf %21, %20 : vector<2x128xf32>
    %23 = arith.divf %21, %22 : vector<2x128xf32>
    %24 = vector.extract_strided_slice %11 {offsets = [0, 256], sizes = [2, 128], strides = [1, 1]} : vector<2x512xf32> to vector<2x128xf32>
    %25 = math.tanh %24 : vector<2x128xf32>
    %26 = vector.extract_strided_slice %11 {offsets = [0, 384], sizes = [2, 128], strides = [1, 1]} : vector<2x512xf32> to vector<2x128xf32>
    %27 = arith.negf %26 : vector<2x128xf32>
    %28 = math.exp %27 : vector<2x128xf32>
    %cst_12 = arith.constant 1.000000e+00 : f32
    %29 = vector.broadcast %cst_12 : f32 to vector<2x128xf32>
    %30 = arith.addf %29, %28 : vector<2x128xf32>
    %31 = arith.divf %29, %30 : vector<2x128xf32>
    %32 = arith.mulf %23, %8 : vector<2x128xf32>
    %33 = arith.mulf %17, %25 : vector<2x128xf32>
    %34 = arith.addf %32, %33 : vector<2x128xf32>
    %35 = math.tanh %34 : vector<2x128xf32>
    %36 = arith.mulf %31, %35 : vector<2x128xf32>
    %37 = vector.extract_strided_slice %5 {offsets = [2, 0], sizes = [2, 512], strides = [1, 1]} : vector<16x512xf32> to vector<2x512xf32>
    %cst_13 = arith.constant dense<0.000000e+00> : vector<2x512xf32>
    %38 = tpu.matmul %36, %6, %cst_13 {dimension_numbers = #tpu.dot_dimension_numbers<[1], [0], [0], [1], [0, 0, 1, 1], [], []>} : vector<2x128xf32>, vector<128x512xf32>, vector<2x512xf32> -> vector<2x512xf32>
    %39 = arith.addf %37, %38 : vector<2x512xf32>
    %40 = vector.extract_strided_slice %39 {offsets = [0, 0], sizes = [2, 128], strides = [1, 1]} : vector<2x512xf32> to vector<2x128xf32>
    %41 = arith.negf %40 : vector<2x128xf32>
    %42 = math.exp %41 : vector<2x128xf32>
    %cst_14 = arith.constant 1.000000e+00 : f32
    %43 = vector.broadcast %cst_14 : f32 to vector<2x128xf32>
    %44 = arith.addf %43, %42 : vector<2x128xf32>
    %45 = arith.divf %43, %44 : vector<2x128xf32>
    %46 = vector.extract_strided_slice %39 {offsets = [0, 128], sizes = [2, 128], strides = [1, 1]} : vector<2x512xf32> to vector<2x128xf32>
    %47 = arith.negf %46 : vector<2x128xf32>
    %48 = math.exp %47 : vector<2x128xf32>
    %cst_15 = arith.constant 1.000000e+00 : f32
    %49 = vector.broadcast %cst_15 : f32 to vector<2x128xf32>
    %50 = arith.addf %49, %48 : vector<2x128xf32>
    %51 = arith.divf %49, %50 : vector<2x128xf32>
    %52 = vector.extract_strided_slice %39 {offsets = [0, 256], sizes = [2, 128], strides = [1, 1]} : vector<2x512xf32> to vector<2x128xf32>
    %53 = math.tanh %52 : vector<2x128xf32>
    %54 = vector.extract_strided_slice %39 {offsets = [0, 384], sizes = [2, 128], strides = [1, 1]} : vector<2x512xf32> to vector<2x128xf32>
    %55 = arith.negf %54 : vector<2x128xf32>
    %56 = math.exp %55 : vector<2x128xf32>
    %cst_16 = arith.constant 1.000000e+00 : f32
    %57 = vector.broadcast %cst_16 : f32 to vector<2x128xf32>
    %58 = arith.addf %57, %56 : vector<2x128xf32>
    %59 = arith.divf %57, %58 : vector<2x128xf32>
    %60 = arith.mulf %51, %34 : vector<2x128xf32>
    %61 = arith.mulf %45, %53 : vector<2x128xf32>
    %62 = arith.addf %60, %61 : vector<2x128xf32>
    %63 = math.tanh %62 : vector<2x128xf32>
    %64 = arith.mulf %59, %63 : vector<2x128xf32>
    %65 = vector.extract_strided_slice %5 {offsets = [4, 0], sizes = [2, 512], strides = [1, 1]} : vector<16x512xf32> to vector<2x512xf32>
    %cst_17 = arith.constant dense<0.000000e+00> : vector<2x512xf32>
    %66 = tpu.matmul %64, %6, %cst_17 {dimension_numbers = #tpu.dot_dimension_numbers<[1], [0], [0], [1], [0, 0, 1, 1], [], []>} : vector<2x128xf32>, vector<128x512xf32>, vector<2x512xf32> -> vector<2x512xf32>
    %67 = arith.addf %65, %66 : vector<2x512xf32>
    %68 = vector.extract_strided_slice %67 {offsets = [0, 0], sizes = [2, 128], strides = [1, 1]} : vector<2x512xf32> to vector<2x128xf32>
    %69 = arith.negf %68 : vector<2x128xf32>
    %70 = math.exp %69 : vector<2x128xf32>
    %cst_18 = arith.constant 1.000000e+00 : f32
    %71 = vector.broadcast %cst_18 : f32 to vector<2x128xf32>
    %72 = arith.addf %71, %70 : vector<2x128xf32>
    %73 = arith.divf %71, %72 : vector<2x128xf32>
    %74 = vector.extract_strided_slice %67 {offsets = [0, 128], sizes = [2, 128], strides = [1, 1]} : vector<2x512xf32> to vector<2x128xf32>
    %75 = arith.negf %74 : vector<2x128xf32>
    %76 = math.exp %75 : vector<2x128xf32>
    %cst_19 = arith.constant 1.000000e+00 : f32
    %77 = vector.broadcast %cst_19 : f32 to vector<2x128xf32>
    %78 = arith.addf %77, %76 : vector<2x128xf32>
    %79 = arith.divf %77, %78 : vector<2x128xf32>
    %80 = vector.extract_strided_slice %67 {offsets = [0, 256], sizes = [2, 128], strides = [1, 1]} : vector<2x512xf32> to vector<2x128xf32>
    %81 = math.tanh %80 : vector<2x128xf32>
    %82 = vector.extract_strided_slice %67 {offsets = [0, 384], sizes = [2, 128], strides = [1, 1]} : vector<2x512xf32> to vector<2x128xf32>
    %83 = arith.negf %82 : vector<2x128xf32>
    %84 = math.exp %83 : vector<2x128xf32>
    %cst_20 = arith.constant 1.000000e+00 : f32
    %85 = vector.broadcast %cst_20 : f32 to vector<2x128xf32>
    %86 = arith.addf %85, %84 : vector<2x128xf32>
    %87 = arith.divf %85, %86 : vector<2x128xf32>
    %88 = arith.mulf %79, %62 : vector<2x128xf32>
    %89 = arith.mulf %73, %81 : vector<2x128xf32>
    %90 = arith.addf %88, %89 : vector<2x128xf32>
    %91 = math.tanh %90 : vector<2x128xf32>
    %92 = arith.mulf %87, %91 : vector<2x128xf32>
    %93 = vector.extract_strided_slice %5 {offsets = [6, 0], sizes = [2, 512], strides = [1, 1]} : vector<16x512xf32> to vector<2x512xf32>
    %cst_21 = arith.constant dense<0.000000e+00> : vector<2x512xf32>
    %94 = tpu.matmul %92, %6, %cst_21 {dimension_numbers = #tpu.dot_dimension_numbers<[1], [0], [0], [1], [0, 0, 1, 1], [], []>} : vector<2x128xf32>, vector<128x512xf32>, vector<2x512xf32> -> vector<2x512xf32>
    %95 = arith.addf %93, %94 : vector<2x512xf32>
    %96 = vector.extract_strided_slice %95 {offsets = [0, 0], sizes = [2, 128], strides = [1, 1]} : vector<2x512xf32> to vector<2x128xf32>
    %97 = arith.negf %96 : vector<2x128xf32>
    %98 = math.exp %97 : vector<2x128xf32>
    %cst_22 = arith.constant 1.000000e+00 : f32
    %99 = vector.broadcast %cst_22 : f32 to vector<2x128xf32>
    %100 = arith.addf %99, %98 : vector<2x128xf32>
    %101 = arith.divf %99, %100 : vector<2x128xf32>
    %102 = vector.extract_strided_slice %95 {offsets = [0, 128], sizes = [2, 128], strides = [1, 1]} : vector<2x512xf32> to vector<2x128xf32>
    %103 = arith.negf %102 : vector<2x128xf32>
    %104 = math.exp %103 : vector<2x128xf32>
    %cst_23 = arith.constant 1.000000e+00 : f32
    %105 = vector.broadcast %cst_23 : f32 to vector<2x128xf32>
    %106 = arith.addf %105, %104 : vector<2x128xf32>
    %107 = arith.divf %105, %106 : vector<2x128xf32>
    %108 = vector.extract_strided_slice %95 {offsets = [0, 256], sizes = [2, 128], strides = [1, 1]} : vector<2x512xf32> to vector<2x128xf32>
    %109 = math.tanh %108 : vector<2x128xf32>
    %110 = vector.extract_strided_slice %95 {offsets = [0, 384], sizes = [2, 128], strides = [1, 1]} : vector<2x512xf32> to vector<2x128xf32>
    %111 = arith.negf %110 : vector<2x128xf32>
    %112 = math.exp %111 : vector<2x128xf32>
    %cst_24 = arith.constant 1.000000e+00 : f32
    %113 = vector.broadcast %cst_24 : f32 to vector<2x128xf32>
    %114 = arith.addf %113, %112 : vector<2x128xf32>
    %115 = arith.divf %113, %114 : vector<2x128xf32>
    %116 = arith.mulf %107, %90 : vector<2x128xf32>
    %117 = arith.mulf %101, %109 : vector<2x128xf32>
    %118 = arith.addf %116, %117 : vector<2x128xf32>
    %119 = math.tanh %118 : vector<2x128xf32>
    %120 = arith.mulf %115, %119 : vector<2x128xf32>
    %121 = vector.extract_strided_slice %5 {offsets = [8, 0], sizes = [2, 512], strides = [1, 1]} : vector<16x512xf32> to vector<2x512xf32>
    %cst_25 = arith.constant dense<0.000000e+00> : vector<2x512xf32>
    %122 = tpu.matmul %120, %6, %cst_25 {dimension_numbers = #tpu.dot_dimension_numbers<[1], [0], [0], [1], [0, 0, 1, 1], [], []>} : vector<2x128xf32>, vector<128x512xf32>, vector<2x512xf32> -> vector<2x512xf32>
    %123 = arith.addf %121, %122 : vector<2x512xf32>
    %124 = vector.extract_strided_slice %123 {offsets = [0, 0], sizes = [2, 128], strides = [1, 1]} : vector<2x512xf32> to vector<2x128xf32>
    %125 = arith.negf %124 : vector<2x128xf32>
    %126 = math.exp %125 : vector<2x128xf32>
    %cst_26 = arith.constant 1.000000e+00 : f32
    %127 = vector.broadcast %cst_26 : f32 to vector<2x128xf32>
    %128 = arith.addf %127, %126 : vector<2x128xf32>
    %129 = arith.divf %127, %128 : vector<2x128xf32>
    %130 = vector.extract_strided_slice %123 {offsets = [0, 128], sizes = [2, 128], strides = [1, 1]} : vector<2x512xf32> to vector<2x128xf32>
    %131 = arith.negf %130 : vector<2x128xf32>
    %132 = math.exp %131 : vector<2x128xf32>
    %cst_27 = arith.constant 1.000000e+00 : f32
    %133 = vector.broadcast %cst_27 : f32 to vector<2x128xf32>
    %134 = arith.addf %133, %132 : vector<2x128xf32>
    %135 = arith.divf %133, %134 : vector<2x128xf32>
    %136 = vector.extract_strided_slice %123 {offsets = [0, 256], sizes = [2, 128], strides = [1, 1]} : vector<2x512xf32> to vector<2x128xf32>
    %137 = math.tanh %136 : vector<2x128xf32>
    %138 = vector.extract_strided_slice %123 {offsets = [0, 384], sizes = [2, 128], strides = [1, 1]} : vector<2x512xf32> to vector<2x128xf32>
    %139 = arith.negf %138 : vector<2x128xf32>
    %140 = math.exp %139 : vector<2x128xf32>
    %cst_28 = arith.constant 1.000000e+00 : f32
    %141 = vector.broadcast %cst_28 : f32 to vector<2x128xf32>
    %142 = arith.addf %141, %140 : vector<2x128xf32>
    %143 = arith.divf %141, %142 : vector<2x128xf32>
    %144 = arith.mulf %135, %118 : vector<2x128xf32>
    %145 = arith.mulf %129, %137 : vector<2x128xf32>
    %146 = arith.addf %144, %145 : vector<2x128xf32>
    %147 = math.tanh %146 : vector<2x128xf32>
    %148 = arith.mulf %143, %147 : vector<2x128xf32>
    %149 = vector.extract_strided_slice %5 {offsets = [10, 0], sizes = [2, 512], strides = [1, 1]} : vector<16x512xf32> to vector<2x512xf32>
    %cst_29 = arith.constant dense<0.000000e+00> : vector<2x512xf32>
    %150 = tpu.matmul %148, %6, %cst_29 {dimension_numbers = #tpu.dot_dimension_numbers<[1], [0], [0], [1], [0, 0, 1, 1], [], []>} : vector<2x128xf32>, vector<128x512xf32>, vector<2x512xf32> -> vector<2x512xf32>
    %151 = arith.addf %149, %150 : vector<2x512xf32>
    %152 = vector.extract_strided_slice %151 {offsets = [0, 0], sizes = [2, 128], strides = [1, 1]} : vector<2x512xf32> to vector<2x128xf32>
    %153 = arith.negf %152 : vector<2x128xf32>
    %154 = math.exp %153 : vector<2x128xf32>
    %cst_30 = arith.constant 1.000000e+00 : f32
    %155 = vector.broadcast %cst_30 : f32 to vector<2x128xf32>
    %156 = arith.addf %155, %154 : vector<2x128xf32>
    %157 = arith.divf %155, %156 : vector<2x128xf32>
    %158 = vector.extract_strided_slice %151 {offsets = [0, 128], sizes = [2, 128], strides = [1, 1]} : vector<2x512xf32> to vector<2x128xf32>
    %159 = arith.negf %158 : vector<2x128xf32>
    %160 = math.exp %159 : vector<2x128xf32>
    %cst_31 = arith.constant 1.000000e+00 : f32
    %161 = vector.broadcast %cst_31 : f32 to vector<2x128xf32>
    %162 = arith.addf %161, %160 : vector<2x128xf32>
    %163 = arith.divf %161, %162 : vector<2x128xf32>
    %164 = vector.extract_strided_slice %151 {offsets = [0, 256], sizes = [2, 128], strides = [1, 1]} : vector<2x512xf32> to vector<2x128xf32>
    %165 = math.tanh %164 : vector<2x128xf32>
    %166 = vector.extract_strided_slice %151 {offsets = [0, 384], sizes = [2, 128], strides = [1, 1]} : vector<2x512xf32> to vector<2x128xf32>
    %167 = arith.negf %166 : vector<2x128xf32>
    %168 = math.exp %167 : vector<2x128xf32>
    %cst_32 = arith.constant 1.000000e+00 : f32
    %169 = vector.broadcast %cst_32 : f32 to vector<2x128xf32>
    %170 = arith.addf %169, %168 : vector<2x128xf32>
    %171 = arith.divf %169, %170 : vector<2x128xf32>
    %172 = arith.mulf %163, %146 : vector<2x128xf32>
    %173 = arith.mulf %157, %165 : vector<2x128xf32>
    %174 = arith.addf %172, %173 : vector<2x128xf32>
    %175 = math.tanh %174 : vector<2x128xf32>
    %176 = arith.mulf %171, %175 : vector<2x128xf32>
    %177 = vector.extract_strided_slice %5 {offsets = [12, 0], sizes = [2, 512], strides = [1, 1]} : vector<16x512xf32> to vector<2x512xf32>
    %cst_33 = arith.constant dense<0.000000e+00> : vector<2x512xf32>
    %178 = tpu.matmul %176, %6, %cst_33 {dimension_numbers = #tpu.dot_dimension_numbers<[1], [0], [0], [1], [0, 0, 1, 1], [], []>} : vector<2x128xf32>, vector<128x512xf32>, vector<2x512xf32> -> vector<2x512xf32>
    %179 = arith.addf %177, %178 : vector<2x512xf32>
    %180 = vector.extract_strided_slice %179 {offsets = [0, 0], sizes = [2, 128], strides = [1, 1]} : vector<2x512xf32> to vector<2x128xf32>
    %181 = arith.negf %180 : vector<2x128xf32>
    %182 = math.exp %181 : vector<2x128xf32>
    %cst_34 = arith.constant 1.000000e+00 : f32
    %183 = vector.broadcast %cst_34 : f32 to vector<2x128xf32>
    %184 = arith.addf %183, %182 : vector<2x128xf32>
    %185 = arith.divf %183, %184 : vector<2x128xf32>
    %186 = vector.extract_strided_slice %179 {offsets = [0, 128], sizes = [2, 128], strides = [1, 1]} : vector<2x512xf32> to vector<2x128xf32>
    %187 = arith.negf %186 : vector<2x128xf32>
    %188 = math.exp %187 : vector<2x128xf32>
    %cst_35 = arith.constant 1.000000e+00 : f32
    %189 = vector.broadcast %cst_35 : f32 to vector<2x128xf32>
    %190 = arith.addf %189, %188 : vector<2x128xf32>
    %191 = arith.divf %189, %190 : vector<2x128xf32>
    %192 = vector.extract_strided_slice %179 {offsets = [0, 256], sizes = [2, 128], strides = [1, 1]} : vector<2x512xf32> to vector<2x128xf32>
    %193 = math.tanh %192 : vector<2x128xf32>
    %194 = vector.extract_strided_slice %179 {offsets = [0, 384], sizes = [2, 128], strides = [1, 1]} : vector<2x512xf32> to vector<2x128xf32>
    %195 = arith.negf %194 : vector<2x128xf32>
    %196 = math.exp %195 : vector<2x128xf32>
    %cst_36 = arith.constant 1.000000e+00 : f32
    %197 = vector.broadcast %cst_36 : f32 to vector<2x128xf32>
    %198 = arith.addf %197, %196 : vector<2x128xf32>
    %199 = arith.divf %197, %198 : vector<2x128xf32>
    %200 = arith.mulf %191, %174 : vector<2x128xf32>
    %201 = arith.mulf %185, %193 : vector<2x128xf32>
    %202 = arith.addf %200, %201 : vector<2x128xf32>
    %203 = math.tanh %202 : vector<2x128xf32>
    %204 = arith.mulf %199, %203 : vector<2x128xf32>
    %205 = vector.extract_strided_slice %5 {offsets = [14, 0], sizes = [2, 512], strides = [1, 1]} : vector<16x512xf32> to vector<2x512xf32>
    %cst_37 = arith.constant dense<0.000000e+00> : vector<2x512xf32>
    %206 = tpu.matmul %204, %6, %cst_37 {dimension_numbers = #tpu.dot_dimension_numbers<[1], [0], [0], [1], [0, 0, 1, 1], [], []>} : vector<2x128xf32>, vector<128x512xf32>, vector<2x512xf32> -> vector<2x512xf32>
    %207 = arith.addf %205, %206 : vector<2x512xf32>
    %208 = vector.extract_strided_slice %207 {offsets = [0, 0], sizes = [2, 128], strides = [1, 1]} : vector<2x512xf32> to vector<2x128xf32>
    %209 = arith.negf %208 : vector<2x128xf32>
    %210 = math.exp %209 : vector<2x128xf32>
    %cst_38 = arith.constant 1.000000e+00 : f32
    %211 = vector.broadcast %cst_38 : f32 to vector<2x128xf32>
    %212 = arith.addf %211, %210 : vector<2x128xf32>
    %213 = arith.divf %211, %212 : vector<2x128xf32>
    %214 = vector.extract_strided_slice %207 {offsets = [0, 128], sizes = [2, 128], strides = [1, 1]} : vector<2x512xf32> to vector<2x128xf32>
    %215 = arith.negf %214 : vector<2x128xf32>
    %216 = math.exp %215 : vector<2x128xf32>
    %cst_39 = arith.constant 1.000000e+00 : f32
    %217 = vector.broadcast %cst_39 : f32 to vector<2x128xf32>
    %218 = arith.addf %217, %216 : vector<2x128xf32>
    %219 = arith.divf %217, %218 : vector<2x128xf32>
    %220 = vector.extract_strided_slice %207 {offsets = [0, 256], sizes = [2, 128], strides = [1, 1]} : vector<2x512xf32> to vector<2x128xf32>
    %221 = math.tanh %220 : vector<2x128xf32>
    %222 = vector.extract_strided_slice %207 {offsets = [0, 384], sizes = [2, 128], strides = [1, 1]} : vector<2x512xf32> to vector<2x128xf32>
    %223 = arith.negf %222 : vector<2x128xf32>
    %224 = math.exp %223 : vector<2x128xf32>
    %cst_40 = arith.constant 1.000000e+00 : f32
    %225 = vector.broadcast %cst_40 : f32 to vector<2x128xf32>
    %226 = arith.addf %225, %224 : vector<2x128xf32>
    %227 = arith.divf %225, %226 : vector<2x128xf32>
    %228 = arith.mulf %219, %202 : vector<2x128xf32>
    %229 = arith.mulf %213, %221 : vector<2x128xf32>
    %230 = arith.addf %228, %229 : vector<2x128xf32>
    %231 = math.tanh %230 : vector<2x128xf32>
    %232 = arith.mulf %227, %231 : vector<2x128xf32>
    %233 = tpu.concatenate %36, %64, %92, %120, %148, %176, %204, %232 in 0 : vector<2x128xf32>, vector<2x128xf32>, vector<2x128xf32>, vector<2x128xf32>, vector<2x128xf32>, vector<2x128xf32>, vector<2x128xf32>, vector<2x128xf32> -> vector<16x128xf32>
    %cst_41 = arith.constant dense<0.000000e+00> : vector<16xf32>
    %234 = vector.multi_reduction <add>, %233, %cst_41 [1] : vector<16x128xf32> to vector<16xf32>
    %235 = vector.shape_cast %234 : vector<16xf32> to vector<16x1xf32>
    %cst_42 = arith.constant 1.280000e+02 : f32
    %236 = vector.broadcast %cst_42 : f32 to vector<16x1xf32>
    %237 = arith.divf %235, %236 : vector<16x1xf32>
    %238 = vector.broadcast %237 : vector<16x1xf32> to vector<16x128xf32>
    %239 = arith.subf %233, %238 : vector<16x128xf32>
    %240 = arith.mulf %239, %239 : vector<16x128xf32>
    %cst_43 = arith.constant dense<0.000000e+00> : vector<16xf32>
    %241 = vector.multi_reduction <add>, %240, %cst_43 [1] : vector<16x128xf32> to vector<16xf32>
    %242 = vector.shape_cast %241 : vector<16xf32> to vector<16x1xf32>
    %cst_44 = arith.constant 1.280000e+02 : f32
    %243 = vector.broadcast %cst_44 : f32 to vector<16x1xf32>
    %244 = arith.divf %242, %243 : vector<16x1xf32>
    %245 = vector.broadcast %237 : vector<16x1xf32> to vector<16x128xf32>
    %246 = arith.subf %233, %245 : vector<16x128xf32>
    %cst_45 = arith.constant 9.99999974E-6 : f32
    %247 = vector.broadcast %cst_45 : f32 to vector<16x1xf32>
    %248 = arith.addf %244, %247 : vector<16x1xf32>
    %249 = math.rsqrt %248 : vector<16x1xf32>
    %250 = vector.broadcast %249 : vector<16x1xf32> to vector<16x128xf32>
    %251 = arith.mulf %246, %250 : vector<16x128xf32>
    %c0_46 = arith.constant 0 : index
    %c0_47 = arith.constant 0 : index
    %252 = vector.load %arg5[%c0_46, %c0_47] : memref<1x128xf32, #tpu.memory_space<vmem>>, vector<1x128xf32>
    %253 = vector.broadcast %252 : vector<1x128xf32> to vector<16x128xf32>
    %254 = arith.mulf %251, %253 : vector<16x128xf32>
    %c0_48 = arith.constant 0 : index
    %c0_49 = arith.constant 0 : index
    %255 = vector.load %arg6[%c0_48, %c0_49] : memref<1x128xf32, #tpu.memory_space<vmem>>, vector<1x128xf32>
    %256 = vector.broadcast %255 : vector<1x128xf32> to vector<16x128xf32>
    %257 = arith.addf %254, %256 : vector<16x128xf32>
    %c0_50 = arith.constant 0 : index
    %c0_51 = arith.constant 0 : index
    %258 = vector.load %arg7[%c0_50, %c0_51] : memref<128x512xf32, #tpu.memory_space<vmem>>, vector<128x512xf32>
    %cst_52 = arith.constant dense<0.000000e+00> : vector<16x512xf32>
    %259 = tpu.matmul %257, %258, %cst_52 {dimension_numbers = #tpu.dot_dimension_numbers<[1], [0], [0], [1], [0, 0, 1, 1], [], []>} : vector<16x128xf32>, vector<128x512xf32>, vector<16x512xf32> -> vector<16x512xf32>
    %c0_53 = arith.constant 0 : index
    %c0_54 = arith.constant 0 : index
    %260 = vector.load %arg9[%c0_53, %c0_54] : memref<1x512xf32, #tpu.memory_space<vmem>>, vector<1x512xf32>
    %261 = vector.broadcast %260 : vector<1x512xf32> to vector<16x512xf32>
    %262 = arith.addf %259, %261 : vector<16x512xf32>
    %c0_55 = arith.constant 0 : index
    %c0_56 = arith.constant 0 : index
    %263 = vector.load %arg8[%c0_55, %c0_56] : memref<128x512xf32, #tpu.memory_space<vmem>>, vector<128x512xf32>
    %cst_57 = arith.constant 0.000000e+00 : f32
    %264 = vector.broadcast %cst_57 : f32 to vector<2x128xf32>
    %cst_58 = arith.constant 0.000000e+00 : f32
    %265 = vector.broadcast %cst_58 : f32 to vector<2x128xf32>
    %266 = vector.extract_strided_slice %262 {offsets = [0, 0], sizes = [2, 512], strides = [1, 1]} : vector<16x512xf32> to vector<2x512xf32>
    %cst_59 = arith.constant dense<0.000000e+00> : vector<2x512xf32>
    %267 = tpu.matmul %264, %263, %cst_59 {dimension_numbers = #tpu.dot_dimension_numbers<[1], [0], [0], [1], [0, 0, 1, 1], [], []>} : vector<2x128xf32>, vector<128x512xf32>, vector<2x512xf32> -> vector<2x512xf32>
    %268 = arith.addf %266, %267 : vector<2x512xf32>
    %269 = vector.extract_strided_slice %268 {offsets = [0, 0], sizes = [2, 128], strides = [1, 1]} : vector<2x512xf32> to vector<2x128xf32>
    %270 = arith.negf %269 : vector<2x128xf32>
    %271 = math.exp %270 : vector<2x128xf32>
    %cst_60 = arith.constant 1.000000e+00 : f32
    %272 = vector.broadcast %cst_60 : f32 to vector<2x128xf32>
    %273 = arith.addf %272, %271 : vector<2x128xf32>
    %274 = arith.divf %272, %273 : vector<2x128xf32>
    %275 = vector.extract_strided_slice %268 {offsets = [0, 128], sizes = [2, 128], strides = [1, 1]} : vector<2x512xf32> to vector<2x128xf32>
    %276 = arith.negf %275 : vector<2x128xf32>
    %277 = math.exp %276 : vector<2x128xf32>
    %cst_61 = arith.constant 1.000000e+00 : f32
    %278 = vector.broadcast %cst_61 : f32 to vector<2x128xf32>
    %279 = arith.addf %278, %277 : vector<2x128xf32>
    %280 = arith.divf %278, %279 : vector<2x128xf32>
    %281 = vector.extract_strided_slice %268 {offsets = [0, 256], sizes = [2, 128], strides = [1, 1]} : vector<2x512xf32> to vector<2x128xf32>
    %282 = math.tanh %281 : vector<2x128xf32>
    %283 = vector.extract_strided_slice %268 {offsets = [0, 384], sizes = [2, 128], strides = [1, 1]} : vector<2x512xf32> to vector<2x128xf32>
    %284 = arith.negf %283 : vector<2x128xf32>
    %285 = math.exp %284 : vector<2x128xf32>
    %cst_62 = arith.constant 1.000000e+00 : f32
    %286 = vector.broadcast %cst_62 : f32 to vector<2x128xf32>
    %287 = arith.addf %286, %285 : vector<2x128xf32>
    %288 = arith.divf %286, %287 : vector<2x128xf32>
    %289 = arith.mulf %280, %265 : vector<2x128xf32>
    %290 = arith.mulf %274, %282 : vector<2x128xf32>
    %291 = arith.addf %289, %290 : vector<2x128xf32>
    %292 = math.tanh %291 : vector<2x128xf32>
    %293 = arith.mulf %288, %292 : vector<2x128xf32>
    %294 = vector.extract_strided_slice %262 {offsets = [2, 0], sizes = [2, 512], strides = [1, 1]} : vector<16x512xf32> to vector<2x512xf32>
    %cst_63 = arith.constant dense<0.000000e+00> : vector<2x512xf32>
    %295 = tpu.matmul %293, %263, %cst_63 {dimension_numbers = #tpu.dot_dimension_numbers<[1], [0], [0], [1], [0, 0, 1, 1], [], []>} : vector<2x128xf32>, vector<128x512xf32>, vector<2x512xf32> -> vector<2x512xf32>
    %296 = arith.addf %294, %295 : vector<2x512xf32>
    %297 = vector.extract_strided_slice %296 {offsets = [0, 0], sizes = [2, 128], strides = [1, 1]} : vector<2x512xf32> to vector<2x128xf32>
    %298 = arith.negf %297 : vector<2x128xf32>
    %299 = math.exp %298 : vector<2x128xf32>
    %cst_64 = arith.constant 1.000000e+00 : f32
    %300 = vector.broadcast %cst_64 : f32 to vector<2x128xf32>
    %301 = arith.addf %300, %299 : vector<2x128xf32>
    %302 = arith.divf %300, %301 : vector<2x128xf32>
    %303 = vector.extract_strided_slice %296 {offsets = [0, 128], sizes = [2, 128], strides = [1, 1]} : vector<2x512xf32> to vector<2x128xf32>
    %304 = arith.negf %303 : vector<2x128xf32>
    %305 = math.exp %304 : vector<2x128xf32>
    %cst_65 = arith.constant 1.000000e+00 : f32
    %306 = vector.broadcast %cst_65 : f32 to vector<2x128xf32>
    %307 = arith.addf %306, %305 : vector<2x128xf32>
    %308 = arith.divf %306, %307 : vector<2x128xf32>
    %309 = vector.extract_strided_slice %296 {offsets = [0, 256], sizes = [2, 128], strides = [1, 1]} : vector<2x512xf32> to vector<2x128xf32>
    %310 = math.tanh %309 : vector<2x128xf32>
    %311 = vector.extract_strided_slice %296 {offsets = [0, 384], sizes = [2, 128], strides = [1, 1]} : vector<2x512xf32> to vector<2x128xf32>
    %312 = arith.negf %311 : vector<2x128xf32>
    %313 = math.exp %312 : vector<2x128xf32>
    %cst_66 = arith.constant 1.000000e+00 : f32
    %314 = vector.broadcast %cst_66 : f32 to vector<2x128xf32>
    %315 = arith.addf %314, %313 : vector<2x128xf32>
    %316 = arith.divf %314, %315 : vector<2x128xf32>
    %317 = arith.mulf %308, %291 : vector<2x128xf32>
    %318 = arith.mulf %302, %310 : vector<2x128xf32>
    %319 = arith.addf %317, %318 : vector<2x128xf32>
    %320 = math.tanh %319 : vector<2x128xf32>
    %321 = arith.mulf %316, %320 : vector<2x128xf32>
    %322 = vector.extract_strided_slice %262 {offsets = [4, 0], sizes = [2, 512], strides = [1, 1]} : vector<16x512xf32> to vector<2x512xf32>
    %cst_67 = arith.constant dense<0.000000e+00> : vector<2x512xf32>
    %323 = tpu.matmul %321, %263, %cst_67 {dimension_numbers = #tpu.dot_dimension_numbers<[1], [0], [0], [1], [0, 0, 1, 1], [], []>} : vector<2x128xf32>, vector<128x512xf32>, vector<2x512xf32> -> vector<2x512xf32>
    %324 = arith.addf %322, %323 : vector<2x512xf32>
    %325 = vector.extract_strided_slice %324 {offsets = [0, 0], sizes = [2, 128], strides = [1, 1]} : vector<2x512xf32> to vector<2x128xf32>
    %326 = arith.negf %325 : vector<2x128xf32>
    %327 = math.exp %326 : vector<2x128xf32>
    %cst_68 = arith.constant 1.000000e+00 : f32
    %328 = vector.broadcast %cst_68 : f32 to vector<2x128xf32>
    %329 = arith.addf %328, %327 : vector<2x128xf32>
    %330 = arith.divf %328, %329 : vector<2x128xf32>
    %331 = vector.extract_strided_slice %324 {offsets = [0, 128], sizes = [2, 128], strides = [1, 1]} : vector<2x512xf32> to vector<2x128xf32>
    %332 = arith.negf %331 : vector<2x128xf32>
    %333 = math.exp %332 : vector<2x128xf32>
    %cst_69 = arith.constant 1.000000e+00 : f32
    %334 = vector.broadcast %cst_69 : f32 to vector<2x128xf32>
    %335 = arith.addf %334, %333 : vector<2x128xf32>
    %336 = arith.divf %334, %335 : vector<2x128xf32>
    %337 = vector.extract_strided_slice %324 {offsets = [0, 256], sizes = [2, 128], strides = [1, 1]} : vector<2x512xf32> to vector<2x128xf32>
    %338 = math.tanh %337 : vector<2x128xf32>
    %339 = vector.extract_strided_slice %324 {offsets = [0, 384], sizes = [2, 128], strides = [1, 1]} : vector<2x512xf32> to vector<2x128xf32>
    %340 = arith.negf %339 : vector<2x128xf32>
    %341 = math.exp %340 : vector<2x128xf32>
    %cst_70 = arith.constant 1.000000e+00 : f32
    %342 = vector.broadcast %cst_70 : f32 to vector<2x128xf32>
    %343 = arith.addf %342, %341 : vector<2x128xf32>
    %344 = arith.divf %342, %343 : vector<2x128xf32>
    %345 = arith.mulf %336, %319 : vector<2x128xf32>
    %346 = arith.mulf %330, %338 : vector<2x128xf32>
    %347 = arith.addf %345, %346 : vector<2x128xf32>
    %348 = math.tanh %347 : vector<2x128xf32>
    %349 = arith.mulf %344, %348 : vector<2x128xf32>
    %350 = vector.extract_strided_slice %262 {offsets = [6, 0], sizes = [2, 512], strides = [1, 1]} : vector<16x512xf32> to vector<2x512xf32>
    %cst_71 = arith.constant dense<0.000000e+00> : vector<2x512xf32>
    %351 = tpu.matmul %349, %263, %cst_71 {dimension_numbers = #tpu.dot_dimension_numbers<[1], [0], [0], [1], [0, 0, 1, 1], [], []>} : vector<2x128xf32>, vector<128x512xf32>, vector<2x512xf32> -> vector<2x512xf32>
    %352 = arith.addf %350, %351 : vector<2x512xf32>
    %353 = vector.extract_strided_slice %352 {offsets = [0, 0], sizes = [2, 128], strides = [1, 1]} : vector<2x512xf32> to vector<2x128xf32>
    %354 = arith.negf %353 : vector<2x128xf32>
    %355 = math.exp %354 : vector<2x128xf32>
    %cst_72 = arith.constant 1.000000e+00 : f32
    %356 = vector.broadcast %cst_72 : f32 to vector<2x128xf32>
    %357 = arith.addf %356, %355 : vector<2x128xf32>
    %358 = arith.divf %356, %357 : vector<2x128xf32>
    %359 = vector.extract_strided_slice %352 {offsets = [0, 128], sizes = [2, 128], strides = [1, 1]} : vector<2x512xf32> to vector<2x128xf32>
    %360 = arith.negf %359 : vector<2x128xf32>
    %361 = math.exp %360 : vector<2x128xf32>
    %cst_73 = arith.constant 1.000000e+00 : f32
    %362 = vector.broadcast %cst_73 : f32 to vector<2x128xf32>
    %363 = arith.addf %362, %361 : vector<2x128xf32>
    %364 = arith.divf %362, %363 : vector<2x128xf32>
    %365 = vector.extract_strided_slice %352 {offsets = [0, 256], sizes = [2, 128], strides = [1, 1]} : vector<2x512xf32> to vector<2x128xf32>
    %366 = math.tanh %365 : vector<2x128xf32>
    %367 = vector.extract_strided_slice %352 {offsets = [0, 384], sizes = [2, 128], strides = [1, 1]} : vector<2x512xf32> to vector<2x128xf32>
    %368 = arith.negf %367 : vector<2x128xf32>
    %369 = math.exp %368 : vector<2x128xf32>
    %cst_74 = arith.constant 1.000000e+00 : f32
    %370 = vector.broadcast %cst_74 : f32 to vector<2x128xf32>
    %371 = arith.addf %370, %369 : vector<2x128xf32>
    %372 = arith.divf %370, %371 : vector<2x128xf32>
    %373 = arith.mulf %364, %347 : vector<2x128xf32>
    %374 = arith.mulf %358, %366 : vector<2x128xf32>
    %375 = arith.addf %373, %374 : vector<2x128xf32>
    %376 = math.tanh %375 : vector<2x128xf32>
    %377 = arith.mulf %372, %376 : vector<2x128xf32>
    %378 = vector.extract_strided_slice %262 {offsets = [8, 0], sizes = [2, 512], strides = [1, 1]} : vector<16x512xf32> to vector<2x512xf32>
    %cst_75 = arith.constant dense<0.000000e+00> : vector<2x512xf32>
    %379 = tpu.matmul %377, %263, %cst_75 {dimension_numbers = #tpu.dot_dimension_numbers<[1], [0], [0], [1], [0, 0, 1, 1], [], []>} : vector<2x128xf32>, vector<128x512xf32>, vector<2x512xf32> -> vector<2x512xf32>
    %380 = arith.addf %378, %379 : vector<2x512xf32>
    %381 = vector.extract_strided_slice %380 {offsets = [0, 0], sizes = [2, 128], strides = [1, 1]} : vector<2x512xf32> to vector<2x128xf32>
    %382 = arith.negf %381 : vector<2x128xf32>
    %383 = math.exp %382 : vector<2x128xf32>
    %cst_76 = arith.constant 1.000000e+00 : f32
    %384 = vector.broadcast %cst_76 : f32 to vector<2x128xf32>
    %385 = arith.addf %384, %383 : vector<2x128xf32>
    %386 = arith.divf %384, %385 : vector<2x128xf32>
    %387 = vector.extract_strided_slice %380 {offsets = [0, 128], sizes = [2, 128], strides = [1, 1]} : vector<2x512xf32> to vector<2x128xf32>
    %388 = arith.negf %387 : vector<2x128xf32>
    %389 = math.exp %388 : vector<2x128xf32>
    %cst_77 = arith.constant 1.000000e+00 : f32
    %390 = vector.broadcast %cst_77 : f32 to vector<2x128xf32>
    %391 = arith.addf %390, %389 : vector<2x128xf32>
    %392 = arith.divf %390, %391 : vector<2x128xf32>
    %393 = vector.extract_strided_slice %380 {offsets = [0, 256], sizes = [2, 128], strides = [1, 1]} : vector<2x512xf32> to vector<2x128xf32>
    %394 = math.tanh %393 : vector<2x128xf32>
    %395 = vector.extract_strided_slice %380 {offsets = [0, 384], sizes = [2, 128], strides = [1, 1]} : vector<2x512xf32> to vector<2x128xf32>
    %396 = arith.negf %395 : vector<2x128xf32>
    %397 = math.exp %396 : vector<2x128xf32>
    %cst_78 = arith.constant 1.000000e+00 : f32
    %398 = vector.broadcast %cst_78 : f32 to vector<2x128xf32>
    %399 = arith.addf %398, %397 : vector<2x128xf32>
    %400 = arith.divf %398, %399 : vector<2x128xf32>
    %401 = arith.mulf %392, %375 : vector<2x128xf32>
    %402 = arith.mulf %386, %394 : vector<2x128xf32>
    %403 = arith.addf %401, %402 : vector<2x128xf32>
    %404 = math.tanh %403 : vector<2x128xf32>
    %405 = arith.mulf %400, %404 : vector<2x128xf32>
    %406 = vector.extract_strided_slice %262 {offsets = [10, 0], sizes = [2, 512], strides = [1, 1]} : vector<16x512xf32> to vector<2x512xf32>
    %cst_79 = arith.constant dense<0.000000e+00> : vector<2x512xf32>
    %407 = tpu.matmul %405, %263, %cst_79 {dimension_numbers = #tpu.dot_dimension_numbers<[1], [0], [0], [1], [0, 0, 1, 1], [], []>} : vector<2x128xf32>, vector<128x512xf32>, vector<2x512xf32> -> vector<2x512xf32>
    %408 = arith.addf %406, %407 : vector<2x512xf32>
    %409 = vector.extract_strided_slice %408 {offsets = [0, 0], sizes = [2, 128], strides = [1, 1]} : vector<2x512xf32> to vector<2x128xf32>
    %410 = arith.negf %409 : vector<2x128xf32>
    %411 = math.exp %410 : vector<2x128xf32>
    %cst_80 = arith.constant 1.000000e+00 : f32
    %412 = vector.broadcast %cst_80 : f32 to vector<2x128xf32>
    %413 = arith.addf %412, %411 : vector<2x128xf32>
    %414 = arith.divf %412, %413 : vector<2x128xf32>
    %415 = vector.extract_strided_slice %408 {offsets = [0, 128], sizes = [2, 128], strides = [1, 1]} : vector<2x512xf32> to vector<2x128xf32>
    %416 = arith.negf %415 : vector<2x128xf32>
    %417 = math.exp %416 : vector<2x128xf32>
    %cst_81 = arith.constant 1.000000e+00 : f32
    %418 = vector.broadcast %cst_81 : f32 to vector<2x128xf32>
    %419 = arith.addf %418, %417 : vector<2x128xf32>
    %420 = arith.divf %418, %419 : vector<2x128xf32>
    %421 = vector.extract_strided_slice %408 {offsets = [0, 256], sizes = [2, 128], strides = [1, 1]} : vector<2x512xf32> to vector<2x128xf32>
    %422 = math.tanh %421 : vector<2x128xf32>
    %423 = vector.extract_strided_slice %408 {offsets = [0, 384], sizes = [2, 128], strides = [1, 1]} : vector<2x512xf32> to vector<2x128xf32>
    %424 = arith.negf %423 : vector<2x128xf32>
    %425 = math.exp %424 : vector<2x128xf32>
    %cst_82 = arith.constant 1.000000e+00 : f32
    %426 = vector.broadcast %cst_82 : f32 to vector<2x128xf32>
    %427 = arith.addf %426, %425 : vector<2x128xf32>
    %428 = arith.divf %426, %427 : vector<2x128xf32>
    %429 = arith.mulf %420, %403 : vector<2x128xf32>
    %430 = arith.mulf %414, %422 : vector<2x128xf32>
    %431 = arith.addf %429, %430 : vector<2x128xf32>
    %432 = math.tanh %431 : vector<2x128xf32>
    %433 = arith.mulf %428, %432 : vector<2x128xf32>
    %434 = vector.extract_strided_slice %262 {offsets = [12, 0], sizes = [2, 512], strides = [1, 1]} : vector<16x512xf32> to vector<2x512xf32>
    %cst_83 = arith.constant dense<0.000000e+00> : vector<2x512xf32>
    %435 = tpu.matmul %433, %263, %cst_83 {dimension_numbers = #tpu.dot_dimension_numbers<[1], [0], [0], [1], [0, 0, 1, 1], [], []>} : vector<2x128xf32>, vector<128x512xf32>, vector<2x512xf32> -> vector<2x512xf32>
    %436 = arith.addf %434, %435 : vector<2x512xf32>
    %437 = vector.extract_strided_slice %436 {offsets = [0, 0], sizes = [2, 128], strides = [1, 1]} : vector<2x512xf32> to vector<2x128xf32>
    %438 = arith.negf %437 : vector<2x128xf32>
    %439 = math.exp %438 : vector<2x128xf32>
    %cst_84 = arith.constant 1.000000e+00 : f32
    %440 = vector.broadcast %cst_84 : f32 to vector<2x128xf32>
    %441 = arith.addf %440, %439 : vector<2x128xf32>
    %442 = arith.divf %440, %441 : vector<2x128xf32>
    %443 = vector.extract_strided_slice %436 {offsets = [0, 128], sizes = [2, 128], strides = [1, 1]} : vector<2x512xf32> to vector<2x128xf32>
    %444 = arith.negf %443 : vector<2x128xf32>
    %445 = math.exp %444 : vector<2x128xf32>
    %cst_85 = arith.constant 1.000000e+00 : f32
    %446 = vector.broadcast %cst_85 : f32 to vector<2x128xf32>
    %447 = arith.addf %446, %445 : vector<2x128xf32>
    %448 = arith.divf %446, %447 : vector<2x128xf32>
    %449 = vector.extract_strided_slice %436 {offsets = [0, 256], sizes = [2, 128], strides = [1, 1]} : vector<2x512xf32> to vector<2x128xf32>
    %450 = math.tanh %449 : vector<2x128xf32>
    %451 = vector.extract_strided_slice %436 {offsets = [0, 384], sizes = [2, 128], strides = [1, 1]} : vector<2x512xf32> to vector<2x128xf32>
    %452 = arith.negf %451 : vector<2x128xf32>
    %453 = math.exp %452 : vector<2x128xf32>
    %cst_86 = arith.constant 1.000000e+00 : f32
    %454 = vector.broadcast %cst_86 : f32 to vector<2x128xf32>
    %455 = arith.addf %454, %453 : vector<2x128xf32>
    %456 = arith.divf %454, %455 : vector<2x128xf32>
    %457 = arith.mulf %448, %431 : vector<2x128xf32>
    %458 = arith.mulf %442, %450 : vector<2x128xf32>
    %459 = arith.addf %457, %458 : vector<2x128xf32>
    %460 = math.tanh %459 : vector<2x128xf32>
    %461 = arith.mulf %456, %460 : vector<2x128xf32>
    %462 = vector.extract_strided_slice %262 {offsets = [14, 0], sizes = [2, 512], strides = [1, 1]} : vector<16x512xf32> to vector<2x512xf32>
    %cst_87 = arith.constant dense<0.000000e+00> : vector<2x512xf32>
    %463 = tpu.matmul %461, %263, %cst_87 {dimension_numbers = #tpu.dot_dimension_numbers<[1], [0], [0], [1], [0, 0, 1, 1], [], []>} : vector<2x128xf32>, vector<128x512xf32>, vector<2x512xf32> -> vector<2x512xf32>
    %464 = arith.addf %462, %463 : vector<2x512xf32>
    %465 = vector.extract_strided_slice %464 {offsets = [0, 0], sizes = [2, 128], strides = [1, 1]} : vector<2x512xf32> to vector<2x128xf32>
    %466 = arith.negf %465 : vector<2x128xf32>
    %467 = math.exp %466 : vector<2x128xf32>
    %cst_88 = arith.constant 1.000000e+00 : f32
    %468 = vector.broadcast %cst_88 : f32 to vector<2x128xf32>
    %469 = arith.addf %468, %467 : vector<2x128xf32>
    %470 = arith.divf %468, %469 : vector<2x128xf32>
    %471 = vector.extract_strided_slice %464 {offsets = [0, 128], sizes = [2, 128], strides = [1, 1]} : vector<2x512xf32> to vector<2x128xf32>
    %472 = arith.negf %471 : vector<2x128xf32>
    %473 = math.exp %472 : vector<2x128xf32>
    %cst_89 = arith.constant 1.000000e+00 : f32
    %474 = vector.broadcast %cst_89 : f32 to vector<2x128xf32>
    %475 = arith.addf %474, %473 : vector<2x128xf32>
    %476 = arith.divf %474, %475 : vector<2x128xf32>
    %477 = vector.extract_strided_slice %464 {offsets = [0, 256], sizes = [2, 128], strides = [1, 1]} : vector<2x512xf32> to vector<2x128xf32>
    %478 = math.tanh %477 : vector<2x128xf32>
    %479 = vector.extract_strided_slice %464 {offsets = [0, 384], sizes = [2, 128], strides = [1, 1]} : vector<2x512xf32> to vector<2x128xf32>
    %480 = arith.negf %479 : vector<2x128xf32>
    %481 = math.exp %480 : vector<2x128xf32>
    %cst_90 = arith.constant 1.000000e+00 : f32
    %482 = vector.broadcast %cst_90 : f32 to vector<2x128xf32>
    %483 = arith.addf %482, %481 : vector<2x128xf32>
    %484 = arith.divf %482, %483 : vector<2x128xf32>
    %485 = arith.mulf %476, %459 : vector<2x128xf32>
    %486 = arith.mulf %470, %478 : vector<2x128xf32>
    %487 = arith.addf %485, %486 : vector<2x128xf32>
    %488 = math.tanh %487 : vector<2x128xf32>
    %489 = arith.mulf %484, %488 : vector<2x128xf32>
    %490 = tpu.concatenate %293, %321, %349, %377, %405, %433, %461, %489 in 0 : vector<2x128xf32>, vector<2x128xf32>, vector<2x128xf32>, vector<2x128xf32>, vector<2x128xf32>, vector<2x128xf32>, vector<2x128xf32>, vector<2x128xf32> -> vector<16x128xf32>
    %c0_91 = arith.constant 0 : index
    %c0_92 = arith.constant 0 : index
    %491 = vector.load %arg10[%c0_91, %c0_92] : memref<128x512xf32, #tpu.memory_space<vmem>>, vector<128x512xf32>
    %cst_93 = arith.constant dense<0.000000e+00> : vector<16x512xf32>
    %492 = tpu.matmul %490, %491, %cst_93 {dimension_numbers = #tpu.dot_dimension_numbers<[1], [0], [0], [1], [0, 0, 1, 1], [], []>} : vector<16x128xf32>, vector<128x512xf32>, vector<16x512xf32> -> vector<16x512xf32>
    %c0_94 = arith.constant 0 : index
    %c0_95 = arith.constant 0 : index
    %493 = vector.load %arg12[%c0_94, %c0_95] : memref<1x512xf32, #tpu.memory_space<vmem>>, vector<1x512xf32>
    %494 = vector.broadcast %493 : vector<1x512xf32> to vector<16x512xf32>
    %495 = arith.addf %492, %494 : vector<16x512xf32>
    %c0_96 = arith.constant 0 : index
    %c0_97 = arith.constant 0 : index
    %496 = vector.load %arg11[%c0_96, %c0_97] : memref<128x512xf32, #tpu.memory_space<vmem>>, vector<128x512xf32>
    %cst_98 = arith.constant 0.000000e+00 : f32
    %497 = vector.broadcast %cst_98 : f32 to vector<2x128xf32>
    %cst_99 = arith.constant 0.000000e+00 : f32
    %498 = vector.broadcast %cst_99 : f32 to vector<2x128xf32>
    %499 = vector.extract_strided_slice %495 {offsets = [0, 0], sizes = [2, 512], strides = [1, 1]} : vector<16x512xf32> to vector<2x512xf32>
    %cst_100 = arith.constant dense<0.000000e+00> : vector<2x512xf32>
    %500 = tpu.matmul %497, %496, %cst_100 {dimension_numbers = #tpu.dot_dimension_numbers<[1], [0], [0], [1], [0, 0, 1, 1], [], []>} : vector<2x128xf32>, vector<128x512xf32>, vector<2x512xf32> -> vector<2x512xf32>
    %501 = arith.addf %499, %500 : vector<2x512xf32>
    %502 = vector.extract_strided_slice %501 {offsets = [0, 0], sizes = [2, 128], strides = [1, 1]} : vector<2x512xf32> to vector<2x128xf32>
    %503 = arith.negf %502 : vector<2x128xf32>
    %504 = math.exp %503 : vector<2x128xf32>
    %cst_101 = arith.constant 1.000000e+00 : f32
    %505 = vector.broadcast %cst_101 : f32 to vector<2x128xf32>
    %506 = arith.addf %505, %504 : vector<2x128xf32>
    %507 = arith.divf %505, %506 : vector<2x128xf32>
    %508 = vector.extract_strided_slice %501 {offsets = [0, 128], sizes = [2, 128], strides = [1, 1]} : vector<2x512xf32> to vector<2x128xf32>
    %509 = arith.negf %508 : vector<2x128xf32>
    %510 = math.exp %509 : vector<2x128xf32>
    %cst_102 = arith.constant 1.000000e+00 : f32
    %511 = vector.broadcast %cst_102 : f32 to vector<2x128xf32>
    %512 = arith.addf %511, %510 : vector<2x128xf32>
    %513 = arith.divf %511, %512 : vector<2x128xf32>
    %514 = vector.extract_strided_slice %501 {offsets = [0, 256], sizes = [2, 128], strides = [1, 1]} : vector<2x512xf32> to vector<2x128xf32>
    %515 = math.tanh %514 : vector<2x128xf32>
    %516 = vector.extract_strided_slice %501 {offsets = [0, 384], sizes = [2, 128], strides = [1, 1]} : vector<2x512xf32> to vector<2x128xf32>
    %517 = arith.negf %516 : vector<2x128xf32>
    %518 = math.exp %517 : vector<2x128xf32>
    %cst_103 = arith.constant 1.000000e+00 : f32
    %519 = vector.broadcast %cst_103 : f32 to vector<2x128xf32>
    %520 = arith.addf %519, %518 : vector<2x128xf32>
    %521 = arith.divf %519, %520 : vector<2x128xf32>
    %522 = arith.mulf %513, %498 : vector<2x128xf32>
    %523 = arith.mulf %507, %515 : vector<2x128xf32>
    %524 = arith.addf %522, %523 : vector<2x128xf32>
    %525 = math.tanh %524 : vector<2x128xf32>
    %526 = arith.mulf %521, %525 : vector<2x128xf32>
    %527 = vector.extract_strided_slice %495 {offsets = [2, 0], sizes = [2, 512], strides = [1, 1]} : vector<16x512xf32> to vector<2x512xf32>
    %cst_104 = arith.constant dense<0.000000e+00> : vector<2x512xf32>
    %528 = tpu.matmul %526, %496, %cst_104 {dimension_numbers = #tpu.dot_dimension_numbers<[1], [0], [0], [1], [0, 0, 1, 1], [], []>} : vector<2x128xf32>, vector<128x512xf32>, vector<2x512xf32> -> vector<2x512xf32>
    %529 = arith.addf %527, %528 : vector<2x512xf32>
    %530 = vector.extract_strided_slice %529 {offsets = [0, 0], sizes = [2, 128], strides = [1, 1]} : vector<2x512xf32> to vector<2x128xf32>
    %531 = arith.negf %530 : vector<2x128xf32>
    %532 = math.exp %531 : vector<2x128xf32>
    %cst_105 = arith.constant 1.000000e+00 : f32
    %533 = vector.broadcast %cst_105 : f32 to vector<2x128xf32>
    %534 = arith.addf %533, %532 : vector<2x128xf32>
    %535 = arith.divf %533, %534 : vector<2x128xf32>
    %536 = vector.extract_strided_slice %529 {offsets = [0, 128], sizes = [2, 128], strides = [1, 1]} : vector<2x512xf32> to vector<2x128xf32>
    %537 = arith.negf %536 : vector<2x128xf32>
    %538 = math.exp %537 : vector<2x128xf32>
    %cst_106 = arith.constant 1.000000e+00 : f32
    %539 = vector.broadcast %cst_106 : f32 to vector<2x128xf32>
    %540 = arith.addf %539, %538 : vector<2x128xf32>
    %541 = arith.divf %539, %540 : vector<2x128xf32>
    %542 = vector.extract_strided_slice %529 {offsets = [0, 256], sizes = [2, 128], strides = [1, 1]} : vector<2x512xf32> to vector<2x128xf32>
    %543 = math.tanh %542 : vector<2x128xf32>
    %544 = vector.extract_strided_slice %529 {offsets = [0, 384], sizes = [2, 128], strides = [1, 1]} : vector<2x512xf32> to vector<2x128xf32>
    %545 = arith.negf %544 : vector<2x128xf32>
    %546 = math.exp %545 : vector<2x128xf32>
    %cst_107 = arith.constant 1.000000e+00 : f32
    %547 = vector.broadcast %cst_107 : f32 to vector<2x128xf32>
    %548 = arith.addf %547, %546 : vector<2x128xf32>
    %549 = arith.divf %547, %548 : vector<2x128xf32>
    %550 = arith.mulf %541, %524 : vector<2x128xf32>
    %551 = arith.mulf %535, %543 : vector<2x128xf32>
    %552 = arith.addf %550, %551 : vector<2x128xf32>
    %553 = math.tanh %552 : vector<2x128xf32>
    %554 = arith.mulf %549, %553 : vector<2x128xf32>
    %555 = vector.extract_strided_slice %495 {offsets = [4, 0], sizes = [2, 512], strides = [1, 1]} : vector<16x512xf32> to vector<2x512xf32>
    %cst_108 = arith.constant dense<0.000000e+00> : vector<2x512xf32>
    %556 = tpu.matmul %554, %496, %cst_108 {dimension_numbers = #tpu.dot_dimension_numbers<[1], [0], [0], [1], [0, 0, 1, 1], [], []>} : vector<2x128xf32>, vector<128x512xf32>, vector<2x512xf32> -> vector<2x512xf32>
    %557 = arith.addf %555, %556 : vector<2x512xf32>
    %558 = vector.extract_strided_slice %557 {offsets = [0, 0], sizes = [2, 128], strides = [1, 1]} : vector<2x512xf32> to vector<2x128xf32>
    %559 = arith.negf %558 : vector<2x128xf32>
    %560 = math.exp %559 : vector<2x128xf32>
    %cst_109 = arith.constant 1.000000e+00 : f32
    %561 = vector.broadcast %cst_109 : f32 to vector<2x128xf32>
    %562 = arith.addf %561, %560 : vector<2x128xf32>
    %563 = arith.divf %561, %562 : vector<2x128xf32>
    %564 = vector.extract_strided_slice %557 {offsets = [0, 128], sizes = [2, 128], strides = [1, 1]} : vector<2x512xf32> to vector<2x128xf32>
    %565 = arith.negf %564 : vector<2x128xf32>
    %566 = math.exp %565 : vector<2x128xf32>
    %cst_110 = arith.constant 1.000000e+00 : f32
    %567 = vector.broadcast %cst_110 : f32 to vector<2x128xf32>
    %568 = arith.addf %567, %566 : vector<2x128xf32>
    %569 = arith.divf %567, %568 : vector<2x128xf32>
    %570 = vector.extract_strided_slice %557 {offsets = [0, 256], sizes = [2, 128], strides = [1, 1]} : vector<2x512xf32> to vector<2x128xf32>
    %571 = math.tanh %570 : vector<2x128xf32>
    %572 = vector.extract_strided_slice %557 {offsets = [0, 384], sizes = [2, 128], strides = [1, 1]} : vector<2x512xf32> to vector<2x128xf32>
    %573 = arith.negf %572 : vector<2x128xf32>
    %574 = math.exp %573 : vector<2x128xf32>
    %cst_111 = arith.constant 1.000000e+00 : f32
    %575 = vector.broadcast %cst_111 : f32 to vector<2x128xf32>
    %576 = arith.addf %575, %574 : vector<2x128xf32>
    %577 = arith.divf %575, %576 : vector<2x128xf32>
    %578 = arith.mulf %569, %552 : vector<2x128xf32>
    %579 = arith.mulf %563, %571 : vector<2x128xf32>
    %580 = arith.addf %578, %579 : vector<2x128xf32>
    %581 = math.tanh %580 : vector<2x128xf32>
    %582 = arith.mulf %577, %581 : vector<2x128xf32>
    %583 = vector.extract_strided_slice %495 {offsets = [6, 0], sizes = [2, 512], strides = [1, 1]} : vector<16x512xf32> to vector<2x512xf32>
    %cst_112 = arith.constant dense<0.000000e+00> : vector<2x512xf32>
    %584 = tpu.matmul %582, %496, %cst_112 {dimension_numbers = #tpu.dot_dimension_numbers<[1], [0], [0], [1], [0, 0, 1, 1], [], []>} : vector<2x128xf32>, vector<128x512xf32>, vector<2x512xf32> -> vector<2x512xf32>
    %585 = arith.addf %583, %584 : vector<2x512xf32>
    %586 = vector.extract_strided_slice %585 {offsets = [0, 0], sizes = [2, 128], strides = [1, 1]} : vector<2x512xf32> to vector<2x128xf32>
    %587 = arith.negf %586 : vector<2x128xf32>
    %588 = math.exp %587 : vector<2x128xf32>
    %cst_113 = arith.constant 1.000000e+00 : f32
    %589 = vector.broadcast %cst_113 : f32 to vector<2x128xf32>
    %590 = arith.addf %589, %588 : vector<2x128xf32>
    %591 = arith.divf %589, %590 : vector<2x128xf32>
    %592 = vector.extract_strided_slice %585 {offsets = [0, 128], sizes = [2, 128], strides = [1, 1]} : vector<2x512xf32> to vector<2x128xf32>
    %593 = arith.negf %592 : vector<2x128xf32>
    %594 = math.exp %593 : vector<2x128xf32>
    %cst_114 = arith.constant 1.000000e+00 : f32
    %595 = vector.broadcast %cst_114 : f32 to vector<2x128xf32>
    %596 = arith.addf %595, %594 : vector<2x128xf32>
    %597 = arith.divf %595, %596 : vector<2x128xf32>
    %598 = vector.extract_strided_slice %585 {offsets = [0, 256], sizes = [2, 128], strides = [1, 1]} : vector<2x512xf32> to vector<2x128xf32>
    %599 = math.tanh %598 : vector<2x128xf32>
    %600 = vector.extract_strided_slice %585 {offsets = [0, 384], sizes = [2, 128], strides = [1, 1]} : vector<2x512xf32> to vector<2x128xf32>
    %601 = arith.negf %600 : vector<2x128xf32>
    %602 = math.exp %601 : vector<2x128xf32>
    %cst_115 = arith.constant 1.000000e+00 : f32
    %603 = vector.broadcast %cst_115 : f32 to vector<2x128xf32>
    %604 = arith.addf %603, %602 : vector<2x128xf32>
    %605 = arith.divf %603, %604 : vector<2x128xf32>
    %606 = arith.mulf %597, %580 : vector<2x128xf32>
    %607 = arith.mulf %591, %599 : vector<2x128xf32>
    %608 = arith.addf %606, %607 : vector<2x128xf32>
    %609 = math.tanh %608 : vector<2x128xf32>
    %610 = arith.mulf %605, %609 : vector<2x128xf32>
    %611 = vector.extract_strided_slice %495 {offsets = [8, 0], sizes = [2, 512], strides = [1, 1]} : vector<16x512xf32> to vector<2x512xf32>
    %cst_116 = arith.constant dense<0.000000e+00> : vector<2x512xf32>
    %612 = tpu.matmul %610, %496, %cst_116 {dimension_numbers = #tpu.dot_dimension_numbers<[1], [0], [0], [1], [0, 0, 1, 1], [], []>} : vector<2x128xf32>, vector<128x512xf32>, vector<2x512xf32> -> vector<2x512xf32>
    %613 = arith.addf %611, %612 : vector<2x512xf32>
    %614 = vector.extract_strided_slice %613 {offsets = [0, 0], sizes = [2, 128], strides = [1, 1]} : vector<2x512xf32> to vector<2x128xf32>
    %615 = arith.negf %614 : vector<2x128xf32>
    %616 = math.exp %615 : vector<2x128xf32>
    %cst_117 = arith.constant 1.000000e+00 : f32
    %617 = vector.broadcast %cst_117 : f32 to vector<2x128xf32>
    %618 = arith.addf %617, %616 : vector<2x128xf32>
    %619 = arith.divf %617, %618 : vector<2x128xf32>
    %620 = vector.extract_strided_slice %613 {offsets = [0, 128], sizes = [2, 128], strides = [1, 1]} : vector<2x512xf32> to vector<2x128xf32>
    %621 = arith.negf %620 : vector<2x128xf32>
    %622 = math.exp %621 : vector<2x128xf32>
    %cst_118 = arith.constant 1.000000e+00 : f32
    %623 = vector.broadcast %cst_118 : f32 to vector<2x128xf32>
    %624 = arith.addf %623, %622 : vector<2x128xf32>
    %625 = arith.divf %623, %624 : vector<2x128xf32>
    %626 = vector.extract_strided_slice %613 {offsets = [0, 256], sizes = [2, 128], strides = [1, 1]} : vector<2x512xf32> to vector<2x128xf32>
    %627 = math.tanh %626 : vector<2x128xf32>
    %628 = vector.extract_strided_slice %613 {offsets = [0, 384], sizes = [2, 128], strides = [1, 1]} : vector<2x512xf32> to vector<2x128xf32>
    %629 = arith.negf %628 : vector<2x128xf32>
    %630 = math.exp %629 : vector<2x128xf32>
    %cst_119 = arith.constant 1.000000e+00 : f32
    %631 = vector.broadcast %cst_119 : f32 to vector<2x128xf32>
    %632 = arith.addf %631, %630 : vector<2x128xf32>
    %633 = arith.divf %631, %632 : vector<2x128xf32>
    %634 = arith.mulf %625, %608 : vector<2x128xf32>
    %635 = arith.mulf %619, %627 : vector<2x128xf32>
    %636 = arith.addf %634, %635 : vector<2x128xf32>
    %637 = math.tanh %636 : vector<2x128xf32>
    %638 = arith.mulf %633, %637 : vector<2x128xf32>
    %639 = vector.extract_strided_slice %495 {offsets = [10, 0], sizes = [2, 512], strides = [1, 1]} : vector<16x512xf32> to vector<2x512xf32>
    %cst_120 = arith.constant dense<0.000000e+00> : vector<2x512xf32>
    %640 = tpu.matmul %638, %496, %cst_120 {dimension_numbers = #tpu.dot_dimension_numbers<[1], [0], [0], [1], [0, 0, 1, 1], [], []>} : vector<2x128xf32>, vector<128x512xf32>, vector<2x512xf32> -> vector<2x512xf32>
    %641 = arith.addf %639, %640 : vector<2x512xf32>
    %642 = vector.extract_strided_slice %641 {offsets = [0, 0], sizes = [2, 128], strides = [1, 1]} : vector<2x512xf32> to vector<2x128xf32>
    %643 = arith.negf %642 : vector<2x128xf32>
    %644 = math.exp %643 : vector<2x128xf32>
    %cst_121 = arith.constant 1.000000e+00 : f32
    %645 = vector.broadcast %cst_121 : f32 to vector<2x128xf32>
    %646 = arith.addf %645, %644 : vector<2x128xf32>
    %647 = arith.divf %645, %646 : vector<2x128xf32>
    %648 = vector.extract_strided_slice %641 {offsets = [0, 128], sizes = [2, 128], strides = [1, 1]} : vector<2x512xf32> to vector<2x128xf32>
    %649 = arith.negf %648 : vector<2x128xf32>
    %650 = math.exp %649 : vector<2x128xf32>
    %cst_122 = arith.constant 1.000000e+00 : f32
    %651 = vector.broadcast %cst_122 : f32 to vector<2x128xf32>
    %652 = arith.addf %651, %650 : vector<2x128xf32>
    %653 = arith.divf %651, %652 : vector<2x128xf32>
    %654 = vector.extract_strided_slice %641 {offsets = [0, 256], sizes = [2, 128], strides = [1, 1]} : vector<2x512xf32> to vector<2x128xf32>
    %655 = math.tanh %654 : vector<2x128xf32>
    %656 = vector.extract_strided_slice %641 {offsets = [0, 384], sizes = [2, 128], strides = [1, 1]} : vector<2x512xf32> to vector<2x128xf32>
    %657 = arith.negf %656 : vector<2x128xf32>
    %658 = math.exp %657 : vector<2x128xf32>
    %cst_123 = arith.constant 1.000000e+00 : f32
    %659 = vector.broadcast %cst_123 : f32 to vector<2x128xf32>
    %660 = arith.addf %659, %658 : vector<2x128xf32>
    %661 = arith.divf %659, %660 : vector<2x128xf32>
    %662 = arith.mulf %653, %636 : vector<2x128xf32>
    %663 = arith.mulf %647, %655 : vector<2x128xf32>
    %664 = arith.addf %662, %663 : vector<2x128xf32>
    %665 = math.tanh %664 : vector<2x128xf32>
    %666 = arith.mulf %661, %665 : vector<2x128xf32>
    %667 = vector.extract_strided_slice %495 {offsets = [12, 0], sizes = [2, 512], strides = [1, 1]} : vector<16x512xf32> to vector<2x512xf32>
    %cst_124 = arith.constant dense<0.000000e+00> : vector<2x512xf32>
    %668 = tpu.matmul %666, %496, %cst_124 {dimension_numbers = #tpu.dot_dimension_numbers<[1], [0], [0], [1], [0, 0, 1, 1], [], []>} : vector<2x128xf32>, vector<128x512xf32>, vector<2x512xf32> -> vector<2x512xf32>
    %669 = arith.addf %667, %668 : vector<2x512xf32>
    %670 = vector.extract_strided_slice %669 {offsets = [0, 0], sizes = [2, 128], strides = [1, 1]} : vector<2x512xf32> to vector<2x128xf32>
    %671 = arith.negf %670 : vector<2x128xf32>
    %672 = math.exp %671 : vector<2x128xf32>
    %cst_125 = arith.constant 1.000000e+00 : f32
    %673 = vector.broadcast %cst_125 : f32 to vector<2x128xf32>
    %674 = arith.addf %673, %672 : vector<2x128xf32>
    %675 = arith.divf %673, %674 : vector<2x128xf32>
    %676 = vector.extract_strided_slice %669 {offsets = [0, 128], sizes = [2, 128], strides = [1, 1]} : vector<2x512xf32> to vector<2x128xf32>
    %677 = arith.negf %676 : vector<2x128xf32>
    %678 = math.exp %677 : vector<2x128xf32>
    %cst_126 = arith.constant 1.000000e+00 : f32
    %679 = vector.broadcast %cst_126 : f32 to vector<2x128xf32>
    %680 = arith.addf %679, %678 : vector<2x128xf32>
    %681 = arith.divf %679, %680 : vector<2x128xf32>
    %682 = vector.extract_strided_slice %669 {offsets = [0, 256], sizes = [2, 128], strides = [1, 1]} : vector<2x512xf32> to vector<2x128xf32>
    %683 = math.tanh %682 : vector<2x128xf32>
    %684 = vector.extract_strided_slice %669 {offsets = [0, 384], sizes = [2, 128], strides = [1, 1]} : vector<2x512xf32> to vector<2x128xf32>
    %685 = arith.negf %684 : vector<2x128xf32>
    %686 = math.exp %685 : vector<2x128xf32>
    %cst_127 = arith.constant 1.000000e+00 : f32
    %687 = vector.broadcast %cst_127 : f32 to vector<2x128xf32>
    %688 = arith.addf %687, %686 : vector<2x128xf32>
    %689 = arith.divf %687, %688 : vector<2x128xf32>
    %690 = arith.mulf %681, %664 : vector<2x128xf32>
    %691 = arith.mulf %675, %683 : vector<2x128xf32>
    %692 = arith.addf %690, %691 : vector<2x128xf32>
    %693 = math.tanh %692 : vector<2x128xf32>
    %694 = arith.mulf %689, %693 : vector<2x128xf32>
    %695 = vector.extract_strided_slice %495 {offsets = [14, 0], sizes = [2, 512], strides = [1, 1]} : vector<16x512xf32> to vector<2x512xf32>
    %cst_128 = arith.constant dense<0.000000e+00> : vector<2x512xf32>
    %696 = tpu.matmul %694, %496, %cst_128 {dimension_numbers = #tpu.dot_dimension_numbers<[1], [0], [0], [1], [0, 0, 1, 1], [], []>} : vector<2x128xf32>, vector<128x512xf32>, vector<2x512xf32> -> vector<2x512xf32>
    %697 = arith.addf %695, %696 : vector<2x512xf32>
    %698 = vector.extract_strided_slice %697 {offsets = [0, 0], sizes = [2, 128], strides = [1, 1]} : vector<2x512xf32> to vector<2x128xf32>
    %699 = arith.negf %698 : vector<2x128xf32>
    %700 = math.exp %699 : vector<2x128xf32>
    %cst_129 = arith.constant 1.000000e+00 : f32
    %701 = vector.broadcast %cst_129 : f32 to vector<2x128xf32>
    %702 = arith.addf %701, %700 : vector<2x128xf32>
    %703 = arith.divf %701, %702 : vector<2x128xf32>
    %704 = vector.extract_strided_slice %697 {offsets = [0, 128], sizes = [2, 128], strides = [1, 1]} : vector<2x512xf32> to vector<2x128xf32>
    %705 = arith.negf %704 : vector<2x128xf32>
    %706 = math.exp %705 : vector<2x128xf32>
    %cst_130 = arith.constant 1.000000e+00 : f32
    %707 = vector.broadcast %cst_130 : f32 to vector<2x128xf32>
    %708 = arith.addf %707, %706 : vector<2x128xf32>
    %709 = arith.divf %707, %708 : vector<2x128xf32>
    %710 = vector.extract_strided_slice %697 {offsets = [0, 256], sizes = [2, 128], strides = [1, 1]} : vector<2x512xf32> to vector<2x128xf32>
    %711 = math.tanh %710 : vector<2x128xf32>
    %712 = arith.mulf %709, %692 : vector<2x128xf32>
    %713 = arith.mulf %703, %711 : vector<2x128xf32>
    %714 = arith.addf %712, %713 : vector<2x128xf32>
    %c0_131 = arith.constant 0 : index
    %c0_132 = arith.constant 0 : index
    %715 = vector.load %arg1[%c0_131, %c0_132] : memref<2x73xf32, #tpu.memory_space<vmem>>, vector<2x73xf32>
    %c0_133 = arith.constant 0 : index
    %c0_134 = arith.constant 0 : index
    %716 = vector.load %arg13[%c0_133, %c0_134] : memref<73x64xf32, #tpu.memory_space<vmem>>, vector<73x64xf32>
    %cst_135 = arith.constant dense<0.000000e+00> : vector<2x64xf32>
    %717 = tpu.matmul %715, %716, %cst_135 {dimension_numbers = #tpu.dot_dimension_numbers<[1], [0], [0], [1], [0, 0, 1, 1], [], []>} : vector<2x73xf32>, vector<73x64xf32>, vector<2x64xf32> -> vector<2x64xf32>
    %c0_136 = arith.constant 0 : index
    %c0_137 = arith.constant 0 : index
    %718 = vector.load %arg14[%c0_136, %c0_137] : memref<1x64xf32, #tpu.memory_space<vmem>>, vector<1x64xf32>
    %719 = vector.broadcast %718 : vector<1x64xf32> to vector<2x64xf32>
    %720 = arith.addf %717, %719 : vector<2x64xf32>
    %cst_138 = arith.constant 0.000000e+00 : f32
    %721 = vector.broadcast %cst_138 : f32 to vector<2x64xf32>
    %722 = arith.maximumf %720, %721 : vector<2x64xf32>
    %c0_139 = arith.constant 0 : index
    %c0_140 = arith.constant 0 : index
    %723 = vector.load %arg15[%c0_139, %c0_140] : memref<64x128xf32, #tpu.memory_space<vmem>>, vector<64x128xf32>
    %cst_141 = arith.constant dense<0.000000e+00> : vector<2x128xf32>
    %724 = tpu.matmul %722, %723, %cst_141 {dimension_numbers = #tpu.dot_dimension_numbers<[1], [0], [0], [1], [0, 0, 1, 1], [], []>} : vector<2x64xf32>, vector<64x128xf32>, vector<2x128xf32> -> vector<2x128xf32>
    %c0_142 = arith.constant 0 : index
    %c0_143 = arith.constant 0 : index
    %725 = vector.load %arg16[%c0_142, %c0_143] : memref<1x128xf32, #tpu.memory_space<vmem>>, vector<1x128xf32>
    %726 = vector.broadcast %725 : vector<1x128xf32> to vector<2x128xf32>
    %727 = arith.addf %724, %726 : vector<2x128xf32>
    %728 = tpu.concatenate %714, %727 in 0 : vector<2x128xf32>, vector<2x128xf32> -> vector<4x128xf32>
    %c0_144 = arith.constant 0 : index
    %c0_145 = arith.constant 0 : index
    %729 = vector.load %arg17[%c0_144, %c0_145] : memref<128x128xf32, #tpu.memory_space<vmem>>, vector<128x128xf32>
    %cst_146 = arith.constant dense<0.000000e+00> : vector<4x128xf32>
    %730 = tpu.matmul %728, %729, %cst_146 {dimension_numbers = #tpu.dot_dimension_numbers<[1], [0], [0], [1], [0, 0, 1, 1], [], []>} : vector<4x128xf32>, vector<128x128xf32>, vector<4x128xf32> -> vector<4x128xf32>
    %c0_147 = arith.constant 0 : index
    %c0_148 = arith.constant 0 : index
    %731 = vector.load %arg18[%c0_147, %c0_148] : memref<1x128xf32, #tpu.memory_space<vmem>>, vector<1x128xf32>
    %732 = vector.broadcast %731 : vector<1x128xf32> to vector<4x128xf32>
    %733 = arith.addf %730, %732 : vector<4x128xf32>
    %c0_149 = arith.constant 0 : index
    %c0_150 = arith.constant 0 : index
    %734 = vector.load %arg19[%c0_149, %c0_150] : memref<128x128xf32, #tpu.memory_space<vmem>>, vector<128x128xf32>
    %cst_151 = arith.constant dense<0.000000e+00> : vector<4x128xf32>
    %735 = tpu.matmul %728, %734, %cst_151 {dimension_numbers = #tpu.dot_dimension_numbers<[1], [0], [0], [1], [0, 0, 1, 1], [], []>} : vector<4x128xf32>, vector<128x128xf32>, vector<4x128xf32> -> vector<4x128xf32>
    %c0_152 = arith.constant 0 : index
    %c0_153 = arith.constant 0 : index
    %736 = vector.load %arg20[%c0_152, %c0_153] : memref<1x128xf32, #tpu.memory_space<vmem>>, vector<1x128xf32>
    %737 = vector.broadcast %736 : vector<1x128xf32> to vector<4x128xf32>
    %738 = arith.addf %735, %737 : vector<4x128xf32>
    %c0_154 = arith.constant 0 : index
    %c0_155 = arith.constant 0 : index
    %739 = vector.load %arg21[%c0_154, %c0_155] : memref<128x128xf32, #tpu.memory_space<vmem>>, vector<128x128xf32>
    %cst_156 = arith.constant dense<0.000000e+00> : vector<4x128xf32>
    %740 = tpu.matmul %728, %739, %cst_156 {dimension_numbers = #tpu.dot_dimension_numbers<[1], [0], [0], [1], [0, 0, 1, 1], [], []>} : vector<4x128xf32>, vector<128x128xf32>, vector<4x128xf32> -> vector<4x128xf32>
    %c0_157 = arith.constant 0 : index
    %c0_158 = arith.constant 0 : index
    %741 = vector.load %arg22[%c0_157, %c0_158] : memref<1x128xf32, #tpu.memory_space<vmem>>, vector<1x128xf32>
    %742 = vector.broadcast %741 : vector<1x128xf32> to vector<4x128xf32>
    %743 = arith.addf %740, %742 : vector<4x128xf32>
    %744 = vector.extract_strided_slice %733 {offsets = [0, 0], sizes = [2, 128], strides = [1, 1]} : vector<4x128xf32> to vector<2x128xf32>
    %745 = vector.extract_strided_slice %733 {offsets = [2, 0], sizes = [2, 128], strides = [1, 1]} : vector<4x128xf32> to vector<2x128xf32>
    %746 = vector.extract_strided_slice %738 {offsets = [0, 0], sizes = [2, 128], strides = [1, 1]} : vector<4x128xf32> to vector<2x128xf32>
    %747 = vector.extract_strided_slice %738 {offsets = [2, 0], sizes = [2, 128], strides = [1, 1]} : vector<4x128xf32> to vector<2x128xf32>
    %748 = vector.extract_strided_slice %743 {offsets = [0, 0], sizes = [2, 128], strides = [1, 1]} : vector<4x128xf32> to vector<2x128xf32>
    %749 = vector.extract_strided_slice %743 {offsets = [2, 0], sizes = [2, 128], strides = [1, 1]} : vector<4x128xf32> to vector<2x128xf32>
    %750 = arith.mulf %744, %746 : vector<2x128xf32>
    %cst_159 = arith.constant dense<0.000000e+00> : vector<2xf32>
    %751 = vector.multi_reduction <add>, %750, %cst_159 [1] : vector<2x128xf32> to vector<2xf32>
    %752 = vector.shape_cast %751 : vector<2xf32> to vector<2x1xf32>
    %cst_160 = arith.constant 0.0883883461 : f32
    %753 = vector.broadcast %cst_160 : f32 to vector<2x1xf32>
    %754 = arith.mulf %752, %753 : vector<2x1xf32>
    %755 = arith.mulf %744, %747 : vector<2x128xf32>
    %cst_161 = arith.constant dense<0.000000e+00> : vector<2xf32>
    %756 = vector.multi_reduction <add>, %755, %cst_161 [1] : vector<2x128xf32> to vector<2xf32>
    %757 = vector.shape_cast %756 : vector<2xf32> to vector<2x1xf32>
    %cst_162 = arith.constant 0.0883883461 : f32
    %758 = vector.broadcast %cst_162 : f32 to vector<2x1xf32>
    %759 = arith.mulf %757, %758 : vector<2x1xf32>
    %760 = arith.mulf %745, %746 : vector<2x128xf32>
    %cst_163 = arith.constant dense<0.000000e+00> : vector<2xf32>
    %761 = vector.multi_reduction <add>, %760, %cst_163 [1] : vector<2x128xf32> to vector<2xf32>
    %762 = vector.shape_cast %761 : vector<2xf32> to vector<2x1xf32>
    %cst_164 = arith.constant 0.0883883461 : f32
    %763 = vector.broadcast %cst_164 : f32 to vector<2x1xf32>
    %764 = arith.mulf %762, %763 : vector<2x1xf32>
    %765 = arith.mulf %745, %747 : vector<2x128xf32>
    %cst_165 = arith.constant dense<0.000000e+00> : vector<2xf32>
    %766 = vector.multi_reduction <add>, %765, %cst_165 [1] : vector<2x128xf32> to vector<2xf32>
    %767 = vector.shape_cast %766 : vector<2xf32> to vector<2x1xf32>
    %cst_166 = arith.constant 0.0883883461 : f32
    %768 = vector.broadcast %cst_166 : f32 to vector<2x1xf32>
    %769 = arith.mulf %767, %768 : vector<2x1xf32>
    %770 = arith.maximumf %754, %759 : vector<2x1xf32>
    %771 = arith.subf %754, %770 : vector<2x1xf32>
    %772 = math.exp %771 : vector<2x1xf32>
    %773 = arith.subf %759, %770 : vector<2x1xf32>
    %774 = math.exp %773 : vector<2x1xf32>
    %775 = arith.addf %772, %774 : vector<2x1xf32>
    %cst_167 = arith.constant 1.000000e+00 : f32
    %776 = vector.broadcast %cst_167 : f32 to vector<2x1xf32>
    %777 = arith.divf %776, %775 : vector<2x1xf32>
    %778 = arith.maximumf %764, %769 : vector<2x1xf32>
    %779 = arith.subf %764, %778 : vector<2x1xf32>
    %780 = math.exp %779 : vector<2x1xf32>
    %781 = arith.subf %769, %778 : vector<2x1xf32>
    %782 = math.exp %781 : vector<2x1xf32>
    %783 = arith.addf %780, %782 : vector<2x1xf32>
    %cst_168 = arith.constant 1.000000e+00 : f32
    %784 = vector.broadcast %cst_168 : f32 to vector<2x1xf32>
    %785 = arith.divf %784, %783 : vector<2x1xf32>
    %786 = arith.mulf %772, %777 : vector<2x1xf32>
    %787 = vector.broadcast %786 : vector<2x1xf32> to vector<2x128xf32>
    %788 = arith.mulf %787, %748 : vector<2x128xf32>
    %789 = arith.mulf %774, %777 : vector<2x1xf32>
    %790 = vector.broadcast %789 : vector<2x1xf32> to vector<2x128xf32>
    %791 = arith.mulf %790, %749 : vector<2x128xf32>
    %792 = arith.addf %788, %791 : vector<2x128xf32>
    %793 = arith.mulf %780, %785 : vector<2x1xf32>
    %794 = vector.broadcast %793 : vector<2x1xf32> to vector<2x128xf32>
    %795 = arith.mulf %794, %748 : vector<2x128xf32>
    %796 = arith.mulf %782, %785 : vector<2x1xf32>
    %797 = vector.broadcast %796 : vector<2x1xf32> to vector<2x128xf32>
    %798 = arith.mulf %797, %749 : vector<2x128xf32>
    %799 = arith.addf %795, %798 : vector<2x128xf32>
    %800 = tpu.concatenate %792, %799 in 0 : vector<2x128xf32>, vector<2x128xf32> -> vector<4x128xf32>
    %c0_169 = arith.constant 0 : index
    %c0_170 = arith.constant 0 : index
    %801 = vector.load %arg23[%c0_169, %c0_170] : memref<128x128xf32, #tpu.memory_space<vmem>>, vector<128x128xf32>
    %cst_171 = arith.constant dense<0.000000e+00> : vector<4x128xf32>
    %802 = tpu.matmul %800, %801, %cst_171 {dimension_numbers = #tpu.dot_dimension_numbers<[1], [0], [0], [1], [0, 0, 1, 1], [], []>} : vector<4x128xf32>, vector<128x128xf32>, vector<4x128xf32> -> vector<4x128xf32>
    %c0_172 = arith.constant 0 : index
    %c0_173 = arith.constant 0 : index
    %803 = vector.load %arg24[%c0_172, %c0_173] : memref<1x128xf32, #tpu.memory_space<vmem>>, vector<1x128xf32>
    %804 = vector.broadcast %803 : vector<1x128xf32> to vector<4x128xf32>
    %805 = arith.addf %802, %804 : vector<4x128xf32>
    %c0_174 = arith.constant 0 : index
    %c0_175 = arith.constant 0 : index
    %806 = vector.load %arg25[%c0_174, %c0_175] : memref<128x512xf32, #tpu.memory_space<vmem>>, vector<128x512xf32>
    %cst_176 = arith.constant dense<0.000000e+00> : vector<4x512xf32>
    %807 = tpu.matmul %805, %806, %cst_176 {dimension_numbers = #tpu.dot_dimension_numbers<[1], [0], [0], [1], [0, 0, 1, 1], [], []>} : vector<4x128xf32>, vector<128x512xf32>, vector<4x512xf32> -> vector<4x512xf32>
    %c0_177 = arith.constant 0 : index
    %c0_178 = arith.constant 0 : index
    %808 = vector.load %arg26[%c0_177, %c0_178] : memref<1x512xf32, #tpu.memory_space<vmem>>, vector<1x512xf32>
    %809 = vector.broadcast %808 : vector<1x512xf32> to vector<4x512xf32>
    %810 = arith.addf %807, %809 : vector<4x512xf32>
    %cst_179 = arith.constant 0.000000e+00 : f32
    %811 = vector.broadcast %cst_179 : f32 to vector<4x512xf32>
    %812 = arith.maximumf %810, %811 : vector<4x512xf32>
    %c0_180 = arith.constant 0 : index
    %c0_181 = arith.constant 0 : index
    %813 = vector.load %arg27[%c0_180, %c0_181] : memref<512x128xf32, #tpu.memory_space<vmem>>, vector<512x128xf32>
    %cst_182 = arith.constant dense<0.000000e+00> : vector<4x128xf32>
    %814 = tpu.matmul %812, %813, %cst_182 {dimension_numbers = #tpu.dot_dimension_numbers<[1], [0], [0], [1], [0, 0, 1, 1], [], []>} : vector<4x512xf32>, vector<512x128xf32>, vector<4x128xf32> -> vector<4x128xf32>
    %c0_183 = arith.constant 0 : index
    %c0_184 = arith.constant 0 : index
    %815 = vector.load %arg28[%c0_183, %c0_184] : memref<1x128xf32, #tpu.memory_space<vmem>>, vector<1x128xf32>
    %816 = vector.broadcast %815 : vector<1x128xf32> to vector<4x128xf32>
    %817 = arith.addf %814, %816 : vector<4x128xf32>
    %818 = vector.extract_strided_slice %817 {offsets = [0, 0], sizes = [2, 128], strides = [1, 1]} : vector<4x128xf32> to vector<2x128xf32>
    %819 = vector.extract_strided_slice %817 {offsets = [2, 0], sizes = [2, 128], strides = [1, 1]} : vector<4x128xf32> to vector<2x128xf32>
    %820 = arith.maximumf %818, %819 : vector<2x128xf32>
    %c0_185 = arith.constant 0 : index
    %c0_186 = arith.constant 0 : index
    %821 = vector.load %arg29[%c0_185, %c0_186] : memref<128x512xf32, #tpu.memory_space<vmem>>, vector<128x512xf32>
    %cst_187 = arith.constant dense<0.000000e+00> : vector<2x512xf32>
    %822 = tpu.matmul %820, %821, %cst_187 {dimension_numbers = #tpu.dot_dimension_numbers<[1], [0], [0], [1], [0, 0, 1, 1], [], []>} : vector<2x128xf32>, vector<128x512xf32>, vector<2x512xf32> -> vector<2x512xf32>
    %c0_188 = arith.constant 0 : index
    %c0_189 = arith.constant 0 : index
    %823 = vector.load %arg30[%c0_188, %c0_189] : memref<1x512xf32, #tpu.memory_space<vmem>>, vector<1x512xf32>
    %824 = vector.broadcast %823 : vector<1x512xf32> to vector<2x512xf32>
    %825 = arith.addf %822, %824 : vector<2x512xf32>
    %cst_190 = arith.constant 0.000000e+00 : f32
    %826 = vector.broadcast %cst_190 : f32 to vector<2x512xf32>
    %827 = arith.maximumf %825, %826 : vector<2x512xf32>
    %c0_191 = arith.constant 0 : index
    %c0_192 = arith.constant 0 : index
    %828 = vector.load %arg31[%c0_191, %c0_192] : memref<512x128xf32, #tpu.memory_space<vmem>>, vector<512x128xf32>
    %cst_193 = arith.constant dense<0.000000e+00> : vector<2x128xf32>
    %829 = tpu.matmul %827, %828, %cst_193 {dimension_numbers = #tpu.dot_dimension_numbers<[1], [0], [0], [1], [0, 0, 1, 1], [], []>} : vector<2x512xf32>, vector<512x128xf32>, vector<2x128xf32> -> vector<2x128xf32>
    %c0_194 = arith.constant 0 : index
    %c0_195 = arith.constant 0 : index
    %830 = vector.load %arg32[%c0_194, %c0_195] : memref<1x128xf32, #tpu.memory_space<vmem>>, vector<1x128xf32>
    %831 = vector.broadcast %830 : vector<1x128xf32> to vector<2x128xf32>
    %832 = arith.addf %829, %831 : vector<2x128xf32>
    %c0_196 = arith.constant 0 : index
    %c0_197 = arith.constant 0 : index
    %833 = vector.load %arg34[%c0_196, %c0_197] : memref<8x32xf32, #tpu.memory_space<vmem>>, vector<8x32xf32>
    %c0_198 = arith.constant 0 : index
    %c0_199 = arith.constant 0 : index
    %834 = vector.load %arg33[%c0_198, %c0_199] : memref<128x32xf32, #tpu.memory_space<vmem>>, vector<128x32xf32>
    %cst_200 = arith.constant dense<0.000000e+00> : vector<2x32xf32>
    %835 = tpu.matmul %832, %834, %cst_200 {dimension_numbers = #tpu.dot_dimension_numbers<[1], [0], [0], [1], [0, 0, 1, 1], [], []>} : vector<2x128xf32>, vector<128x32xf32>, vector<2x32xf32> -> vector<2x32xf32>
    %c0_201 = arith.constant 0 : index
    %c0_202 = arith.constant 0 : index
    %836 = vector.load %arg35[%c0_201, %c0_202] : memref<1x32xf32, #tpu.memory_space<vmem>>, vector<1x32xf32>
    %837 = vector.shape_cast %836 : vector<1x32xf32> to vector<1x32xf32>
    %838 = vector.broadcast %837 : vector<1x32xf32> to vector<2x32xf32>
    %839 = arith.addf %835, %838 : vector<2x32xf32>
    %cst_203 = arith.constant 0.000000e+00 : f32
    %840 = vector.broadcast %cst_203 : f32 to vector<2x8xf32>
    %cst_204 = arith.constant 0.000000e+00 : f32
    %841 = vector.broadcast %cst_204 : f32 to vector<2x8xf32>
    %cst_205 = arith.constant dense<0.000000e+00> : vector<2x32xf32>
    %842 = tpu.matmul %840, %833, %cst_205 {dimension_numbers = #tpu.dot_dimension_numbers<[1], [0], [0], [1], [0, 0, 1, 1], [], []>} : vector<2x8xf32>, vector<8x32xf32>, vector<2x32xf32> -> vector<2x32xf32>
    %843 = arith.addf %839, %842 : vector<2x32xf32>
    %844 = vector.extract_strided_slice %843 {offsets = [0, 0], sizes = [2, 8], strides = [1, 1]} : vector<2x32xf32> to vector<2x8xf32>
    %845 = arith.negf %844 : vector<2x8xf32>
    %846 = math.exp %845 : vector<2x8xf32>
    %cst_206 = arith.constant 1.000000e+00 : f32
    %847 = vector.broadcast %cst_206 : f32 to vector<2x8xf32>
    %848 = arith.addf %847, %846 : vector<2x8xf32>
    %849 = arith.divf %847, %848 : vector<2x8xf32>
    %850 = vector.extract_strided_slice %843 {offsets = [0, 8], sizes = [2, 8], strides = [1, 1]} : vector<2x32xf32> to vector<2x8xf32>
    %851 = arith.negf %850 : vector<2x8xf32>
    %852 = math.exp %851 : vector<2x8xf32>
    %cst_207 = arith.constant 1.000000e+00 : f32
    %853 = vector.broadcast %cst_207 : f32 to vector<2x8xf32>
    %854 = arith.addf %853, %852 : vector<2x8xf32>
    %855 = arith.divf %853, %854 : vector<2x8xf32>
    %856 = vector.extract_strided_slice %843 {offsets = [0, 16], sizes = [2, 8], strides = [1, 1]} : vector<2x32xf32> to vector<2x8xf32>
    %857 = math.tanh %856 : vector<2x8xf32>
    %858 = vector.extract_strided_slice %843 {offsets = [0, 24], sizes = [2, 8], strides = [1, 1]} : vector<2x32xf32> to vector<2x8xf32>
    %859 = arith.negf %858 : vector<2x8xf32>
    %860 = math.exp %859 : vector<2x8xf32>
    %cst_208 = arith.constant 1.000000e+00 : f32
    %861 = vector.broadcast %cst_208 : f32 to vector<2x8xf32>
    %862 = arith.addf %861, %860 : vector<2x8xf32>
    %863 = arith.divf %861, %862 : vector<2x8xf32>
    %864 = arith.mulf %855, %841 : vector<2x8xf32>
    %865 = arith.mulf %849, %857 : vector<2x8xf32>
    %866 = arith.addf %864, %865 : vector<2x8xf32>
    %867 = math.tanh %866 : vector<2x8xf32>
    %868 = arith.mulf %863, %867 : vector<2x8xf32>
    %cst_209 = arith.constant dense<0.000000e+00> : vector<2x32xf32>
    %869 = tpu.matmul %868, %833, %cst_209 {dimension_numbers = #tpu.dot_dimension_numbers<[1], [0], [0], [1], [0, 0, 1, 1], [], []>} : vector<2x8xf32>, vector<8x32xf32>, vector<2x32xf32> -> vector<2x32xf32>
    %870 = arith.addf %838, %869 : vector<2x32xf32>
    %871 = vector.extract_strided_slice %870 {offsets = [0, 0], sizes = [2, 8], strides = [1, 1]} : vector<2x32xf32> to vector<2x8xf32>
    %872 = arith.negf %871 : vector<2x8xf32>
    %873 = math.exp %872 : vector<2x8xf32>
    %cst_210 = arith.constant 1.000000e+00 : f32
    %874 = vector.broadcast %cst_210 : f32 to vector<2x8xf32>
    %875 = arith.addf %874, %873 : vector<2x8xf32>
    %876 = arith.divf %874, %875 : vector<2x8xf32>
    %877 = vector.extract_strided_slice %870 {offsets = [0, 8], sizes = [2, 8], strides = [1, 1]} : vector<2x32xf32> to vector<2x8xf32>
    %878 = arith.negf %877 : vector<2x8xf32>
    %879 = math.exp %878 : vector<2x8xf32>
    %cst_211 = arith.constant 1.000000e+00 : f32
    %880 = vector.broadcast %cst_211 : f32 to vector<2x8xf32>
    %881 = arith.addf %880, %879 : vector<2x8xf32>
    %882 = arith.divf %880, %881 : vector<2x8xf32>
    %883 = vector.extract_strided_slice %870 {offsets = [0, 16], sizes = [2, 8], strides = [1, 1]} : vector<2x32xf32> to vector<2x8xf32>
    %884 = math.tanh %883 : vector<2x8xf32>
    %885 = vector.extract_strided_slice %870 {offsets = [0, 24], sizes = [2, 8], strides = [1, 1]} : vector<2x32xf32> to vector<2x8xf32>
    %886 = arith.negf %885 : vector<2x8xf32>
    %887 = math.exp %886 : vector<2x8xf32>
    %cst_212 = arith.constant 1.000000e+00 : f32
    %888 = vector.broadcast %cst_212 : f32 to vector<2x8xf32>
    %889 = arith.addf %888, %887 : vector<2x8xf32>
    %890 = arith.divf %888, %889 : vector<2x8xf32>
    %891 = arith.mulf %882, %866 : vector<2x8xf32>
    %892 = arith.mulf %876, %884 : vector<2x8xf32>
    %893 = arith.addf %891, %892 : vector<2x8xf32>
    %894 = math.tanh %893 : vector<2x8xf32>
    %895 = arith.mulf %890, %894 : vector<2x8xf32>
    %cst_213 = arith.constant dense<0.000000e+00> : vector<2x32xf32>
    %896 = tpu.matmul %895, %833, %cst_213 {dimension_numbers = #tpu.dot_dimension_numbers<[1], [0], [0], [1], [0, 0, 1, 1], [], []>} : vector<2x8xf32>, vector<8x32xf32>, vector<2x32xf32> -> vector<2x32xf32>
    %897 = arith.addf %838, %896 : vector<2x32xf32>
    %898 = vector.extract_strided_slice %897 {offsets = [0, 0], sizes = [2, 8], strides = [1, 1]} : vector<2x32xf32> to vector<2x8xf32>
    %899 = arith.negf %898 : vector<2x8xf32>
    %900 = math.exp %899 : vector<2x8xf32>
    %cst_214 = arith.constant 1.000000e+00 : f32
    %901 = vector.broadcast %cst_214 : f32 to vector<2x8xf32>
    %902 = arith.addf %901, %900 : vector<2x8xf32>
    %903 = arith.divf %901, %902 : vector<2x8xf32>
    %904 = vector.extract_strided_slice %897 {offsets = [0, 8], sizes = [2, 8], strides = [1, 1]} : vector<2x32xf32> to vector<2x8xf32>
    %905 = arith.negf %904 : vector<2x8xf32>
    %906 = math.exp %905 : vector<2x8xf32>
    %cst_215 = arith.constant 1.000000e+00 : f32
    %907 = vector.broadcast %cst_215 : f32 to vector<2x8xf32>
    %908 = arith.addf %907, %906 : vector<2x8xf32>
    %909 = arith.divf %907, %908 : vector<2x8xf32>
    %910 = vector.extract_strided_slice %897 {offsets = [0, 16], sizes = [2, 8], strides = [1, 1]} : vector<2x32xf32> to vector<2x8xf32>
    %911 = math.tanh %910 : vector<2x8xf32>
    %912 = vector.extract_strided_slice %897 {offsets = [0, 24], sizes = [2, 8], strides = [1, 1]} : vector<2x32xf32> to vector<2x8xf32>
    %913 = arith.negf %912 : vector<2x8xf32>
    %914 = math.exp %913 : vector<2x8xf32>
    %cst_216 = arith.constant 1.000000e+00 : f32
    %915 = vector.broadcast %cst_216 : f32 to vector<2x8xf32>
    %916 = arith.addf %915, %914 : vector<2x8xf32>
    %917 = arith.divf %915, %916 : vector<2x8xf32>
    %918 = arith.mulf %909, %893 : vector<2x8xf32>
    %919 = arith.mulf %903, %911 : vector<2x8xf32>
    %920 = arith.addf %918, %919 : vector<2x8xf32>
    %921 = math.tanh %920 : vector<2x8xf32>
    %922 = arith.mulf %917, %921 : vector<2x8xf32>
    %cst_217 = arith.constant dense<0.000000e+00> : vector<2x32xf32>
    %923 = tpu.matmul %922, %833, %cst_217 {dimension_numbers = #tpu.dot_dimension_numbers<[1], [0], [0], [1], [0, 0, 1, 1], [], []>} : vector<2x8xf32>, vector<8x32xf32>, vector<2x32xf32> -> vector<2x32xf32>
    %924 = arith.addf %838, %923 : vector<2x32xf32>
    %925 = vector.extract_strided_slice %924 {offsets = [0, 0], sizes = [2, 8], strides = [1, 1]} : vector<2x32xf32> to vector<2x8xf32>
    %926 = arith.negf %925 : vector<2x8xf32>
    %927 = math.exp %926 : vector<2x8xf32>
    %cst_218 = arith.constant 1.000000e+00 : f32
    %928 = vector.broadcast %cst_218 : f32 to vector<2x8xf32>
    %929 = arith.addf %928, %927 : vector<2x8xf32>
    %930 = arith.divf %928, %929 : vector<2x8xf32>
    %931 = vector.extract_strided_slice %924 {offsets = [0, 8], sizes = [2, 8], strides = [1, 1]} : vector<2x32xf32> to vector<2x8xf32>
    %932 = arith.negf %931 : vector<2x8xf32>
    %933 = math.exp %932 : vector<2x8xf32>
    %cst_219 = arith.constant 1.000000e+00 : f32
    %934 = vector.broadcast %cst_219 : f32 to vector<2x8xf32>
    %935 = arith.addf %934, %933 : vector<2x8xf32>
    %936 = arith.divf %934, %935 : vector<2x8xf32>
    %937 = vector.extract_strided_slice %924 {offsets = [0, 16], sizes = [2, 8], strides = [1, 1]} : vector<2x32xf32> to vector<2x8xf32>
    %938 = math.tanh %937 : vector<2x8xf32>
    %939 = vector.extract_strided_slice %924 {offsets = [0, 24], sizes = [2, 8], strides = [1, 1]} : vector<2x32xf32> to vector<2x8xf32>
    %940 = arith.negf %939 : vector<2x8xf32>
    %941 = math.exp %940 : vector<2x8xf32>
    %cst_220 = arith.constant 1.000000e+00 : f32
    %942 = vector.broadcast %cst_220 : f32 to vector<2x8xf32>
    %943 = arith.addf %942, %941 : vector<2x8xf32>
    %944 = arith.divf %942, %943 : vector<2x8xf32>
    %945 = arith.mulf %936, %920 : vector<2x8xf32>
    %946 = arith.mulf %930, %938 : vector<2x8xf32>
    %947 = arith.addf %945, %946 : vector<2x8xf32>
    %948 = math.tanh %947 : vector<2x8xf32>
    %949 = arith.mulf %944, %948 : vector<2x8xf32>
    %cst_221 = arith.constant dense<0.000000e+00> : vector<2x32xf32>
    %950 = tpu.matmul %949, %833, %cst_221 {dimension_numbers = #tpu.dot_dimension_numbers<[1], [0], [0], [1], [0, 0, 1, 1], [], []>} : vector<2x8xf32>, vector<8x32xf32>, vector<2x32xf32> -> vector<2x32xf32>
    %951 = arith.addf %838, %950 : vector<2x32xf32>
    %952 = vector.extract_strided_slice %951 {offsets = [0, 0], sizes = [2, 8], strides = [1, 1]} : vector<2x32xf32> to vector<2x8xf32>
    %953 = arith.negf %952 : vector<2x8xf32>
    %954 = math.exp %953 : vector<2x8xf32>
    %cst_222 = arith.constant 1.000000e+00 : f32
    %955 = vector.broadcast %cst_222 : f32 to vector<2x8xf32>
    %956 = arith.addf %955, %954 : vector<2x8xf32>
    %957 = arith.divf %955, %956 : vector<2x8xf32>
    %958 = vector.extract_strided_slice %951 {offsets = [0, 8], sizes = [2, 8], strides = [1, 1]} : vector<2x32xf32> to vector<2x8xf32>
    %959 = arith.negf %958 : vector<2x8xf32>
    %960 = math.exp %959 : vector<2x8xf32>
    %cst_223 = arith.constant 1.000000e+00 : f32
    %961 = vector.broadcast %cst_223 : f32 to vector<2x8xf32>
    %962 = arith.addf %961, %960 : vector<2x8xf32>
    %963 = arith.divf %961, %962 : vector<2x8xf32>
    %964 = vector.extract_strided_slice %951 {offsets = [0, 16], sizes = [2, 8], strides = [1, 1]} : vector<2x32xf32> to vector<2x8xf32>
    %965 = math.tanh %964 : vector<2x8xf32>
    %966 = vector.extract_strided_slice %951 {offsets = [0, 24], sizes = [2, 8], strides = [1, 1]} : vector<2x32xf32> to vector<2x8xf32>
    %967 = arith.negf %966 : vector<2x8xf32>
    %968 = math.exp %967 : vector<2x8xf32>
    %cst_224 = arith.constant 1.000000e+00 : f32
    %969 = vector.broadcast %cst_224 : f32 to vector<2x8xf32>
    %970 = arith.addf %969, %968 : vector<2x8xf32>
    %971 = arith.divf %969, %970 : vector<2x8xf32>
    %972 = arith.mulf %963, %947 : vector<2x8xf32>
    %973 = arith.mulf %957, %965 : vector<2x8xf32>
    %974 = arith.addf %972, %973 : vector<2x8xf32>
    %975 = math.tanh %974 : vector<2x8xf32>
    %976 = arith.mulf %971, %975 : vector<2x8xf32>
    %cst_225 = arith.constant dense<0.000000e+00> : vector<2x32xf32>
    %977 = tpu.matmul %976, %833, %cst_225 {dimension_numbers = #tpu.dot_dimension_numbers<[1], [0], [0], [1], [0, 0, 1, 1], [], []>} : vector<2x8xf32>, vector<8x32xf32>, vector<2x32xf32> -> vector<2x32xf32>
    %978 = arith.addf %838, %977 : vector<2x32xf32>
    %979 = vector.extract_strided_slice %978 {offsets = [0, 0], sizes = [2, 8], strides = [1, 1]} : vector<2x32xf32> to vector<2x8xf32>
    %980 = arith.negf %979 : vector<2x8xf32>
    %981 = math.exp %980 : vector<2x8xf32>
    %cst_226 = arith.constant 1.000000e+00 : f32
    %982 = vector.broadcast %cst_226 : f32 to vector<2x8xf32>
    %983 = arith.addf %982, %981 : vector<2x8xf32>
    %984 = arith.divf %982, %983 : vector<2x8xf32>
    %985 = vector.extract_strided_slice %978 {offsets = [0, 8], sizes = [2, 8], strides = [1, 1]} : vector<2x32xf32> to vector<2x8xf32>
    %986 = arith.negf %985 : vector<2x8xf32>
    %987 = math.exp %986 : vector<2x8xf32>
    %cst_227 = arith.constant 1.000000e+00 : f32
    %988 = vector.broadcast %cst_227 : f32 to vector<2x8xf32>
    %989 = arith.addf %988, %987 : vector<2x8xf32>
    %990 = arith.divf %988, %989 : vector<2x8xf32>
    %991 = vector.extract_strided_slice %978 {offsets = [0, 16], sizes = [2, 8], strides = [1, 1]} : vector<2x32xf32> to vector<2x8xf32>
    %992 = math.tanh %991 : vector<2x8xf32>
    %993 = vector.extract_strided_slice %978 {offsets = [0, 24], sizes = [2, 8], strides = [1, 1]} : vector<2x32xf32> to vector<2x8xf32>
    %994 = arith.negf %993 : vector<2x8xf32>
    %995 = math.exp %994 : vector<2x8xf32>
    %cst_228 = arith.constant 1.000000e+00 : f32
    %996 = vector.broadcast %cst_228 : f32 to vector<2x8xf32>
    %997 = arith.addf %996, %995 : vector<2x8xf32>
    %998 = arith.divf %996, %997 : vector<2x8xf32>
    %999 = arith.mulf %990, %974 : vector<2x8xf32>
    %1000 = arith.mulf %984, %992 : vector<2x8xf32>
    %1001 = arith.addf %999, %1000 : vector<2x8xf32>
    %1002 = math.tanh %1001 : vector<2x8xf32>
    %1003 = arith.mulf %998, %1002 : vector<2x8xf32>
    %cst_229 = arith.constant dense<0.000000e+00> : vector<2x32xf32>
    %1004 = tpu.matmul %1003, %833, %cst_229 {dimension_numbers = #tpu.dot_dimension_numbers<[1], [0], [0], [1], [0, 0, 1, 1], [], []>} : vector<2x8xf32>, vector<8x32xf32>, vector<2x32xf32> -> vector<2x32xf32>
    %1005 = arith.addf %838, %1004 : vector<2x32xf32>
    %1006 = vector.extract_strided_slice %1005 {offsets = [0, 0], sizes = [2, 8], strides = [1, 1]} : vector<2x32xf32> to vector<2x8xf32>
    %1007 = arith.negf %1006 : vector<2x8xf32>
    %1008 = math.exp %1007 : vector<2x8xf32>
    %cst_230 = arith.constant 1.000000e+00 : f32
    %1009 = vector.broadcast %cst_230 : f32 to vector<2x8xf32>
    %1010 = arith.addf %1009, %1008 : vector<2x8xf32>
    %1011 = arith.divf %1009, %1010 : vector<2x8xf32>
    %1012 = vector.extract_strided_slice %1005 {offsets = [0, 8], sizes = [2, 8], strides = [1, 1]} : vector<2x32xf32> to vector<2x8xf32>
    %1013 = arith.negf %1012 : vector<2x8xf32>
    %1014 = math.exp %1013 : vector<2x8xf32>
    %cst_231 = arith.constant 1.000000e+00 : f32
    %1015 = vector.broadcast %cst_231 : f32 to vector<2x8xf32>
    %1016 = arith.addf %1015, %1014 : vector<2x8xf32>
    %1017 = arith.divf %1015, %1016 : vector<2x8xf32>
    %1018 = vector.extract_strided_slice %1005 {offsets = [0, 16], sizes = [2, 8], strides = [1, 1]} : vector<2x32xf32> to vector<2x8xf32>
    %1019 = math.tanh %1018 : vector<2x8xf32>
    %1020 = vector.extract_strided_slice %1005 {offsets = [0, 24], sizes = [2, 8], strides = [1, 1]} : vector<2x32xf32> to vector<2x8xf32>
    %1021 = arith.negf %1020 : vector<2x8xf32>
    %1022 = math.exp %1021 : vector<2x8xf32>
    %cst_232 = arith.constant 1.000000e+00 : f32
    %1023 = vector.broadcast %cst_232 : f32 to vector<2x8xf32>
    %1024 = arith.addf %1023, %1022 : vector<2x8xf32>
    %1025 = arith.divf %1023, %1024 : vector<2x8xf32>
    %1026 = arith.mulf %1017, %1001 : vector<2x8xf32>
    %1027 = arith.mulf %1011, %1019 : vector<2x8xf32>
    %1028 = arith.addf %1026, %1027 : vector<2x8xf32>
    %1029 = math.tanh %1028 : vector<2x8xf32>
    %1030 = arith.mulf %1025, %1029 : vector<2x8xf32>
    %cst_233 = arith.constant dense<0.000000e+00> : vector<2x32xf32>
    %1031 = tpu.matmul %1030, %833, %cst_233 {dimension_numbers = #tpu.dot_dimension_numbers<[1], [0], [0], [1], [0, 0, 1, 1], [], []>} : vector<2x8xf32>, vector<8x32xf32>, vector<2x32xf32> -> vector<2x32xf32>
    %1032 = arith.addf %838, %1031 : vector<2x32xf32>
    %1033 = vector.extract_strided_slice %1032 {offsets = [0, 0], sizes = [2, 8], strides = [1, 1]} : vector<2x32xf32> to vector<2x8xf32>
    %1034 = arith.negf %1033 : vector<2x8xf32>
    %1035 = math.exp %1034 : vector<2x8xf32>
    %cst_234 = arith.constant 1.000000e+00 : f32
    %1036 = vector.broadcast %cst_234 : f32 to vector<2x8xf32>
    %1037 = arith.addf %1036, %1035 : vector<2x8xf32>
    %1038 = arith.divf %1036, %1037 : vector<2x8xf32>
    %1039 = vector.extract_strided_slice %1032 {offsets = [0, 8], sizes = [2, 8], strides = [1, 1]} : vector<2x32xf32> to vector<2x8xf32>
    %1040 = arith.negf %1039 : vector<2x8xf32>
    %1041 = math.exp %1040 : vector<2x8xf32>
    %cst_235 = arith.constant 1.000000e+00 : f32
    %1042 = vector.broadcast %cst_235 : f32 to vector<2x8xf32>
    %1043 = arith.addf %1042, %1041 : vector<2x8xf32>
    %1044 = arith.divf %1042, %1043 : vector<2x8xf32>
    %1045 = vector.extract_strided_slice %1032 {offsets = [0, 16], sizes = [2, 8], strides = [1, 1]} : vector<2x32xf32> to vector<2x8xf32>
    %1046 = math.tanh %1045 : vector<2x8xf32>
    %1047 = vector.extract_strided_slice %1032 {offsets = [0, 24], sizes = [2, 8], strides = [1, 1]} : vector<2x32xf32> to vector<2x8xf32>
    %1048 = arith.negf %1047 : vector<2x8xf32>
    %1049 = math.exp %1048 : vector<2x8xf32>
    %cst_236 = arith.constant 1.000000e+00 : f32
    %1050 = vector.broadcast %cst_236 : f32 to vector<2x8xf32>
    %1051 = arith.addf %1050, %1049 : vector<2x8xf32>
    %1052 = arith.divf %1050, %1051 : vector<2x8xf32>
    %1053 = arith.mulf %1044, %1028 : vector<2x8xf32>
    %1054 = arith.mulf %1038, %1046 : vector<2x8xf32>
    %1055 = arith.addf %1053, %1054 : vector<2x8xf32>
    %1056 = math.tanh %1055 : vector<2x8xf32>
    %1057 = arith.mulf %1052, %1056 : vector<2x8xf32>
    %1058 = tpu.concatenate %868, %895, %922, %949, %976, %1003, %1030, %1057 in 1 : vector<2x8xf32>, vector<2x8xf32>, vector<2x8xf32>, vector<2x8xf32>, vector<2x8xf32>, vector<2x8xf32>, vector<2x8xf32>, vector<2x8xf32> -> vector<2x64xf32>
    %c0_237 = arith.constant 0 : index
    %c0_238 = arith.constant 0 : index
    %1059 = vector.load %arg36[%c0_237, %c0_238] : memref<2x64xf32, #tpu.memory_space<vmem>>, vector<2x64xf32>
    tpu.vector_store %arg36[%c0_237, %c0_238], %1058 {strides = array<i32>} : memref<2x64xf32, #tpu.memory_space<vmem>>, vector<2x64xf32>,
    return
  }
}

</mosaic_0001>

<bundles_post_ra>
// kernel: bimodal_ae_forward.1
= control target key start
LH: loop header
LB: loop body
LE: loop exit
PB: predicated region body
PF: predicated region fallthrough
CT: control target
= control target key end

     0   :  { %s10178_s6 = smov 1   ;;  %s10179_s10 = smov 2   ;;  %s13533_s0 = inlined_call_operand.smem [shape: u32[37], index: -1, kind: input, shape index: {}] }
   0x1   :  { %s10259_s5 = sld [smem:[%s13533_s0]]   ;;  %s10180_s14 = smov 3  }
   0x2   :  { %s10264_s9 = sld [smem:[%s13533_s0 + %s10178_s6]]   ;;  %s10181_s18 = smov 4  }
   0x3   :  { %s10269_s13 = sld [smem:[%s13533_s0 + %s10179_s10]]   ;;  %s10182_s22 = smov 5  }
   0x4   :  { %s10274_s17 = sld [smem:[%s13533_s0 + %s10180_s14]]   ;;  %s10183_s26 = smov 6  }
   0x5   :  { %s10279_s21 = sld [smem:[%s13533_s0 + %s10181_s18]]   ;;  %s10184_s30 = smov 7  }
   0x6   :  { %s10284_s25 = sld [smem:[%s13533_s0 + %s10182_s22]]   ;;  %s10185_s4 = smov 8  }
   0x7   :  { %13857 = sst [smem:[#allocation56_spill]] %s10259_s5  ;;  %s10186_s10 = smov 9  }
   0x8   :  { %s10289_s29 = sld [smem:[%s13533_s0 + %s10183_s26]]   ;;  %s10187_s15 = smov 10  }
   0x9   :  { %s10294_s3 = sld [smem:[%s13533_s0 + %s10184_s30]]   ;;  %s10188_s20 = smov 11  }
   0xa   :  { %s10299_s8 = sld [smem:[%s13533_s0 + %s10185_s4]]   ;;  %s10189_s26 = smov 12  }
   0xb   :  { %s10304_s14 = sld [smem:[%s13533_s0 + %s10186_s10]]   ;;  %s10190_s1 = smov 13  }
   0xc   :  { %13858 = sst [smem:[#allocation57_spill]] %s10284_s25  ;;  %s10191_s7 = smov 14  }
   0xd   :  { %s10309_s19 = sld [smem:[%s13533_s0 + %s10187_s15]]   ;;  %s10192_s15 = smov 15  }
   0xe   :  { %13859 = sst [smem:[#allocation58_spill]] %s10289_s29  ;;  %s10193_s22 = smov 16  }
   0xf   :  { %13860 = sst [smem:[#allocation59_spill]] %s10294_s3  ;;  %s10194_s28 = smov 17  }
  0x10   :  { %s10314_s24 = sld [smem:[%s13533_s0 + %s10188_s20]]  }
  0x11   :  { %13861 = sst [smem:[#allocation60_spill]] %s10304_s14 }
  0x12   :  { %s10319_s30 = sld [smem:[%s13533_s0 + %s10189_s26]]  }
  0x13   :  { %s10324_s6 = sld [smem:[%s13533_s0 + %s10190_s1]]  }
  0x14   :  { %s10329_s12 = sld [smem:[%s13533_s0 + %s10191_s7]]   ;;  %s10195_s7 = smov 18  }
  0x15   :  { %s10334_s20 = sld [smem:[%s13533_s0 + %s10192_s15]]   ;;  %s10196_s15 = smov 19  }
  0x16   :  { %13862 = sst [smem:[#allocation61_spill]] %s10314_s24 }
  0x17   :  { %s10339_s27 = sld [smem:[%s13533_s0 + %s10193_s22]]   ;;  %s10197_s22 = smov 20  }
  0x18   :  { %s10344_s4 = sld [smem:[%s13533_s0 + %s10194_s28]]   ;;  %s10198_s28 = smov 21  }
  0x19   :  { %13863 = sst [smem:[#allocation62_spill]] %s10324_s6 }
  0x1a   :  { %s10349_s29 = sld [smem:[%s13533_s0 + %s10195_s7]]   ;;  %s10199_s7 = smov 22  }
  0x1b   :  { %13864 = sst [smem:[#allocation63_spill]] %s10334_s20 }
  0x1c   :  { %s10354_s20 = sld [smem:[%s13533_s0 + %s10196_s15]]   ;;  %s10200_s15 = smov 23  }
  0x1d   :  { %13865 = sst [smem:[#allocation64_spill]] %s10339_s27 }
  0x1e   :  { %s10359_s25 = sld [smem:[%s13533_s0 + %s10197_s22]]   ;;  %s10201_s22 = smov 24  }
  0x1f   :  { %s10364_s5 = sld [smem:[%s13533_s0 + %s10198_s28]]   ;;  %s10202_s28 = smov 25  }
  0x20   :  { %13866 = sst [smem:[#allocation65_spill]] %s10349_s29 }
  0x21   :  { %s10369_s29 = sld [smem:[%s13533_s0 + %s10199_s7]]   ;;  %s10203_s7 = smov 26  }
  0x22   :  { %s10374_s27 = sld [smem:[%s13533_s0 + %s10200_s15]]   ;;  %s10204_s15 = smov 27  }
  0x23   :  { %s10384_s6 = sld [smem:[%s13533_s0 + %s10202_s28]]   ;;  %s10206_s28 = smov 29  }
  0x24   :  { %13867 = sst [smem:[#allocation66_spill]] %s10359_s25 }
  0x25   :  { %s10379_s25 = sld [smem:[%s13533_s0 + %s10201_s22]]   ;;  %s10205_s22 = smov 28  }
  0x26   :  { %s10394_s24 = sld [smem:[%s13533_s0 + %s10204_s15]]   ;;  %s10208_s15 = smov 31  }
  0x27   :  { %13868 = sst [smem:[#allocation67_spill]] %s10369_s29 }
  0x28   :  { %s10389_s29 = sld [smem:[%s13533_s0 + %s10203_s7]]   ;;  %s10207_s7 = smov 30  }
  0x29   :  { %s10404_s14 = sld [smem:[%s13533_s0 + %s10206_s28]]   ;;  %s10210_s28 = smov 33  }
  0x2a   :  { %s10424_s3 = sld [smem:[%s13533_s0 + %s10210_s28]]  }
  0x2b   :  { %13869 = sst [smem:[#allocation68_spill]] %s10379_s25 }
  0x2c   :  { %13871 = sst [smem:[#allocation70_spill]] %s10394_s24 }
  0x2d   :  { %s10399_s25 = sld [smem:[%s13533_s0 + %s10205_s22]]   ;;  %s10209_s22 = smov 32  }
  0x2e   :  { %13870 = sst [smem:[#allocation69_spill]] %s10389_s29 }
  0x2f   :  { %s10409_s29 = sld [smem:[%s13533_s0 + %s10207_s7]]   ;;  %s10211_s7 = smov 34  }
  0x30   :  { %s10414_s24 = sld [smem:[%s13533_s0 + %s10208_s15]]   ;;  %s10212_s15 = smov 35  }
  0x33   :  { %13872 = sst [smem:[#allocation71_spill]] %s10399_s25 }
  0x34   :  { %s10419_s25 = sld [smem:[%s13533_s0 + %s10209_s22]]   ;;  %s10213_s22 = smov 36  }
  0x35   :  { %13873 = sst [smem:[#allocation72_spill]] %s10409_s29 }
  0x36   :  { %13874 = sst [smem:[#allocation73_spill]] %s10414_s24 }
  0x37   :  { %s10429_s29 = sld [smem:[%s13533_s0 + %s10211_s7]]  }
  0x38   :  { %s10434_s24 = sld [smem:[%s13533_s0 + %s10212_s15]]  }
  0x3a   :  { %13875 = sst [smem:[#allocation74_spill]] %s10419_s25 }
  0x3b   :  { %s10439_s25 = sld [smem:[%s13533_s0 + %s10213_s22]]  }
  0x3c   :  { %78 = vsyncpa [#allocation3], 0 }
  0x3d   :  { %79 = vsyncpa [#allocation5], 0 }
  0x3e   :  { %80 = vsyncpa [#allocation8], 0 }
  0x3f   :  { %81 = vsyncpa [#allocation11], 0 }
  0x40   :  { %82 = vsyncpa [#allocation14], 0 }
  0x41   :  { %83 = vsyncpa [#allocation17], 0 }
  0x42   :  { %84 = vsyncpa [#allocation20], 0 }
  0x43   :  { %85 = vsyncpa [#allocation23], 0 }
  0x44   :  { %86 = vsyncpa [#allocation26], 0 }
  0x45   :  { %87 = vsyncpa [#allocation29], 0 }
  0x46   :  { %88 = vsyncpa [#allocation32], 0 }
  0x47   :  { %89 = vsyncpa [#allocation35], 0 }
  0x48   :  { %90 = vsyncpa [#allocation38], 0 }
  0x49   :  { %91 = vsyncpa [#allocation41], 0  ;;  %s10214_s28 = smov [#allocation4]   ;;  %s10215_s2 = smov [#allocation7]  }
  0x4a   :  { %s110_s1 = sshll.u32 %s10214_s28, 4  ;;  %s132_s7 = sshll.u32 %s10215_s2, 4  ;;  %s111_s1 = int_to_ptr.vmem [resolvable:$true] %s110_s1  ;;  %s133_s7 = int_to_ptr.vmem [resolvable:$true] %s132_s7 }
  0x4b   :  { %s9638_s0 = scalar_lea.vmem %s111_s1, 512  ;;  %p9643_p1 = scmp.lt.s32.totalorder %s111_s1, %s111_s1 }
  0x4c   :  { %p9639_p0 = scmp.ne.s32.totalorder %s111_s1, %s9638_s0  ;;  %p9644_p2 = scmp.lt.s32.totalorder %s9638_s0, %s9638_s0 }
  0x4e   :  { %p9645_p3 = por %p9644_p2, %p9643_p1 }
  0x50   :  { %p9646_p4 = pnand %p9645_p3, %p9639_p0 }
  0x52   :  { %9649 = shalt.err (!%p9646_p4)
}
  0x53   :  { %113 = dma.hbm_to_vmem [thread:$0]  %s10269_s13, 512, %s111_s1, [#allocation5]  }
  0x54   :  { %s9658_s10 = scalar_lea.vmem %s133_s7, 64  ;;  %p9663_p6 = scmp.lt.s32.totalorder %s133_s7, %s133_s7 }
  0x55   :  { %p9659_p5 = scmp.ne.s32.totalorder %s133_s7, %s9658_s10  ;;  %p9664_p7 = scmp.lt.s32.totalorder %s9658_s10, %s9658_s10 }
  0x57   :  { %p9665_p8 = por %p9664_p7, %p9663_p6 }
  0x59   :  { %p9666_p9 = pnand %p9665_p8, %p9659_p5 }
  0x5b   :  { %9669 = shalt.err (!%p9666_p9)
}
  0x5c   :  { %135 = dma.hbm_to_vmem [thread:$0]  %s10279_s21, 64, %s133_s7, [#allocation8]  }
  0x5d   :  { %s10216_s11 = smov [#allocation10]   ;;  %s10217_s16 = smov [#allocation13]  }
  0x5e   :  { %s157_s15 = sshll.u32 %s10216_s11, 4  ;;  %s179_s18 = sshll.u32 %s10217_s16, 4  ;;  %s158_s15 = int_to_ptr.vmem [resolvable:$true] %s157_s15  ;;  %s180_s18 = int_to_ptr.vmem [resolvable:$true] %s179_s18 }
  0x5f   :  { %s9678_s22 = scalar_lea.vmem %s158_s15, 8192  ;;  %p9683_p11 = scmp.lt.s32.totalorder %s158_s15, %s158_s15 }
  0x60   :  { %p9679_p10 = scmp.ne.s32.totalorder %s158_s15, %s9678_s22  ;;  %p9684_p12 = scmp.lt.s32.totalorder %s9678_s22, %s9678_s22 }
  0x62   :  { %p9685_p13 = por %p9684_p12, %p9683_p11 }
  0x64   :  { %p9686_p0 = pnand %p9685_p13, %p9679_p10 }
  0x66   :  { %9689 = shalt.err (!%p9686_p0)
}
  0x67   :  { %s10218_s13 = smov 512   ;;  %s10219_s23 = smov 32  }
  0x68   :  { %163 = dma.hbm_to_vmem [thread:$0]  %s10299_s8, 8192, %s158_s15, [#allocation11], %s10218_s13, %s10218_s13, %s10219_s23  }
  0x69   :  { %s9698_s21 = scalar_lea.vmem %s180_s18, 8192  ;;  %p9703_p2 = scmp.lt.s32.totalorder %s180_s18, %s180_s18 }
  0x6a   :  { %p9699_p1 = scmp.ne.s32.totalorder %s180_s18, %s9698_s21  ;;  %p9704_p3 = scmp.lt.s32.totalorder %s9698_s21, %s9698_s21 }
  0x6c   :  { %p9705_p4 = por %p9704_p3, %p9703_p2 }
  0x6e   :  { %p9706_p5 = pnand %p9705_p4, %p9699_p1 }
  0x70   :  { %9709 = shalt.err (!%p9706_p5)
}
  0x71   :  { %185 = dma.hbm_to_vmem [thread:$0]  %s10309_s19, 8192, %s180_s18, [#allocation14], %s10218_s13, %s10218_s13, %s10219_s23  }
  0x72   :  { %s10220_s26 = smov [#allocation16]   ;;  %s10221_s1 = smov [#allocation19]  }
  0x73   :  { %s204_s28 = sshll.u32 %s10220_s26, 4  ;;  %s226_s2 = sshll.u32 %s10221_s1, 4  ;;  %s205_s28 = int_to_ptr.vmem [resolvable:$true] %s204_s28  ;;  %s227_s2 = int_to_ptr.vmem [resolvable:$true] %s226_s2 }
  0x74   :  { %s9718_s7 = scalar_lea.vmem %s205_s28, 64  ;;  %p9723_p7 = scmp.lt.s32.totalorder %s205_s28, %s205_s28 }
  0x75   :  { %p9719_p6 = scmp.ne.s32.totalorder %s205_s28, %s9718_s7  ;;  %p9724_p8 = scmp.lt.s32.totalorder %s9718_s7, %s9718_s7 }
  0x77   :  { %p9725_p9 = por %p9724_p8, %p9723_p7 }
  0x79   :  { %p9726_p10 = pnand %p9725_p9, %p9719_p6 }
  0x7b   :  { %9729 = shalt.err (!%p9726_p10)
}
  0x7c   :  { %207 = dma.hbm_to_vmem [thread:$0]  %s10319_s30, 64, %s205_s28, [#allocation17]  }
  0x7d   :  { %s9738_s8 = scalar_lea.vmem %s227_s2, 16  ;;  %s9742_s0 = scalar_lea.vmem %s227_s2, 32 }
  0x7e   :  { %p9739_p11 = scmp.ne.s32.totalorder %s227_s2, %s9738_s8  ;;  %p9743_p12 = scmp.lt.s32.totalorder %s227_s2, %s227_s2 }
  0x7f   :  { %p9744_p13 = scmp.lt.s32.totalorder %s9742_s0, %s9738_s8 }
  0x81   :  { %p9745_p0 = por %p9744_p13, %p9743_p12 }
  0x83   :  { %p9746_p1 = pnand %p9745_p0, %p9739_p11 }
  0x85   :  { %9749 = shalt.err (!%p9746_p1)
}
  0x86   :  { %229 = dma.hbm_to_vmem [thread:$0]  %s10329_s12, 16, %s227_s2, [#allocation20]  }
  0x87   :  { %s10222_s19 = smov [#allocation22]   ;;  %s10223_s11 = smov [#allocation25]  }
  0x88   :  { %s247_s10 = sshll.u32 %s10222_s19, 4  ;;  %s269_s15 = sshll.u32 %s10223_s11, 4  ;;  %s248_s10 = int_to_ptr.vmem [resolvable:$true] %s247_s10  ;;  %s270_s15 = int_to_ptr.vmem [resolvable:$true] %s269_s15 }
  0x89   :  { %s9758_s16 = scalar_lea.vmem %s248_s10, 2048  ;;  %p9763_p3 = scmp.lt.s32.totalorder %s248_s10, %s248_s10 }
  0x8a   :  { %p9759_p2 = scmp.ne.s32.totalorder %s248_s10, %s9758_s16  ;;  %p9764_p4 = scmp.lt.s32.totalorder %s9758_s16, %s9758_s16 }
  0x8c   :  { %p9765_p5 = por %p9764_p4, %p9763_p3 }
  0x8e   :  { %p9766_p6 = pnand %p9765_p5, %p9759_p2 }
  0x90   :  { %9769 = shalt.err (!%p9766_p6)
}
  0x91   :  { %s10224_s30 = smov 128   ;;  %s10225_s18 = smov 8  }
  0x92   :  { %253 = dma.hbm_to_vmem [thread:$0]  %s10344_s4, 2048, %s248_s10, [#allocation23], %s10224_s30, %s10224_s30, %s10225_s18  }
  0x93   :  { %s9778_s12 = scalar_lea.vmem %s270_s15, 2048  ;;  %p9783_p8 = scmp.lt.s32.totalorder %s270_s15, %s270_s15 }
  0x94   :  { %p9779_p7 = scmp.ne.s32.totalorder %s270_s15, %s9778_s12  ;;  %p9784_p9 = scmp.lt.s32.totalorder %s9778_s12, %s9778_s12 }
  0x96   :  { %p9785_p10 = por %p9784_p9, %p9783_p8 }
  0x98   :  { %p9786_p11 = pnand %p9785_p10, %p9779_p7 }
  0x9a   :  { %9789 = shalt.err (!%p9786_p11)
}
  0x9b   :  { %275 = dma.hbm_to_vmem [thread:$0]  %s10354_s20, 2048, %s270_s15, [#allocation26], %s10224_s30, %s10224_s30, %s10225_s18  }
  0x9c   :  { %s10226_s22 = smov [#allocation28]   ;;  %s10227_s26 = smov [#allocation31]  }
  0x9d   :  { %s291_s21 = sshll.u32 %s10226_s22, 4  ;;  %s313_s28 = sshll.u32 %s10227_s26, 4  ;;  %s292_s21 = int_to_ptr.vmem [resolvable:$true] %s291_s21  ;;  %s314_s28 = int_to_ptr.vmem [resolvable:$true] %s313_s28 }
  0x9e   :  { %s9798_s1 = scalar_lea.vmem %s292_s21, 2048  ;;  %p9803_p13 = scmp.lt.s32.totalorder %s292_s21, %s292_s21 }
  0x9f   :  { %p9799_p12 = scmp.ne.s32.totalorder %s292_s21, %s9798_s1  ;;  %p9804_p0 = scmp.lt.s32.totalorder %s9798_s1, %s9798_s1 }
  0xa1   :  { %p9805_p1 = por %p9804_p0, %p9803_p13 }
  0xa3   :  { %p9806_p2 = pnand %p9805_p1, %p9799_p12 }
  0xa5   :  { %9809 = shalt.err (!%p9806_p2)
}
  0xa6   :  { %297 = dma.hbm_to_vmem [thread:$0]  %s10364_s5, 2048, %s292_s21, [#allocation29], %s10224_s30, %s10224_s30, %s10225_s18  }
  0xa7   :  { %s9818_s4 = scalar_lea.vmem %s314_s28, 2048  ;;  %p9823_p4 = scmp.lt.s32.totalorder %s314_s28, %s314_s28 }
  0xa8   :  { %p9819_p3 = scmp.ne.s32.totalorder %s314_s28, %s9818_s4  ;;  %p9824_p5 = scmp.lt.s32.totalorder %s9818_s4, %s9818_s4 }
  0xaa   :  { %p9825_p6 = por %p9824_p5, %p9823_p4 }
  0xac   :  { %p9826_p7 = pnand %p9825_p6, %p9819_p3 }
  0xae   :  { %9829 = shalt.err (!%p9826_p7)
}
  0xaf   :  { %319 = dma.hbm_to_vmem [thread:$0]  %s10374_s27, 2048, %s314_s28, [#allocation32], %s10224_s30, %s10224_s30, %s10225_s18  }
  0xb0   :  { %s10228_s20 = smov [#allocation34]   ;;  %s10229_s7 = smov [#allocation37]  }
  0xb1   :  { %s335_s2 = sshll.u32 %s10228_s20, 4  ;;  %s363_s8 = sshll.u32 %s10229_s7, 4  ;;  %s336_s2 = int_to_ptr.vmem [resolvable:$true] %s335_s2  ;;  %s364_s8 = int_to_ptr.vmem [resolvable:$true] %s363_s8 }
  0xb2   :  { %s9838_s0 = scalar_lea.vmem %s336_s2, 8192  ;;  %p9843_p9 = scmp.lt.s32.totalorder %s336_s2, %s336_s2 }
  0xb3   :  { %p9839_p8 = scmp.ne.s32.totalorder %s336_s2, %s9838_s0  ;;  %p9844_p10 = scmp.lt.s32.totalorder %s9838_s0, %s9838_s0 }
  0xb5   :  { %p9845_p11 = por %p9844_p10, %p9843_p9 }
  0xb7   :  { %p9846_p12 = pnand %p9845_p11, %p9839_p8 }
  0xb9   :  { %9849 = shalt.err (!%p9846_p12)
}
  0xba   :  { %341 = dma.hbm_to_vmem [thread:$0]  %s10384_s6, 8192, %s336_s2, [#allocation35], %s10218_s13, %s10218_s13, %s10219_s23  }
  0xbb   :  { %s9858_s5 = scalar_lea.vmem %s364_s8, 8192  ;;  %p9863_p0 = scmp.lt.s32.totalorder %s364_s8, %s364_s8 }
  0xbc   :  { %p9859_p13 = scmp.ne.s32.totalorder %s364_s8, %s9858_s5  ;;  %p9864_p1 = scmp.lt.s32.totalorder %s9858_s5, %s9858_s5 }
  0xbe   :  { %p9865_p2 = por %p9864_p1, %p9863_p0 }
  0xc0   :  { %p9866_p3 = pnand %p9865_p2, %p9859_p13 }
  0xc2   :  { %9869 = shalt.err (!%p9866_p3)
}
  0xc3   :  { %369 = dma.hbm_to_vmem [thread:$0]  %s10404_s14, 8192, %s364_s8, [#allocation38], %s10218_s13, %s10218_s13, %s10219_s23  }
  0xc4   :  { %s10230_s27 = smov [#allocation2]   ;;  %s10231_s10 = smov [#allocation6]  }
  0xc5   :  { %s100_s19 = sshll.u32 %s10230_s27, 4  ;;  %s119_s11 = sshll.u32 %s10231_s10, 4  ;;  %s101_s19 = int_to_ptr.vmem [resolvable:$true] %s100_s19  ;;  %s120_s11 = int_to_ptr.vmem [resolvable:$true] %s119_s11 }
  0xc6   :  { %s9878_s15 = scalar_lea.vmem %s101_s19, 32  ;;  %p9883_p5 = scmp.lt.s32.totalorder %s101_s19, %s101_s19 }
  0xc7   :  { %p9879_p4 = scmp.ne.s32.totalorder %s101_s19, %s9878_s15  ;;  %p9884_p6 = scmp.lt.s32.totalorder %s9878_s15, %s9878_s15 }
  0xc9   :  { %p9885_p7 = por %p9884_p6, %p9883_p5 }
  0xcb   :  { %p9886_p8 = pnand %p9885_p7, %p9879_p4 }
  0xcd   :  { %9889 = shalt.err (!%p9886_p8)
}
  0xce   :  { %103 = dma.hbm_to_vmem [thread:$0]  %s10264_s9, 32, %s101_s19, [#allocation3]  }
  0xcf   :  { %s9898_s6 = scalar_lea.vmem %s120_s11, 8192  ;;  %p9903_p10 = scmp.lt.s32.totalorder %s120_s11, %s120_s11 }
  0xd0   :  { %p9899_p9 = scmp.ne.s32.totalorder %s120_s11, %s9898_s6  ;;  %p9904_p11 = scmp.lt.s32.totalorder %s9898_s6, %s9898_s6 }
  0xd2   :  { %p9905_p12 = por %p9904_p11, %p9903_p10 }
  0xd4   :  { %p9906_p13 = pnand %p9905_p12, %p9899_p9 }
  0xd6   :  { %9909 = shalt.err (!%p9906_p13)
}
  0xd7   :  { %125 = dma.hbm_to_vmem [thread:$0]  %s10274_s17, 8192, %s120_s11, [#allocation5], %s10218_s13, %s10218_s13, %s10219_s23  }
  0xd8   :  { %s10232_s14 = smov [#allocation9]   ;;  %s10233_s12 = smov [#allocation12]  }
  0xd9   :  { %s145_s16 = sshll.u32 %s10232_s14, 4  ;;  %s170_s22 = sshll.u32 %s10233_s12, 4  ;;  %s146_s16 = int_to_ptr.vmem [resolvable:$true] %s145_s16  ;;  %s171_s22 = int_to_ptr.vmem [resolvable:$true] %s170_s22 }
  0xda   :  { %s9918_s21 = scalar_lea.vmem %s146_s16, 8192  ;;  %p9923_p1 = scmp.lt.s32.totalorder %s146_s16, %s146_s16 }
  0xdb   :  { %p9919_p0 = scmp.ne.s32.totalorder %s146_s16, %s9918_s21  ;;  %p9924_p2 = scmp.lt.s32.totalorder %s9918_s21, %s9918_s21 }
  0xdd   :  { %p9925_p3 = por %p9924_p2, %p9923_p1 }
  0xdf   :  { %p9926_p4 = pnand %p9925_p3, %p9919_p0 }
  0xe1   :  { %9929 = shalt.err (!%p9926_p4)
}
  0xe2   :  { %s13876_s9 = sld [smem:[#allocation59_spill]]  ;;  %s9938_s26 = scalar_lea.vmem %s171_s22, 64 }
  0xe3   :  { %p9939_p5 = scmp.ne.s32.totalorder %s171_s22, %s9938_s26  ;;  %p9943_p6 = scmp.lt.s32.totalorder %s171_s22, %s171_s22 }
  0xe4   :  { %p9944_p7 = scmp.lt.s32.totalorder %s9938_s26, %s9938_s26 }
  0xe6   :  { %p9945_p8 = por %p9944_p7, %p9943_p6 }
  0xe8   :  { %151 = dma.hbm_to_vmem [thread:$0]  %s13876_s9, 8192, %s146_s16, [#allocation8], %s10218_s13, %s10218_s13, %s10219_s23  }
  0xe9   :  { %p9946_p9 = pnand %p9945_p8, %p9939_p5 }
  0xeb   :  { %9949 = shalt.err (!%p9946_p9)
}
  0xec   :  { %s13877_s17 = sld [smem:[#allocation60_spill]]  ;;  %s10234_s28 = smov [#allocation15]  }
  0xed   :  { %s191_s1 = sshll.u32 %s10234_s28, 4  ;;  %s10235_s4 = smov [#allocation18]   ;;  %s192_s1 = int_to_ptr.vmem [resolvable:$true] %s191_s1 }
  0xee   :  { %s213_s20 = sshll.u32 %s10235_s4, 4  ;;  %s9958_s2 = scalar_lea.vmem %s192_s1, 8192  ;;  %s214_s20 = int_to_ptr.vmem [resolvable:$true] %s213_s20 }
  0xef   :  { %p9959_p10 = scmp.ne.s32.totalorder %s192_s1, %s9958_s2  ;;  %p9963_p11 = scmp.lt.s32.totalorder %s192_s1, %s192_s1 }
  0xf0   :  { %p9964_p12 = scmp.lt.s32.totalorder %s9958_s2, %s9958_s2 }
  0xf2   :  { %173 = dma.hbm_to_vmem [thread:$0]  %s13877_s17, 64, %s171_s22, [#allocation11]  }
  0xf3   :  { %p9965_p13 = por %p9964_p12, %p9963_p11 }
  0xf5   :  { %p9966_p0 = pnand %p9965_p13, %p9959_p10 }
  0xf7   :  { %9969 = shalt.err (!%p9966_p0)
}
  0xf8   :  { %s13878_s7 = sld [smem:[#allocation61_spill]]  ;;  %s9978_s8 = scalar_lea.vmem %s214_s20, 1280 }
  0xf9   :  { %p9979_p1 = scmp.ne.s32.totalorder %s214_s20, %s9978_s8  ;;  %p9983_p2 = scmp.lt.s32.totalorder %s214_s20, %s214_s20 }
  0xfa   :  { %p9984_p3 = scmp.lt.s32.totalorder %s9978_s8, %s9978_s8 }
  0xfc   :  { %p9985_p4 = por %p9984_p3, %p9983_p2 }
  0xfe   :  { %197 = dma.hbm_to_vmem [thread:$0]  %s13878_s7, 8192, %s192_s1, [#allocation14], %s10218_s13, %s10218_s13, %s10219_s23  }
  0xff   :  { %p9986_p5 = pnand %p9985_p4, %p9979_p1 }
 0x101   :  { %9989 = shalt.err (!%p9986_p5)
}
 0x102   :  { %s13879_s0 = sld [smem:[#allocation62_spill]]  ;;  %s10236_s5 = smov [#allocation21]  }
 0x103   :  { %s238_s27 = sshll.u32 %s10236_s5, 4  ;;  %s10237_s19 = smov [#allocation24]   ;;  %s239_s27 = int_to_ptr.vmem [resolvable:$true] %s238_s27 }
 0x104   :  { %s260_s10 = sshll.u32 %s10237_s19, 4  ;;  %s9998_s11 = scalar_lea.vmem %s239_s27, 16  ;;  %s261_s10 = int_to_ptr.vmem [resolvable:$true] %s260_s10 }
 0x105   :  { %p9999_p6 = scmp.ne.s32.totalorder %s239_s27, %s9998_s11  ;;  %s10002_s13 = scalar_lea.vmem %s239_s27, 32 }
 0x106   :  { %p10003_p7 = scmp.lt.s32.totalorder %s239_s27, %s239_s27  ;;  %p10004_p8 = scmp.lt.s32.totalorder %s10002_s13, %s9998_s11 }
 0x108   :  { %219 = dma.hbm_to_vmem [thread:$0]  %s13879_s0, 1280, %s214_s20, [#allocation17], %s10224_s30, %s10224_s30, %s10225_s18  }
 0x109   :  { %p10005_p9 = por %p10004_p8, %p10003_p7 }
 0x10b   :  { %p10006_p10 = pnand %p10005_p9, %p9999_p6 }
 0x10d   :  { %10009 = shalt.err (!%p10006_p10)
}
 0x10e   :  { %s13880_s15 = sld [smem:[#allocation64_spill]]  ;;  %s10018_s6 = scalar_lea.vmem %s261_s10, 16 }
 0x10f   :  { %p10019_p11 = scmp.ne.s32.totalorder %s261_s10, %s10018_s6  ;;  %s10022_s14 = scalar_lea.vmem %s261_s10, 32 }
 0x110   :  { %p10023_p12 = scmp.lt.s32.totalorder %s261_s10, %s261_s10  ;;  %p10024_p13 = scmp.lt.s32.totalorder %s10022_s14, %s10018_s6 }
 0x112   :  { %p10025_p0 = por %p10024_p13, %p10023_p12 }
 0x114   :  { %241 = dma.hbm_to_vmem [thread:$0]  %s13880_s15, 16, %s239_s27, [#allocation20]  }
 0x115   :  { %p10026_p1 = pnand %p10025_p0, %p10019_p11 }
 0x117   :  { %10029 = shalt.err (!%p10026_p1)
}
 0x118   :  { %s13881_s16 = sld [smem:[#allocation65_spill]]  ;;  %s10238_s12 = smov [#allocation27]  }
 0x119   :  { %s282_s22 = sshll.u32 %s10238_s12, 4  ;;  %s10239_s21 = smov [#allocation30]   ;;  %s283_s22 = int_to_ptr.vmem [resolvable:$true] %s282_s22 }
 0x11a   :  { %s304_s9 = sshll.u32 %s10239_s21, 4  ;;  %s10038_s26 = scalar_lea.vmem %s283_s22, 16  ;;  %s305_s9 = int_to_ptr.vmem [resolvable:$true] %s304_s9 }
 0x11b   :  { %p10039_p2 = scmp.ne.s32.totalorder %s283_s22, %s10038_s26  ;;  %s10042_s17 = scalar_lea.vmem %s283_s22, 32 }
 0x11c   :  { %p10043_p3 = scmp.lt.s32.totalorder %s283_s22, %s283_s22  ;;  %p10044_p4 = scmp.lt.s32.totalorder %s10042_s17, %s10038_s26 }
 0x11e   :  { %263 = dma.hbm_to_vmem [thread:$0]  %s13881_s16, 16, %s261_s10, [#allocation23]  }
 0x11f   :  { %p10045_p5 = por %p10044_p4, %p10043_p3 }
 0x121   :  { %p10046_p6 = pnand %p10045_p5, %p10039_p2 }
 0x123   :  { %10049 = shalt.err (!%p10046_p6)
}
 0x124   :  { %s13882_s28 = sld [smem:[#allocation66_spill]]  ;;  %s10058_s1 = scalar_lea.vmem %s305_s9, 16 }
 0x125   :  { %p10059_p7 = scmp.ne.s32.totalorder %s305_s9, %s10058_s1  ;;  %s10062_s4 = scalar_lea.vmem %s305_s9, 32 }
 0x126   :  { %p10063_p8 = scmp.lt.s32.totalorder %s305_s9, %s305_s9  ;;  %p10064_p9 = scmp.lt.s32.totalorder %s10062_s4, %s10058_s1 }
 0x128   :  { %p10065_p10 = por %p10064_p9, %p10063_p8 }
 0x12a   :  { %285 = dma.hbm_to_vmem [thread:$0]  %s13882_s28, 16, %s283_s22, [#allocation26]  }
 0x12b   :  { %p10066_p11 = pnand %p10065_p10, %p10059_p7 }
 0x12d   :  { %10069 = shalt.err (!%p10066_p11)
}
 0x12e   :  { %s13883_s20 = sld [smem:[#allocation67_spill]]  ;;  %s10240_s2 = smov [#allocation33]  }
 0x12f   :  { %s326_s7 = sshll.u32 %s10240_s2, 4  ;;  %s10241_s8 = smov [#allocation36]   ;;  %s327_s7 = int_to_ptr.vmem [resolvable:$true] %s326_s7 }
 0x130   :  { %s349_s0 = sshll.u32 %s10241_s8, 4  ;;  %s10078_s5 = scalar_lea.vmem %s327_s7, 16  ;;  %s350_s0 = int_to_ptr.vmem [resolvable:$true] %s349_s0 }
 0x131   :  { %p10079_p12 = scmp.ne.s32.totalorder %s327_s7, %s10078_s5  ;;  %s10082_s27 = scalar_lea.vmem %s327_s7, 32 }
 0x132   :  { %p10083_p13 = scmp.lt.s32.totalorder %s327_s7, %s327_s7  ;;  %p10084_p0 = scmp.lt.s32.totalorder %s10082_s27, %s10078_s5 }
 0x134   :  { %307 = dma.hbm_to_vmem [thread:$0]  %s13883_s20, 16, %s305_s9, [#allocation29]  }
 0x135   :  { %p10085_p1 = por %p10084_p0, %p10083_p13 }
 0x137   :  { %p10086_p2 = pnand %p10085_p1, %p10079_p12 }
 0x139   :  { %10089 = shalt.err (!%p10086_p2)
}
 0x13a   :  { %s13884_s19 = sld [smem:[#allocation68_spill]]  ;;  %s10098_s10 = scalar_lea.vmem %s350_s0, 8192 }
 0x13b   :  { %p10099_p3 = scmp.ne.s32.totalorder %s350_s0, %s10098_s10  ;;  %p10103_p4 = scmp.lt.s32.totalorder %s350_s0, %s350_s0 }
 0x13c   :  { %p10104_p5 = scmp.lt.s32.totalorder %s10098_s10, %s10098_s10 }
 0x13e   :  { %p10105_p6 = por %p10104_p5, %p10103_p4 }
 0x140   :  { %329 = dma.hbm_to_vmem [thread:$0]  %s13884_s19, 16, %s327_s7, [#allocation32]  }
 0x141   :  { %p10106_p7 = pnand %p10105_p6, %p10099_p3 }
 0x143   :  { %10109 = shalt.err (!%p10106_p7)
}
 0x144   :  { %s13885_s11 = sld [smem:[#allocation70_spill]]  ;;  %s10242_s13 = smov [#allocation39]  }
 0x145   :  { %s377_s15 = sshll.u32 %s10242_s13, 4  ;;  %s10243_s6 = smov [#allocation40]   ;;  %s378_s15 = int_to_ptr.vmem [resolvable:$true] %s377_s15 }
 0x146   :  { %s391_s14 = sshll.u32 %s10243_s6, 4  ;;  %s10118_s16 = scalar_lea.vmem %s378_s15, 8192  ;;  %s392_s14 = int_to_ptr.vmem [resolvable:$true] %s391_s14 }
 0x147   :  { %p10119_p8 = scmp.ne.s32.totalorder %s378_s15, %s10118_s16  ;;  %p10123_p9 = scmp.lt.s32.totalorder %s378_s15, %s378_s15 }
 0x148   :  { %p10124_p10 = scmp.lt.s32.totalorder %s10118_s16, %s10118_s16 }
 0x14a   :  { %355 = dma.hbm_to_vmem [thread:$0]  %s13885_s11, 8192, %s350_s0, [#allocation35], %s10224_s30, %s10224_s30, %s10225_s18  }
 0x14b   :  { %p10125_p11 = por %p10124_p10, %p10123_p9 }
 0x14d   :  { %p10126_p12 = pnand %p10125_p11, %p10119_p8 }
 0x14f   :  { %10129 = shalt.err (!%p10126_p12)
}
 0x150   :  { %s13886_s12 = sld [smem:[#allocation73_spill]]  ;;  %s10138_s22 = scalar_lea.vmem %s392_s14, 2048 }
 0x151   :  { %p10139_p13 = scmp.ne.s32.totalorder %s392_s14, %s10138_s22  ;;  %p10143_p0 = scmp.lt.s32.totalorder %s392_s14, %s392_s14 }
 0x152   :  { %p10144_p1 = scmp.lt.s32.totalorder %s10138_s22, %s10138_s22 }
 0x154   :  { %p10145_p2 = por %p10144_p1, %p10143_p0 }
 0x156   :  { %383 = dma.hbm_to_vmem [thread:$0]  %s13886_s12, 8192, %s378_s15, [#allocation38], %s10224_s30, %s10224_s30, %s10225_s18  }
 0x157   :  { %p10146_p3 = pnand %p10145_p2, %p10139_p13 }
 0x159   :  { %10149 = shalt.err (!%p10146_p3)
}
 0x15a   :  { %397 = dma.hbm_to_vmem [thread:$0]  %s10424_s3, 2048, %s392_s14, [#allocation41], %s10224_s30, %s10224_s30, %s10225_s18  }
 0x15b   :  { %10150 = dma.done.wait [#allocation3], 32  }
 0x15c   :  { %10151 = vsyncadd [#allocation3], 4294967264 }
 0x15d   :  { %10152 = dma.done.wait [#allocation5], 8704  }
 0x15e   :  { %10153 = vsyncadd [#allocation5], 4294958592 }
 0x15f   :  { %10154 = dma.done.wait [#allocation8], 8256  }
 0x160   :  { %10155 = vsyncadd [#allocation8], 4294959040 }
 0x161   :  { %10156 = dma.done.wait [#allocation11], 8256  }
 0x162   :  { %10157 = vsyncadd [#allocation11], 4294959040 }
 0x163   :  { %10158 = dma.done.wait [#allocation14], 16384  }
 0x164   :  { %10159 = vsyncadd [#allocation14], 4294950912 }
 0x165   :  { %10160 = dma.done.wait [#allocation17], 1344  }
 0x166   :  { %10161 = vsyncadd [#allocation17], 4294965952 }
 0x167   :  { %10162 = dma.done.wait [#allocation20], 32  }
 0x168   :  { %10163 = vsyncadd [#allocation20], 4294967264 }
 0x169   :  { %10164 = dma.done.wait [#allocation23], 2064  }
 0x16a   :  { %10165 = vsyncadd [#allocation23], 4294965232 }
 0x16b   :  { %10166 = dma.done.wait [#allocation26], 2064  }
 0x16c   :  { %10167 = vsyncadd [#allocation26], 4294965232 }
 0x16d   :  { %10168 = dma.done.wait [#allocation29], 2064  }
 0x16e   :  { %10169 = vsyncadd [#allocation29], 4294965232 }
 0x16f   :  { %10170 = dma.done.wait [#allocation32], 2064  }
 0x170   :  { %10171 = vsyncadd [#allocation32], 4294965232 }
 0x171   :  { %10172 = dma.done.wait [#allocation35], 16384  }
 0x172   :  { %10173 = vsyncadd [#allocation35], 4294950912 }
 0x173   :  { %10174 = dma.done.wait [#allocation38], 16384  }
 0x174   :  { %10175 = vsyncadd [#allocation38], 4294950912 }
 0x175   :  { %10176 = dma.done.wait [#allocation41], 2048  }
 0x176   :  { %10177 = vsyncadd [#allocation41], 4294965248  ;;  %s13887_s3 = sld [smem:[#allocation56_spill]]  ;;  %v13538_v0 = vmov 0.0   ;;  %v483_v1 = vld [vmem:[#allocation4 + $0x8] sm:$0xff]  ;;  %v485_v2 = vld [vmem:[#allocation4 + $0x18] sm:$0xff] }
 0x177   :  { %579 = vmatprep.mubr.f32.mxu0 %v13538_v0  ;;  %656 = vmatprep.mubr.f32.mxu1 %v13538_v0  ;;  %v482_v3 = vld [vmem:[#allocation4] sm:$0xff]  ;;  %vm508_vm0 = vcmask 64512   ;;  %v484_v4 = vld [vmem:[#allocation4 + $0x10] sm:$0xff]  ;;  %v10515_v6 = vld [vmem:[#allocation6 + $0x1e8] sm:$0xff]  ;;  %vm2201_vm1 = vcmask 1041408   ;;  %vm2203_vm2 = vcmask 1043456  }
 0x178   :  { %545 = vmatprep.subr.mxu0 %v483_v1  ;;  %622 = vmatprep.subr.mxu1 %v485_v2  ;;  %13888 = vst [vmem:[#allocation75_spill] sm:$0xff] %v10515_v6  ;;  %v10517_v7 = vld [vmem:[#allocation6 + $0x1f8] sm:$0xff]  ;;  %v10519_v8 = vld [vmem:[#allocation6 + $0x1e0] sm:$0xff]  ;;  %v10521_v9 = vld [vmem:[#allocation6 + $0x1f0] sm:$0xff]  ;;  %vm2205_vm3 = vcmask 1045504   ;;  %s14065_s30 = sld [smem:[#allocation57_spill]] }
 0x179   :  { %546 = vmatpush1.msra.mxu0 %v482_v3  ;;  %623 = vmatpush1.msra.mxu1 %v484_v4  ;;  %13889 = vst [vmem:[#allocation76_spill] sm:$0xff] %v10517_v7  ;;  %v10525_v10 = vld [vmem:[#allocation6 + $0x1c8] sm:$0xff]  ;;  %v10527_v11 = vld [vmem:[#allocation6 + $0x1d8] sm:$0xff]  ;;  %v10531_v12 = vld [vmem:[#allocation6 + $0x1c0] sm:$0xff]  ;;  %s14067_s21 = sld [smem:[#allocation58_spill]]  ;;  %vm5810_vm4 = vcmask 1040384  }
 0x17a   :  { %733 = vmatprep.subr.mxu0 %v10515_v6  ;;  %804 = vmatprep.subr.mxu1 %v10517_v7  ;;  %v10533_v13 = vld [vmem:[#allocation6 + $0x1d0] sm:$0xff]  ;;  %v10537_v14 = vld [vmem:[#allocation6 + $0x1a8] sm:$0xff]  ;;  %v10539_v15 = vld [vmem:[#allocation6 + $0x1b8] sm:$0xff]  ;;  %vm10245_vm5 = vmmov 0   ;;  %s14469_s9 = sld [smem:[#allocation63_spill]]  ;;  %vm5806_vm6 = vcmask 596992  }
 0x17b   :  { %v10543_v16 = vld [vmem:[#allocation6 + $0x1a0] sm:$0xff]  ;;  %v10545_v17 = vld [vmem:[#allocation6 + $0x1b0] sm:$0xff]  ;;  %v10549_v18 = vld [vmem:[#allocation6 + $0x188] sm:$0xff]  ;;  %vm5900_vm7 = vcmask 523264   ;;  %vm6276_vm8 = vcmask 1043458   ;;  %s14470_s26 = sld [smem:[#allocation69_spill]] }
 0x17c   :  { %v480_v5 = vld [vmem:[%s13887_s3] sm:$0xff]  ;;  %v10557_v21 = vld [vmem:[#allocation6 + $0x190] sm:$0xff]  ;;  %v10561_v22 = vld [vmem:[#allocation6 + $0x168] sm:$0xff]  ;;  %s14475_s17 = sld [smem:[#allocation71_spill]]  ;;  %s10248_s4 = smov 104   ;;  %vm8217_vm9 = vcmask 130048  }
 0x17d   :  { %8285 = vmatmul.mubr.msk.f32.vlgmr.msra.gmra.mxu0 %vm508_vm0, %v480_v5  ;;  %8287 = vmatmul.mubr.msk.f32.vlgmr.msra.gmra.mxu1 %vm508_vm0, %v480_v5  ;;  %v10551_v19 = vld [vmem:[#allocation6 + $0x198] sm:$0xff]  ;;  %v10555_v20 = vld [vmem:[#allocation6 + $0x180] sm:$0xff]  ;;  %v10569_v25 = vld [vmem:[#allocation6 + $0x170] sm:$0xff]  ;;  %s14476_s28 = sld [smem:[#allocation72_spill]]  ;;  %s10249_s20 = smov 24   ;;  %vm8219_vm10 = vcmask 195584  }
 0x17e   :  { %734 = vmatpush1.msra.mxu0 %v10519_v8  ;;  %805 = vmatpush1.msra.mxu1 %v10521_v9  ;;  %v10563_v23 = vld [vmem:[#allocation6 + $0x178] sm:$0xff]  ;;  %v10567_v24 = vld [vmem:[#allocation6 + $0x160] sm:$0xff]  ;;  %v10573_v26 = vld [vmem:[#allocation6 + $0x148] sm:$0xff]  ;;  %s14477_s1 = sld [smem:[#allocation74_spill]]  ;;  %s10250_s2 = smov 120   ;;  %vm8221_vm11 = vcmask 261120  }
 0x17f   :  { %735 = vmatprep.subr.mxu0 %v10525_v10  ;;  %806 = vmatprep.subr.mxu1 %v10527_v11  ;;  %v10575_v27 = vld [vmem:[#allocation6 + $0x158] sm:$0xff]  ;;  %v10579_v28 = vld [vmem:[#allocation6 + $0x140] sm:$0xff]  ;;  %v10581_v29 = vld [vmem:[#allocation6 + $0x150] sm:$0xff]  ;;  %vm8223_vm12 = vcmask 326656   ;;  %vm8225_vm13 = vcmask 392192   ;;  %vm8227_vm14 = vcmask 457728  }
 0x180   :  { %736 = vmatpush1.msra.mxu0 %v10531_v12  ;;  %807 = vmatpush1.msra.mxu1 %v10533_v13  ;;  %v10585_v30 = vld [vmem:[#allocation6 + $0x128] sm:$0xff]  ;;  %v10587_v31 = vld [vmem:[#allocation6 + $0x138] sm:$0xff]  ;;  %v10591_v32 = vld [vmem:[#allocation6 + $0x120] sm:$0xff]  ;;  %vm8229_vm15 = vcmask 517120  }
 0x181   :  { %737 = vmatprep.subr.mxu0 %v10537_v14  ;;  %808 = vmatprep.subr.mxu1 %v10539_v15  ;;  %v10593_v33 = vld [vmem:[#allocation6 + $0x130] sm:$0xff]  ;;  %v10597_v34 = vld [vmem:[#allocation6 + $0x108] sm:$0xff]  ;;  %v10599_v35 = vld [vmem:[#allocation6 + $0x118] sm:$0xff] }
 0x182   :  { %738 = vmatpush1.msra.mxu0 %v10543_v16  ;;  %809 = vmatpush1.msra.mxu1 %v10545_v17  ;;  %v10603_v36 = vld [vmem:[#allocation6 + $0x100] sm:$0xff]  ;;  %v10605_v37 = vld [vmem:[#allocation6 + $0x110] sm:$0xff]  ;;  %v10609_v38 = vld [vmem:[#allocation6 + $0xe8] sm:$0xff] }
 0x183   :  { %739 = vmatprep.subr.mxu0 %v10549_v18  ;;  %810 = vmatprep.subr.mxu1 %v10551_v19  ;;  %v10611_v39 = vld [vmem:[#allocation6 + $0xf8] sm:$0xff]  ;;  %v10615_v40 = vld [vmem:[#allocation6 + $0xe0] sm:$0xff]  ;;  %v10617_v41 = vld [vmem:[#allocation6 + $0xf0] sm:$0xff] }
 0x184   :  { %740 = vmatpush1.msra.mxu0 %v10555_v20  ;;  %811 = vmatpush1.msra.mxu1 %v10557_v21  ;;  %v10621_v42 = vld [vmem:[#allocation6 + $0xc8] sm:$0xff]  ;;  %v10623_v43 = vld [vmem:[#allocation6 + $0xd8] sm:$0xff]  ;;  %v10627_v44 = vld [vmem:[#allocation6 + $0xc0] sm:$0xff] }
 0x185   :  { %741 = vmatprep.subr.mxu0 %v10561_v22  ;;  %812 = vmatprep.subr.mxu1 %v10563_v23  ;;  %v10629_v45 = vld [vmem:[#allocation6 + $0xd0] sm:$0xff]  ;;  %v10633_v46 = vld [vmem:[#allocation6 + $0xa8] sm:$0xff]  ;;  %v10635_v47 = vld [vmem:[#allocation6 + $0xb8] sm:$0xff] }
 0x186   :  { %742 = vmatpush1.msra.mxu0 %v10567_v24  ;;  %813 = vmatpush1.msra.mxu1 %v10569_v25  ;;  %v10639_v48 = vld [vmem:[#allocation6 + $0xa0] sm:$0xff]  ;;  %v10641_v49 = vld [vmem:[#allocation6 + $0xb0] sm:$0xff]  ;;  %v10645_v50 = vld [vmem:[#allocation6 + $0x88] sm:$0xff] }
 0x187   :  { %743 = vmatprep.subr.mxu0 %v10573_v26  ;;  %814 = vmatprep.subr.mxu1 %v10575_v27  ;;  %13890 = vst [vmem:[#allocation77_spill] sm:$0xff] %v10641_v49  ;;  %13891 = vst [vmem:[#allocation78_spill] sm:$0xff] %v10645_v50  ;;  %v10647_v51 = vld [vmem:[#allocation6 + $0x98] sm:$0xff]  ;;  %v10651_v52 = vld [vmem:[#allocation6 + $0x80] sm:$0xff] }
 0x188   :  { %744 = vmatpush1.msra.mxu0 %v10579_v28  ;;  %815 = vmatpush1.msra.mxu1 %v10581_v29  ;;  %13892 = vst [vmem:[#allocation79_spill] sm:$0xff] %v10647_v51  ;;  %13893 = vst [vmem:[#allocation80_spill] sm:$0xff] %v10651_v52  ;;  %v10653_v53 = vld [vmem:[#allocation6 + $0x90] sm:$0xff]  ;;  %v10657_v54 = vld [vmem:[#allocation6 + $0x68] sm:$0xff] }
 0x189   :  { %745 = vmatprep.subr.mxu0 %v10585_v30  ;;  %816 = vmatprep.subr.mxu1 %v10587_v31  ;;  %13894 = vst [vmem:[#allocation81_spill] sm:$0xff] %v10653_v53  ;;  %13895 = vst [vmem:[#allocation82_spill] sm:$0xff] %v10657_v54  ;;  %v10659_v55 = vld [vmem:[#allocation6 + $0x78] sm:$0xff]  ;;  %v10663_v56 = vld [vmem:[#allocation6 + $0x60] sm:$0xff] }
 0x18a   :  { %746 = vmatpush1.msra.mxu0 %v10591_v32  ;;  %817 = vmatpush1.msra.mxu1 %v10593_v33  ;;  %13896 = vst [vmem:[#allocation83_spill] sm:$0xff] %v10659_v55  ;;  %13897 = vst [vmem:[#allocation84_spill] sm:$0xff] %v10663_v56  ;;  %v10667_v57 = vld [vmem:[#allocation6 + $0x70] sm:$0xff]  ;;  %v481_v58 = vld [vmem:[%s13887_s3 + $0x8] sm:$0xff] }
 0x18b   :  { %747 = vmatprep.subr.mxu0 %v10597_v34  ;;  %818 = vmatprep.subr.mxu1 %v10599_v35  ;;  %13898 = vst [vmem:[#allocation85_spill] sm:$0xff] %v10667_v57  ;;  %v10672_v59 = vld [vmem:[#allocation6 + $0x48] sm:$0xff]  ;;  %v10674_v60 = vld [vmem:[#allocation6 + $0x58] sm:$0xff]  ;;  %v10678_v61 = vld [vmem:[#allocation6 + $0x40] sm:$0xff] }
 0x18c   :  { %748 = vmatpush1.msra.mxu0 %v10603_v36  ;;  %819 = vmatpush1.msra.mxu1 %v10605_v37  ;;  %13899 = vst [vmem:[#allocation86_spill] sm:$0xff] %v10672_v59  ;;  %13900 = vst [vmem:[#allocation87_spill] sm:$0xff] %v10674_v60  ;;  %v10682_v62 = vld [vmem:[#allocation6 + $0x50] sm:$0xff]  ;;  %v10684_v63 = vld [vmem:[#allocation6 + $0x28] sm:$0xff] }
 0x18d   :  { %749 = vmatprep.subr.mxu0 %v10609_v38  ;;  %820 = vmatprep.subr.mxu1 %v10611_v39  ;;  %13901 = vst [vmem:[#allocation88_spill] sm:$0xff] %v10678_v61  ;;  %13902 = vst [vmem:[#allocation89_spill] sm:$0xff] %v10682_v62  ;;  %v10688_v1 = vld [vmem:[#allocation6 + $0x38] sm:$0xff]  ;;  %v10692_v2 = vld [vmem:[#allocation6 + $0x20] sm:$0xff] }
 0x18e   :  { %750 = vmatpush1.msra.mxu0 %v10615_v40  ;;  %821 = vmatpush1.msra.mxu1 %v10617_v41  ;;  %13903 = vst [vmem:[#allocation90_spill] sm:$0xff] %v10684_v63  ;;  %13904 = vst [vmem:[#allocation91_spill] sm:$0xff] %v10688_v1  ;;  %v10694_v3 = vld [vmem:[#allocation6 + $0x30] sm:$0xff]  ;;  %v10698_v4 = vld [vmem:[#allocation6 + $0x8] sm:$0xff] }
 0x18f   :  { %751 = vmatprep.subr.mxu0 %v10621_v42  ;;  %822 = vmatprep.subr.mxu1 %v10623_v43  ;;  %13905 = vst [vmem:[#allocation92_spill] sm:$0xff] %v10692_v2  ;;  %13906 = vst [vmem:[#allocation93_spill] sm:$0xff] %v10694_v3  ;;  %v10700_v5 = vld [vmem:[#allocation6 + $0x18] sm:$0xff] }
 0x190   :  { %752 = vmatpush1.msra.mxu0 %v10627_v44  ;;  %823 = vmatpush1.msra.mxu1 %v10629_v45  ;;  %13907 = vst [vmem:[#allocation94_spill] sm:$0xff] %v10698_v4  ;;  %13908 = vst [vmem:[#allocation95_spill] sm:$0xff] %v10700_v5 }
 0x191   :  { %753 = vmatprep.subr.mxu0 %v10633_v46  ;;  %824 = vmatprep.subr.mxu1 %v10635_v47 }
 0x192   :  { %754 = vmatpush1.msra.mxu0 %v10639_v48  ;;  %825 = vmatpush1.msra.mxu1 %v10641_v49 }
 0x193   :  { %755 = vmatprep.subr.mxu0 %v10645_v50  ;;  %826 = vmatprep.subr.mxu1 %v10647_v51 }
 0x194   :  { %756 = vmatpush1.msra.mxu0 %v10651_v52  ;;  %827 = vmatpush1.msra.mxu1 %v10653_v53 }
 0x195   :  { %757 = vmatprep.subr.mxu0 %v10657_v54  ;;  %828 = vmatprep.subr.mxu1 %v10659_v55 }
 0x196   :  { %585 = vmatprep.mubr.f32.mxu0 %v13538_v0  ;;  %758 = vmatpush1.msra.mxu0 %v10663_v56 }
 0x197   :  { %829 = vmatpush1.msra.mxu1 %v10667_v57  ;;  %8286 = vmatmul.mubr.msk.f32.gmra.mxu0 %vm508_vm0, %v481_v58 }
 0x198   :  { %759 = vmatprep.subr.mxu0 %v10672_v59  ;;  %830 = vmatprep.subr.mxu1 %v10674_v60  ;;  %v10704_v60 = vld [vmem:[#allocation6] sm:$0xff] }
 0x199   :  { %662 = vmatprep.mubr.f32.mxu1 %v13538_v0  ;;  %760 = vmatpush1.msra.mxu0 %v10678_v61  ;;  %13909 = vst [vmem:[#allocation96_spill] sm:$0xff] %v10704_v60  ;;  %v10708_v0 = vld [vmem:[#allocation6 + $0x10] sm:$0xff] }
 0x19a   :  { %831 = vmatpush1.msra.mxu1 %v10682_v62  ;;  %761 = vmatprep.subr.mxu0 %v10684_v63  ;;  %13910 = vst [vmem:[#allocation97_spill] sm:$0xff] %v10708_v0  ;;  %v13911_v63 = vmov 0.0  }
 0x19b   :  { %8288 = vmatmul.mubr.msk.f32.gmra.mxu1 %vm508_vm0, %v481_v58  ;;  %832 = vmatprep.subr.mxu1 %v10688_v1  ;;  %v13912_v58 = vld [vmem:[#allocation87_spill] sm:$0xff] }
 0x19c   :  { %762 = vmatpush1.msra.mxu0 %v10692_v2  ;;  %833 = vmatpush1.msra.mxu1 %v10694_v3 }
 0x19d   :  { %763 = vmatprep.subr.mxu0 %v10698_v4  ;;  %834 = vmatprep.subr.mxu1 %v10700_v5 }
 0x19e   :  { %764 = vmatpush1.msra.mxu0 %v10704_v60  ;;  %797 = vmatprep.mubr.f32.mxu0 %v13911_v63 }
 0x19f   :  { %835 = vmatpush1.msra.mxu1 %v10708_v0  ;;  %868 = vmatprep.mubr.f32.mxu1 %v13911_v63 }
 0x1a0   :  { %798 = vmatmul.mubr.f32.vlgmr.msra.gmra.mxu0 %v13911_v63  ;;  %869 = vmatmul.mubr.f32.vlgmr.msra.gmra.mxu1 %v13911_v63 }
 0x1a1   :  { %903 = vmatprep.subr.mxu0 %v10515_v6  ;;  %974 = vmatprep.subr.mxu1 %v10517_v7 }
 0x1a2   :  { %904 = vmatpush1.msra.mxu0 %v10519_v8  ;;  %975 = vmatpush1.msra.mxu1 %v10521_v9 }
 0x1a3   :  { %905 = vmatprep.subr.mxu0 %v10525_v10  ;;  %976 = vmatprep.subr.mxu1 %v10527_v11 }
 0x1a4   :  { %906 = vmatpush1.msra.mxu0 %v10531_v12  ;;  %977 = vmatpush1.msra.mxu1 %v10533_v13 }
 0x1a5   :  { %907 = vmatprep.subr.mxu0 %v10537_v14  ;;  %978 = vmatprep.subr.mxu1 %v10539_v15 }
 0x1a6   :  { %908 = vmatpush1.msra.mxu0 %v10543_v16  ;;  %979 = vmatpush1.msra.mxu1 %v10545_v17 }
 0x1a7   :  { %909 = vmatprep.subr.mxu0 %v10549_v18  ;;  %980 = vmatprep.subr.mxu1 %v10551_v19 }
 0x1a8   :  { %910 = vmatpush1.msra.mxu0 %v10555_v20  ;;  %981 = vmatpush1.msra.mxu1 %v10557_v21 }
 0x1a9   :  { %911 = vmatprep.subr.mxu0 %v10561_v22  ;;  %982 = vmatprep.subr.mxu1 %v10563_v23 }
 0x1aa   :  { %912 = vmatpush1.msra.mxu0 %v10567_v24  ;;  %983 = vmatpush1.msra.mxu1 %v10569_v25 }
 0x1ab   :  { %913 = vmatprep.subr.mxu0 %v10573_v26  ;;  %984 = vmatprep.subr.mxu1 %v10575_v27 }
 0x1ac   :  { %914 = vmatpush1.msra.mxu0 %v10579_v28  ;;  %985 = vmatpush1.msra.mxu1 %v10581_v29 }
 0x1ad   :  { %915 = vmatprep.subr.mxu0 %v10585_v30  ;;  %986 = vmatprep.subr.mxu1 %v10587_v31 }
 0x1ae   :  { %916 = vmatpush1.msra.mxu0 %v10591_v32  ;;  %987 = vmatpush1.msra.mxu1 %v10593_v33 }
 0x1af   :  { %917 = vmatprep.subr.mxu0 %v10597_v34  ;;  %988 = vmatprep.subr.mxu1 %v10599_v35 }
 0x1b0   :  { %918 = vmatpush1.msra.mxu0 %v10603_v36  ;;  %989 = vmatpush1.msra.mxu1 %v10605_v37 }
 0x1b1   :  { %919 = vmatprep.subr.mxu0 %v10609_v38  ;;  %990 = vmatprep.subr.mxu1 %v10611_v39 }
 0x1b2   :  { %920 = vmatpush1.msra.mxu0 %v10615_v40  ;;  %991 = vmatpush1.msra.mxu1 %v10617_v41 }
 0x1b3   :  { %921 = vmatprep.subr.mxu0 %v10621_v42  ;;  %992 = vmatprep.subr.mxu1 %v10623_v43 }
 0x1b4   :  { %922 = vmatpush1.msra.mxu0 %v10627_v44  ;;  %993 = vmatpush1.msra.mxu1 %v10629_v45 }
 0x1b5   :  { %923 = vmatprep.subr.mxu0 %v10633_v46  ;;  %994 = vmatprep.subr.mxu1 %v10635_v47 }
 0x1b6   :  { %924 = vmatpush1.msra.mxu0 %v10639_v48  ;;  %995 = vmatpush1.msra.mxu1 %v10641_v49 }
 0x1b7   :  { %925 = vmatprep.subr.mxu0 %v10645_v50  ;;  %996 = vmatprep.subr.mxu1 %v10647_v51  ;;  %v13913_v51 = vld [vmem:[#allocation90_spill] sm:$0xff] }
 0x1b8   :  { %926 = vmatpush1.msra.mxu0 %v10651_v52  ;;  %997 = vmatpush1.msra.mxu1 %v10653_v53 }
 0x1b9   :  { %927 = vmatprep.subr.mxu0 %v10657_v54  ;;  %998 = vmatprep.subr.mxu1 %v10659_v55 }
 0x1ba   :  { %928 = vmatpush1.msra.mxu0 %v10663_v56  ;;  %999 = vmatpush1.msra.mxu1 %v10667_v57 }
 0x1bb   :  { %929 = vmatprep.subr.mxu0 %v10672_v59  ;;  %1000 = vmatprep.subr.mxu1 %v13912_v58 }
 0x1bc   :  { %930 = vmatpush1.msra.mxu0 %v10678_v61  ;;  %1001 = vmatpush1.msra.mxu1 %v10682_v62 }
 0x1bd   :  { %931 = vmatprep.subr.mxu0 %v13913_v51  ;;  %1002 = vmatprep.subr.mxu1 %v10688_v1  ;;  %v488_v1 = vlaneseq }
 0x1be   :  { %932 = vmatpush1.msra.mxu0 %v10692_v2  ;;  %1003 = vmatpush1.msra.mxu1 %v10694_v3 }
 0x1bf   :  { %933 = vmatprep.subr.mxu0 %v10698_v4  ;;  %1004 = vmatprep.subr.mxu1 %v10700_v5  ;;  %v489_v2 = vshrl.u32 %v488_v1, 7  ;;  %v486_v4 = vld [vmem:[#allocation7] sm:$0xf] }
 0x1c0   :  { %934 = vmatpush1.msra.mxu0 %v10704_v60  ;;  %967 = vmatprep.mubr.f32.mxu0 %v13911_v63 }
 0x1c1   :  { %1005 = vmatpush1.msra.mxu1 %v10708_v0  ;;  %1038 = vmatprep.mubr.f32.mxu1 %v13911_v63  ;;  %v10786_v3 = vsub.s32 0, %v489_v2  ;;  %v10788_v62 = vsub.s32 1, %v489_v2  ;;  %v10791_v58 = vsub.s32 2, %v489_v2 }
 0x1c2   :  { %1091 = vmatprep.subr.mxu0 %v10515_v6  ;;  %1162 = vmatprep.subr.mxu1 %v10517_v7  ;;  %v10794_v6 = vsub.s32 3, %v489_v2 }
 0x1c3   :  { %13914 = vst [vmem:[#allocation98_spill] sm:$0xff] %v10786_v3  ;;  %13915 = vst [vmem:[#allocation99_spill] sm:$0xff] %v10788_v62  ;;  %v491_v61 = vrot.slane %v486_v4, %v10786_v3  ;;  %v495_v63 = vrot.slane %v486_v4, %v10788_v62  ;;  %v499_v57 = vrot.slane %v486_v4, %v10791_v58 }
 0x1c4   :  { %13916 = vst [vmem:[#allocation100_spill] sm:$0xff] %v10791_v58  ;;  %13917 = vst [vmem:[#allocation101_spill] sm:$0xff] %v10794_v6  ;;  %v503_v54 = vrot.slane %v486_v4, %v10794_v6 }
 0x23d   :  { %v581_v51 = vpop.f32.mrf.mxu0  ;;  %v658_v60 = vpop.f32.mrf.mxu1 }
 0x23e   :  { %v10806_v50 = vadd.f32 %v581_v51, %v491_v61  ;;  %v10815_v51 = vadd.f32 %v658_v60, %v499_v57 }
 0x23f   :  { %v583_v5 = vpop.f32.mrf.mxu0  ;;  %v660_v1 = vpop.f32.mrf.mxu1 }
 0x240   :  { %v10808_v62 = vadd.f32 %v583_v5, %v495_v63  ;;  %v10812_v4 = vadd.f32 %v660_v1, %v503_v54 }
 0x257   :  { %v587_v0 = vpop.f32.mrf.mxu0 }
 0x258   :  { %v10796_v7 = vadd.f32 %v587_v0, %v491_v61 }
 0x259   :  { %v589_v59 = vpop.f32.mrf.mxu0 }
 0x25a   :  { %13918 = vst [vmem:[#allocation102_spill] sm:$0xff] %v10796_v7  ;;  %v10799_v56 = vadd.f32 %v589_v59, %v495_v63 }
 0x25b   :  { %v664_v55 = vpop.f32.mrf.mxu1 }
 0x25c   :  { %13919 = vst [vmem:[#allocation103_spill] sm:$0xff] %v10799_v56  ;;  %v10802_v53 = vadd.f32 %v664_v55, %v499_v57 }
 0x25d   :  { %v666_v3 = vpop.f32.mrf.mxu1 }
 0x25e   :  { %13920 = vst [vmem:[#allocation104_spill] sm:$0xff] %v10802_v53  ;;  %v10804_v52 = vadd.f32 %v666_v3, %v503_v54  ;;  %v13938_v53 = vld [vmem:[#allocation92_spill] sm:$0xff] }
 0x260   :  { %13921 = vst [vmem:[#allocation105_spill] sm:$0xff] %v10804_v52  ;;  %v799_v2 = vpop.f32.mrf.mxu0  ;;  %v870_v58 = vpop.f32.mrf.mxu1  ;;  %v13939_v52 = vld [vmem:[#allocation93_spill] sm:$0xff] }
 0x261   :  { %v875_v0 = vadd.f32 %v799_v2, %v10806_v50  ;;  %v877_v5 = vadd.f32 %v870_v58, %v10815_v51 }
 0x262   :  { %v801_v7 = vpop.f32.mrf.mxu0  ;;  %v872_v55 = vpop.f32.mrf.mxu1 }
 0x263   :  { %v8289_v49 = vmul.f32 -1.442695, %v875_v0  ;;  %v876_v59 = vadd.f32 %v801_v7, %v10808_v62  ;;  %v878_v3 = vadd.f32 %v872_v55, %v10812_v4 }
 0x265   :  { %8980 = vpow2.f32 %v8289_v49  ;;  %v8290_v56 = vmul.f32 -1.442695, %v876_v59  ;;  %v8291_v61 = vmul.f32 -1.442695, %v878_v3 }
 0x267   :  { %8982 = vpow2.f32 %v8290_v56 }
 0x268   :  { %8984 = vpow2.f32 %v8291_v61  ;;  %v13924_v61 = vld [vmem:[#allocation78_spill] sm:$0xff] }
 0x272   :  { %v8981_v63 = vpop.eup %8980 }
 0x273   :  { %v882_v2 = vadd.f32 1.0, %v8981_v63  ;;  %v13925_v63 = vld [vmem:[#allocation79_spill] sm:$0xff] }
 0x274   :  { %v8983_v6 = vpop.eup %8982 }
 0x275   :  { %8986 = vrcp.f32 %v882_v2  ;;  %v888_v7 = vadd.f32 1.0, %v8983_v6  ;;  %v8985_v49 = vpop.eup %8984  ;;  %v13923_v6 = vld [vmem:[#allocation77_spill] sm:$0xff] }
 0x276   :  { %8988 = vtanh.f32 %v877_v5  ;;  %v895_v1 = vadd.f32 1.0, %v8985_v49  ;;  %v13926_v5 = vld [vmem:[#allocation80_spill] sm:$0xff]  ;;  %v13927_v2 = vld [vmem:[#allocation81_spill] sm:$0xff]  ;;  %v13929_v49 = vld [vmem:[#allocation83_spill] sm:$0xff] }
 0x277   :  { %8990 = vrcp.f32 %v888_v7  ;;  %v13928_v7 = vld [vmem:[#allocation82_spill] sm:$0xff] }
 0x278   :  { %8992 = vrcp.f32 %v895_v1  ;;  %v13933_v1 = vld [vmem:[#allocation87_spill] sm:$0xff] }
 0x282   :  { %v8987_v56 = vpop.eup %8986 }
 0x283   :  { %v8989_v0 = vpop.eup %8988 }
 0x284   :  { %v8991_v54 = vpop.eup %8990  ;;  %v899_v55 = vmul.f32 %v8989_v0, %v8987_v56  ;;  %v13930_v56 = vld [vmem:[#allocation84_spill] sm:$0xff]  ;;  %v13931_v0 = vld [vmem:[#allocation85_spill] sm:$0xff] }
 0x285   :  { %v898_v59 = vmul.f32 0.0, %v8991_v54  ;;  %v8993_v60 = vpop.eup %8992  ;;  %v13932_v54 = vld [vmem:[#allocation86_spill] sm:$0xff] }
 0x287   :  { %v10818_v57 = vadd.f32 %v899_v55, %v898_v59  ;;  %v13934_v59 = vld [vmem:[#allocation88_spill] sm:$0xff]  ;;  %v13935_v55 = vld [vmem:[#allocation89_spill] sm:$0xff] }
 0x289   :  { %8994 = vtanh.f32 %v10818_v57 }
 0x296   :  { %v8995_v58 = vpop.eup %8994 }
 0x297   :  { %v10821_v3 = vmul.f32 %v8995_v58, %v8993_v60  ;;  %v13936_v60 = vld [vmem:[#allocation90_spill] sm:$0xff]  ;;  %v13937_v58 = vld [vmem:[#allocation91_spill] sm:$0xff] }
 0x299   :  { %13922 = vst [vmem:[#allocation106_spill] sm:$0xff] %v10821_v3  ;;  %968 = vmatmul.mubr.f32.vlgmr.msra.gmra.mxu0 %v10821_v3  ;;  %1039 = vmatmul.mubr.f32.vlgmr.msra.gmra.mxu1 %v10821_v3  ;;  %v13940_v3 = vld [vmem:[#allocation94_spill] sm:$0xff] }
 0x29a   :  { %1092 = vmatpush1.msra.mxu0 %v10519_v8  ;;  %1163 = vmatpush1.msra.mxu1 %v10521_v9 }
 0x29b   :  { %1093 = vmatprep.subr.mxu0 %v10525_v10  ;;  %1164 = vmatprep.subr.mxu1 %v10527_v11 }
 0x29c   :  { %1094 = vmatpush1.msra.mxu0 %v10531_v12  ;;  %1165 = vmatpush1.msra.mxu1 %v10533_v13 }
 0x29d   :  { %1095 = vmatprep.subr.mxu0 %v10537_v14  ;;  %1166 = vmatprep.subr.mxu1 %v10539_v15 }
 0x29e   :  { %1096 = vmatpush1.msra.mxu0 %v10543_v16  ;;  %1167 = vmatpush1.msra.mxu1 %v10545_v17 }
 0x29f   :  { %1097 = vmatprep.subr.mxu0 %v10549_v18  ;;  %1168 = vmatprep.subr.mxu1 %v10551_v19 }
 0x2a0   :  { %1098 = vmatpush1.msra.mxu0 %v10555_v20  ;;  %1169 = vmatpush1.msra.mxu1 %v10557_v21 }
 0x2a1   :  { %1099 = vmatprep.subr.mxu0 %v10561_v22  ;;  %1170 = vmatprep.subr.mxu1 %v10563_v23 }
 0x2a2   :  { %1100 = vmatpush1.msra.mxu0 %v10567_v24  ;;  %1171 = vmatpush1.msra.mxu1 %v10569_v25 }
 0x2a3   :  { %1101 = vmatprep.subr.mxu0 %v10573_v26  ;;  %1172 = vmatprep.subr.mxu1 %v10575_v27 }
 0x2a4   :  { %1102 = vmatpush1.msra.mxu0 %v10579_v28  ;;  %1173 = vmatpush1.msra.mxu1 %v10581_v29 }
 0x2a5   :  { %1103 = vmatprep.subr.mxu0 %v10585_v30  ;;  %1174 = vmatprep.subr.mxu1 %v10587_v31 }
 0x2a6   :  { %1104 = vmatpush1.msra.mxu0 %v10591_v32  ;;  %1175 = vmatpush1.msra.mxu1 %v10593_v33 }
 0x2a7   :  { %1105 = vmatprep.subr.mxu0 %v10597_v34  ;;  %1176 = vmatprep.subr.mxu1 %v10599_v35 }
 0x2a8   :  { %1106 = vmatpush1.msra.mxu0 %v10603_v36  ;;  %1177 = vmatpush1.msra.mxu1 %v10605_v37 }
 0x2a9   :  { %1107 = vmatprep.subr.mxu0 %v10609_v38  ;;  %1178 = vmatprep.subr.mxu1 %v10611_v39 }
 0x2aa   :  { %1108 = vmatpush1.msra.mxu0 %v10615_v40  ;;  %1179 = vmatpush1.msra.mxu1 %v10617_v41 }
 0x2ab   :  { %1109 = vmatprep.subr.mxu0 %v10621_v42  ;;  %1180 = vmatprep.subr.mxu1 %v10623_v43 }
 0x2ac   :  { %1110 = vmatpush1.msra.mxu0 %v10627_v44  ;;  %1181 = vmatpush1.msra.mxu1 %v10629_v45 }
 0x2ad   :  { %1111 = vmatprep.subr.mxu0 %v10633_v46  ;;  %1182 = vmatprep.subr.mxu1 %v10635_v47 }
 0x2ae   :  { %1112 = vmatpush1.msra.mxu0 %v10639_v48  ;;  %1183 = vmatpush1.msra.mxu1 %v13923_v6 }
 0x2af   :  { %1113 = vmatprep.subr.mxu0 %v13924_v61  ;;  %1184 = vmatprep.subr.mxu1 %v13925_v63 }
 0x2b0   :  { %1114 = vmatpush1.msra.mxu0 %v13926_v5  ;;  %1185 = vmatpush1.msra.mxu1 %v13927_v2 }
 0x2b1   :  { %1115 = vmatprep.subr.mxu0 %v13928_v7  ;;  %1186 = vmatprep.subr.mxu1 %v13929_v49 }
 0x2b2   :  { %1116 = vmatpush1.msra.mxu0 %v13930_v56  ;;  %1187 = vmatpush1.msra.mxu1 %v13931_v0  ;;  %v13941_v56 = vld [vmem:[#allocation95_spill] sm:$0xff]  ;;  %v13942_v0 = vld [vmem:[#allocation96_spill] sm:$0xff] }
 0x2b3   :  { %1117 = vmatprep.subr.mxu0 %v13932_v54  ;;  %1188 = vmatprep.subr.mxu1 %v13933_v1  ;;  %v13943_v54 = vmov 0.0   ;;  %v13944_v1 = vld [vmem:[#allocation97_spill] sm:$0xff] }
 0x2b4   :  { %1118 = vmatpush1.msra.mxu0 %v13934_v59  ;;  %1189 = vmatpush1.msra.mxu1 %v13935_v55  ;;  %v13945_v55 = vld [vmem:[#allocation75_spill] sm:$0xff] }
 0x2b5   :  { %1119 = vmatprep.subr.mxu0 %v13936_v60  ;;  %1190 = vmatprep.subr.mxu1 %v13937_v58  ;;  %v13946_v60 = vld [vmem:[#allocation76_spill] sm:$0xff] }
 0x2b6   :  { %1120 = vmatpush1.msra.mxu0 %v13938_v53  ;;  %1191 = vmatpush1.msra.mxu1 %v13939_v52 }
 0x2b7   :  { %1121 = vmatprep.subr.mxu0 %v13940_v3  ;;  %1192 = vmatprep.subr.mxu1 %v13941_v56 }
 0x2b8   :  { %1122 = vmatpush1.msra.mxu0 %v13942_v0  ;;  %1155 = vmatprep.mubr.f32.mxu0 %v13943_v54 }
 0x2b9   :  { %1193 = vmatpush1.msra.mxu1 %v13944_v1  ;;  %1226 = vmatprep.mubr.f32.mxu1 %v13943_v54 }
 0x2ba   :  { %1279 = vmatprep.subr.mxu0 %v13945_v55  ;;  %1350 = vmatprep.subr.mxu1 %v13946_v60 }
 0x359   :  { %v969_v58 = vpop.f32.mrf.mxu0  ;;  %v1040_v3 = vpop.f32.mrf.mxu1 }
 0x35a   :  { %v1049_v53 = vrot.slane %v969_v58, 6  ;;  %v1051_v55 = vrot.slane %v1040_v3, 6 }
 0x35b   :  { %v971_v59 = vpop.f32.mrf.mxu0  ;;  %v1042_v2 = vpop.f32.mrf.mxu1 }
 0x35c   :  { %v1057_v52 = vadd.f32 %v1049_v53, %v10806_v50  ;;  %v1050_v49 = vrot.slane %v971_v59, 6  ;;  %v1052_v1 = vrot.slane %v1042_v2, 6  ;;  %v1059_v58 = vadd.f32 %v1051_v55, %v10815_v51  ;;  %v13948_v55 = vld [vmem:[#allocation79_spill] sm:$0xff] }
 0x35e   :  { %v8292_v56 = vmul.f32 -1.442695, %v1057_v52  ;;  %v1058_v0 = vadd.f32 %v1050_v49, %v10808_v62  ;;  %v1060_v54 = vadd.f32 %v1052_v1, %v10812_v4 }
 0x360   :  { %8996 = vpow2.f32 %v8292_v56  ;;  %v8293_v7 = vmul.f32 -1.442695, %v1058_v0  ;;  %v8294_v5 = vmul.f32 -1.442695, %v1060_v54 }
 0x362   :  { %8998 = vpow2.f32 %v8293_v7  ;;  %v1081_v7 = vrot.slane %v10818_v57, 6  ;;  %v13947_v57 = vld [vmem:[#allocation78_spill] sm:$0xff] }
 0x363   :  { %9000 = vpow2.f32 %v8294_v5 }
 0x36d   :  { %v8997_v60 = vpop.eup %8996 }
 0x36e   :  { %v1064_v63 = vadd.f32 1.0, %v8997_v60  ;;  %v13949_v60 = vld [vmem:[#allocation80_spill] sm:$0xff] }
 0x36f   :  { %v8999_v61 = vpop.eup %8998 }
 0x370   :  { %9002 = vrcp.f32 %v1064_v63  ;;  %v1070_v53 = vadd.f32 1.0, %v8999_v61  ;;  %v9001_v52 = vpop.eup %9000 }
 0x371   :  { %9004 = vtanh.f32 %v1059_v58  ;;  %v1077_v0 = vadd.f32 1.0, %v9001_v52  ;;  %v13950_v58 = vld [vmem:[#allocation81_spill] sm:$0xff]  ;;  %v13952_v52 = vld [vmem:[#allocation83_spill] sm:$0xff] }
 0x372   :  { %9006 = vrcp.f32 %v1070_v53  ;;  %v13951_v53 = vld [vmem:[#allocation82_spill] sm:$0xff] }
 0x373   :  { %9008 = vrcp.f32 %v1077_v0  ;;  %v13957_v0 = vld [vmem:[#allocation88_spill] sm:$0xff] }
 0x37d   :  { %v9003_v49 = vpop.eup %9002 }
 0x37e   :  { %v9005_v56 = vpop.eup %9004 }
 0x37f   :  { %v9007_v2 = vpop.eup %9006  ;;  %v1084_v1 = vmul.f32 %v9005_v56, %v9003_v49  ;;  %v13953_v49 = vld [vmem:[#allocation84_spill] sm:$0xff]  ;;  %v13954_v56 = vld [vmem:[#allocation85_spill] sm:$0xff] }
 0x380   :  { %v1083_v3 = vmul.f32 %v9007_v2, %v1081_v7  ;;  %v9009_v59 = vpop.eup %9008  ;;  %v13955_v7 = vld [vmem:[#allocation86_spill] sm:$0xff]  ;;  %v13956_v2 = vld [vmem:[#allocation87_spill] sm:$0xff] }
 0x382   :  { %v10896_v54 = vadd.f32 %v1084_v1, %v1083_v3  ;;  %v13958_v1 = vld [vmem:[#allocation89_spill] sm:$0xff]  ;;  %v13959_v3 = vld [vmem:[#allocation90_spill] sm:$0xff] }
 0x384   :  { %9010 = vtanh.f32 %v10896_v54 }
 0x391   :  { %v9011_v5 = vpop.eup %9010 }
 0x392   :  { %v10899_v63 = vmul.f32 %v9011_v5, %v9009_v59  ;;  %v13960_v59 = vld [vmem:[#allocation91_spill] sm:$0xff]  ;;  %v13961_v5 = vld [vmem:[#allocation92_spill] sm:$0xff] }
 0x394   :  { %v1089_v61 = vrot.slane %v10899_v63, 2 }
 0x396   :  { %1156 = vmatmul.mubr.f32.vlgmr.msra.gmra.mxu0 %v1089_v61  ;;  %1227 = vmatmul.mubr.f32.vlgmr.msra.gmra.mxu1 %v1089_v61  ;;  %v13962_v61 = vld [vmem:[#allocation93_spill] sm:$0xff] }
 0x397   :  { %1280 = vmatpush1.msra.mxu0 %v10519_v8  ;;  %1351 = vmatpush1.msra.mxu1 %v10521_v9 }
 0x398   :  { %1281 = vmatprep.subr.mxu0 %v10525_v10  ;;  %1352 = vmatprep.subr.mxu1 %v10527_v11 }
 0x399   :  { %1282 = vmatpush1.msra.mxu0 %v10531_v12  ;;  %1353 = vmatpush1.msra.mxu1 %v10533_v13 }
 0x39a   :  { %1283 = vmatprep.subr.mxu0 %v10537_v14  ;;  %1354 = vmatprep.subr.mxu1 %v10539_v15 }
 0x39b   :  { %1284 = vmatpush1.msra.mxu0 %v10543_v16  ;;  %1355 = vmatpush1.msra.mxu1 %v10545_v17 }
 0x39c   :  { %1285 = vmatprep.subr.mxu0 %v10549_v18  ;;  %1356 = vmatprep.subr.mxu1 %v10551_v19 }
 0x39d   :  { %1286 = vmatpush1.msra.mxu0 %v10555_v20  ;;  %1357 = vmatpush1.msra.mxu1 %v10557_v21 }
 0x39e   :  { %1287 = vmatprep.subr.mxu0 %v10561_v22  ;;  %1358 = vmatprep.subr.mxu1 %v10563_v23 }
 0x39f   :  { %1288 = vmatpush1.msra.mxu0 %v10567_v24  ;;  %1359 = vmatpush1.msra.mxu1 %v10569_v25 }
 0x3a0   :  { %1289 = vmatprep.subr.mxu0 %v10573_v26  ;;  %1360 = vmatprep.subr.mxu1 %v10575_v27 }
 0x3a1   :  { %1290 = vmatpush1.msra.mxu0 %v10579_v28  ;;  %1361 = vmatpush1.msra.mxu1 %v10581_v29 }
 0x3a2   :  { %1291 = vmatprep.subr.mxu0 %v10585_v30  ;;  %1362 = vmatprep.subr.mxu1 %v10587_v31 }
 0x3a3   :  { %1292 = vmatpush1.msra.mxu0 %v10591_v32  ;;  %1363 = vmatpush1.msra.mxu1 %v10593_v33 }
 0x3a4   :  { %1293 = vmatprep.subr.mxu0 %v10597_v34  ;;  %1364 = vmatprep.subr.mxu1 %v10599_v35 }
 0x3a5   :  { %1294 = vmatpush1.msra.mxu0 %v10603_v36  ;;  %1365 = vmatpush1.msra.mxu1 %v10605_v37 }
 0x3a6   :  { %1295 = vmatprep.subr.mxu0 %v10609_v38  ;;  %1366 = vmatprep.subr.mxu1 %v10611_v39 }
 0x3a7   :  { %1296 = vmatpush1.msra.mxu0 %v10615_v40  ;;  %1367 = vmatpush1.msra.mxu1 %v10617_v41 }
 0x3a8   :  { %1297 = vmatprep.subr.mxu0 %v10621_v42  ;;  %1368 = vmatprep.subr.mxu1 %v10623_v43 }
 0x3a9   :  { %1298 = vmatpush1.msra.mxu0 %v10627_v44  ;;  %1369 = vmatpush1.msra.mxu1 %v10629_v45 }
 0x3aa   :  { %1299 = vmatprep.subr.mxu0 %v10633_v46  ;;  %1370 = vmatprep.subr.mxu1 %v10635_v47 }
 0x3ab   :  { %1300 = vmatpush1.msra.mxu0 %v10639_v48  ;;  %1371 = vmatpush1.msra.mxu1 %v13923_v6 }
 0x3ac   :  { %1301 = vmatprep.subr.mxu0 %v13947_v57  ;;  %1372 = vmatprep.subr.mxu1 %v13948_v55 }
 0x3ad   :  { %1302 = vmatpush1.msra.mxu0 %v13949_v60  ;;  %1373 = vmatpush1.msra.mxu1 %v13950_v58 }
 0x3ae   :  { %1303 = vmatprep.subr.mxu0 %v13951_v53  ;;  %1374 = vmatprep.subr.mxu1 %v13952_v52  ;;  %v13963_v52 = vld [vmem:[#allocation94_spill] sm:$0xff] }
 0x3af   :  { %1304 = vmatpush1.msra.mxu0 %v13953_v49  ;;  %1375 = vmatpush1.msra.mxu1 %v13954_v56  ;;  %v13964_v49 = vld [vmem:[#allocation95_spill] sm:$0xff]  ;;  %v13965_v56 = vld [vmem:[#allocation96_spill] sm:$0xff] }
 0x3b0   :  { %1305 = vmatprep.subr.mxu0 %v13955_v7  ;;  %1376 = vmatprep.subr.mxu1 %v13956_v2  ;;  %v13966_v7 = vmov 0.0   ;;  %v13967_v2 = vld [vmem:[#allocation97_spill] sm:$0xff] }
 0x3b1   :  { %1306 = vmatpush1.msra.mxu0 %v13957_v0  ;;  %1377 = vmatpush1.msra.mxu1 %v13958_v1  ;;  %v13968_v1 = vld [vmem:[#allocation75_spill] sm:$0xff] }
 0x3b2   :  { %1307 = vmatprep.subr.mxu0 %v13959_v3  ;;  %1378 = vmatprep.subr.mxu1 %v13960_v59  ;;  %v13969_v3 = vld [vmem:[#allocation76_spill] sm:$0xff] }
 0x3b3   :  { %1308 = vmatpush1.msra.mxu0 %v13961_v5  ;;  %1379 = vmatpush1.msra.mxu1 %v13962_v61 }
 0x3b4   :  { %1309 = vmatprep.subr.mxu0 %v13963_v52  ;;  %1380 = vmatprep.subr.mxu1 %v13964_v49 }
 0x3b5   :  { %1310 = vmatpush1.msra.mxu0 %v13965_v56  ;;  %1343 = vmatprep.mubr.f32.mxu0 %v13966_v7 }
 0x3b6   :  { %1381 = vmatpush1.msra.mxu1 %v13967_v2  ;;  %1414 = vmatprep.mubr.f32.mxu1 %v13966_v7 }
 0x3b7   :  { %1467 = vmatprep.subr.mxu0 %v13968_v1  ;;  %1538 = vmatprep.subr.mxu1 %v13969_v3 }
 0x456   :  { %v1157_v59 = vpop.f32.mrf.mxu0  ;;  %v1228_v52 = vpop.f32.mrf.mxu1 }
 0x457   :  { %v1237_v5 = vrot.slane %v1157_v59, 4  ;;  %v1239_v1 = vrot.slane %v1228_v52, 4 }
 0x458   :  { %v1159_v0 = vpop.f32.mrf.mxu0  ;;  %v1230_v60 = vpop.f32.mrf.mxu1 }
 0x459   :  { %v1245_v61 = vadd.f32 %v1237_v5, %v10806_v50  ;;  %v1238_v53 = vrot.slane %v1159_v0, 4  ;;  %v1240_v2 = vrot.slane %v1230_v60, 4  ;;  %v1247_v59 = vadd.f32 %v1239_v1, %v10815_v51 }
 0x45b   :  { %v8295_v49 = vmul.f32 -1.442695, %v1245_v61  ;;  %v1246_v56 = vadd.f32 %v1238_v53, %v10808_v62  ;;  %v1248_v7 = vadd.f32 %v1240_v2, %v10812_v4 }
 0x45d   :  { %9012 = vpow2.f32 %v8295_v49  ;;  %v8296_v58 = vmul.f32 -1.442695, %v1246_v56  ;;  %v8297_v55 = vmul.f32 -1.442695, %v1248_v7 }
 0x45f   :  { %9014 = vpow2.f32 %v8296_v58  ;;  %v1269_v58 = vrot.slane %v10896_v54, 6 }
 0x460   :  { %9016 = vpow2.f32 %v8297_v55  ;;  %v13970_v55 = vld [vmem:[#allocation106_spill] sm:$0xff] }
 0x461   :  { %v2202_v1 = vsel %vm2201_vm1, %v13970_v55, %v10899_v63  ;;  %v11074_v55 = vld [vmem:[#allocation6 + $0x1d8] sm:$0xff] }
 0x46a   :  { %v9013_v3 = vpop.eup %9012 }
 0x46b   :  { %v1252_v57 = vadd.f32 1.0, %v9013_v3 }
 0x46c   :  { %v9015_v6 = vpop.eup %9014 }
 0x46d   :  { %9018 = vrcp.f32 %v1252_v57  ;;  %v1258_v0 = vadd.f32 1.0, %v9015_v6  ;;  %v9017_v53 = vpop.eup %9016 }
 0x46e   :  { %9020 = vtanh.f32 %v1247_v59  ;;  %v1265_v5 = vadd.f32 1.0, %v9017_v53 }
 0x46f   :  { %9022 = vrcp.f32 %v1258_v0 }
 0x470   :  { %9024 = vrcp.f32 %v1265_v5 }
 0x47a   :  { %v9019_v49 = vpop.eup %9018 }
 0x47b   :  { %v9021_v56 = vpop.eup %9020 }
 0x47c   :  { %v9023_v60 = vpop.eup %9022  ;;  %v1272_v2 = vmul.f32 %v9021_v56, %v9019_v49 }
 0x47d   :  { %v1271_v52 = vmul.f32 %v9023_v60, %v1269_v58  ;;  %v9025_v61 = vpop.eup %9024 }
 0x47f   :  { %v10973_v7 = vadd.f32 %v1272_v2, %v1271_v52 }
 0x481   :  { %9026 = vtanh.f32 %v10973_v7  ;;  %v1457_v53 = vrot.slane %v10973_v7, 6  ;;  %v11065_v7 = vld [vmem:[#allocation6 + $0x1e0] sm:$0xff] }
 0x48e   :  { %v9027_v57 = vpop.eup %9026 }
 0x48f   :  { %v1275_v6 = vmul.f32 %v9027_v57, %v9025_v61  ;;  %v11068_v57 = vld [vmem:[#allocation6 + $0x1f0] sm:$0xff] }
 0x491   :  { %v1277_v3 = vrot.slane %v1275_v6, 4  ;;  %v10980_v54 = vsel %vm2203_vm2, %v2202_v1, %v1275_v6  ;;  %v11071_v6 = vld [vmem:[#allocation6 + $0x1c8] sm:$0xff]  ;;  %v11077_v1 = vld [vmem:[#allocation6 + $0x1c0] sm:$0xff] }
 0x493   :  { %1344 = vmatmul.mubr.f32.vlgmr.msra.gmra.mxu0 %v1277_v3  ;;  %1415 = vmatmul.mubr.f32.vlgmr.msra.gmra.mxu1 %v1277_v3  ;;  %v11080_v3 = vld [vmem:[#allocation6 + $0x1d0] sm:$0xff] }
 0x494   :  { %1468 = vmatpush1.msra.mxu0 %v10519_v8  ;;  %1539 = vmatpush1.msra.mxu1 %v10521_v9  ;;  %v13971_v8 = vld [vmem:[#allocation77_spill] sm:$0xff]  ;;  %v13972_v9 = vld [vmem:[#allocation78_spill] sm:$0xff] }
 0x495   :  { %1469 = vmatprep.subr.mxu0 %v10525_v10  ;;  %1540 = vmatprep.subr.mxu1 %v10527_v11  ;;  %v13973_v10 = vld [vmem:[#allocation79_spill] sm:$0xff]  ;;  %v13974_v11 = vld [vmem:[#allocation80_spill] sm:$0xff] }
 0x496   :  { %1470 = vmatpush1.msra.mxu0 %v10531_v12  ;;  %1541 = vmatpush1.msra.mxu1 %v10533_v13  ;;  %v13975_v12 = vld [vmem:[#allocation81_spill] sm:$0xff]  ;;  %v13976_v13 = vld [vmem:[#allocation82_spill] sm:$0xff] }
 0x497   :  { %1471 = vmatprep.subr.mxu0 %v10537_v14  ;;  %1542 = vmatprep.subr.mxu1 %v10539_v15  ;;  %v13977_v14 = vld [vmem:[#allocation83_spill] sm:$0xff]  ;;  %v13978_v15 = vld [vmem:[#allocation84_spill] sm:$0xff] }
 0x498   :  { %1472 = vmatpush1.msra.mxu0 %v10543_v16  ;;  %1543 = vmatpush1.msra.mxu1 %v10545_v17  ;;  %v13979_v16 = vld [vmem:[#allocation85_spill] sm:$0xff]  ;;  %v13980_v17 = vld [vmem:[#allocation86_spill] sm:$0xff] }
 0x499   :  { %1473 = vmatprep.subr.mxu0 %v10549_v18  ;;  %1544 = vmatprep.subr.mxu1 %v10551_v19  ;;  %v13981_v18 = vld [vmem:[#allocation87_spill] sm:$0xff]  ;;  %v13982_v19 = vld [vmem:[#allocation88_spill] sm:$0xff] }
 0x49a   :  { %1474 = vmatpush1.msra.mxu0 %v10555_v20  ;;  %1545 = vmatpush1.msra.mxu1 %v10557_v21  ;;  %v13983_v20 = vld [vmem:[#allocation89_spill] sm:$0xff]  ;;  %v13984_v21 = vld [vmem:[#allocation90_spill] sm:$0xff] }
 0x49b   :  { %1475 = vmatprep.subr.mxu0 %v10561_v22  ;;  %1546 = vmatprep.subr.mxu1 %v10563_v23  ;;  %v13985_v22 = vld [vmem:[#allocation91_spill] sm:$0xff]  ;;  %v13986_v23 = vld [vmem:[#allocation92_spill] sm:$0xff] }
 0x49c   :  { %1476 = vmatpush1.msra.mxu0 %v10567_v24  ;;  %1547 = vmatpush1.msra.mxu1 %v10569_v25  ;;  %v13987_v24 = vld [vmem:[#allocation93_spill] sm:$0xff]  ;;  %v13988_v25 = vld [vmem:[#allocation94_spill] sm:$0xff] }
 0x49d   :  { %1477 = vmatprep.subr.mxu0 %v10573_v26  ;;  %1548 = vmatprep.subr.mxu1 %v10575_v27  ;;  %v13989_v26 = vld [vmem:[#allocation95_spill] sm:$0xff]  ;;  %v13990_v27 = vld [vmem:[#allocation96_spill] sm:$0xff] }
 0x49e   :  { %1478 = vmatpush1.msra.mxu0 %v10579_v28  ;;  %1549 = vmatpush1.msra.mxu1 %v10581_v29  ;;  %v13991_v28 = vmov 0.0   ;;  %v13992_v29 = vld [vmem:[#allocation97_spill] sm:$0xff] }
 0x49f   :  { %1479 = vmatprep.subr.mxu0 %v10585_v30  ;;  %1550 = vmatprep.subr.mxu1 %v10587_v31  ;;  %v11046_v30 = vld [vmem:[#allocation6 + $0x1e8] sm:$0xff]  ;;  %v11049_v31 = vld [vmem:[#allocation6 + $0x1f8] sm:$0xff] }
 0x4a0   :  { %1480 = vmatpush1.msra.mxu0 %v10591_v32  ;;  %1551 = vmatpush1.msra.mxu1 %v10593_v33  ;;  %13993 = vst [vmem:[#allocation75_spill] sm:$0xff] %v11046_v30  ;;  %13994 = vst [vmem:[#allocation76_spill] sm:$0xff] %v11049_v31 }
 0x4a1   :  { %1481 = vmatprep.subr.mxu0 %v10597_v34  ;;  %1552 = vmatprep.subr.mxu1 %v10599_v35 }
 0x4a2   :  { %1482 = vmatpush1.msra.mxu0 %v10603_v36  ;;  %1553 = vmatpush1.msra.mxu1 %v10605_v37 }
 0x4a3   :  { %1483 = vmatprep.subr.mxu0 %v10609_v38  ;;  %1554 = vmatprep.subr.mxu1 %v10611_v39 }
 0x4a4   :  { %1484 = vmatpush1.msra.mxu0 %v10615_v40  ;;  %1555 = vmatpush1.msra.mxu1 %v10617_v41 }
 0x4a5   :  { %1485 = vmatprep.subr.mxu0 %v10621_v42  ;;  %1556 = vmatprep.subr.mxu1 %v10623_v43 }
 0x4a6   :  { %1486 = vmatpush1.msra.mxu0 %v10627_v44  ;;  %1557 = vmatpush1.msra.mxu1 %v10629_v45 }
 0x4a7   :  { %1487 = vmatprep.subr.mxu0 %v10633_v46  ;;  %1558 = vmatprep.subr.mxu1 %v10635_v47 }
 0x4a8   :  { %1488 = vmatpush1.msra.mxu0 %v10639_v48  ;;  %1559 = vmatpush1.msra.mxu1 %v13971_v8  ;;  %v11086_v8 = vld [vmem:[#allocation6 + $0x1b8] sm:$0xff] }
 0x4a9   :  { %1489 = vmatprep.subr.mxu0 %v13972_v9  ;;  %1560 = vmatprep.subr.mxu1 %v13973_v10  ;;  %v11089_v9 = vld [vmem:[#allocation6 + $0x1a0] sm:$0xff]  ;;  %v11092_v10 = vld [vmem:[#allocation6 + $0x1b0] sm:$0xff] }
 0x4aa   :  { %1490 = vmatpush1.msra.mxu0 %v13974_v11  ;;  %1561 = vmatpush1.msra.mxu1 %v13975_v12  ;;  %v11095_v11 = vld [vmem:[#allocation6 + $0x188] sm:$0xff]  ;;  %v11098_v12 = vld [vmem:[#allocation6 + $0x198] sm:$0xff] }
 0x4ab   :  { %1491 = vmatprep.subr.mxu0 %v13976_v13  ;;  %1562 = vmatprep.subr.mxu1 %v13977_v14  ;;  %v11101_v13 = vld [vmem:[#allocation6 + $0x180] sm:$0xff]  ;;  %v11104_v14 = vld [vmem:[#allocation6 + $0x190] sm:$0xff] }
 0x4ac   :  { %1492 = vmatpush1.msra.mxu0 %v13978_v15  ;;  %1563 = vmatpush1.msra.mxu1 %v13979_v16  ;;  %v11107_v15 = vld [vmem:[#allocation6 + $0x168] sm:$0xff]  ;;  %v11110_v16 = vld [vmem:[#allocation6 + $0x178] sm:$0xff] }
 0x4ad   :  { %1493 = vmatprep.subr.mxu0 %v13980_v17  ;;  %1564 = vmatprep.subr.mxu1 %v13981_v18  ;;  %v11113_v17 = vld [vmem:[#allocation6 + $0x160] sm:$0xff]  ;;  %v11116_v18 = vld [vmem:[#allocation6 + $0x170] sm:$0xff] }
 0x4ae   :  { %1494 = vmatpush1.msra.mxu0 %v13982_v19  ;;  %1565 = vmatpush1.msra.mxu1 %v13983_v20  ;;  %v11119_v19 = vld [vmem:[#allocation6 + $0x148] sm:$0xff]  ;;  %v11122_v20 = vld [vmem:[#allocation6 + $0x158] sm:$0xff] }
 0x4af   :  { %1495 = vmatprep.subr.mxu0 %v13984_v21  ;;  %1566 = vmatprep.subr.mxu1 %v13985_v22  ;;  %v11125_v21 = vld [vmem:[#allocation6 + $0x140] sm:$0xff]  ;;  %v11128_v22 = vld [vmem:[#allocation6 + $0x150] sm:$0xff] }
 0x4b0   :  { %1496 = vmatpush1.msra.mxu0 %v13986_v23  ;;  %1567 = vmatpush1.msra.mxu1 %v13987_v24  ;;  %v11131_v23 = vld [vmem:[#allocation6 + $0x128] sm:$0xff]  ;;  %v11134_v24 = vld [vmem:[#allocation6 + $0x138] sm:$0xff] }
 0x4b1   :  { %1497 = vmatprep.subr.mxu0 %v13988_v25  ;;  %1568 = vmatprep.subr.mxu1 %v13989_v26  ;;  %v11137_v25 = vld [vmem:[#allocation6 + $0x120] sm:$0xff]  ;;  %v11140_v26 = vld [vmem:[#allocation6 + $0x130] sm:$0xff] }
 0x4b2   :  { %1498 = vmatpush1.msra.mxu0 %v13990_v27  ;;  %1531 = vmatprep.mubr.f32.mxu0 %v13991_v28  ;;  %v11143_v27 = vld [vmem:[#allocation6 + $0x108] sm:$0xff] }
 0x4b3   :  { %1569 = vmatpush1.msra.mxu1 %v13992_v29  ;;  %1602 = vmatprep.mubr.f32.mxu1 %v13991_v28  ;;  %v11146_v29 = vld [vmem:[#allocation6 + $0x118] sm:$0xff] }
 0x4b4   :  { %1640 = vmatprep.subr.mxu0 %v11046_v30  ;;  %1711 = vmatprep.subr.mxu1 %v11049_v31 }
 0x553   :  { %v1345_v32 = vpop.f32.mrf.mxu0  ;;  %v1416_v36 = vpop.f32.mrf.mxu1 }
 0x554   :  { %v1425_v33 = vrot.slane %v1345_v32, 2  ;;  %v1427_v44 = vrot.slane %v1416_v36, 2  ;;  %v11149_v32 = vld [vmem:[#allocation6 + $0x100] sm:$0xff] }
 0x555   :  { %v1347_v34 = vpop.f32.mrf.mxu0  ;;  %v1418_v41 = vpop.f32.mrf.mxu1  ;;  %v11161_v36 = vld [vmem:[#allocation6 + $0xe0] sm:$0xff] }
 0x556   :  { %v1433_v35 = vadd.f32 %v1425_v33, %v10806_v50  ;;  %v1426_v37 = vrot.slane %v1347_v34, 2  ;;  %v1428_v42 = vrot.slane %v1418_v41, 2  ;;  %v1435_v47 = vadd.f32 %v1427_v44, %v10815_v51  ;;  %v11152_v33 = vld [vmem:[#allocation6 + $0x110] sm:$0xff]  ;;  %v11155_v34 = vld [vmem:[#allocation6 + $0xe8] sm:$0xff]  ;;  %v11185_v44 = vld [vmem:[#allocation6 + $0xa0] sm:$0xff] }
 0x557   :  { %v11176_v41 = vld [vmem:[#allocation6 + $0xd0] sm:$0xff] }
 0x558   :  { %v8298_v38 = vmul.f32 -1.442695, %v1433_v35  ;;  %v1434_v39 = vadd.f32 %v1426_v37, %v10808_v62  ;;  %v1436_v43 = vadd.f32 %v1428_v42, %v10812_v4  ;;  %v11158_v35 = vld [vmem:[#allocation6 + $0xf8] sm:$0xff]  ;;  %v11164_v37 = vld [vmem:[#allocation6 + $0xf0] sm:$0xff]  ;;  %v11179_v42 = vld [vmem:[#allocation6 + $0xa8] sm:$0xff] }
 0x55a   :  { %9028 = vpow2.f32 %v8298_v38  ;;  %v8299_v40 = vmul.f32 -1.442695, %v1434_v39  ;;  %v8300_v45 = vmul.f32 -1.442695, %v1436_v43  ;;  %v11167_v38 = vld [vmem:[#allocation6 + $0xc8] sm:$0xff]  ;;  %v11170_v39 = vld [vmem:[#allocation6 + $0xd8] sm:$0xff] }
 0x55b   :  { %v11182_v43 = vld [vmem:[#allocation6 + $0xb8] sm:$0xff] }
 0x55c   :  { %9030 = vpow2.f32 %v8299_v40  ;;  %v11173_v40 = vld [vmem:[#allocation6 + $0xc0] sm:$0xff] }
 0x55d   :  { %9032 = vpow2.f32 %v8300_v45  ;;  %v11188_v45 = vld [vmem:[#allocation6 + $0xb0] sm:$0xff] }
 0x567   :  { %v9029_v46 = vpop.eup %9028 }
 0x568   :  { %v1440_v48 = vadd.f32 1.0, %v9029_v46  ;;  %v11191_v46 = vld [vmem:[#allocation6 + $0x88] sm:$0xff] }
 0x569   :  { %v9031_v63 = vpop.eup %9030  ;;  %13995 = vst [vmem:[#allocation106_spill] sm:$0xff] %v11191_v46 }
 0x56a   :  { %9034 = vrcp.f32 %v1440_v48  ;;  %v1446_v50 = vadd.f32 1.0, %v9031_v63  ;;  %v9033_v62 = vpop.eup %9032  ;;  %v11197_v48 = vld [vmem:[#allocation6 + $0x80] sm:$0xff]  ;;  %v11200_v63 = vld [vmem:[#allocation6 + $0x90] sm:$0xff] }
 0x56b   :  { %9036 = vtanh.f32 %v1435_v47  ;;  %v1453_v56 = vadd.f32 1.0, %v9033_v62  ;;  %v11194_v47 = vld [vmem:[#allocation6 + $0x98] sm:$0xff]  ;;  %13997 = vst [vmem:[#allocation78_spill] sm:$0xff] %v11197_v48  ;;  %13998 = vst [vmem:[#allocation79_spill] sm:$0xff] %v11200_v63 }
 0x56c   :  { %9038 = vrcp.f32 %v1446_v50  ;;  %13996 = vst [vmem:[#allocation77_spill] sm:$0xff] %v11194_v47  ;;  %v11203_v50 = vld [vmem:[#allocation6 + $0x68] sm:$0xff]  ;;  %v11206_v62 = vld [vmem:[#allocation6 + $0x78] sm:$0xff] }
 0x56d   :  { %9040 = vrcp.f32 %v1453_v56  ;;  %13999 = vst [vmem:[#allocation80_spill] sm:$0xff] %v11203_v50  ;;  %14000 = vst [vmem:[#allocation81_spill] sm:$0xff] %v11206_v62  ;;  %v11221_v56 = vld [vmem:[#allocation6 + $0x40] sm:$0xff] }
 0x56e   :  { %14005 = vst [vmem:[#allocation86_spill] sm:$0xff] %v11221_v56 }
 0x577   :  { %v9035_v59 = vpop.eup %9034 }
 0x578   :  { %v9037_v0 = vpop.eup %9036 }
 0x579   :  { %v9039_v49 = vpop.eup %9038  ;;  %v1460_v4 = vmul.f32 %v9037_v0, %v9035_v59  ;;  %v11209_v59 = vld [vmem:[#allocation6 + $0x60] sm:$0xff]  ;;  %v11212_v0 = vld [vmem:[#allocation6 + $0x70] sm:$0xff] }
 0x57a   :  { %v1459_v58 = vmul.f32 %v9039_v49, %v1457_v53  ;;  %v9041_v51 = vpop.eup %9040  ;;  %14001 = vst [vmem:[#allocation82_spill] sm:$0xff] %v11209_v59  ;;  %14002 = vst [vmem:[#allocation83_spill] sm:$0xff] %v11212_v0  ;;  %v11215_v53 = vld [vmem:[#allocation6 + $0x48] sm:$0xff]  ;;  %v11218_v49 = vld [vmem:[#allocation6 + $0x58] sm:$0xff] }
 0x57b   :  { %14003 = vst [vmem:[#allocation84_spill] sm:$0xff] %v11215_v53  ;;  %14004 = vst [vmem:[#allocation85_spill] sm:$0xff] %v11218_v49 }
 0x57c   :  { %v11057_v60 = vadd.f32 %v1460_v4, %v1459_v58  ;;  %v11224_v4 = vld [vmem:[#allocation6 + $0x50] sm:$0xff]  ;;  %v11227_v58 = vld [vmem:[#allocation6 + $0x28] sm:$0xff] }
 0x57d   :  { %14006 = vst [vmem:[#allocation87_spill] sm:$0xff] %v11224_v4  ;;  %14007 = vst [vmem:[#allocation88_spill] sm:$0xff] %v11227_v58 }
 0x57e   :  { %9042 = vtanh.f32 %v11057_v60 }
 0x58b   :  { %v9043_v5 = vpop.eup %9042 }
 0x58c   :  { %v1463_v2 = vmul.f32 %v9043_v5, %v9041_v51  ;;  %v11230_v51 = vld [vmem:[#allocation6 + $0x38] sm:$0xff]  ;;  %v11233_v5 = vld [vmem:[#allocation6 + $0x20] sm:$0xff] }
 0x58d   :  { %14008 = vst [vmem:[#allocation89_spill] sm:$0xff] %v11230_v51  ;;  %14009 = vst [vmem:[#allocation90_spill] sm:$0xff] %v11233_v5 }
 0x58e   :  { %v11062_v52 = vsel %vm2205_vm3, %v10980_v54, %v1463_v2  ;;  %v1465_v61 = vrot.slane %v1463_v2, 6  ;;  %v11083_v54 = vld [vmem:[#allocation6 + $0x1a8] sm:$0xff]  ;;  %v11236_v2 = vld [vmem:[#allocation6 + $0x30] sm:$0xff] }
 0x58f   :  { %2210 = vadd.xlane.f32.xlu0 %v11062_v52  ;;  %14010 = vst [vmem:[#allocation91_spill] sm:$0xff] %v11236_v2 }
 0x590   :  { %1532 = vmatmul.mubr.f32.vlgmr.msra.gmra.mxu0 %v1465_v61  ;;  %1603 = vmatmul.mubr.f32.vlgmr.msra.gmra.mxu1 %v1465_v61  ;;  %v11239_v61 = vld [vmem:[#allocation6 + $0x8] sm:$0xff] }
 0x591   :  { %1641 = vmatpush1.msra.mxu0 %v11065_v7  ;;  %1712 = vmatpush1.msra.mxu1 %v11068_v57  ;;  %14011 = vst [vmem:[#allocation92_spill] sm:$0xff] %v11239_v61 }
 0x592   :  { %1642 = vmatprep.subr.mxu0 %v11071_v6  ;;  %1713 = vmatprep.subr.mxu1 %v11074_v55 }
 0x593   :  { %1643 = vmatpush1.msra.mxu0 %v11077_v1  ;;  %1714 = vmatpush1.msra.mxu1 %v11080_v3 }
 0x594   :  { %1644 = vmatprep.subr.mxu0 %v11083_v54  ;;  %1715 = vmatprep.subr.mxu1 %v11086_v8 }
 0x595   :  { %1645 = vmatpush1.msra.mxu0 %v11089_v9  ;;  %1716 = vmatpush1.msra.mxu1 %v11092_v10 }
 0x596   :  { %1646 = vmatprep.subr.mxu0 %v11095_v11  ;;  %1717 = vmatprep.subr.mxu1 %v11098_v12 }
 0x597   :  { %1647 = vmatpush1.msra.mxu0 %v11101_v13  ;;  %1718 = vmatpush1.msra.mxu1 %v11104_v14 }
 0x598   :  { %1648 = vmatprep.subr.mxu0 %v11107_v15  ;;  %1719 = vmatprep.subr.mxu1 %v11110_v16 }
 0x599   :  { %1649 = vmatpush1.msra.mxu0 %v11113_v17  ;;  %1720 = vmatpush1.msra.mxu1 %v11116_v18 }
 0x59a   :  { %1650 = vmatprep.subr.mxu0 %v11119_v19  ;;  %1721 = vmatprep.subr.mxu1 %v11122_v20 }
 0x59b   :  { %1651 = vmatpush1.msra.mxu0 %v11125_v21  ;;  %1722 = vmatpush1.msra.mxu1 %v11128_v22 }
 0x59c   :  { %1652 = vmatprep.subr.mxu0 %v11131_v23  ;;  %1723 = vmatprep.subr.mxu1 %v11134_v24 }
 0x59d   :  { %1653 = vmatpush1.msra.mxu0 %v11137_v25  ;;  %1724 = vmatpush1.msra.mxu1 %v11140_v26 }
 0x59e   :  { %1654 = vmatprep.subr.mxu0 %v11143_v27  ;;  %1725 = vmatprep.subr.mxu1 %v11146_v29 }
 0x59f   :  { %1655 = vmatpush1.msra.mxu0 %v11149_v32  ;;  %1726 = vmatpush1.msra.mxu1 %v11152_v33 }
 0x5a0   :  { %1656 = vmatprep.subr.mxu0 %v11155_v34  ;;  %1727 = vmatprep.subr.mxu1 %v11158_v35 }
 0x5a1   :  { %1657 = vmatpush1.msra.mxu0 %v11161_v36  ;;  %1728 = vmatpush1.msra.mxu1 %v11164_v37 }
 0x5a2   :  { %1658 = vmatprep.subr.mxu0 %v11167_v38  ;;  %1729 = vmatprep.subr.mxu1 %v11170_v39 }
 0x5a3   :  { %1659 = vmatpush1.msra.mxu0 %v11173_v40  ;;  %1730 = vmatpush1.msra.mxu1 %v11176_v41 }
 0x5a4   :  { %1660 = vmatprep.subr.mxu0 %v11179_v42  ;;  %1731 = vmatprep.subr.mxu1 %v11182_v43 }
 0x5a5   :  { %1661 = vmatpush1.msra.mxu0 %v11185_v44  ;;  %1732 = vmatpush1.msra.mxu1 %v11188_v45 }
 0x5a6   :  { %1662 = vmatprep.subr.mxu0 %v11191_v46  ;;  %1733 = vmatprep.subr.mxu1 %v11194_v47 }
 0x5a7   :  { %1663 = vmatpush1.msra.mxu0 %v11197_v48  ;;  %1734 = vmatpush1.msra.mxu1 %v11200_v63 }
 0x5a8   :  { %1664 = vmatprep.subr.mxu0 %v11203_v50  ;;  %1735 = vmatprep.subr.mxu1 %v11206_v62  ;;  %v14019_v50 = vld [vmem:[#allocation104_spill] sm:$0xff] }
 0x5a9   :  { %1665 = vmatpush1.msra.mxu0 %v11209_v59  ;;  %1736 = vmatpush1.msra.mxu1 %v11212_v0  ;;  %v14017_v0 = vld [vmem:[#allocation103_spill] sm:$0xff] }
 0x5aa   :  { %1666 = vmatprep.subr.mxu0 %v11215_v53  ;;  %1737 = vmatprep.subr.mxu1 %v11218_v49 }
 0x5ab   :  { %1667 = vmatpush1.msra.mxu0 %v11221_v56  ;;  %1738 = vmatpush1.msra.mxu1 %v11224_v4  ;;  %v11242_v4 = vld [vmem:[#allocation6 + $0x18] sm:$0xff]  ;;  %v14016_v56 = vld [vmem:[#allocation102_spill] sm:$0xff] }
 0x5ac   :  { %1668 = vmatprep.subr.mxu0 %v11227_v58  ;;  %1739 = vmatprep.subr.mxu1 %v11230_v51  ;;  %14012 = vst [vmem:[#allocation93_spill] sm:$0xff] %v11242_v4  ;;  %v11245_v58 = vld [vmem:[#allocation6] sm:$0xff]  ;;  %v11249_v51 = vld [vmem:[#allocation6 + $0x10] sm:$0xff] }
 0x5ad   :  { %1669 = vmatpush1.msra.mxu0 %v11233_v5  ;;  %1740 = vmatpush1.msra.mxu1 %v11236_v2  ;;  %14013 = vst [vmem:[#allocation94_spill] sm:$0xff] %v11245_v58  ;;  %14014 = vst [vmem:[#allocation95_spill] sm:$0xff] %v11249_v51 }
 0x5ae   :  { %1670 = vmatprep.subr.mxu0 %v11239_v61  ;;  %1741 = vmatprep.subr.mxu1 %v11242_v4 }
 0x5af   :  { %1671 = vmatpush1.msra.mxu0 %v11245_v58  ;;  %1704 = vmatprep.mubr.f32.mxu0 %v13991_v28 }
 0x5b0   :  { %1742 = vmatpush1.msra.mxu1 %v11249_v51  ;;  %1775 = vmatprep.mubr.f32.mxu1 %v13991_v28 }
 0x5b1   :  { %1828 = vmatprep.subr.mxu0 %v11046_v30  ;;  %1899 = vmatprep.subr.mxu1 %v11049_v31 }
 0x618   :  { %v2211_v61 = vpop.xlane.xlu0 %2210 }
 0x619   :  { %v2215_v2 = vmul.f32 0.0078125, %v2211_v61  ;;  %v14018_v61 = vld [vmem:[#allocation105_spill] sm:$0xff] }
 0x61b   :  { %v11256_v4 = vsub.f32 %v11062_v52, %v2215_v2 }
 0x61d   :  { %14015 = vst [vmem:[#allocation96_spill] sm:$0xff] %v11256_v4  ;;  %v2219_v58 = vmul.f32 %v11256_v4, %v11256_v4 }
 0x61f   :  { %2221 = vadd.xlane.f32.xlu1 %v2219_v58 }
 0x650   :  { %v1533_v5 = vpop.f32.mrf.mxu0  ;;  %v1604_v30 = vpop.f32.mrf.mxu1 }
 0x651   :  { %v1609_v49 = vadd.f32 %v1533_v5, %v14016_v56  ;;  %v1611_v63 = vadd.f32 %v1604_v30, %v14019_v50 }
 0x652   :  { %v1535_v53 = vpop.f32.mrf.mxu0  ;;  %v1606_v31 = vpop.f32.mrf.mxu1 }
 0x653   :  { %v8301_v51 = vmul.f32 -1.442695, %v1609_v49  ;;  %v1610_v28 = vadd.f32 %v1535_v53, %v14017_v0  ;;  %v1612_v62 = vadd.f32 %v1606_v31, %v14018_v61 }
 0x655   :  { %9044 = vpow2.f32 %v8301_v51  ;;  %v8302_v59 = vmul.f32 -1.442695, %v1610_v28  ;;  %v8303_v52 = vmul.f32 -1.442695, %v1612_v62  ;;  %v1633_v28 = vrot.slane %v11057_v60, 6  ;;  %v14021_v60 = vld [vmem:[#allocation79_spill] sm:$0xff] }
 0x657   :  { %9046 = vpow2.f32 %v8302_v59 }
 0x658   :  { %9048 = vpow2.f32 %v8303_v52 }
 0x662   :  { %v9045_v2 = vpop.eup %9044 }
 0x663   :  { %v1616_v4 = vadd.f32 1.0, %v9045_v2  ;;  %v14025_v2 = vld [vmem:[#allocation83_spill] sm:$0xff] }
 0x664   :  { %v9047_v58 = vpop.eup %9046 }
 0x665   :  { %9050 = vrcp.f32 %v1616_v4  ;;  %v1622_v5 = vadd.f32 1.0, %v9047_v58  ;;  %v9049_v49 = vpop.eup %9048  ;;  %v14026_v58 = vld [vmem:[#allocation84_spill] sm:$0xff] }
 0x666   :  { %9052 = vtanh.f32 %v1611_v63  ;;  %v1629_v0 = vadd.f32 1.0, %v9049_v49  ;;  %v14022_v63 = vld [vmem:[#allocation80_spill] sm:$0xff]  ;;  %v14028_v49 = vld [vmem:[#allocation86_spill] sm:$0xff] }
 0x667   :  { %9054 = vrcp.f32 %v1622_v5  ;;  %v14027_v5 = vld [vmem:[#allocation85_spill] sm:$0xff] }
 0x668   :  { %9056 = vrcp.f32 %v1629_v0  ;;  %v14023_v0 = vld [vmem:[#allocation81_spill] sm:$0xff] }
 0x672   :  { %v9051_v53 = vpop.eup %9050 }
 0x673   :  { %v9053_v51 = vpop.eup %9052 }
 0x674   :  { %v9055_v59 = vpop.eup %9054  ;;  %v1636_v56 = vmul.f32 %v9053_v51, %v9051_v53  ;;  %v14029_v53 = vld [vmem:[#allocation87_spill] sm:$0xff]  ;;  %v14030_v51 = vld [vmem:[#allocation88_spill] sm:$0xff] }
 0x675   :  { %v1635_v31 = vmul.f32 %v9055_v59, %v1633_v28  ;;  %v9057_v30 = vpop.eup %9056  ;;  %v14031_v28 = vld [vmem:[#allocation89_spill] sm:$0xff]  ;;  %v14032_v59 = vld [vmem:[#allocation90_spill] sm:$0xff] }
 0x677   :  { %v11265_v62 = vadd.f32 %v1636_v56, %v1635_v31  ;;  %v14024_v56 = vld [vmem:[#allocation82_spill] sm:$0xff]  ;;  %v14033_v31 = vld [vmem:[#allocation91_spill] sm:$0xff] }
 0x679   :  { %9058 = vtanh.f32 %v11265_v62 }
 0x686   :  { %v9059_v52 = vpop.eup %9058 }
 0x687   :  { %v11268_v4 = vmul.f32 %v9059_v52, %v9057_v30  ;;  %v14034_v30 = vld [vmem:[#allocation92_spill] sm:$0xff]  ;;  %v14035_v52 = vld [vmem:[#allocation93_spill] sm:$0xff] }
 0x689   :  { %14020 = vst [vmem:[#allocation97_spill] sm:$0xff] %v11268_v4  ;;  %1705 = vmatmul.mubr.f32.vlgmr.msra.gmra.mxu0 %v11268_v4  ;;  %1776 = vmatmul.mubr.f32.vlgmr.msra.gmra.mxu1 %v11268_v4  ;;  %v14036_v4 = vld [vmem:[#allocation94_spill] sm:$0xff] }
 0x68a   :  { %1829 = vmatpush1.msra.mxu0 %v11065_v7  ;;  %1900 = vmatpush1.msra.mxu1 %v11068_v57 }
 0x68b   :  { %1830 = vmatprep.subr.mxu0 %v11071_v6  ;;  %1901 = vmatprep.subr.mxu1 %v11074_v55 }
 0x68c   :  { %1831 = vmatpush1.msra.mxu0 %v11077_v1  ;;  %1902 = vmatpush1.msra.mxu1 %v11080_v3 }
 0x68d   :  { %1832 = vmatprep.subr.mxu0 %v11083_v54  ;;  %1903 = vmatprep.subr.mxu1 %v11086_v8 }
 0x68e   :  { %1833 = vmatpush1.msra.mxu0 %v11089_v9  ;;  %1904 = vmatpush1.msra.mxu1 %v11092_v10 }
 0x68f   :  { %1834 = vmatprep.subr.mxu0 %v11095_v11  ;;  %1905 = vmatprep.subr.mxu1 %v11098_v12 }
 0x690   :  { %1835 = vmatpush1.msra.mxu0 %v11101_v13  ;;  %1906 = vmatpush1.msra.mxu1 %v11104_v14 }
 0x691   :  { %1836 = vmatprep.subr.mxu0 %v11107_v15  ;;  %1907 = vmatprep.subr.mxu1 %v11110_v16 }
 0x692   :  { %1837 = vmatpush1.msra.mxu0 %v11113_v17  ;;  %1908 = vmatpush1.msra.mxu1 %v11116_v18 }
 0x693   :  { %1838 = vmatprep.subr.mxu0 %v11119_v19  ;;  %1909 = vmatprep.subr.mxu1 %v11122_v20 }
 0x694   :  { %1839 = vmatpush1.msra.mxu0 %v11125_v21  ;;  %1910 = vmatpush1.msra.mxu1 %v11128_v22 }
 0x695   :  { %1840 = vmatprep.subr.mxu0 %v11131_v23  ;;  %1911 = vmatprep.subr.mxu1 %v11134_v24 }
 0x696   :  { %1841 = vmatpush1.msra.mxu0 %v11137_v25  ;;  %1912 = vmatpush1.msra.mxu1 %v11140_v26 }
 0x697   :  { %1842 = vmatprep.subr.mxu0 %v11143_v27  ;;  %1913 = vmatprep.subr.mxu1 %v11146_v29 }
 0x698   :  { %1843 = vmatpush1.msra.mxu0 %v11149_v32  ;;  %1914 = vmatpush1.msra.mxu1 %v11152_v33 }
 0x699   :  { %1844 = vmatprep.subr.mxu0 %v11155_v34  ;;  %1915 = vmatprep.subr.mxu1 %v11158_v35 }
 0x69a   :  { %1845 = vmatpush1.msra.mxu0 %v11161_v36  ;;  %1916 = vmatpush1.msra.mxu1 %v11164_v37 }
 0x69b   :  { %1846 = vmatprep.subr.mxu0 %v11167_v38  ;;  %1917 = vmatprep.subr.mxu1 %v11170_v39 }
 0x69c   :  { %1847 = vmatpush1.msra.mxu0 %v11173_v40  ;;  %1918 = vmatpush1.msra.mxu1 %v11176_v41 }
 0x69d   :  { %1848 = vmatprep.subr.mxu0 %v11179_v42  ;;  %1919 = vmatprep.subr.mxu1 %v11182_v43 }
 0x69e   :  { %1849 = vmatpush1.msra.mxu0 %v11185_v44  ;;  %1920 = vmatpush1.msra.mxu1 %v11188_v45 }
 0x69f   :  { %1850 = vmatprep.subr.mxu0 %v11191_v46  ;;  %1921 = vmatprep.subr.mxu1 %v11194_v47 }
 0x6a0   :  { %1851 = vmatpush1.msra.mxu0 %v11197_v48  ;;  %1922 = vmatpush1.msra.mxu1 %v14021_v60 }
 0x6a1   :  { %1852 = vmatprep.subr.mxu0 %v14022_v63  ;;  %1923 = vmatprep.subr.mxu1 %v14023_v0  ;;  %v14042_v0 = vld [vmem:[#allocation103_spill] sm:$0xff] }
 0x6a2   :  { %1853 = vmatpush1.msra.mxu0 %v14024_v56  ;;  %1924 = vmatpush1.msra.mxu1 %v14025_v2 }
 0x6a3   :  { %1854 = vmatprep.subr.mxu0 %v14026_v58  ;;  %1925 = vmatprep.subr.mxu1 %v14027_v5  ;;  %v14037_v58 = vmov 0.0   ;;  %v14038_v5 = vld [vmem:[#allocation95_spill] sm:$0xff] }
 0x6a4   :  { %1855 = vmatpush1.msra.mxu0 %v14028_v49  ;;  %1926 = vmatpush1.msra.mxu1 %v14029_v53  ;;  %v14039_v53 = vld [vmem:[#allocation75_spill] sm:$0xff] }
 0x6a5   :  { %1856 = vmatprep.subr.mxu0 %v14030_v51  ;;  %1927 = vmatprep.subr.mxu1 %v14031_v28  ;;  %v14040_v51 = vld [vmem:[#allocation76_spill] sm:$0xff] }
 0x6a6   :  { %1857 = vmatpush1.msra.mxu0 %v14032_v59  ;;  %1928 = vmatpush1.msra.mxu1 %v14033_v31  ;;  %v14041_v31 = vld [vmem:[#allocation102_spill] sm:$0xff] }
 0x6a7   :  { %1858 = vmatprep.subr.mxu0 %v14034_v30  ;;  %1929 = vmatprep.subr.mxu1 %v14035_v52 }
 0x6a8   :  { %1859 = vmatpush1.msra.mxu0 %v14036_v4  ;;  %1892 = vmatprep.mubr.f32.mxu0 %v14037_v58 }
 0x6a9   :  { %1930 = vmatpush1.msra.mxu1 %v14038_v5  ;;  %1963 = vmatprep.mubr.f32.mxu1 %v14037_v58 }
 0x6aa   :  { %2016 = vmatprep.subr.mxu0 %v14039_v53  ;;  %2087 = vmatprep.subr.mxu1 %v14040_v51 }
 0x749   :  { %v1706_v28 = vpop.f32.mrf.mxu0  ;;  %v1777_v30 = vpop.f32.mrf.mxu1 }
 0x74a   :  { %v1786_v59 = vrot.slane %v1706_v28, 6  ;;  %v1788_v53 = vrot.slane %v1777_v30, 6 }
 0x74b   :  { %v1708_v49 = vpop.f32.mrf.mxu0  ;;  %v1779_v60 = vpop.f32.mrf.mxu1 }
 0x74c   :  { %v1794_v2 = vadd.f32 %v1786_v59, %v14041_v31  ;;  %v1787_v56 = vrot.slane %v1708_v49, 6  ;;  %v1789_v5 = vrot.slane %v1779_v60, 6  ;;  %v1796_v28 = vadd.f32 %v1788_v53, %v14019_v50 }
 0x74e   :  { %v8304_v52 = vmul.f32 -1.442695, %v1794_v2  ;;  %v1795_v4 = vadd.f32 %v1787_v56, %v14042_v0  ;;  %v1797_v58 = vadd.f32 %v1789_v5, %v14018_v61 }
 0x750   :  { %9060 = vpow2.f32 %v8304_v52  ;;  %v8305_v63 = vmul.f32 -1.442695, %v1795_v4  ;;  %v8306_v48 = vmul.f32 -1.442695, %v1797_v58 }
 0x752   :  { %9062 = vpow2.f32 %v8305_v63  ;;  %v1818_v63 = vrot.slane %v11265_v62, 6 }
 0x753   :  { %9064 = vpow2.f32 %v8306_v48 }
 0x75d   :  { %v9061_v51 = vpop.eup %9060 }
 0x75e   :  { %v1801_v47 = vadd.f32 1.0, %v9061_v51 }
 0x75f   :  { %v9063_v46 = vpop.eup %9062 }
 0x760   :  { %9066 = vrcp.f32 %v1801_v47  ;;  %v1807_v49 = vadd.f32 1.0, %v9063_v46  ;;  %v9065_v56 = vpop.eup %9064 }
 0x761   :  { %9068 = vtanh.f32 %v1796_v28  ;;  %v1814_v59 = vadd.f32 1.0, %v9065_v56 }
 0x762   :  { %9070 = vrcp.f32 %v1807_v49 }
 0x763   :  { %9072 = vrcp.f32 %v1814_v59 }
 0x76d   :  { %v9067_v2 = vpop.eup %9066 }
 0x76e   :  { %v9069_v4 = vpop.eup %9068 }
 0x76f   :  { %v9071_v60 = vpop.eup %9070  ;;  %v1821_v5 = vmul.f32 %v9069_v4, %v9067_v2 }
 0x770   :  { %v1820_v30 = vmul.f32 %v9071_v60, %v1818_v63  ;;  %v9073_v52 = vpop.eup %9072 }
 0x772   :  { %v11343_v58 = vadd.f32 %v1821_v5, %v1820_v30  ;;  %v2222_v5 = vpop.xlane.xlu1 %2221 }
 0x774   :  { %9074 = vtanh.f32 %v11343_v58  ;;  %v2006_v28 = vrot.slane %v11343_v58, 6  ;;  %v2313_v58 = vld [vmem:[#allocation9 + $0x1f0] sm:$0xff] }
 0x781   :  { %v9075_v48 = vpop.eup %9074 }
 0x782   :  { %v11346_v47 = vmul.f32 %v9075_v48, %v9073_v52  ;;  %v14064_v52 = vld [vmem:[#allocation97_spill] sm:$0xff] }
 0x784   :  { %v1826_v46 = vrot.slane %v11346_v47, 2  ;;  %v2207_v48 = vsel %vm2201_vm1, %v14064_v52, %v11346_v47  ;;  %v2303_v47 = vld [vmem:[#allocation9 + $0x1a0] sm:$0xff]  ;;  %v2262_v52 = vld [vmem:[#allocation9 + $0x58] sm:$0xff] }
 0x786   :  { %1893 = vmatmul.mubr.f32.vlgmr.msra.gmra.mxu0 %v1826_v46  ;;  %1964 = vmatmul.mubr.f32.vlgmr.msra.gmra.mxu1 %v1826_v46 }
 0x787   :  { %2017 = vmatpush1.msra.mxu0 %v11065_v7  ;;  %2088 = vmatpush1.msra.mxu1 %v11068_v57  ;;  %v14043_v7 = vld [vmem:[#allocation106_spill] sm:$0xff]  ;;  %v14044_v57 = vld [vmem:[#allocation77_spill] sm:$0xff] }
 0x788   :  { %2018 = vmatprep.subr.mxu0 %v11071_v6  ;;  %2089 = vmatprep.subr.mxu1 %v11074_v55  ;;  %v14045_v6 = vld [vmem:[#allocation78_spill] sm:$0xff]  ;;  %v14046_v55 = vld [vmem:[#allocation79_spill] sm:$0xff] }
 0x789   :  { %2019 = vmatpush1.msra.mxu0 %v11077_v1  ;;  %2090 = vmatpush1.msra.mxu1 %v11080_v3  ;;  %v14047_v1 = vld [vmem:[#allocation80_spill] sm:$0xff]  ;;  %v14048_v3 = vld [vmem:[#allocation81_spill] sm:$0xff] }
 0x78a   :  { %2020 = vmatprep.subr.mxu0 %v11083_v54  ;;  %2091 = vmatprep.subr.mxu1 %v11086_v8  ;;  %v14049_v54 = vld [vmem:[#allocation82_spill] sm:$0xff]  ;;  %v14050_v8 = vld [vmem:[#allocation83_spill] sm:$0xff] }
 0x78b   :  { %2021 = vmatpush1.msra.mxu0 %v11089_v9  ;;  %2092 = vmatpush1.msra.mxu1 %v11092_v10  ;;  %v14051_v9 = vld [vmem:[#allocation84_spill] sm:$0xff]  ;;  %v14052_v10 = vld [vmem:[#allocation85_spill] sm:$0xff] }
 0x78c   :  { %2022 = vmatprep.subr.mxu0 %v11095_v11  ;;  %2093 = vmatprep.subr.mxu1 %v11098_v12  ;;  %v14053_v11 = vld [vmem:[#allocation86_spill] sm:$0xff]  ;;  %v14054_v12 = vld [vmem:[#allocation87_spill] sm:$0xff] }
 0x78d   :  { %2023 = vmatpush1.msra.mxu0 %v11101_v13  ;;  %2094 = vmatpush1.msra.mxu1 %v11104_v14  ;;  %v14055_v13 = vld [vmem:[#allocation88_spill] sm:$0xff]  ;;  %v14056_v14 = vld [vmem:[#allocation89_spill] sm:$0xff] }
 0x78e   :  { %2024 = vmatprep.subr.mxu0 %v11107_v15  ;;  %2095 = vmatprep.subr.mxu1 %v11110_v16  ;;  %v14057_v15 = vld [vmem:[#allocation90_spill] sm:$0xff]  ;;  %v14058_v16 = vld [vmem:[#allocation91_spill] sm:$0xff] }
 0x78f   :  { %2025 = vmatpush1.msra.mxu0 %v11113_v17  ;;  %2096 = vmatpush1.msra.mxu1 %v11116_v18  ;;  %v14059_v17 = vld [vmem:[#allocation92_spill] sm:$0xff]  ;;  %v14060_v18 = vld [vmem:[#allocation93_spill] sm:$0xff] }
 0x790   :  { %2026 = vmatprep.subr.mxu0 %v11119_v19  ;;  %2097 = vmatprep.subr.mxu1 %v11122_v20  ;;  %v14061_v19 = vld [vmem:[#allocation94_spill] sm:$0xff]  ;;  %v14062_v20 = vld [vmem:[#allocation95_spill] sm:$0xff] }
 0x791   :  { %2027 = vmatpush1.msra.mxu0 %v11125_v21  ;;  %2098 = vmatpush1.msra.mxu1 %v11128_v22  ;;  %v14063_v21 = vmov 0.0   ;;  %v2312_v22 = vld [vmem:[#allocation9 + $0x1e8] sm:$0xff] }
 0x792   :  { %2028 = vmatprep.subr.mxu0 %v11131_v23  ;;  %2099 = vmatprep.subr.mxu1 %v11134_v24  ;;  %v2314_v23 = vld [vmem:[#allocation9 + $0x1f8] sm:$0xff] }
 0x793   :  { %2029 = vmatpush1.msra.mxu0 %v11137_v25  ;;  %2100 = vmatpush1.msra.mxu1 %v11140_v26 }
 0x794   :  { %2030 = vmatprep.subr.mxu0 %v11143_v27  ;;  %2101 = vmatprep.subr.mxu1 %v11146_v29 }
 0x795   :  { %2031 = vmatpush1.msra.mxu0 %v11149_v32  ;;  %2102 = vmatpush1.msra.mxu1 %v11152_v33 }
 0x796   :  { %2032 = vmatprep.subr.mxu0 %v11155_v34  ;;  %2103 = vmatprep.subr.mxu1 %v11158_v35 }
 0x797   :  { %2033 = vmatpush1.msra.mxu0 %v11161_v36  ;;  %2104 = vmatpush1.msra.mxu1 %v11164_v37 }
 0x798   :  { %2034 = vmatprep.subr.mxu0 %v11167_v38  ;;  %2105 = vmatprep.subr.mxu1 %v11170_v39 }
 0x799   :  { %2035 = vmatpush1.msra.mxu0 %v11173_v40  ;;  %2106 = vmatpush1.msra.mxu1 %v11176_v41 }
 0x79a   :  { %2036 = vmatprep.subr.mxu0 %v11179_v42  ;;  %2107 = vmatprep.subr.mxu1 %v11182_v43 }
 0x79b   :  { %2037 = vmatpush1.msra.mxu0 %v11185_v44  ;;  %2108 = vmatpush1.msra.mxu1 %v11188_v45 }
 0x79c   :  { %2038 = vmatprep.subr.mxu0 %v14043_v7  ;;  %2109 = vmatprep.subr.mxu1 %v14044_v57  ;;  %v2311_v7 = vld [vmem:[#allocation9 + $0x1e0] sm:$0xff] }
 0x79d   :  { %2039 = vmatpush1.msra.mxu0 %v14045_v6  ;;  %2110 = vmatpush1.msra.mxu1 %v14046_v55  ;;  %v2225_v6 = vmul.f32 0.0078125, %v2222_v5  ;;  %v2308_v55 = vld [vmem:[#allocation9 + $0x1c8] sm:$0xff]  ;;  %v2265_v5 = vld [vmem:[#allocation9 + $0x70] sm:$0xff] }
 0x79e   :  { %2040 = vmatprep.subr.mxu0 %v14047_v1  ;;  %2111 = vmatprep.subr.mxu1 %v14048_v3  ;;  %v2310_v1 = vld [vmem:[#allocation9 + $0x1d8] sm:$0xff]  ;;  %v2307_v3 = vld [vmem:[#allocation9 + $0x1c0] sm:$0xff] }
 0x79f   :  { %2041 = vmatpush1.msra.mxu0 %v14049_v54  ;;  %2112 = vmatpush1.msra.mxu1 %v14050_v8  ;;  %v2309_v54 = vld [vmem:[#allocation9 + $0x1d0] sm:$0xff]  ;;  %v2304_v8 = vld [vmem:[#allocation9 + $0x1a8] sm:$0xff] }
 0x7a0   :  { %2042 = vmatprep.subr.mxu0 %v14051_v9  ;;  %2113 = vmatprep.subr.mxu1 %v14052_v10  ;;  %v2306_v9 = vld [vmem:[#allocation9 + $0x1b8] sm:$0xff]  ;;  %v2305_v10 = vld [vmem:[#allocation9 + $0x1b0] sm:$0xff] }
 0x7a1   :  { %2043 = vmatpush1.msra.mxu0 %v14053_v11  ;;  %2114 = vmatpush1.msra.mxu1 %v14054_v12  ;;  %v2227_v11 = vadd.f32 1e-05, %v2225_v6  ;;  %v2300_v12 = vld [vmem:[#allocation9 + $0x188] sm:$0xff]  ;;  %v11429_v6 = vld [vmem:[%s14065_s30] ss:$0 sm:$0xff] }
 0x7a2   :  { %2044 = vmatprep.subr.mxu0 %v14055_v13  ;;  %2115 = vmatprep.subr.mxu1 %v14056_v14  ;;  %v2302_v13 = vld [vmem:[#allocation9 + $0x198] sm:$0xff]  ;;  %v2299_v14 = vld [vmem:[#allocation9 + $0x180] sm:$0xff] }
 0x7a3   :  { %2045 = vmatpush1.msra.mxu0 %v14057_v15  ;;  %2116 = vmatpush1.msra.mxu1 %v14058_v16  ;;  %v2301_v15 = vld [vmem:[#allocation9 + $0x190] sm:$0xff]  ;;  %v2296_v16 = vld [vmem:[#allocation9 + $0x168] sm:$0xff] }
 0x7a4   :  { %2046 = vmatprep.subr.mxu0 %v14059_v17  ;;  %2117 = vmatprep.subr.mxu1 %v14060_v18  ;;  %v2298_v17 = vld [vmem:[#allocation9 + $0x178] sm:$0xff]  ;;  %v2295_v18 = vld [vmem:[#allocation9 + $0x160] sm:$0xff] }
 0x7a5   :  { %2047 = vmatpush1.msra.mxu0 %v14061_v19  ;;  %2118 = vmatpush1.msra.mxu1 %v14062_v20  ;;  %v2297_v19 = vld [vmem:[#allocation9 + $0x170] sm:$0xff]  ;;  %v2292_v20 = vld [vmem:[#allocation9 + $0x148] sm:$0xff] }
 0x7a6   :  { %2080 = vmatprep.mubr.f32.mxu0 %v14063_v21  ;;  %2151 = vmatprep.mubr.f32.mxu1 %v14063_v21 }
 0x7a7   :  { %2337 = vmatprep.subr.mxu0 %v2312_v22  ;;  %2414 = vmatprep.subr.mxu1 %v2314_v23  ;;  %v2294_v22 = vld [vmem:[#allocation9 + $0x158] sm:$0xff]  ;;  %v2291_v23 = vld [vmem:[#allocation9 + $0x140] sm:$0xff] }
 0x846   :  { %v1894_v24 = vpop.f32.mrf.mxu0  ;;  %v1965_v29 = vpop.f32.mrf.mxu1 }
 0x847   :  { %v1974_v25 = vrot.slane %v1894_v24, 4  ;;  %v1976_v39 = vrot.slane %v1965_v29, 4  ;;  %v2293_v24 = vld [vmem:[#allocation9 + $0x150] sm:$0xff] }
 0x848   :  { %v1896_v26 = vpop.f32.mrf.mxu0  ;;  %v1967_v36 = vpop.f32.mrf.mxu1  ;;  %v2289_v29 = vld [vmem:[#allocation9 + $0x130] sm:$0xff] }
 0x849   :  { %v1982_v27 = vadd.f32 %v1974_v25, %v14041_v31  ;;  %v1975_v32 = vrot.slane %v1896_v26, 4  ;;  %v1977_v37 = vrot.slane %v1967_v36, 4  ;;  %v1984_v42 = vadd.f32 %v1976_v39, %v14019_v50  ;;  %v2288_v25 = vld [vmem:[#allocation9 + $0x128] sm:$0xff]  ;;  %v2290_v26 = vld [vmem:[#allocation9 + $0x138] sm:$0xff]  ;;  %v2281_v39 = vld [vmem:[#allocation9 + $0xf0] sm:$0xff] }
 0x84a   :  { %v2280_v36 = vld [vmem:[#allocation9 + $0xe8] sm:$0xff] }
 0x84b   :  { %v8307_v33 = vmul.f32 -1.442695, %v1982_v27  ;;  %v1983_v34 = vadd.f32 %v1975_v32, %v14042_v0  ;;  %v1985_v38 = vadd.f32 %v1977_v37, %v14018_v61  ;;  %v2287_v27 = vld [vmem:[#allocation9 + $0x120] sm:$0xff]  ;;  %v2284_v32 = vld [vmem:[#allocation9 + $0x108] sm:$0xff]  ;;  %v2282_v37 = vld [vmem:[#allocation9 + $0xf8] sm:$0xff] }
 0x84d   :  { %9076 = vpow2.f32 %v8307_v33  ;;  %v8308_v35 = vmul.f32 -1.442695, %v1983_v34  ;;  %v8309_v40 = vmul.f32 -1.442695, %v1985_v38  ;;  %v2286_v33 = vld [vmem:[#allocation9 + $0x118] sm:$0xff]  ;;  %v2283_v34 = vld [vmem:[#allocation9 + $0x100] sm:$0xff] }
 0x84e   :  { %v2279_v38 = vld [vmem:[#allocation9 + $0xe0] sm:$0xff] }
 0x84f   :  { %9078 = vpow2.f32 %v8308_v35  ;;  %v2285_v35 = vld [vmem:[#allocation9 + $0x110] sm:$0xff] }
 0x850   :  { %9080 = vpow2.f32 %v8309_v40  ;;  %v2276_v40 = vld [vmem:[#allocation9 + $0xc8] sm:$0xff] }
 0x85a   :  { %v9077_v41 = vpop.eup %9076 }
 0x85b   :  { %v1989_v43 = vadd.f32 1.0, %v9077_v41  ;;  %v2278_v41 = vld [vmem:[#allocation9 + $0xd8] sm:$0xff] }
 0x85c   :  { %v9079_v44 = vpop.eup %9078 }
 0x85d   :  { %9082 = vrcp.f32 %v1989_v43  ;;  %v1995_v45 = vadd.f32 1.0, %v9079_v44  ;;  %v9081_v62 = vpop.eup %9080  ;;  %v2277_v43 = vld [vmem:[#allocation9 + $0xd0] sm:$0xff]  ;;  %v2272_v44 = vld [vmem:[#allocation9 + $0xa8] sm:$0xff] }
 0x85e   :  { %9084 = vtanh.f32 %v1984_v42  ;;  %v2002_v56 = vadd.f32 1.0, %v9081_v62  ;;  %v2275_v42 = vld [vmem:[#allocation9 + $0xc0] sm:$0xff] }
 0x85f   :  { %9086 = vrcp.f32 %v1995_v45  ;;  %v2274_v45 = vld [vmem:[#allocation9 + $0xb8] sm:$0xff]  ;;  %v2271_v62 = vld [vmem:[#allocation9 + $0xa0] sm:$0xff] }
 0x860   :  { %9088 = vrcp.f32 %v2002_v56  ;;  %v2267_v56 = vld [vmem:[#allocation9 + $0x80] sm:$0xff] }
 0x86a   :  { %v9083_v53 = vpop.eup %9082 }
 0x86b   :  { %v9085_v51 = vpop.eup %9084 }
 0x86c   :  { %v9087_v49 = vpop.eup %9086  ;;  %v2009_v2 = vmul.f32 %v9085_v51, %v9083_v53  ;;  %v2273_v53 = vld [vmem:[#allocation9 + $0xb0] sm:$0xff]  ;;  %v2268_v51 = vld [vmem:[#allocation9 + $0x88] sm:$0xff] }
 0x86d   :  { %v2008_v4 = vmul.f32 %v9087_v49, %v2006_v28  ;;  %v9089_v60 = vpop.eup %9088  ;;  %v2270_v28 = vld [vmem:[#allocation9 + $0x98] sm:$0xff] }
 0x86f   :  { %v11418_v63 = vadd.f32 %v2009_v2, %v2008_v4  ;;  %v2269_v2 = vld [vmem:[#allocation9 + $0x90] sm:$0xff]  ;;  %v2264_v4 = vld [vmem:[#allocation9 + $0x68] sm:$0xff] }
 0x871   :  { %9090 = vtanh.f32 %v11418_v63 }
 0x872   :  { %9092 = vrsqrt.f32 %v2227_v11  ;;  %v11433_v11 = vld [vmem:[%s14067_s21] ss:$0 sm:$0xff] }
 0x87e   :  { %v9091_v59 = vpop.eup %9090 }
 0x87f   :  { %v2012_v30 = vmul.f32 %v9091_v59, %v9089_v60  ;;  %v9093_v49 = vpop.eup %9092  ;;  %v2266_v60 = vld [vmem:[#allocation9 + $0x78] sm:$0xff]  ;;  %v2263_v59 = vld [vmem:[#allocation9 + $0x60] sm:$0xff] }
 0x881   :  { %v2014_v46 = vrot.slane %v2012_v30, 4  ;;  %v11425_v57 = vsel %vm2203_vm2, %v2207_v48, %v2012_v30  ;;  %v2260_v30 = vld [vmem:[#allocation9 + $0x48] sm:$0xff] }
 0x882   :  { %v14066_v48 = vld [vmem:[#allocation96_spill] sm:$0xff] }
 0x883   :  { %2081 = vmatmul.mubr.f32.vlgmr.msra.gmra.mxu0 %v2014_v46  ;;  %2152 = vmatmul.mubr.f32.vlgmr.msra.gmra.mxu1 %v2014_v46  ;;  %v2231_v46 = vmul.f32 %v9093_v49, %v14066_v48  ;;  %v11459_v49 = vld [vmem:[#allocation10 + $0x1d8] sm:$0xff]  ;;  %v11483_v48 = vld [vmem:[#allocation10 + $0x1b0] sm:$0xff] }
 0x884   :  { %2338 = vmatpush1.msra.mxu0 %v2311_v7  ;;  %2415 = vmatpush1.msra.mxu1 %v2313_v58  ;;  %v2259_v7 = vld [vmem:[#allocation9 + $0x40] sm:$0xff]  ;;  %v2261_v58 = vld [vmem:[#allocation9 + $0x50] sm:$0xff] }
 0x885   :  { %2339 = vmatprep.subr.mxu0 %v2308_v55  ;;  %2416 = vmatprep.subr.mxu1 %v2310_v1  ;;  %v2256_v55 = vld [vmem:[#allocation9 + $0x28] sm:$0xff]  ;;  %v2258_v1 = vld [vmem:[#allocation9 + $0x38] sm:$0xff] }
 0x886   :  { %2340 = vmatpush1.msra.mxu0 %v2307_v3  ;;  %2417 = vmatpush1.msra.mxu1 %v2309_v54  ;;  %v2255_v3 = vld [vmem:[#allocation9 + $0x20] sm:$0xff]  ;;  %v2257_v54 = vld [vmem:[#allocation9 + $0x30] sm:$0xff] }
 0x887   :  { %2341 = vmatprep.subr.mxu0 %v2304_v8  ;;  %2418 = vmatprep.subr.mxu1 %v2306_v9  ;;  %v2252_v8 = vld [vmem:[#allocation9 + $0x8] sm:$0xff]  ;;  %v2254_v9 = vld [vmem:[#allocation9 + $0x18] sm:$0xff] }
 0x888   :  { %2342 = vmatpush1.msra.mxu0 %v2303_v47  ;;  %2419 = vmatpush1.msra.mxu1 %v2305_v10  ;;  %v2240_v47 = vmul.f32 %v11429_v6, %v2231_v46  ;;  %v2251_v10 = vld [vmem:[#allocation9] sm:$0xff]  ;;  %v11487_v46 = vld [vmem:[#allocation10 + $0x188] sm:$0xff] }
 0x889   :  { %2343 = vmatprep.subr.mxu0 %v2300_v12  ;;  %2420 = vmatprep.subr.mxu1 %v2302_v13  ;;  %v2253_v12 = vld [vmem:[#allocation9 + $0x10] sm:$0xff] }
 0x88a   :  { %2344 = vmatpush1.msra.mxu0 %v2299_v14  ;;  %2421 = vmatpush1.msra.mxu1 %v2301_v15  ;;  %v2249_v13 = vadd.f32 %v11433_v11, %v2240_v47  ;;  %v11511_v47 = vld [vmem:[#allocation10 + $0x158] sm:$0xff] }
 0x88b   :  { %2345 = vmatprep.subr.mxu0 %v2296_v16  ;;  %2422 = vmatprep.subr.mxu1 %v2298_v17 }
 0x88c   :  { %2346 = vmatpush1.msra.mxu0 %v2295_v18  ;;  %2423 = vmatpush1.msra.mxu1 %v2297_v19 }
 0x88d   :  { %2347 = vmatprep.subr.mxu0 %v2292_v20  ;;  %2424 = vmatprep.subr.mxu1 %v2294_v22 }
 0x88e   :  { %2348 = vmatpush1.msra.mxu0 %v2291_v23  ;;  %2425 = vmatpush1.msra.mxu1 %v2293_v24 }
 0x88f   :  { %2349 = vmatprep.subr.mxu0 %v2288_v25  ;;  %2426 = vmatprep.subr.mxu1 %v2290_v26 }
 0x890   :  { %2350 = vmatpush1.msra.mxu0 %v2287_v27  ;;  %2427 = vmatpush1.msra.mxu1 %v2289_v29 }
 0x891   :  { %2351 = vmatprep.subr.mxu0 %v2284_v32  ;;  %2428 = vmatprep.subr.mxu1 %v2286_v33 }
 0x892   :  { %2352 = vmatpush1.msra.mxu0 %v2283_v34  ;;  %2429 = vmatpush1.msra.mxu1 %v2285_v35 }
 0x893   :  { %2353 = vmatprep.subr.mxu0 %v2280_v36  ;;  %2430 = vmatprep.subr.mxu1 %v2282_v37 }
 0x894   :  { %2354 = vmatpush1.msra.mxu0 %v2279_v38  ;;  %2431 = vmatpush1.msra.mxu1 %v2281_v39  ;;  %v2194_v38 = vrot.slane %v11418_v63, 6  ;;  %v11455_v63 = vld [vmem:[#allocation10 + $0x1f0] sm:$0xff] }
 0x895   :  { %2355 = vmatprep.subr.mxu0 %v2276_v40  ;;  %2432 = vmatprep.subr.mxu1 %v2278_v41 }
 0x896   :  { %2356 = vmatpush1.msra.mxu0 %v2275_v42  ;;  %2433 = vmatpush1.msra.mxu1 %v2277_v43 }
 0x897   :  { %2357 = vmatprep.subr.mxu0 %v2272_v44  ;;  %2434 = vmatprep.subr.mxu1 %v2274_v45 }
 0x898   :  { %2358 = vmatpush1.msra.mxu0 %v2271_v62  ;;  %2435 = vmatpush1.msra.mxu1 %v2273_v53  ;;  %v11447_v62 = vld [vmem:[#allocation10 + $0x1e8] sm:$0xff]  ;;  %v11449_v53 = vld [vmem:[#allocation10 + $0x1f8] sm:$0xff] }
 0x899   :  { %2359 = vmatprep.subr.mxu0 %v2268_v51  ;;  %2436 = vmatprep.subr.mxu1 %v2270_v28  ;;  %14068 = vst [vmem:[#allocation105_spill] sm:$0xff] %v11447_v62  ;;  %14069 = vst [vmem:[#allocation104_spill] sm:$0xff] %v11449_v53  ;;  %v11451_v51 = vld [vmem:[#allocation10 + $0x1e0] sm:$0xff]  ;;  %v11457_v28 = vld [vmem:[#allocation10 + $0x1c8] sm:$0xff] }
 0x89a   :  { %2360 = vmatpush1.msra.mxu0 %v2267_v56  ;;  %2437 = vmatpush1.msra.mxu1 %v2269_v2  ;;  %v11465_v56 = vld [vmem:[#allocation10 + $0x1d0] sm:$0xff] }
 0x89b   :  { %2361 = vmatprep.subr.mxu0 %v2264_v4  ;;  %2438 = vmatprep.subr.mxu1 %v2266_v60 }
 0x89c   :  { %2362 = vmatpush1.msra.mxu0 %v2263_v59  ;;  %2439 = vmatpush1.msra.mxu1 %v2265_v5  ;;  %v11475_v5 = vld [vmem:[#allocation10 + $0x1a8] sm:$0xff] }
 0x89d   :  { %2363 = vmatprep.subr.mxu0 %v2260_v30  ;;  %2440 = vmatprep.subr.mxu1 %v2262_v52  ;;  %v11477_v30 = vld [vmem:[#allocation10 + $0x1b8] sm:$0xff]  ;;  %v11481_v52 = vld [vmem:[#allocation10 + $0x1a0] sm:$0xff] }
 0x89e   :  { %2364 = vmatpush1.msra.mxu0 %v2259_v7  ;;  %2441 = vmatpush1.msra.mxu1 %v2261_v58  ;;  %v11489_v7 = vld [vmem:[#allocation10 + $0x198] sm:$0xff]  ;;  %v11493_v58 = vld [vmem:[#allocation10 + $0x180] sm:$0xff] }
 0x89f   :  { %2365 = vmatprep.subr.mxu0 %v2256_v55  ;;  %2442 = vmatprep.subr.mxu1 %v2258_v1  ;;  %v11495_v55 = vld [vmem:[#allocation10 + $0x190] sm:$0xff]  ;;  %v11497_v1 = vld [vmem:[#allocation10 + $0x168] sm:$0xff] }
 0x8a0   :  { %2366 = vmatpush1.msra.mxu0 %v2255_v3  ;;  %2443 = vmatpush1.msra.mxu1 %v2257_v54  ;;  %v11501_v3 = vld [vmem:[#allocation10 + $0x178] sm:$0xff]  ;;  %v11503_v54 = vld [vmem:[#allocation10 + $0x160] sm:$0xff] }
 0x8a1   :  { %2367 = vmatprep.subr.mxu0 %v2252_v8  ;;  %2444 = vmatprep.subr.mxu1 %v2254_v9  ;;  %v11505_v8 = vld [vmem:[#allocation10 + $0x170] sm:$0xff]  ;;  %v11509_v9 = vld [vmem:[#allocation10 + $0x148] sm:$0xff] }
 0x8a2   :  { %2368 = vmatpush1.msra.mxu0 %v2251_v10  ;;  %2401 = vmatprep.mubr.f32.mxu0 %v14063_v21  ;;  %v11513_v10 = vld [vmem:[#allocation10 + $0x140] sm:$0xff] }
 0x8a3   :  { %2445 = vmatpush1.msra.mxu1 %v2253_v12  ;;  %2478 = vmatprep.mubr.f32.mxu1 %v14063_v21  ;;  %v11517_v12 = vld [vmem:[#allocation10 + $0x150] sm:$0xff] }
 0x8a4   :  { %2402 = vmatmul.mubr.f32.vlgmr.msra.gmra.mxu0 %v2249_v13  ;;  %2479 = vmatmul.mubr.f32.vlgmr.msra.gmra.mxu1 %v2249_v13  ;;  %v11519_v13 = vld [vmem:[#allocation10 + $0x128] sm:$0xff] }
 0x8a5   :  { %2407 = vmatprep.mubr.f32.mxu0 %v14063_v21  ;;  %2484 = vmatprep.mubr.f32.mxu1 %v14063_v21 }
 0x8a6   :  { %2555 = vmatprep.subr.mxu0 %v11447_v62  ;;  %2626 = vmatprep.subr.mxu1 %v11449_v53 }
 0x8a7   :  { %2556 = vmatpush1.msra.mxu0 %v11451_v51  ;;  %2627 = vmatpush1.msra.mxu1 %v11455_v63 }
 0x8a8   :  { %2557 = vmatprep.subr.mxu0 %v11457_v28  ;;  %2628 = vmatprep.subr.mxu1 %v11459_v49 }
 0x8a9   :  { %2629 = vmatpush1.msra.mxu1 %v11465_v56 }
 0x8aa   :  { %2630 = vmatprep.subr.mxu1 %v11477_v30 }
 0x8ab   :  { %2631 = vmatpush1.msra.mxu1 %v11483_v48 }
 0x8ac   :  { %2632 = vmatprep.subr.mxu1 %v11489_v7 }
 0x8ad   :  { %2633 = vmatpush1.msra.mxu1 %v11495_v55 }
 0x8ae   :  { %2634 = vmatprep.subr.mxu1 %v11501_v3 }
 0x8af   :  { %2635 = vmatpush1.msra.mxu1 %v11505_v8 }
 0x8b0   :  { %2636 = vmatprep.subr.mxu1 %v11511_v47 }
 0x8b1   :  { %2637 = vmatpush1.msra.mxu1 %v11517_v12 }
 0x943   :  { %v2082_v14 = vpop.f32.mrf.mxu0  ;;  %v2153_v18 = vpop.f32.mrf.mxu1 }
 0x944   :  { %v2162_v15 = vrot.slane %v2082_v14, 2  ;;  %v2164_v27 = vrot.slane %v2153_v18, 2  ;;  %v11521_v14 = vld [vmem:[#allocation10 + $0x138] sm:$0xff] }
 0x945   :  { %v2084_v16 = vpop.f32.mrf.mxu0  ;;  %v2155_v24 = vpop.f32.mrf.mxu1  ;;  %v11533_v18 = vld [vmem:[#allocation10 + $0x118] sm:$0xff]  ;;  %2638 = vmatprep.subr.mxu1 %v11521_v14 }
 0x946   :  { %v2170_v17 = vadd.f32 %v2162_v15, %v14041_v31  ;;  %v2163_v19 = vrot.slane %v2084_v16, 2  ;;  %v2165_v25 = vrot.slane %v2155_v24, 2  ;;  %v2172_v33 = vadd.f32 %v2164_v27, %v14019_v50  ;;  %v11525_v15 = vld [vmem:[#allocation10 + $0x120] sm:$0xff]  ;;  %v11527_v16 = vld [vmem:[#allocation10 + $0x130] sm:$0xff]  ;;  %v11557_v27 = vld [vmem:[#allocation10 + $0xd8] sm:$0xff] }
 0x947   :  { %2639 = vmatpush1.msra.mxu1 %v11527_v16  ;;  %v11549_v24 = vld [vmem:[#allocation10 + $0xe0] sm:$0xff] }
 0x948   :  { %v8310_v20 = vmul.f32 -1.442695, %v2170_v17  ;;  %v2171_v22 = vadd.f32 %v2163_v19, %v14042_v0  ;;  %v2173_v26 = vadd.f32 %v2165_v25, %v14018_v61  ;;  %v11531_v17 = vld [vmem:[#allocation10 + $0x108] sm:$0xff]  ;;  %v11537_v19 = vld [vmem:[#allocation10 + $0x100] sm:$0xff]  ;;  %2640 = vmatprep.subr.mxu1 %v11533_v18  ;;  %v11551_v25 = vld [vmem:[#allocation10 + $0xf0] sm:$0xff] }
 0x94a   :  { %9094 = vpow2.f32 %v8310_v20  ;;  %v8311_v23 = vmul.f32 -1.442695, %v2171_v22  ;;  %v8312_v29 = vmul.f32 -1.442695, %v2173_v26  ;;  %v11539_v20 = vld [vmem:[#allocation10 + $0x110] sm:$0xff]  ;;  %v11543_v22 = vld [vmem:[#allocation10 + $0xe8] sm:$0xff] }
 0x94b   :  { %2641 = vmatpush1.msra.mxu1 %v11539_v20  ;;  %v11555_v26 = vld [vmem:[#allocation10 + $0xc8] sm:$0xff] }
 0x94c   :  { %9096 = vpow2.f32 %v8311_v23  ;;  %v11545_v23 = vld [vmem:[#allocation10 + $0xf8] sm:$0xff] }
 0x94d   :  { %9098 = vpow2.f32 %v8312_v29  ;;  %2642 = vmatprep.subr.mxu1 %v11545_v23  ;;  %v11561_v29 = vld [vmem:[#allocation10 + $0xc0] sm:$0xff] }
 0x94e   :  { %2643 = vmatpush1.msra.mxu1 %v11551_v25 }
 0x94f   :  { %2644 = vmatprep.subr.mxu1 %v11557_v27 }
 0x957   :  { %v9095_v32 = vpop.eup %9094 }
 0x958   :  { %v2177_v34 = vadd.f32 1.0, %v9095_v32  ;;  %v11563_v32 = vld [vmem:[#allocation10 + $0xd0] sm:$0xff] }
 0x959   :  { %v9097_v35 = vpop.eup %9096  ;;  %2645 = vmatpush1.msra.mxu1 %v11563_v32 }
 0x95a   :  { %9100 = vrcp.f32 %v2177_v34  ;;  %v2183_v31 = vadd.f32 1.0, %v9097_v35  ;;  %v9099_v0 = vpop.eup %9098  ;;  %v11569_v34 = vld [vmem:[#allocation10 + $0xb8] sm:$0xff]  ;;  %v11573_v35 = vld [vmem:[#allocation10 + $0xa0] sm:$0xff] }
 0x95b   :  { %9102 = vtanh.f32 %v2172_v33  ;;  %v2190_v40 = vadd.f32 1.0, %v9099_v0  ;;  %v11567_v33 = vld [vmem:[#allocation10 + $0xa8] sm:$0xff]  ;;  %2646 = vmatprep.subr.mxu1 %v11569_v34 }
 0x95c   :  { %9104 = vrcp.f32 %v2183_v31  ;;  %v11575_v31 = vld [vmem:[#allocation10 + $0xb0] sm:$0xff]  ;;  %v11579_v0 = vld [vmem:[#allocation10 + $0x88] sm:$0xff] }
 0x95d   :  { %9106 = vrcp.f32 %v2190_v40  ;;  %14070 = vst [vmem:[#allocation75_spill] sm:$0xff] %v11575_v31  ;;  %14071 = vst [vmem:[#allocation76_spill] sm:$0xff] %v11579_v0  ;;  %2647 = vmatpush1.msra.mxu1 %v11575_v31  ;;  %v11593_v40 = vld [vmem:[#allocation10 + $0x78] sm:$0xff] }
 0x95e   :  { %14076 = vst [vmem:[#allocation78_spill] sm:$0xff] %v11593_v40 }
 0x967   :  { %v9101_v36 = vpop.eup %9100 }
 0x968   :  { %v9103_v37 = vpop.eup %9102 }
 0x969   :  { %v9105_v39 = vpop.eup %9104  ;;  %v2197_v61 = vmul.f32 %v9103_v37, %v9101_v36  ;;  %v11581_v36 = vld [vmem:[#allocation10 + $0x98] sm:$0xff]  ;;  %v11585_v37 = vld [vmem:[#allocation10 + $0x80] sm:$0xff] }
 0x96a   :  { %v2196_v41 = vmul.f32 %v9105_v39, %v2194_v38  ;;  %v9107_v50 = vpop.eup %9106  ;;  %14072 = vst [vmem:[#allocation102_spill] sm:$0xff] %v11581_v36  ;;  %14073 = vst [vmem:[#allocation103_spill] sm:$0xff] %v11585_v37  ;;  %v11587_v38 = vld [vmem:[#allocation10 + $0x90] sm:$0xff]  ;;  %v11591_v39 = vld [vmem:[#allocation10 + $0x68] sm:$0xff]  ;;  %2648 = vmatprep.subr.mxu1 %v11581_v36 }
 0x96b   :  { %14074 = vst [vmem:[#allocation106_spill] sm:$0xff] %v11587_v38  ;;  %14075 = vst [vmem:[#allocation77_spill] sm:$0xff] %v11591_v39  ;;  %2649 = vmatpush1.msra.mxu1 %v11587_v38 }
 0x96c   :  { %v2198_v42 = vadd.f32 %v2197_v61, %v2196_v41  ;;  %v11597_v61 = vld [vmem:[#allocation10 + $0x60] sm:$0xff]  ;;  %v11599_v41 = vld [vmem:[#allocation10 + $0x70] sm:$0xff]  ;;  %2650 = vmatprep.subr.mxu1 %v11593_v40  ;;  %v11627_v40 = vld [vmem:[#allocation10 + $0x8] sm:$0xff] }
 0x96d   :  { %14077 = vst [vmem:[#allocation79_spill] sm:$0xff] %v11597_v61  ;;  %14078 = vst [vmem:[#allocation80_spill] sm:$0xff] %v11599_v41  ;;  %2651 = vmatpush1.msra.mxu1 %v11599_v41 }
 0x96e   :  { %9108 = vtanh.f32 %v2198_v42  ;;  %v11603_v42 = vld [vmem:[#allocation10 + $0x48] sm:$0xff]  ;;  %14087 = vst [vmem:[#allocation89_spill] sm:$0xff] %v11627_v40 }
 0x96f   :  { %14079 = vst [vmem:[#allocation81_spill] sm:$0xff] %v11603_v42 }
 0x97b   :  { %v9109_v43 = vpop.eup %9108 }
 0x97c   :  { %v2200_v44 = vmul.f32 %v9109_v43, %v9107_v50  ;;  %v11605_v50 = vld [vmem:[#allocation10 + $0x58] sm:$0xff]  ;;  %v11609_v43 = vld [vmem:[#allocation10 + $0x40] sm:$0xff] }
 0x97d   :  { %14080 = vst [vmem:[#allocation82_spill] sm:$0xff] %v11605_v50  ;;  %14081 = vst [vmem:[#allocation83_spill] sm:$0xff] %v11609_v43  ;;  %2652 = vmatprep.subr.mxu1 %v11605_v50  ;;  %v11633_v50 = vld [vmem:[#allocation10] sm:$0xff] }
 0x97e   :  { %v2209_v45 = vsel %vm2205_vm3, %v11425_v57, %v2200_v44  ;;  %v11463_v57 = vld [vmem:[#allocation10 + $0x1c0] sm:$0xff]  ;;  %v11611_v44 = vld [vmem:[#allocation10 + $0x50] sm:$0xff]  ;;  %14089 = vst [vmem:[#allocation91_spill] sm:$0xff] %v11633_v50 }
 0x97f   :  { %2212 = vadd.xlane.f32.xlu0 %v2209_v45  ;;  %2558 = vmatpush1.msra.mxu0 %v11463_v57  ;;  %14082 = vst [vmem:[#allocation84_spill] sm:$0xff] %v11611_v44 }
 0x980   :  { %2559 = vmatprep.subr.mxu0 %v11475_v5  ;;  %2653 = vmatpush1.msra.mxu1 %v11611_v44 }
 0x981   :  { %2560 = vmatpush1.msra.mxu0 %v11481_v52 }
 0x982   :  { %2561 = vmatprep.subr.mxu0 %v11487_v46 }
 0x983   :  { %2562 = vmatpush1.msra.mxu0 %v11493_v58 }
 0x984   :  { %2563 = vmatprep.subr.mxu0 %v11497_v1 }
 0x985   :  { %2564 = vmatpush1.msra.mxu0 %v11503_v54 }
 0x986   :  { %2565 = vmatprep.subr.mxu0 %v11509_v9 }
 0x987   :  { %2566 = vmatpush1.msra.mxu0 %v11513_v10 }
 0x988   :  { %2567 = vmatprep.subr.mxu0 %v11519_v13 }
 0x989   :  { %2568 = vmatpush1.msra.mxu0 %v11525_v15 }
 0x98a   :  { %2569 = vmatprep.subr.mxu0 %v11531_v17 }
 0x98b   :  { %2570 = vmatpush1.msra.mxu0 %v11537_v19 }
 0x98c   :  { %2571 = vmatprep.subr.mxu0 %v11543_v22 }
 0x98d   :  { %2572 = vmatpush1.msra.mxu0 %v11549_v24 }
 0x98e   :  { %2573 = vmatprep.subr.mxu0 %v11555_v26 }
 0x98f   :  { %2574 = vmatpush1.msra.mxu0 %v11561_v29 }
 0x990   :  { %2575 = vmatprep.subr.mxu0 %v11567_v33 }
 0x991   :  { %2576 = vmatpush1.msra.mxu0 %v11573_v35 }
 0x992   :  { %2577 = vmatprep.subr.mxu0 %v11579_v0 }
 0x993   :  { %2578 = vmatpush1.msra.mxu0 %v11585_v37 }
 0x994   :  { %2579 = vmatprep.subr.mxu0 %v11591_v39 }
 0x995   :  { %2580 = vmatpush1.msra.mxu0 %v11597_v61  ;;  %v11629_v61 = vld [vmem:[#allocation10 + $0x18] sm:$0xff] }
 0x996   :  { %2581 = vmatprep.subr.mxu0 %v11603_v42  ;;  %14088 = vst [vmem:[#allocation90_spill] sm:$0xff] %v11629_v61  ;;  %v11635_v42 = vld [vmem:[#allocation10 + $0x10] sm:$0xff] }
 0x997   :  { %2582 = vmatpush1.msra.mxu0 %v11609_v43  ;;  %14090 = vst [vmem:[#allocation92_spill] sm:$0xff] %v11635_v42 }
 0xa08   :  { %v2213_v2 = vpop.xlane.xlu0 %2212 }
 0xa09   :  { %v2216_v4 = vmul.f32 0.0078125, %v2213_v2  ;;  %v11619_v2 = vld [vmem:[#allocation10 + $0x38] sm:$0xff] }
 0xa0a   :  { %14084 = vst [vmem:[#allocation86_spill] sm:$0xff] %v11619_v2  ;;  %2654 = vmatprep.subr.mxu1 %v11619_v2 }
 0xa0b   :  { %v11471_v60 = vsub.f32 %v2209_v45, %v2216_v4  ;;  %v11617_v45 = vld [vmem:[#allocation10 + $0x28] sm:$0xff]  ;;  %v11621_v4 = vld [vmem:[#allocation10 + $0x20] sm:$0xff] }
 0xa0c   :  { %14083 = vst [vmem:[#allocation85_spill] sm:$0xff] %v11617_v45  ;;  %14085 = vst [vmem:[#allocation87_spill] sm:$0xff] %v11621_v4  ;;  %2583 = vmatprep.subr.mxu0 %v11617_v45 }
 0xa0d   :  { %v2220_v59 = vmul.f32 %v11471_v60, %v11471_v60  ;;  %2584 = vmatpush1.msra.mxu0 %v11621_v4 }
 0xa0e   :  { %2585 = vmatprep.subr.mxu0 %v11627_v40 }
 0xa0f   :  { %2223 = vadd.xlane.f32.xlu1 %v2220_v59  ;;  %v11625_v59 = vld [vmem:[#allocation10 + $0x30] sm:$0xff]  ;;  %2586 = vmatpush1.msra.mxu0 %v11633_v50 }
 0xa10   :  { %14086 = vst [vmem:[#allocation88_spill] sm:$0xff] %v11625_v59  ;;  %2655 = vmatpush1.msra.mxu1 %v11625_v59  ;;  %2725 = vmatprep.subr.mxu0 %v11447_v62 }
 0xa11   :  { %2656 = vmatprep.subr.mxu1 %v11629_v61 }
 0xa12   :  { %2657 = vmatpush1.msra.mxu1 %v11635_v42 }
 0xa13   :  { %2796 = vmatprep.subr.mxu1 %v11449_v53 }
 0xa98   :  { %v2224_v2 = vpop.xlane.xlu1 %2223 }
 0xa99   :  { %v2226_v45 = vmul.f32 0.0078125, %v2224_v2  ;;  %v14098_v2 = vld [vmem:[#allocation86_spill] sm:$0xff] }
 0xa9b   :  { %v2228_v44 = vadd.f32 1e-05, %v2226_v45  ;;  %v14097_v45 = vld [vmem:[#allocation85_spill] sm:$0xff] }
 0xa9d   :  { %9110 = vrsqrt.f32 %v2228_v44  ;;  %v14096_v44 = vld [vmem:[#allocation84_spill] sm:$0xff] }
 0xaaa   :  { %v9111_v43 = vpop.eup %9110 }
 0xaab   :  { %v2232_v4 = vmul.f32 %v9111_v43, %v11471_v60  ;;  %v14093_v60 = vld [vmem:[#allocation81_spill] sm:$0xff]  ;;  %v14095_v43 = vld [vmem:[#allocation83_spill] sm:$0xff] }
 0xaad   :  { %v2241_v59 = vmul.f32 %v11429_v6, %v2232_v4  ;;  %v14091_v6 = vld [vmem:[#allocation78_spill] sm:$0xff]  ;;  %v14099_v4 = vld [vmem:[#allocation87_spill] sm:$0xff] }
 0xaaf   :  { %v2250_v40 = vadd.f32 %v11433_v11, %v2241_v59  ;;  %v14092_v11 = vld [vmem:[#allocation79_spill] sm:$0xff]  ;;  %v14100_v59 = vld [vmem:[#allocation88_spill] sm:$0xff] }
 0xab1   :  { %2408 = vmatmul.mubr.f32.gmra.mxu0 %v2250_v40  ;;  %2485 = vmatmul.mubr.f32.gmra.mxu1 %v2250_v40  ;;  %v14094_v40 = vld [vmem:[#allocation82_spill] sm:$0xff] }
 0xab2   :  { %2619 = vmatprep.mubr.f32.mxu0 %v14063_v21  ;;  %2690 = vmatprep.mubr.f32.mxu1 %v14063_v21 }
 0xab5   :  { %2620 = vmatmul.mubr.f32.vlgmr.msra.gmra.mxu0 %v14063_v21  ;;  %2691 = vmatmul.mubr.f32.vlgmr.msra.gmra.mxu1 %v14063_v21 }
 0xab6   :  { %2726 = vmatpush1.msra.mxu0 %v11451_v51  ;;  %2797 = vmatpush1.msra.mxu1 %v11455_v63 }
 0xab7   :  { %2727 = vmatprep.subr.mxu0 %v11457_v28  ;;  %2798 = vmatprep.subr.mxu1 %v11459_v49 }
 0xab8   :  { %2728 = vmatpush1.msra.mxu0 %v11463_v57  ;;  %2799 = vmatpush1.msra.mxu1 %v11465_v56 }
 0xab9   :  { %2729 = vmatprep.subr.mxu0 %v11475_v5  ;;  %2800 = vmatprep.subr.mxu1 %v11477_v30 }
 0xaba   :  { %2730 = vmatpush1.msra.mxu0 %v11481_v52  ;;  %2801 = vmatpush1.msra.mxu1 %v11483_v48 }
 0xabb   :  { %2731 = vmatprep.subr.mxu0 %v11487_v46  ;;  %2802 = vmatprep.subr.mxu1 %v11489_v7 }
 0xabc   :  { %2732 = vmatpush1.msra.mxu0 %v11493_v58  ;;  %2803 = vmatpush1.msra.mxu1 %v11495_v55 }
 0xabd   :  { %2733 = vmatprep.subr.mxu0 %v11497_v1  ;;  %2804 = vmatprep.subr.mxu1 %v11501_v3 }
 0xabe   :  { %2734 = vmatpush1.msra.mxu0 %v11503_v54  ;;  %2805 = vmatpush1.msra.mxu1 %v11505_v8 }
 0xabf   :  { %2735 = vmatprep.subr.mxu0 %v11509_v9  ;;  %2806 = vmatprep.subr.mxu1 %v11511_v47 }
 0xac0   :  { %2736 = vmatpush1.msra.mxu0 %v11513_v10  ;;  %2807 = vmatpush1.msra.mxu1 %v11517_v12 }
 0xac1   :  { %2737 = vmatprep.subr.mxu0 %v11519_v13  ;;  %2808 = vmatprep.subr.mxu1 %v11521_v14 }
 0xac2   :  { %2738 = vmatpush1.msra.mxu0 %v11525_v15  ;;  %2809 = vmatpush1.msra.mxu1 %v11527_v16 }
 0xac3   :  { %2739 = vmatprep.subr.mxu0 %v11531_v17  ;;  %2810 = vmatprep.subr.mxu1 %v11533_v18 }
 0xac4   :  { %2740 = vmatpush1.msra.mxu0 %v11537_v19  ;;  %2811 = vmatpush1.msra.mxu1 %v11539_v20 }
 0xac5   :  { %2741 = vmatprep.subr.mxu0 %v11543_v22  ;;  %2812 = vmatprep.subr.mxu1 %v11545_v23 }
 0xac6   :  { %2742 = vmatpush1.msra.mxu0 %v11549_v24  ;;  %2813 = vmatpush1.msra.mxu1 %v11551_v25 }
 0xac7   :  { %2743 = vmatprep.subr.mxu0 %v11555_v26  ;;  %2814 = vmatprep.subr.mxu1 %v11557_v27 }
 0xac8   :  { %2744 = vmatpush1.msra.mxu0 %v11561_v29  ;;  %2815 = vmatpush1.msra.mxu1 %v11563_v32 }
 0xac9   :  { %2745 = vmatprep.subr.mxu0 %v11567_v33  ;;  %2816 = vmatprep.subr.mxu1 %v11569_v34 }
 0xaca   :  { %2746 = vmatpush1.msra.mxu0 %v11573_v35  ;;  %2817 = vmatpush1.msra.mxu1 %v11575_v31 }
 0xacb   :  { %2747 = vmatprep.subr.mxu0 %v11579_v0  ;;  %2818 = vmatprep.subr.mxu1 %v11581_v36 }
 0xacc   :  { %2748 = vmatpush1.msra.mxu0 %v11585_v37  ;;  %2819 = vmatpush1.msra.mxu1 %v11587_v38  ;;  %v14111_v38 = vld [vmem:[#allocation101_spill] sm:$0xff] }
 0xacd   :  { %2749 = vmatprep.subr.mxu0 %v11591_v39  ;;  %2820 = vmatprep.subr.mxu1 %v14091_v6  ;;  %v14101_v6 = vld [vmem:[#allocation89_spill] sm:$0xff] }
 0xace   :  { %2750 = vmatpush1.msra.mxu0 %v14092_v11  ;;  %2821 = vmatpush1.msra.mxu1 %v11599_v41 }
 0xacf   :  { %2751 = vmatprep.subr.mxu0 %v14093_v60  ;;  %2822 = vmatprep.subr.mxu1 %v14094_v40 }
 0xad0   :  { %2752 = vmatpush1.msra.mxu0 %v14095_v43  ;;  %2823 = vmatpush1.msra.mxu1 %v14096_v44  ;;  %v14102_v44 = vld [vmem:[#allocation98_spill] sm:$0xff] }
 0xad1   :  { %2753 = vmatprep.subr.mxu0 %v14097_v45  ;;  %2824 = vmatprep.subr.mxu1 %v14098_v2  ;;  %v2403_v2 = vpop.f32.mrf.mxu0  ;;  %v2315_v45 = vld [vmem:[#allocation12] sm:$0xf] }
 0xad2   :  { %2754 = vmatpush1.msra.mxu0 %v14099_v4  ;;  %2825 = vmatpush1.msra.mxu1 %v14100_v59  ;;  %v2480_v4 = vpop.f32.mrf.mxu1 }
 0xad3   :  { %2755 = vmatprep.subr.mxu0 %v14101_v6  ;;  %2826 = vmatprep.subr.mxu1 %v11629_v61  ;;  %v2405_v59 = vpop.f32.mrf.mxu0  ;;  %v11719_v6 = vrot.slane %v2315_v45, %v14102_v44 }
 0xad4   :  { %2756 = vmatpush1.msra.mxu0 %v11633_v50  ;;  %2789 = vmatprep.mubr.f32.mxu0 %v14063_v21  ;;  %v2482_v61 = vpop.f32.mrf.mxu1  ;;  %v14105_v50 = vld [vmem:[#allocation99_spill] sm:$0xff] }
 0xad5   :  { %2827 = vmatpush1.msra.mxu1 %v11635_v42  ;;  %2860 = vmatprep.mubr.f32.mxu1 %v14063_v21  ;;  %14103 = vst [vmem:[#allocation93_spill] sm:$0xff] %v11719_v6  ;;  %v11724_v40 = vrot.slane %v2315_v45, %v14105_v50 }
 0xad6   :  { %2913 = vmatprep.subr.mxu0 %v11447_v62  ;;  %2984 = vmatprep.subr.mxu1 %v11449_v53  ;;  %v11731_v62 = vadd.f32 %v2403_v2, %v11719_v6 }
 0xad7   :  { %14106 = vst [vmem:[#allocation95_spill] sm:$0xff] %v11724_v40  ;;  %v11734_v60 = vadd.f32 %v2405_v59, %v11724_v40  ;;  %v14114_v59 = vld [vmem:[#allocation100_spill] sm:$0xff] }
 0xad8   :  { %v11747_v40 = vrot.slane %v2315_v45, %v14114_v59 }
 0xad9   :  { %14109 = vst [vmem:[#allocation107_spill] sm:$0xff] %v11734_v60 }
 0xada   :  { %14115 = vst [vmem:[#allocation111_spill] sm:$0xff] %v11747_v40 }
 0xb71   :  { %v11721_v43 = vpop.f32.mrf.mxu0  ;;  %v11726_v42 = vpop.f32.mrf.mxu1 }
 0xb72   :  { %14104 = vst [vmem:[#allocation94_spill] sm:$0xff] %v11721_v43  ;;  %14107 = vst [vmem:[#allocation97_spill] sm:$0xff] %v11726_v42 }
 0xb73   :  { %v11728_v21 = vpop.f32.mrf.mxu0  ;;  %v11736_v41 = vpop.f32.mrf.mxu1 }
 0xb74   :  { %14108 = vst [vmem:[#allocation96_spill] sm:$0xff] %v11728_v21  ;;  %14110 = vst [vmem:[#allocation108_spill] sm:$0xff] %v11736_v41  ;;  %v11741_v21 = vrot.slane %v2315_v45, %v14111_v38 }
 0xb75   :  { %v2621_v53 = vpop.f32.mrf.mxu0  ;;  %v2692_v39 = vpop.f32.mrf.mxu1 }
 0xb76   :  { %v2697_v44 = vadd.f32 %v2621_v53, %v11731_v62  ;;  %14112 = vst [vmem:[#allocation109_spill] sm:$0xff] %v11741_v21  ;;  %v11744_v6 = vadd.f32 %v2482_v61, %v11741_v21 }
 0xb77   :  { %v2623_v11 = vpop.f32.mrf.mxu0  ;;  %v2694_v2 = vpop.f32.mrf.mxu1 }
 0xb78   :  { %v8315_v43 = vmul.f32 -1.442695, %v2697_v44  ;;  %v2698_v50 = vadd.f32 %v2623_v11, %v11734_v60  ;;  %14113 = vst [vmem:[#allocation110_spill] sm:$0xff] %v11744_v6  ;;  %v2700_v53 = vadd.f32 %v2694_v2, %v11744_v6  ;;  %v11751_v44 = vadd.f32 %v2480_v4, %v11747_v40  ;;  %v14131_v40 = vld [vmem:[#allocation90_spill] sm:$0xff] }
 0xb7a   :  { %9112 = vpow2.f32 %v8315_v43  ;;  %v8316_v42 = vmul.f32 -1.442695, %v2698_v50  ;;  %v8317_v11 = vmul.f32 -1.442695, %v2700_v53  ;;  %v2699_v50 = vadd.f32 %v2692_v39, %v11751_v44 }
 0xb7c   :  { %9114 = vpow2.f32 %v8316_v42 }
 0xb7d   :  { %9116 = vpow2.f32 %v8317_v11  ;;  %v14123_v11 = vld [vmem:[#allocation82_spill] sm:$0xff] }
 0xb87   :  { %v9113_v43 = vpop.eup %9112 }
 0xb88   :  { %v2704_v41 = vadd.f32 1.0, %v9113_v43 }
 0xb89   :  { %v9115_v38 = vpop.eup %9114 }
 0xb8a   :  { %9118 = vrcp.f32 %v2704_v41  ;;  %v2710_v42 = vadd.f32 1.0, %v9115_v38  ;;  %v9117_v61 = vpop.eup %9116  ;;  %v14118_v38 = vld [vmem:[#allocation77_spill] sm:$0xff]  ;;  %v14119_v41 = vld [vmem:[#allocation78_spill] sm:$0xff] }
 0xb8b   :  { %9120 = vtanh.f32 %v2699_v50  ;;  %v2717_v60 = vadd.f32 1.0, %v9117_v61  ;;  %v14124_v50 = vld [vmem:[#allocation83_spill] sm:$0xff]  ;;  %v14126_v61 = vld [vmem:[#allocation85_spill] sm:$0xff] }
 0xb8c   :  { %9122 = vrcp.f32 %v2710_v42  ;;  %v14125_v42 = vld [vmem:[#allocation84_spill] sm:$0xff] }
 0xb8d   :  { %9124 = vrcp.f32 %v2717_v60  ;;  %v14121_v60 = vld [vmem:[#allocation80_spill] sm:$0xff] }
 0xb97   :  { %v9119_v21 = vpop.eup %9118 }
 0xb98   :  { %v9121_v45 = vpop.eup %9120 }
 0xb99   :  { %v9123_v59 = vpop.eup %9122  ;;  %v2721_v6 = vmul.f32 %v9121_v45, %v9119_v21  ;;  %v14117_v21 = vld [vmem:[#allocation106_spill] sm:$0xff] }
 0xb9a   :  { %v2720_v2 = vmul.f32 0.0, %v9123_v59  ;;  %v9125_v39 = vpop.eup %9124  ;;  %v14122_v59 = vld [vmem:[#allocation81_spill] sm:$0xff]  ;;  %v14127_v45 = vld [vmem:[#allocation86_spill] sm:$0xff] }
 0xb9c   :  { %v11754_v4 = vadd.f32 %v2721_v6, %v2720_v2  ;;  %v14120_v6 = vld [vmem:[#allocation79_spill] sm:$0xff] }
 0xb9d   :  { %v14128_v2 = vld [vmem:[#allocation87_spill] sm:$0xff] }
 0xb9e   :  { %9126 = vtanh.f32 %v11754_v4 }
 0xbab   :  { %v9127_v53 = vpop.eup %9126 }
 0xbac   :  { %v11757_v43 = vmul.f32 %v9127_v53, %v9125_v39  ;;  %v14129_v39 = vld [vmem:[#allocation88_spill] sm:$0xff]  ;;  %v14130_v53 = vld [vmem:[#allocation89_spill] sm:$0xff] }
 0xbae   :  { %14116 = vst [vmem:[#allocation112_spill] sm:$0xff] %v11757_v43  ;;  %2790 = vmatmul.mubr.f32.vlgmr.msra.gmra.mxu0 %v11757_v43  ;;  %2861 = vmatmul.mubr.f32.vlgmr.msra.gmra.mxu1 %v11757_v43  ;;  %v14132_v43 = vld [vmem:[#allocation91_spill] sm:$0xff] }
 0xbaf   :  { %2914 = vmatpush1.msra.mxu0 %v11451_v51  ;;  %2985 = vmatpush1.msra.mxu1 %v11455_v63 }
 0xbb0   :  { %2915 = vmatprep.subr.mxu0 %v11457_v28  ;;  %2986 = vmatprep.subr.mxu1 %v11459_v49 }
 0xbb1   :  { %2916 = vmatpush1.msra.mxu0 %v11463_v57  ;;  %2987 = vmatpush1.msra.mxu1 %v11465_v56 }
 0xbb2   :  { %2917 = vmatprep.subr.mxu0 %v11475_v5  ;;  %2988 = vmatprep.subr.mxu1 %v11477_v30 }
 0xbb3   :  { %2918 = vmatpush1.msra.mxu0 %v11481_v52  ;;  %2989 = vmatpush1.msra.mxu1 %v11483_v48 }
 0xbb4   :  { %2919 = vmatprep.subr.mxu0 %v11487_v46  ;;  %2990 = vmatprep.subr.mxu1 %v11489_v7 }
 0xbb5   :  { %2920 = vmatpush1.msra.mxu0 %v11493_v58  ;;  %2991 = vmatpush1.msra.mxu1 %v11495_v55 }
 0xbb6   :  { %2921 = vmatprep.subr.mxu0 %v11497_v1  ;;  %2992 = vmatprep.subr.mxu1 %v11501_v3 }
 0xbb7   :  { %2922 = vmatpush1.msra.mxu0 %v11503_v54  ;;  %2993 = vmatpush1.msra.mxu1 %v11505_v8 }
 0xbb8   :  { %2923 = vmatprep.subr.mxu0 %v11509_v9  ;;  %2994 = vmatprep.subr.mxu1 %v11511_v47 }
 0xbb9   :  { %2924 = vmatpush1.msra.mxu0 %v11513_v10  ;;  %2995 = vmatpush1.msra.mxu1 %v11517_v12 }
 0xbba   :  { %2925 = vmatprep.subr.mxu0 %v11519_v13  ;;  %2996 = vmatprep.subr.mxu1 %v11521_v14 }
 0xbbb   :  { %2926 = vmatpush1.msra.mxu0 %v11525_v15  ;;  %2997 = vmatpush1.msra.mxu1 %v11527_v16 }
 0xbbc   :  { %2927 = vmatprep.subr.mxu0 %v11531_v17  ;;  %2998 = vmatprep.subr.mxu1 %v11533_v18 }
 0xbbd   :  { %2928 = vmatpush1.msra.mxu0 %v11537_v19  ;;  %2999 = vmatpush1.msra.mxu1 %v11539_v20 }
 0xbbe   :  { %2929 = vmatprep.subr.mxu0 %v11543_v22  ;;  %3000 = vmatprep.subr.mxu1 %v11545_v23 }
 0xbbf   :  { %2930 = vmatpush1.msra.mxu0 %v11549_v24  ;;  %3001 = vmatpush1.msra.mxu1 %v11551_v25 }
 0xbc0   :  { %2931 = vmatprep.subr.mxu0 %v11555_v26  ;;  %3002 = vmatprep.subr.mxu1 %v11557_v27 }
 0xbc1   :  { %2932 = vmatpush1.msra.mxu0 %v11561_v29  ;;  %3003 = vmatpush1.msra.mxu1 %v11563_v32 }
 0xbc2   :  { %2933 = vmatprep.subr.mxu0 %v11567_v33  ;;  %3004 = vmatprep.subr.mxu1 %v11569_v34 }
 0xbc3   :  { %2934 = vmatpush1.msra.mxu0 %v11573_v35  ;;  %3005 = vmatpush1.msra.mxu1 %v11575_v31 }
 0xbc4   :  { %2935 = vmatprep.subr.mxu0 %v11579_v0  ;;  %3006 = vmatprep.subr.mxu1 %v11581_v36 }
 0xbc5   :  { %2936 = vmatpush1.msra.mxu0 %v11585_v37  ;;  %3007 = vmatpush1.msra.mxu1 %v14117_v21 }
 0xbc6   :  { %2937 = vmatprep.subr.mxu0 %v14118_v38  ;;  %3008 = vmatprep.subr.mxu1 %v14119_v41 }
 0xbc7   :  { %2938 = vmatpush1.msra.mxu0 %v14120_v6  ;;  %3009 = vmatpush1.msra.mxu1 %v14121_v60  ;;  %v14137_v6 = vld [vmem:[#allocation107_spill] sm:$0xff] }
 0xbc8   :  { %2939 = vmatprep.subr.mxu0 %v14122_v59  ;;  %3010 = vmatprep.subr.mxu1 %v14123_v11  ;;  %v14133_v59 = vmov 0.0   ;;  %v14134_v11 = vld [vmem:[#allocation92_spill] sm:$0xff] }
 0xbc9   :  { %2940 = vmatpush1.msra.mxu0 %v14124_v50  ;;  %3011 = vmatpush1.msra.mxu1 %v14125_v42  ;;  %v14135_v42 = vld [vmem:[#allocation105_spill] sm:$0xff] }
 0xbca   :  { %2941 = vmatprep.subr.mxu0 %v14126_v61  ;;  %3012 = vmatprep.subr.mxu1 %v14127_v45  ;;  %v14136_v61 = vld [vmem:[#allocation104_spill] sm:$0xff] }
 0xbcb   :  { %2942 = vmatpush1.msra.mxu0 %v14128_v2  ;;  %3013 = vmatpush1.msra.mxu1 %v14129_v39 }
 0xbcc   :  { %2943 = vmatprep.subr.mxu0 %v14130_v53  ;;  %3014 = vmatprep.subr.mxu1 %v14131_v40 }
 0xbcd   :  { %2944 = vmatpush1.msra.mxu0 %v14132_v43  ;;  %2977 = vmatprep.mubr.f32.mxu0 %v14133_v59 }
 0xbce   :  { %3015 = vmatpush1.msra.mxu1 %v14134_v11  ;;  %3048 = vmatprep.mubr.f32.mxu1 %v14133_v59  ;;  %v14138_v59 = vld [vmem:[#allocation110_spill] sm:$0xff] }
 0xbcf   :  { %3101 = vmatprep.subr.mxu0 %v14135_v42  ;;  %3172 = vmatprep.subr.mxu1 %v14136_v61 }
 0xc6e   :  { %v2791_v45 = vpop.f32.mrf.mxu0  ;;  %v2862_v53 = vpop.f32.mrf.mxu1 }
 0xc6f   :  { %v2871_v2 = vrot.slane %v2791_v45, 6  ;;  %v2873_v42 = vrot.slane %v2862_v53, 6  ;;  %v14141_v53 = vld [vmem:[#allocation103_spill] sm:$0xff] }
 0xc70   :  { %v2793_v50 = vpop.f32.mrf.mxu0  ;;  %v2864_v38 = vpop.f32.mrf.mxu1 }
 0xc71   :  { %v2879_v39 = vadd.f32 %v2871_v2, %v11731_v62  ;;  %v2872_v60 = vrot.slane %v2793_v50, 6  ;;  %v2874_v11 = vrot.slane %v2864_v38, 6  ;;  %v2881_v45 = vadd.f32 %v2873_v42, %v11751_v44 }
 0xc73   :  { %v8318_v40 = vmul.f32 -1.442695, %v2879_v39  ;;  %v2880_v43 = vadd.f32 %v2872_v60, %v14137_v6  ;;  %v2882_v21 = vadd.f32 %v2874_v11, %v14138_v59 }
 0xc75   :  { %9128 = vpow2.f32 %v8318_v40  ;;  %v8319_v41 = vmul.f32 -1.442695, %v2880_v43  ;;  %v8320_v37 = vmul.f32 -1.442695, %v2882_v21 }
 0xc77   :  { %9130 = vpow2.f32 %v8319_v41  ;;  %v2903_v41 = vrot.slane %v11754_v4, 6  ;;  %v14139_v4 = vld [vmem:[#allocation76_spill] sm:$0xff] }
 0xc78   :  { %9132 = vpow2.f32 %v8320_v37 }
 0xc82   :  { %v9129_v61 = vpop.eup %9128 }
 0xc83   :  { %v2886_v36 = vadd.f32 1.0, %v9129_v61  ;;  %v14140_v61 = vld [vmem:[#allocation102_spill] sm:$0xff] }
 0xc84   :  { %v9131_v0 = vpop.eup %9130 }
 0xc85   :  { %9134 = vrcp.f32 %v2886_v36  ;;  %v2892_v50 = vadd.f32 1.0, %v9131_v0  ;;  %v9133_v60 = vpop.eup %9132 }
 0xc86   :  { %9136 = vtanh.f32 %v2881_v45  ;;  %v2899_v2 = vadd.f32 1.0, %v9133_v60  ;;  %v14142_v45 = vld [vmem:[#allocation106_spill] sm:$0xff] }
 0xc87   :  { %9138 = vrcp.f32 %v2892_v50  ;;  %v14143_v50 = vld [vmem:[#allocation77_spill] sm:$0xff]  ;;  %v14144_v60 = vld [vmem:[#allocation78_spill] sm:$0xff] }
 0xc88   :  { %9140 = vrcp.f32 %v2899_v2  ;;  %v14149_v2 = vld [vmem:[#allocation83_spill] sm:$0xff] }
 0xc92   :  { %v9135_v40 = vpop.eup %9134 }
 0xc93   :  { %v9137_v43 = vpop.eup %9136 }
 0xc94   :  { %v9139_v38 = vpop.eup %9138  ;;  %v2906_v11 = vmul.f32 %v9137_v43, %v9135_v40  ;;  %v14145_v40 = vld [vmem:[#allocation79_spill] sm:$0xff]  ;;  %v14146_v43 = vld [vmem:[#allocation80_spill] sm:$0xff] }
 0xc95   :  { %v2905_v39 = vmul.f32 %v9139_v38, %v2903_v41  ;;  %v9141_v42 = vpop.eup %9140  ;;  %v14147_v41 = vld [vmem:[#allocation81_spill] sm:$0xff]  ;;  %v14148_v38 = vld [vmem:[#allocation82_spill] sm:$0xff] }
 0xc97   :  { %v11832_v21 = vadd.f32 %v2906_v11, %v2905_v39  ;;  %v14150_v11 = vld [vmem:[#allocation84_spill] sm:$0xff]  ;;  %v14151_v39 = vld [vmem:[#allocation85_spill] sm:$0xff] }
 0xc99   :  { %9142 = vtanh.f32 %v11832_v21 }
 0xca6   :  { %v9143_v37 = vpop.eup %9142 }
 0xca7   :  { %v11835_v36 = vmul.f32 %v9143_v37, %v9141_v42  ;;  %v14152_v42 = vld [vmem:[#allocation86_spill] sm:$0xff]  ;;  %v14153_v37 = vld [vmem:[#allocation87_spill] sm:$0xff] }
 0xca9   :  { %v2911_v0 = vrot.slane %v11835_v36, 2 }
 0xcab   :  { %2978 = vmatmul.mubr.f32.vlgmr.msra.gmra.mxu0 %v2911_v0  ;;  %3049 = vmatmul.mubr.f32.vlgmr.msra.gmra.mxu1 %v2911_v0  ;;  %v14154_v0 = vld [vmem:[#allocation88_spill] sm:$0xff] }
 0xcac   :  { %3102 = vmatpush1.msra.mxu0 %v11451_v51  ;;  %3173 = vmatpush1.msra.mxu1 %v11455_v63 }
 0xcad   :  { %3103 = vmatprep.subr.mxu0 %v11457_v28  ;;  %3174 = vmatprep.subr.mxu1 %v11459_v49 }
 0xcae   :  { %3104 = vmatpush1.msra.mxu0 %v11463_v57  ;;  %3175 = vmatpush1.msra.mxu1 %v11465_v56 }
 0xcaf   :  { %3105 = vmatprep.subr.mxu0 %v11475_v5  ;;  %3176 = vmatprep.subr.mxu1 %v11477_v30 }
 0xcb0   :  { %3106 = vmatpush1.msra.mxu0 %v11481_v52  ;;  %3177 = vmatpush1.msra.mxu1 %v11483_v48 }
 0xcb1   :  { %3107 = vmatprep.subr.mxu0 %v11487_v46  ;;  %3178 = vmatprep.subr.mxu1 %v11489_v7 }
 0xcb2   :  { %3108 = vmatpush1.msra.mxu0 %v11493_v58  ;;  %3179 = vmatpush1.msra.mxu1 %v11495_v55 }
 0xcb3   :  { %3109 = vmatprep.subr.mxu0 %v11497_v1  ;;  %3180 = vmatprep.subr.mxu1 %v11501_v3 }
 0xcb4   :  { %3110 = vmatpush1.msra.mxu0 %v11503_v54  ;;  %3181 = vmatpush1.msra.mxu1 %v11505_v8 }
 0xcb5   :  { %3111 = vmatprep.subr.mxu0 %v11509_v9  ;;  %3182 = vmatprep.subr.mxu1 %v11511_v47 }
 0xcb6   :  { %3112 = vmatpush1.msra.mxu0 %v11513_v10  ;;  %3183 = vmatpush1.msra.mxu1 %v11517_v12 }
 0xcb7   :  { %3113 = vmatprep.subr.mxu0 %v11519_v13  ;;  %3184 = vmatprep.subr.mxu1 %v11521_v14 }
 0xcb8   :  { %3114 = vmatpush1.msra.mxu0 %v11525_v15  ;;  %3185 = vmatpush1.msra.mxu1 %v11527_v16 }
 0xcb9   :  { %3115 = vmatprep.subr.mxu0 %v11531_v17  ;;  %3186 = vmatprep.subr.mxu1 %v11533_v18 }
 0xcba   :  { %3116 = vmatpush1.msra.mxu0 %v11537_v19  ;;  %3187 = vmatpush1.msra.mxu1 %v11539_v20 }
 0xcbb   :  { %3117 = vmatprep.subr.mxu0 %v11543_v22  ;;  %3188 = vmatprep.subr.mxu1 %v11545_v23 }
 0xcbc   :  { %3118 = vmatpush1.msra.mxu0 %v11549_v24  ;;  %3189 = vmatpush1.msra.mxu1 %v11551_v25 }
 0xcbd   :  { %3119 = vmatprep.subr.mxu0 %v11555_v26  ;;  %3190 = vmatprep.subr.mxu1 %v11557_v27 }
 0xcbe   :  { %3120 = vmatpush1.msra.mxu0 %v11561_v29  ;;  %3191 = vmatpush1.msra.mxu1 %v11563_v32 }
 0xcbf   :  { %3121 = vmatprep.subr.mxu0 %v11567_v33  ;;  %3192 = vmatprep.subr.mxu1 %v11569_v34 }
 0xcc0   :  { %3122 = vmatpush1.msra.mxu0 %v11573_v35  ;;  %3193 = vmatpush1.msra.mxu1 %v11575_v31 }
 0xcc1   :  { %3123 = vmatprep.subr.mxu0 %v14139_v4  ;;  %3194 = vmatprep.subr.mxu1 %v14140_v61 }
 0xcc2   :  { %3124 = vmatpush1.msra.mxu0 %v14141_v53  ;;  %3195 = vmatpush1.msra.mxu1 %v14142_v45 }
 0xcc3   :  { %3125 = vmatprep.subr.mxu0 %v14143_v50  ;;  %3196 = vmatprep.subr.mxu1 %v14144_v60  ;;  %v14155_v60 = vld [vmem:[#allocation89_spill] sm:$0xff] }
 0xcc4   :  { %3126 = vmatpush1.msra.mxu0 %v14145_v40  ;;  %3197 = vmatpush1.msra.mxu1 %v14146_v43  ;;  %v14156_v40 = vld [vmem:[#allocation90_spill] sm:$0xff]  ;;  %v14157_v43 = vld [vmem:[#allocation91_spill] sm:$0xff] }
 0xcc5   :  { %3127 = vmatprep.subr.mxu0 %v14147_v41  ;;  %3198 = vmatprep.subr.mxu1 %v14148_v38  ;;  %v14158_v41 = vmov 0.0   ;;  %v14159_v38 = vld [vmem:[#allocation92_spill] sm:$0xff] }
 0xcc6   :  { %3128 = vmatpush1.msra.mxu0 %v14149_v2  ;;  %3199 = vmatpush1.msra.mxu1 %v14150_v11  ;;  %v14160_v11 = vld [vmem:[#allocation105_spill] sm:$0xff] }
 0xcc7   :  { %3129 = vmatprep.subr.mxu0 %v14151_v39  ;;  %3200 = vmatprep.subr.mxu1 %v14152_v42  ;;  %v14161_v39 = vld [vmem:[#allocation104_spill] sm:$0xff] }
 0xcc8   :  { %3130 = vmatpush1.msra.mxu0 %v14153_v37  ;;  %3201 = vmatpush1.msra.mxu1 %v14154_v0 }
 0xcc9   :  { %3131 = vmatprep.subr.mxu0 %v14155_v60  ;;  %3202 = vmatprep.subr.mxu1 %v14156_v40 }
 0xcca   :  { %3132 = vmatpush1.msra.mxu0 %v14157_v43  ;;  %3165 = vmatprep.mubr.f32.mxu0 %v14158_v41 }
 0xccb   :  { %3203 = vmatpush1.msra.mxu1 %v14159_v38  ;;  %3236 = vmatprep.mubr.f32.mxu1 %v14158_v41 }
 0xccc   :  { %3289 = vmatprep.subr.mxu0 %v14160_v11  ;;  %3360 = vmatprep.subr.mxu1 %v14161_v39 }
 0xd6b   :  { %v2979_v42 = vpop.f32.mrf.mxu0  ;;  %v3050_v60 = vpop.f32.mrf.mxu1 }
 0xd6c   :  { %v3059_v37 = vrot.slane %v2979_v42, 4  ;;  %v3061_v11 = vrot.slane %v3050_v60, 4 }
 0xd6d   :  { %v2981_v2 = vpop.f32.mrf.mxu0  ;;  %v3052_v53 = vpop.f32.mrf.mxu1 }
 0xd6e   :  { %v3067_v0 = vadd.f32 %v3059_v37, %v11731_v62  ;;  %v3060_v50 = vrot.slane %v2981_v2, 4  ;;  %v3062_v38 = vrot.slane %v3052_v53, 4  ;;  %v3069_v42 = vadd.f32 %v3061_v11, %v11751_v44 }
 0xd70   :  { %v8321_v40 = vmul.f32 -1.442695, %v3067_v0  ;;  %v3068_v43 = vadd.f32 %v3060_v50, %v14137_v6  ;;  %v3070_v41 = vadd.f32 %v3062_v38, %v14138_v59 }
 0xd72   :  { %9144 = vpow2.f32 %v8321_v40  ;;  %v8322_v45 = vmul.f32 -1.442695, %v3068_v43  ;;  %v8323_v61 = vmul.f32 -1.442695, %v3070_v41 }
 0xd74   :  { %9146 = vpow2.f32 %v8322_v45  ;;  %v3091_v45 = vrot.slane %v11832_v21, 6 }
 0xd75   :  { %9148 = vpow2.f32 %v8323_v61 }
 0xd7f   :  { %v9145_v39 = vpop.eup %9144 }
 0xd80   :  { %v3074_v4 = vadd.f32 1.0, %v9145_v39 }
 0xd81   :  { %v9147_v31 = vpop.eup %9146 }
 0xd82   :  { %9150 = vrcp.f32 %v3074_v4  ;;  %v3080_v2 = vadd.f32 1.0, %v9147_v31  ;;  %v9149_v50 = vpop.eup %9148  ;;  %v14162_v31 = vld [vmem:[#allocation112_spill] sm:$0xff] }
 0xd83   :  { %9152 = vtanh.f32 %v3069_v42  ;;  %v3087_v37 = vadd.f32 1.0, %v9149_v50  ;;  %v4023_v11 = vsel %vm2201_vm1, %v14162_v31, %v11835_v36  ;;  %v12009_v31 = vld [vmem:[#allocation10 + $0x1d8] sm:$0xff] }
 0xd84   :  { %9154 = vrcp.f32 %v3080_v2 }
 0xd85   :  { %9156 = vrcp.f32 %v3087_v37 }
 0xd8f   :  { %v9151_v40 = vpop.eup %9150 }
 0xd90   :  { %v9153_v43 = vpop.eup %9152 }
 0xd91   :  { %v9155_v53 = vpop.eup %9154  ;;  %v3094_v38 = vmul.f32 %v9153_v43, %v9151_v40 }
 0xd92   :  { %v3093_v60 = vmul.f32 %v9155_v53, %v3091_v45  ;;  %v9157_v0 = vpop.eup %9156 }
 0xd94   :  { %v11909_v41 = vadd.f32 %v3094_v38, %v3093_v60 }
 0xd96   :  { %9158 = vtanh.f32 %v11909_v41  ;;  %v3279_v50 = vrot.slane %v11909_v41, 6  ;;  %v12000_v41 = vld [vmem:[#allocation10 + $0x1e0] sm:$0xff] }
 0xda3   :  { %v9159_v61 = vpop.eup %9158 }
 0xda4   :  { %v3097_v4 = vmul.f32 %v9159_v61, %v9157_v0  ;;  %v12003_v61 = vld [vmem:[#allocation10 + $0x1f0] sm:$0xff] }
 0xda6   :  { %v3099_v39 = vrot.slane %v3097_v4, 4  ;;  %v11916_v42 = vsel %vm2203_vm2, %v4023_v11, %v3097_v4  ;;  %v12006_v4 = vld [vmem:[#allocation10 + $0x1c8] sm:$0xff]  ;;  %v12012_v11 = vld [vmem:[#allocation10 + $0x1c0] sm:$0xff] }
 0xda8   :  { %3166 = vmatmul.mubr.f32.vlgmr.msra.gmra.mxu0 %v3099_v39  ;;  %3237 = vmatmul.mubr.f32.vlgmr.msra.gmra.mxu1 %v3099_v39  ;;  %v12015_v39 = vld [vmem:[#allocation10 + $0x1d0] sm:$0xff] }
 0xda9   :  { %3290 = vmatpush1.msra.mxu0 %v11451_v51  ;;  %3361 = vmatpush1.msra.mxu1 %v11455_v63  ;;  %v14163_v51 = vld [vmem:[#allocation75_spill] sm:$0xff]  ;;  %v14164_v63 = vld [vmem:[#allocation76_spill] sm:$0xff] }
 0xdaa   :  { %3291 = vmatprep.subr.mxu0 %v11457_v28  ;;  %3362 = vmatprep.subr.mxu1 %v11459_v49  ;;  %v14165_v28 = vld [vmem:[#allocation102_spill] sm:$0xff]  ;;  %v14166_v49 = vld [vmem:[#allocation103_spill] sm:$0xff] }
 0xdab   :  { %3292 = vmatpush1.msra.mxu0 %v11463_v57  ;;  %3363 = vmatpush1.msra.mxu1 %v11465_v56  ;;  %v14167_v57 = vld [vmem:[#allocation106_spill] sm:$0xff]  ;;  %v14168_v56 = vld [vmem:[#allocation77_spill] sm:$0xff] }
 0xdac   :  { %3293 = vmatprep.subr.mxu0 %v11475_v5  ;;  %3364 = vmatprep.subr.mxu1 %v11477_v30  ;;  %v14169_v5 = vld [vmem:[#allocation78_spill] sm:$0xff]  ;;  %v14170_v30 = vld [vmem:[#allocation79_spill] sm:$0xff] }
 0xdad   :  { %3294 = vmatpush1.msra.mxu0 %v11481_v52  ;;  %3365 = vmatpush1.msra.mxu1 %v11483_v48  ;;  %v14171_v52 = vld [vmem:[#allocation80_spill] sm:$0xff]  ;;  %v14172_v48 = vld [vmem:[#allocation81_spill] sm:$0xff] }
 0xdae   :  { %3295 = vmatprep.subr.mxu0 %v11487_v46  ;;  %3366 = vmatprep.subr.mxu1 %v11489_v7  ;;  %v14173_v46 = vld [vmem:[#allocation82_spill] sm:$0xff]  ;;  %v14174_v7 = vld [vmem:[#allocation83_spill] sm:$0xff] }
 0xdaf   :  { %3296 = vmatpush1.msra.mxu0 %v11493_v58  ;;  %3367 = vmatpush1.msra.mxu1 %v11495_v55  ;;  %v14175_v58 = vld [vmem:[#allocation84_spill] sm:$0xff]  ;;  %v14176_v55 = vld [vmem:[#allocation85_spill] sm:$0xff] }
 0xdb0   :  { %3297 = vmatprep.subr.mxu0 %v11497_v1  ;;  %3368 = vmatprep.subr.mxu1 %v11501_v3  ;;  %v14177_v1 = vld [vmem:[#allocation86_spill] sm:$0xff]  ;;  %v14178_v3 = vld [vmem:[#allocation87_spill] sm:$0xff] }
 0xdb1   :  { %3298 = vmatpush1.msra.mxu0 %v11503_v54  ;;  %3369 = vmatpush1.msra.mxu1 %v11505_v8  ;;  %v14179_v54 = vld [vmem:[#allocation88_spill] sm:$0xff]  ;;  %v14180_v8 = vld [vmem:[#allocation89_spill] sm:$0xff] }
 0xdb2   :  { %3299 = vmatprep.subr.mxu0 %v11509_v9  ;;  %3370 = vmatprep.subr.mxu1 %v11511_v47  ;;  %v14181_v9 = vld [vmem:[#allocation90_spill] sm:$0xff]  ;;  %v14182_v47 = vld [vmem:[#allocation91_spill] sm:$0xff] }
 0xdb3   :  { %3300 = vmatpush1.msra.mxu0 %v11513_v10  ;;  %3371 = vmatpush1.msra.mxu1 %v11517_v12  ;;  %v14183_v10 = vmov 0.0   ;;  %v14184_v12 = vld [vmem:[#allocation92_spill] sm:$0xff] }
 0xdb4   :  { %3301 = vmatprep.subr.mxu0 %v11519_v13  ;;  %3372 = vmatprep.subr.mxu1 %v11521_v14  ;;  %v11982_v13 = vld [vmem:[#allocation10 + $0x1e8] sm:$0xff]  ;;  %v11985_v14 = vld [vmem:[#allocation10 + $0x1f8] sm:$0xff] }
 0xdb5   :  { %3302 = vmatpush1.msra.mxu0 %v11525_v15  ;;  %3373 = vmatpush1.msra.mxu1 %v11527_v16  ;;  %14185 = vst [vmem:[#allocation107_spill] sm:$0xff] %v11982_v13  ;;  %14186 = vst [vmem:[#allocation110_spill] sm:$0xff] %v11985_v14 }
 0xdb6   :  { %3303 = vmatprep.subr.mxu0 %v11531_v17  ;;  %3374 = vmatprep.subr.mxu1 %v11533_v18 }
 0xdb7   :  { %3304 = vmatpush1.msra.mxu0 %v11537_v19  ;;  %3375 = vmatpush1.msra.mxu1 %v11539_v20 }
 0xdb8   :  { %3305 = vmatprep.subr.mxu0 %v11543_v22  ;;  %3376 = vmatprep.subr.mxu1 %v11545_v23 }
 0xdb9   :  { %3306 = vmatpush1.msra.mxu0 %v11549_v24  ;;  %3377 = vmatpush1.msra.mxu1 %v11551_v25 }
 0xdba   :  { %3307 = vmatprep.subr.mxu0 %v11555_v26  ;;  %3378 = vmatprep.subr.mxu1 %v11557_v27 }
 0xdbb   :  { %3308 = vmatpush1.msra.mxu0 %v11561_v29  ;;  %3379 = vmatpush1.msra.mxu1 %v11563_v32 }
 0xdbc   :  { %3309 = vmatprep.subr.mxu0 %v11567_v33  ;;  %3380 = vmatprep.subr.mxu1 %v11569_v34 }
 0xdbd   :  { %3310 = vmatpush1.msra.mxu0 %v11573_v35  ;;  %3381 = vmatpush1.msra.mxu1 %v14163_v51  ;;  %v12021_v51 = vld [vmem:[#allocation10 + $0x1b8] sm:$0xff] }
 0xdbe   :  { %3311 = vmatprep.subr.mxu0 %v14164_v63  ;;  %3382 = vmatprep.subr.mxu1 %v14165_v28  ;;  %v12024_v63 = vld [vmem:[#allocation10 + $0x1a0] sm:$0xff]  ;;  %v12027_v28 = vld [vmem:[#allocation10 + $0x1b0] sm:$0xff] }
 0xdbf   :  { %3312 = vmatpush1.msra.mxu0 %v14166_v49  ;;  %3383 = vmatpush1.msra.mxu1 %v14167_v57  ;;  %v12030_v49 = vld [vmem:[#allocation10 + $0x188] sm:$0xff]  ;;  %v12033_v57 = vld [vmem:[#allocation10 + $0x198] sm:$0xff] }
 0xdc0   :  { %3313 = vmatprep.subr.mxu0 %v14168_v56  ;;  %3384 = vmatprep.subr.mxu1 %v14169_v5  ;;  %v12036_v56 = vld [vmem:[#allocation10 + $0x180] sm:$0xff]  ;;  %v12039_v5 = vld [vmem:[#allocation10 + $0x190] sm:$0xff] }
 0xdc1   :  { %3314 = vmatpush1.msra.mxu0 %v14170_v30  ;;  %3385 = vmatpush1.msra.mxu1 %v14171_v52  ;;  %v12042_v30 = vld [vmem:[#allocation10 + $0x168] sm:$0xff]  ;;  %v12045_v52 = vld [vmem:[#allocation10 + $0x178] sm:$0xff] }
 0xdc2   :  { %3315 = vmatprep.subr.mxu0 %v14172_v48  ;;  %3386 = vmatprep.subr.mxu1 %v14173_v46  ;;  %v12048_v48 = vld [vmem:[#allocation10 + $0x160] sm:$0xff]  ;;  %v12051_v46 = vld [vmem:[#allocation10 + $0x170] sm:$0xff] }
 0xdc3   :  { %3316 = vmatpush1.msra.mxu0 %v14174_v7  ;;  %3387 = vmatpush1.msra.mxu1 %v14175_v58  ;;  %v12054_v7 = vld [vmem:[#allocation10 + $0x148] sm:$0xff]  ;;  %v12057_v58 = vld [vmem:[#allocation10 + $0x158] sm:$0xff] }
 0xdc4   :  { %3317 = vmatprep.subr.mxu0 %v14176_v55  ;;  %3388 = vmatprep.subr.mxu1 %v14177_v1  ;;  %v12060_v55 = vld [vmem:[#allocation10 + $0x140] sm:$0xff]  ;;  %v12063_v1 = vld [vmem:[#allocation10 + $0x150] sm:$0xff] }
 0xdc5   :  { %3318 = vmatpush1.msra.mxu0 %v14178_v3  ;;  %3389 = vmatpush1.msra.mxu1 %v14179_v54  ;;  %v12066_v3 = vld [vmem:[#allocation10 + $0x128] sm:$0xff]  ;;  %v12069_v54 = vld [vmem:[#allocation10 + $0x138] sm:$0xff] }
 0xdc6   :  { %3319 = vmatprep.subr.mxu0 %v14180_v8  ;;  %3390 = vmatprep.subr.mxu1 %v14181_v9  ;;  %v12072_v8 = vld [vmem:[#allocation10 + $0x120] sm:$0xff]  ;;  %v12075_v9 = vld [vmem:[#allocation10 + $0x130] sm:$0xff] }
 0xdc7   :  { %3320 = vmatpush1.msra.mxu0 %v14182_v47  ;;  %3353 = vmatprep.mubr.f32.mxu0 %v14183_v10  ;;  %v12078_v47 = vld [vmem:[#allocation10 + $0x108] sm:$0xff] }
 0xdc8   :  { %3391 = vmatpush1.msra.mxu1 %v14184_v12  ;;  %3424 = vmatprep.mubr.f32.mxu1 %v14183_v10  ;;  %v12081_v12 = vld [vmem:[#allocation10 + $0x118] sm:$0xff] }
 0xdc9   :  { %3462 = vmatprep.subr.mxu0 %v11982_v13  ;;  %3533 = vmatprep.subr.mxu1 %v11985_v14 }
 0xe68   :  { %v3167_v15 = vpop.f32.mrf.mxu0  ;;  %v3238_v19 = vpop.f32.mrf.mxu1 }
 0xe69   :  { %v3247_v16 = vrot.slane %v3167_v15, 2  ;;  %v3249_v29 = vrot.slane %v3238_v19, 2  ;;  %v12084_v15 = vld [vmem:[#allocation10 + $0x100] sm:$0xff] }
 0xe6a   :  { %v3169_v17 = vpop.f32.mrf.mxu0  ;;  %v3240_v25 = vpop.f32.mrf.mxu1  ;;  %v12096_v19 = vld [vmem:[#allocation10 + $0xe0] sm:$0xff] }
 0xe6b   :  { %v3255_v18 = vadd.f32 %v3247_v16, %v11731_v62  ;;  %v3248_v20 = vrot.slane %v3169_v17, 2  ;;  %v3250_v26 = vrot.slane %v3240_v25, 2  ;;  %v3257_v34 = vadd.f32 %v3249_v29, %v11751_v44  ;;  %v12087_v16 = vld [vmem:[#allocation10 + $0x110] sm:$0xff]  ;;  %v12090_v17 = vld [vmem:[#allocation10 + $0xe8] sm:$0xff]  ;;  %v12120_v29 = vld [vmem:[#allocation10 + $0xa0] sm:$0xff] }
 0xe6c   :  { %v12111_v25 = vld [vmem:[#allocation10 + $0xd0] sm:$0xff] }
 0xe6d   :  { %v8324_v22 = vmul.f32 -1.442695, %v3255_v18  ;;  %v3256_v23 = vadd.f32 %v3248_v20, %v14137_v6  ;;  %v3258_v27 = vadd.f32 %v3250_v26, %v14138_v59  ;;  %v12093_v18 = vld [vmem:[#allocation10 + $0xf8] sm:$0xff]  ;;  %v12099_v20 = vld [vmem:[#allocation10 + $0xf0] sm:$0xff]  ;;  %v12114_v26 = vld [vmem:[#allocation10 + $0xa8] sm:$0xff] }
 0xe6f   :  { %9160 = vpow2.f32 %v8324_v22  ;;  %v8325_v24 = vmul.f32 -1.442695, %v3256_v23  ;;  %v8326_v32 = vmul.f32 -1.442695, %v3258_v27  ;;  %v12102_v22 = vld [vmem:[#allocation10 + $0xc8] sm:$0xff]  ;;  %v12105_v23 = vld [vmem:[#allocation10 + $0xd8] sm:$0xff] }
 0xe70   :  { %v12117_v27 = vld [vmem:[#allocation10 + $0xb8] sm:$0xff] }
 0xe71   :  { %9162 = vpow2.f32 %v8325_v24  ;;  %v12108_v24 = vld [vmem:[#allocation10 + $0xc0] sm:$0xff] }
 0xe72   :  { %9164 = vpow2.f32 %v8326_v32  ;;  %v12123_v32 = vld [vmem:[#allocation10 + $0xb0] sm:$0xff] }
 0xe7c   :  { %v9161_v33 = vpop.eup %9160 }
 0xe7d   :  { %v3262_v35 = vadd.f32 1.0, %v9161_v33  ;;  %v12126_v33 = vld [vmem:[#allocation10 + $0x88] sm:$0xff] }
 0xe7e   :  { %v9163_v21 = vpop.eup %9162  ;;  %14188 = vst [vmem:[#allocation104_spill] sm:$0xff] %v12126_v33 }
 0xe7f   :  { %9166 = vrcp.f32 %v3262_v35  ;;  %v3268_v62 = vadd.f32 1.0, %v9163_v21  ;;  %v9165_v6 = vpop.eup %9164  ;;  %v12132_v35 = vld [vmem:[#allocation10 + $0x80] sm:$0xff]  ;;  %v12135_v21 = vld [vmem:[#allocation10 + $0x90] sm:$0xff] }
 0xe80   :  { %9168 = vtanh.f32 %v3257_v34  ;;  %v3275_v43 = vadd.f32 1.0, %v9165_v6  ;;  %v12129_v34 = vld [vmem:[#allocation10 + $0x98] sm:$0xff]  ;;  %14190 = vst [vmem:[#allocation75_spill] sm:$0xff] %v12132_v35  ;;  %14191 = vst [vmem:[#allocation76_spill] sm:$0xff] %v12135_v21 }
 0xe81   :  { %9170 = vrcp.f32 %v3268_v62  ;;  %14189 = vst [vmem:[#allocation112_spill] sm:$0xff] %v12129_v34  ;;  %v12138_v62 = vld [vmem:[#allocation10 + $0x68] sm:$0xff]  ;;  %v12141_v6 = vld [vmem:[#allocation10 + $0x78] sm:$0xff] }
 0xe82   :  { %9172 = vrcp.f32 %v3275_v43  ;;  %14192 = vst [vmem:[#allocation102_spill] sm:$0xff] %v12138_v62  ;;  %14193 = vst [vmem:[#allocation103_spill] sm:$0xff] %v12141_v6  ;;  %v12156_v43 = vld [vmem:[#allocation10 + $0x40] sm:$0xff] }
 0xe83   :  { %14198 = vst [vmem:[#allocation80_spill] sm:$0xff] %v12156_v43 }
 0xe8c   :  { %v9167_v36 = vpop.eup %9166 }
 0xe8d   :  { %v9169_v2 = vpop.eup %9168 }
 0xe8e   :  { %v9171_v40 = vpop.eup %9170  ;;  %v3282_v59 = vmul.f32 %v9169_v2, %v9167_v36  ;;  %v12144_v36 = vld [vmem:[#allocation10 + $0x60] sm:$0xff]  ;;  %v12147_v2 = vld [vmem:[#allocation10 + $0x70] sm:$0xff] }
 0xe8f   :  { %v3281_v45 = vmul.f32 %v9171_v40, %v3279_v50  ;;  %v9173_v44 = vpop.eup %9172  ;;  %14194 = vst [vmem:[#allocation106_spill] sm:$0xff] %v12144_v36  ;;  %14195 = vst [vmem:[#allocation77_spill] sm:$0xff] %v12147_v2  ;;  %v12150_v50 = vld [vmem:[#allocation10 + $0x48] sm:$0xff]  ;;  %v12153_v40 = vld [vmem:[#allocation10 + $0x58] sm:$0xff] }
 0xe90   :  { %14196 = vst [vmem:[#allocation78_spill] sm:$0xff] %v12150_v50  ;;  %14197 = vst [vmem:[#allocation79_spill] sm:$0xff] %v12153_v40 }
 0xe91   :  { %v11993_v53 = vadd.f32 %v3282_v59, %v3281_v45  ;;  %v12159_v59 = vld [vmem:[#allocation10 + $0x50] sm:$0xff]  ;;  %v12162_v45 = vld [vmem:[#allocation10 + $0x28] sm:$0xff] }
 0xe92   :  { %14199 = vst [vmem:[#allocation81_spill] sm:$0xff] %v12159_v59  ;;  %14200 = vst [vmem:[#allocation82_spill] sm:$0xff] %v12162_v45 }
 0xe93   :  { %9174 = vtanh.f32 %v11993_v53 }
 0xea0   :  { %v9175_v37 = vpop.eup %9174 }
 0xea1   :  { %v3285_v38 = vmul.f32 %v9175_v37, %v9173_v44  ;;  %v12165_v44 = vld [vmem:[#allocation10 + $0x38] sm:$0xff]  ;;  %v12168_v37 = vld [vmem:[#allocation10 + $0x20] sm:$0xff] }
 0xea2   :  { %14201 = vst [vmem:[#allocation83_spill] sm:$0xff] %v12165_v44  ;;  %14202 = vst [vmem:[#allocation84_spill] sm:$0xff] %v12168_v37 }
 0xea3   :  { %v3287_v60 = vrot.slane %v3285_v38, 6  ;;  %v11998_v0 = vsel %vm2205_vm3, %v11916_v42, %v3285_v38  ;;  %v12018_v42 = vld [vmem:[#allocation10 + $0x1a8] sm:$0xff]  ;;  %v12171_v38 = vld [vmem:[#allocation10 + $0x30] sm:$0xff] }
 0xea4   :  { %14187 = vst [vmem:[#allocation105_spill] sm:$0xff] %v11998_v0  ;;  %14203 = vst [vmem:[#allocation85_spill] sm:$0xff] %v12171_v38  ;;  %v12177_v0 = vld [vmem:[#allocation10 + $0x18] sm:$0xff] }
 0xea5   :  { %3354 = vmatmul.mubr.f32.vlgmr.msra.gmra.mxu0 %v3287_v60  ;;  %3425 = vmatmul.mubr.f32.vlgmr.msra.gmra.mxu1 %v3287_v60  ;;  %v12174_v60 = vld [vmem:[#allocation10 + $0x8] sm:$0xff]  ;;  %14205 = vst [vmem:[#allocation87_spill] sm:$0xff] %v12177_v0 }
 0xea6   :  { %3463 = vmatpush1.msra.mxu0 %v12000_v41  ;;  %3534 = vmatpush1.msra.mxu1 %v12003_v61  ;;  %14204 = vst [vmem:[#allocation86_spill] sm:$0xff] %v12174_v60 }
 0xea7   :  { %3464 = vmatprep.subr.mxu0 %v12006_v4  ;;  %3535 = vmatprep.subr.mxu1 %v12009_v31 }
 0xea8   :  { %3465 = vmatpush1.msra.mxu0 %v12012_v11  ;;  %3536 = vmatpush1.msra.mxu1 %v12015_v39 }
 0xea9   :  { %3466 = vmatprep.subr.mxu0 %v12018_v42  ;;  %3537 = vmatprep.subr.mxu1 %v12021_v51 }
 0xeaa   :  { %3467 = vmatpush1.msra.mxu0 %v12024_v63  ;;  %3538 = vmatpush1.msra.mxu1 %v12027_v28 }
 0xeab   :  { %3468 = vmatprep.subr.mxu0 %v12030_v49  ;;  %3539 = vmatprep.subr.mxu1 %v12033_v57 }
 0xeac   :  { %3469 = vmatpush1.msra.mxu0 %v12036_v56  ;;  %3540 = vmatpush1.msra.mxu1 %v12039_v5 }
 0xead   :  { %3470 = vmatprep.subr.mxu0 %v12042_v30  ;;  %3541 = vmatprep.subr.mxu1 %v12045_v52 }
 0xeae   :  { %3471 = vmatpush1.msra.mxu0 %v12048_v48  ;;  %3542 = vmatpush1.msra.mxu1 %v12051_v46 }
 0xeaf   :  { %3472 = vmatprep.subr.mxu0 %v12054_v7  ;;  %3543 = vmatprep.subr.mxu1 %v12057_v58 }
 0xeb0   :  { %3473 = vmatpush1.msra.mxu0 %v12060_v55  ;;  %3544 = vmatpush1.msra.mxu1 %v12063_v1 }
 0xeb1   :  { %3474 = vmatprep.subr.mxu0 %v12066_v3  ;;  %3545 = vmatprep.subr.mxu1 %v12069_v54 }
 0xeb2   :  { %3475 = vmatpush1.msra.mxu0 %v12072_v8  ;;  %3546 = vmatpush1.msra.mxu1 %v12075_v9 }
 0xeb3   :  { %3476 = vmatprep.subr.mxu0 %v12078_v47  ;;  %3547 = vmatprep.subr.mxu1 %v12081_v12 }
 0xeb4   :  { %3477 = vmatpush1.msra.mxu0 %v12084_v15  ;;  %3548 = vmatpush1.msra.mxu1 %v12087_v16 }
 0xeb5   :  { %3478 = vmatprep.subr.mxu0 %v12090_v17  ;;  %3549 = vmatprep.subr.mxu1 %v12093_v18 }
 0xeb6   :  { %3479 = vmatpush1.msra.mxu0 %v12096_v19  ;;  %3550 = vmatpush1.msra.mxu1 %v12099_v20 }
 0xeb7   :  { %3480 = vmatprep.subr.mxu0 %v12102_v22  ;;  %3551 = vmatprep.subr.mxu1 %v12105_v23 }
 0xeb8   :  { %3481 = vmatpush1.msra.mxu0 %v12108_v24  ;;  %3552 = vmatpush1.msra.mxu1 %v12111_v25 }
 0xeb9   :  { %3482 = vmatprep.subr.mxu0 %v12114_v26  ;;  %3553 = vmatprep.subr.mxu1 %v12117_v27 }
 0xeba   :  { %3483 = vmatpush1.msra.mxu0 %v12120_v29  ;;  %3554 = vmatpush1.msra.mxu1 %v12123_v32 }
 0xebb   :  { %3484 = vmatprep.subr.mxu0 %v12126_v33  ;;  %3555 = vmatprep.subr.mxu1 %v12129_v34 }
 0xebc   :  { %3485 = vmatpush1.msra.mxu0 %v12132_v35  ;;  %3556 = vmatpush1.msra.mxu1 %v12135_v21 }
 0xebd   :  { %3486 = vmatprep.subr.mxu0 %v12138_v62  ;;  %3557 = vmatprep.subr.mxu1 %v12141_v6  ;;  %v14215_v6 = vld [vmem:[#allocation108_spill] sm:$0xff]  ;;  %v14217_v62 = vld [vmem:[#allocation111_spill] sm:$0xff] }
 0xebe   :  { %3487 = vmatpush1.msra.mxu0 %v12144_v36  ;;  %3558 = vmatpush1.msra.mxu1 %v12147_v2  ;;  %v14214_v36 = vld [vmem:[#allocation109_spill] sm:$0xff] }
 0xebf   :  { %3488 = vmatprep.subr.mxu0 %v12150_v50  ;;  %3559 = vmatprep.subr.mxu1 %v12153_v40 }
 0xec0   :  { %3489 = vmatpush1.msra.mxu0 %v12156_v43  ;;  %3560 = vmatpush1.msra.mxu1 %v12159_v59  ;;  %v14211_v59 = vld [vmem:[#allocation95_spill] sm:$0xff]  ;;  %v14212_v43 = vld [vmem:[#allocation96_spill] sm:$0xff] }
 0xec1   :  { %3490 = vmatprep.subr.mxu0 %v12162_v45  ;;  %3561 = vmatprep.subr.mxu1 %v12165_v44  ;;  %v12180_v45 = vld [vmem:[#allocation10] sm:$0xff]  ;;  %v12184_v44 = vld [vmem:[#allocation10 + $0x10] sm:$0xff] }
 0xec2   :  { %3491 = vmatpush1.msra.mxu0 %v12168_v37  ;;  %3562 = vmatpush1.msra.mxu1 %v12171_v38  ;;  %14206 = vst [vmem:[#allocation88_spill] sm:$0xff] %v12180_v45  ;;  %14207 = vst [vmem:[#allocation89_spill] sm:$0xff] %v12184_v44  ;;  %v14209_v38 = vld [vmem:[#allocation94_spill] sm:$0xff] }
 0xec3   :  { %3492 = vmatprep.subr.mxu0 %v12174_v60  ;;  %3563 = vmatprep.subr.mxu1 %v12177_v0  ;;  %v14208_v60 = vld [vmem:[#allocation93_spill] sm:$0xff] }
 0xec4   :  { %3493 = vmatpush1.msra.mxu0 %v12180_v45  ;;  %3526 = vmatprep.mubr.f32.mxu0 %v14183_v10  ;;  %v12192_v37 = vadd.f32 %v14209_v38, %v14208_v60  ;;  %v12196_v45 = vadd.f32 %v14212_v43, %v14211_v59  ;;  %v12202_v38 = vadd.f32 %v14215_v6, %v14214_v36  ;;  %v14218_v43 = vld [vmem:[#allocation97_spill] sm:$0xff] }
 0xec5   :  { %3564 = vmatpush1.msra.mxu1 %v12184_v44  ;;  %3597 = vmatprep.mubr.f32.mxu1 %v14183_v10  ;;  %v12207_v59 = vadd.f32 %v14218_v43, %v14217_v62 }
 0xec6   :  { %3650 = vmatprep.subr.mxu0 %v11982_v13  ;;  %3721 = vmatprep.subr.mxu1 %v11985_v14  ;;  %14210 = vst [vmem:[#allocation90_spill] sm:$0xff] %v12192_v37  ;;  %14213 = vst [vmem:[#allocation91_spill] sm:$0xff] %v12196_v45 }
 0xec7   :  { %14216 = vst [vmem:[#allocation92_spill] sm:$0xff] %v12202_v38 }
 0xf65   :  { %v3355_v0 = vpop.f32.mrf.mxu0  ;;  %v3426_v10 = vpop.f32.mrf.mxu1 }
 0xf66   :  { %v3431_v40 = vadd.f32 %v3355_v0, %v12192_v37 }
 0xf67   :  { %v3357_v50 = vpop.f32.mrf.mxu0  ;;  %v3428_v14 = vpop.f32.mrf.mxu1 }
 0xf68   :  { %v8327_v2 = vmul.f32 -1.442695, %v3431_v40  ;;  %v3432_v44 = vadd.f32 %v3357_v50, %v12196_v45  ;;  %v3434_v60 = vadd.f32 %v3428_v14, %v12202_v38  ;;  %v3433_v40 = vadd.f32 %v3426_v10, %v12207_v59 }
 0xf69   :  { %v3455_v14 = vrot.slane %v11993_v53, 6  ;;  %v14220_v53 = vld [vmem:[#allocation102_spill] sm:$0xff] }
 0xf6a   :  { %9176 = vpow2.f32 %v8327_v2  ;;  %v8328_v13 = vmul.f32 -1.442695, %v3432_v44  ;;  %v8329_v0 = vmul.f32 -1.442695, %v3434_v60 }
 0xf6c   :  { %9178 = vpow2.f32 %v8328_v13 }
 0xf6d   :  { %9180 = vpow2.f32 %v8329_v0 }
 0xf77   :  { %v9177_v37 = vpop.eup %9176 }
 0xf78   :  { %v3438_v50 = vadd.f32 1.0, %v9177_v37 }
 0xf79   :  { %v9179_v2 = vpop.eup %9178 }
 0xf7a   :  { %9182 = vrcp.f32 %v3438_v50  ;;  %v3444_v13 = vadd.f32 1.0, %v9179_v2  ;;  %v9181_v44 = vpop.eup %9180  ;;  %v14224_v50 = vld [vmem:[#allocation78_spill] sm:$0xff]  ;;  %v14225_v2 = vld [vmem:[#allocation79_spill] sm:$0xff] }
 0xf7b   :  { %9184 = vtanh.f32 %v3433_v40  ;;  %v3451_v45 = vadd.f32 1.0, %v9181_v44  ;;  %v14223_v40 = vld [vmem:[#allocation77_spill] sm:$0xff] }
 0xf7c   :  { %9186 = vrcp.f32 %v3444_v13  ;;  %v14226_v13 = vld [vmem:[#allocation80_spill] sm:$0xff]  ;;  %v14227_v44 = vld [vmem:[#allocation81_spill] sm:$0xff] }
 0xf7d   :  { %9188 = vrcp.f32 %v3451_v45  ;;  %v14221_v45 = vld [vmem:[#allocation103_spill] sm:$0xff] }
 0xf87   :  { %v9183_v6 = vpop.eup %9182 }
 0xf88   :  { %v9185_v36 = vpop.eup %9184 }
 0xf89   :  { %v9187_v38 = vpop.eup %9186  ;;  %v3458_v62 = vmul.f32 %v9185_v36, %v9183_v6  ;;  %v14228_v6 = vld [vmem:[#allocation82_spill] sm:$0xff]  ;;  %v14229_v36 = vld [vmem:[#allocation83_spill] sm:$0xff] }
 0xf8a   :  { %v3457_v43 = vmul.f32 %v9187_v38, %v3455_v14  ;;  %v9189_v10 = vpop.eup %9188  ;;  %v14222_v38 = vld [vmem:[#allocation106_spill] sm:$0xff]  ;;  %v14230_v14 = vld [vmem:[#allocation84_spill] sm:$0xff] }
 0xf8c   :  { %v12211_v60 = vadd.f32 %v3458_v62, %v3457_v43  ;;  %v14231_v62 = vld [vmem:[#allocation85_spill] sm:$0xff]  ;;  %v14232_v43 = vld [vmem:[#allocation86_spill] sm:$0xff] }
 0xf8e   :  { %9190 = vtanh.f32 %v12211_v60 }
 0xf9b   :  { %v9191_v37 = vpop.eup %9190 }
 0xf9c   :  { %v12214_v0 = vmul.f32 %v9191_v37, %v9189_v10  ;;  %v14233_v10 = vld [vmem:[#allocation87_spill] sm:$0xff]  ;;  %v14234_v37 = vld [vmem:[#allocation88_spill] sm:$0xff] }
 0xf9e   :  { %14219 = vst [vmem:[#allocation93_spill] sm:$0xff] %v12214_v0  ;;  %3527 = vmatmul.mubr.f32.vlgmr.msra.gmra.mxu0 %v12214_v0  ;;  %3598 = vmatmul.mubr.f32.vlgmr.msra.gmra.mxu1 %v12214_v0  ;;  %v14235_v0 = vmov 0.0  }
 0xf9f   :  { %3651 = vmatpush1.msra.mxu0 %v12000_v41  ;;  %3722 = vmatpush1.msra.mxu1 %v12003_v61 }
 0xfa0   :  { %3652 = vmatprep.subr.mxu0 %v12006_v4  ;;  %3723 = vmatprep.subr.mxu1 %v12009_v31 }
 0xfa1   :  { %3653 = vmatpush1.msra.mxu0 %v12012_v11  ;;  %3724 = vmatpush1.msra.mxu1 %v12015_v39 }
 0xfa2   :  { %3654 = vmatprep.subr.mxu0 %v12018_v42  ;;  %3725 = vmatprep.subr.mxu1 %v12021_v51 }
 0xfa3   :  { %3655 = vmatpush1.msra.mxu0 %v12024_v63  ;;  %3726 = vmatpush1.msra.mxu1 %v12027_v28 }
 0xfa4   :  { %3656 = vmatprep.subr.mxu0 %v12030_v49  ;;  %3727 = vmatprep.subr.mxu1 %v12033_v57 }
 0xfa5   :  { %3657 = vmatpush1.msra.mxu0 %v12036_v56  ;;  %3728 = vmatpush1.msra.mxu1 %v12039_v5 }
 0xfa6   :  { %3658 = vmatprep.subr.mxu0 %v12042_v30  ;;  %3729 = vmatprep.subr.mxu1 %v12045_v52 }
 0xfa7   :  { %3659 = vmatpush1.msra.mxu0 %v12048_v48  ;;  %3730 = vmatpush1.msra.mxu1 %v12051_v46 }
 0xfa8   :  { %3660 = vmatprep.subr.mxu0 %v12054_v7  ;;  %3731 = vmatprep.subr.mxu1 %v12057_v58 }
 0xfa9   :  { %3661 = vmatpush1.msra.mxu0 %v12060_v55  ;;  %3732 = vmatpush1.msra.mxu1 %v12063_v1 }
 0xfaa   :  { %3662 = vmatprep.subr.mxu0 %v12066_v3  ;;  %3733 = vmatprep.subr.mxu1 %v12069_v54 }
 0xfab   :  { %3663 = vmatpush1.msra.mxu0 %v12072_v8  ;;  %3734 = vmatpush1.msra.mxu1 %v12075_v9 }
 0xfac   :  { %3664 = vmatprep.subr.mxu0 %v12078_v47  ;;  %3735 = vmatprep.subr.mxu1 %v12081_v12 }
 0xfad   :  { %3665 = vmatpush1.msra.mxu0 %v12084_v15  ;;  %3736 = vmatpush1.msra.mxu1 %v12087_v16 }
 0xfae   :  { %3666 = vmatprep.subr.mxu0 %v12090_v17  ;;  %3737 = vmatprep.subr.mxu1 %v12093_v18 }
 0xfaf   :  { %3667 = vmatpush1.msra.mxu0 %v12096_v19  ;;  %3738 = vmatpush1.msra.mxu1 %v12099_v20 }
 0xfb0   :  { %3668 = vmatprep.subr.mxu0 %v12102_v22  ;;  %3739 = vmatprep.subr.mxu1 %v12105_v23 }
 0xfb1   :  { %3669 = vmatpush1.msra.mxu0 %v12108_v24  ;;  %3740 = vmatpush1.msra.mxu1 %v12111_v25 }
 0xfb2   :  { %3670 = vmatprep.subr.mxu0 %v12114_v26  ;;  %3741 = vmatprep.subr.mxu1 %v12117_v27 }
 0xfb3   :  { %3671 = vmatpush1.msra.mxu0 %v12120_v29  ;;  %3742 = vmatpush1.msra.mxu1 %v12123_v32 }
 0xfb4   :  { %3672 = vmatprep.subr.mxu0 %v12126_v33  ;;  %3743 = vmatprep.subr.mxu1 %v12129_v34 }
 0xfb5   :  { %3673 = vmatpush1.msra.mxu0 %v12132_v35  ;;  %3744 = vmatpush1.msra.mxu1 %v12135_v21 }
 0xfb6   :  { %3674 = vmatprep.subr.mxu0 %v14220_v53  ;;  %3745 = vmatprep.subr.mxu1 %v14221_v45 }
 0xfb7   :  { %3675 = vmatpush1.msra.mxu0 %v14222_v38  ;;  %3746 = vmatpush1.msra.mxu1 %v14223_v40  ;;  %v14240_v38 = vld [vmem:[#allocation91_spill] sm:$0xff] }
 0xfb8   :  { %3676 = vmatprep.subr.mxu0 %v14224_v50  ;;  %3747 = vmatprep.subr.mxu1 %v14225_v2  ;;  %v14236_v2 = vld [vmem:[#allocation89_spill] sm:$0xff] }
 0xfb9   :  { %3677 = vmatpush1.msra.mxu0 %v14226_v13  ;;  %3748 = vmatpush1.msra.mxu1 %v14227_v44  ;;  %v14237_v44 = vld [vmem:[#allocation107_spill] sm:$0xff] }
 0xfba   :  { %3678 = vmatprep.subr.mxu0 %v14228_v6  ;;  %3749 = vmatprep.subr.mxu1 %v14229_v36  ;;  %v14238_v6 = vld [vmem:[#allocation110_spill] sm:$0xff] }
 0xfbb   :  { %3679 = vmatpush1.msra.mxu0 %v14230_v14  ;;  %3750 = vmatpush1.msra.mxu1 %v14231_v62  ;;  %v14239_v62 = vld [vmem:[#allocation90_spill] sm:$0xff] }
 0xfbc   :  { %3680 = vmatprep.subr.mxu0 %v14232_v43  ;;  %3751 = vmatprep.subr.mxu1 %v14233_v10 }
 0xfbd   :  { %3681 = vmatpush1.msra.mxu0 %v14234_v37  ;;  %3714 = vmatprep.mubr.f32.mxu0 %v14235_v0 }
 0xfbe   :  { %3752 = vmatpush1.msra.mxu1 %v14236_v2  ;;  %3785 = vmatprep.mubr.f32.mxu1 %v14235_v0  ;;  %v14241_v0 = vld [vmem:[#allocation92_spill] sm:$0xff] }
 0xfbf   :  { %3838 = vmatprep.subr.mxu0 %v14237_v44  ;;  %3909 = vmatprep.subr.mxu1 %v14238_v6 }
0x105e   :  { %v3528_v36 = vpop.f32.mrf.mxu0  ;;  %v3599_v43 = vpop.f32.mrf.mxu1 }
0x105f   :  { %v3608_v14 = vrot.slane %v3528_v36, 6  ;;  %v3610_v44 = vrot.slane %v3599_v43, 6 }
0x1060   :  { %v3530_v13 = vpop.f32.mrf.mxu0  ;;  %v3601_v53 = vpop.f32.mrf.mxu1 }
0x1061   :  { %v3616_v50 = vadd.f32 %v3608_v14, %v14239_v62  ;;  %v3609_v40 = vrot.slane %v3530_v13, 6  ;;  %v3611_v2 = vrot.slane %v3601_v53, 6  ;;  %v3618_v36 = vadd.f32 %v3610_v44, %v12207_v59 }
0x1063   :  { %v8330_v10 = vmul.f32 -1.442695, %v3616_v50  ;;  %v3617_v37 = vadd.f32 %v3609_v40, %v14240_v38  ;;  %v3619_v21 = vadd.f32 %v3611_v2, %v14241_v0 }
0x1065   :  { %9192 = vpow2.f32 %v8330_v10  ;;  %v8331_v45 = vmul.f32 -1.442695, %v3617_v37  ;;  %v8332_v35 = vmul.f32 -1.442695, %v3619_v21 }
0x1067   :  { %9194 = vpow2.f32 %v8331_v45  ;;  %v3640_v45 = vrot.slane %v12211_v60, 6 }
0x1068   :  { %9196 = vpow2.f32 %v8332_v35 }
0x1072   :  { %v9193_v6 = vpop.eup %9192 }
0x1073   :  { %v3623_v34 = vadd.f32 1.0, %v9193_v6 }
0x1074   :  { %v9195_v33 = vpop.eup %9194 }
0x1075   :  { %9198 = vrcp.f32 %v3623_v34  ;;  %v3629_v13 = vadd.f32 1.0, %v9195_v33  ;;  %v9197_v40 = vpop.eup %9196 }
0x1076   :  { %9200 = vtanh.f32 %v3618_v36  ;;  %v3636_v10 = vadd.f32 1.0, %v9197_v40 }
0x1077   :  { %9202 = vrcp.f32 %v3629_v13 }
0x1078   :  { %9204 = vrcp.f32 %v3636_v10 }
0x1082   :  { %v9199_v50 = vpop.eup %9198 }
0x1083   :  { %v9201_v14 = vpop.eup %9200 }
0x1084   :  { %v9203_v53 = vpop.eup %9202  ;;  %v3643_v2 = vmul.f32 %v9201_v14, %v9199_v50 }
0x1085   :  { %v3642_v43 = vmul.f32 %v9203_v53, %v3640_v45  ;;  %v9205_v37 = vpop.eup %9204 }
0x1087   :  { %v12289_v21 = vadd.f32 %v3643_v2, %v3642_v43  ;;  %v14263_v43 = vld [vmem:[#allocation93_spill] sm:$0xff] }
0x1089   :  { %9206 = vtanh.f32 %v12289_v21  ;;  %v3828_v36 = vrot.slane %v12289_v21, 6 }
0x1096   :  { %v9207_v35 = vpop.eup %9206 }
0x1097   :  { %v12292_v34 = vmul.f32 %v9207_v35, %v9205_v37 }
0x1099   :  { %v3648_v33 = vrot.slane %v12292_v34, 2  ;;  %v4026_v37 = vsel %vm2201_vm1, %v14263_v43, %v12292_v34  ;;  %v4083_v34 = vld [vmem:[#allocation13 + $0x1b0] sm:$0xff]  ;;  %v4034_v43 = vld [vmem:[#allocation13 + $0x28] sm:$0xff] }
0x109b   :  { %3715 = vmatmul.mubr.f32.vlgmr.msra.gmra.mxu0 %v3648_v33  ;;  %3786 = vmatmul.mubr.f32.vlgmr.msra.gmra.mxu1 %v3648_v33  ;;  %v4089_v33 = vld [vmem:[#allocation13 + $0x1e0] sm:$0xff] }
0x109c   :  { %3839 = vmatpush1.msra.mxu0 %v12000_v41  ;;  %3910 = vmatpush1.msra.mxu1 %v12003_v61  ;;  %v14242_v41 = vld [vmem:[#allocation104_spill] sm:$0xff] }
0x109d   :  { %3840 = vmatprep.subr.mxu0 %v12006_v4  ;;  %3911 = vmatprep.subr.mxu1 %v12009_v31  ;;  %v14243_v61 = vld [vmem:[#allocation112_spill] sm:$0xff]  ;;  %v14244_v4 = vld [vmem:[#allocation75_spill] sm:$0xff] }
0x109e   :  { %3841 = vmatpush1.msra.mxu0 %v12012_v11  ;;  %3912 = vmatpush1.msra.mxu1 %v12015_v39  ;;  %v14245_v31 = vld [vmem:[#allocation76_spill] sm:$0xff]  ;;  %v14246_v11 = vld [vmem:[#allocation102_spill] sm:$0xff]  ;;  %v14247_v39 = vld [vmem:[#allocation103_spill] sm:$0xff] }
0x109f   :  { %3842 = vmatprep.subr.mxu0 %v12018_v42  ;;  %3913 = vmatprep.subr.mxu1 %v12021_v51  ;;  %v14248_v42 = vld [vmem:[#allocation106_spill] sm:$0xff]  ;;  %v14249_v51 = vld [vmem:[#allocation77_spill] sm:$0xff] }
0x10a0   :  { %3843 = vmatpush1.msra.mxu0 %v12024_v63  ;;  %3914 = vmatpush1.msra.mxu1 %v12027_v28  ;;  %v14250_v63 = vld [vmem:[#allocation78_spill] sm:$0xff]  ;;  %v14251_v28 = vld [vmem:[#allocation79_spill] sm:$0xff] }
0x10a1   :  { %3844 = vmatprep.subr.mxu0 %v12030_v49  ;;  %3915 = vmatprep.subr.mxu1 %v12033_v57  ;;  %v14252_v49 = vld [vmem:[#allocation80_spill] sm:$0xff]  ;;  %v14253_v57 = vld [vmem:[#allocation81_spill] sm:$0xff] }
0x10a2   :  { %3845 = vmatpush1.msra.mxu0 %v12036_v56  ;;  %3916 = vmatpush1.msra.mxu1 %v12039_v5  ;;  %v14254_v56 = vld [vmem:[#allocation82_spill] sm:$0xff]  ;;  %v14255_v5 = vld [vmem:[#allocation83_spill] sm:$0xff] }
0x10a3   :  { %3846 = vmatprep.subr.mxu0 %v12042_v30  ;;  %3917 = vmatprep.subr.mxu1 %v12045_v52  ;;  %v14256_v30 = vld [vmem:[#allocation84_spill] sm:$0xff]  ;;  %v14257_v52 = vld [vmem:[#allocation85_spill] sm:$0xff] }
0x10a4   :  { %3847 = vmatpush1.msra.mxu0 %v12048_v48  ;;  %3918 = vmatpush1.msra.mxu1 %v12051_v46  ;;  %v14258_v48 = vld [vmem:[#allocation86_spill] sm:$0xff]  ;;  %v14259_v46 = vld [vmem:[#allocation87_spill] sm:$0xff] }
0x10a5   :  { %3848 = vmatprep.subr.mxu0 %v12054_v7  ;;  %3919 = vmatprep.subr.mxu1 %v12057_v58  ;;  %v14260_v7 = vld [vmem:[#allocation88_spill] sm:$0xff]  ;;  %v14261_v58 = vld [vmem:[#allocation89_spill] sm:$0xff] }
0x10a6   :  { %3849 = vmatpush1.msra.mxu0 %v12060_v55  ;;  %3920 = vmatpush1.msra.mxu1 %v12063_v1  ;;  %v14262_v55 = vmov 0.0   ;;  %v4090_v1 = vld [vmem:[#allocation13 + $0x1e8] sm:$0xff] }
0x10a7   :  { %3850 = vmatprep.subr.mxu0 %v12066_v3  ;;  %3921 = vmatprep.subr.mxu1 %v12069_v54  ;;  %v4092_v3 = vld [vmem:[#allocation13 + $0x1f8] sm:$0xff] }
0x10a8   :  { %3851 = vmatpush1.msra.mxu0 %v12072_v8  ;;  %3922 = vmatpush1.msra.mxu1 %v12075_v9 }
0x10a9   :  { %3852 = vmatprep.subr.mxu0 %v12078_v47  ;;  %3923 = vmatprep.subr.mxu1 %v12081_v12 }
0x10aa   :  { %3853 = vmatpush1.msra.mxu0 %v12084_v15  ;;  %3924 = vmatpush1.msra.mxu1 %v12087_v16 }
0x10ab   :  { %3854 = vmatprep.subr.mxu0 %v12090_v17  ;;  %3925 = vmatprep.subr.mxu1 %v12093_v18 }
0x10ac   :  { %3855 = vmatpush1.msra.mxu0 %v12096_v19  ;;  %3926 = vmatpush1.msra.mxu1 %v12099_v20 }
0x10ad   :  { %3856 = vmatprep.subr.mxu0 %v12102_v22  ;;  %3927 = vmatprep.subr.mxu1 %v12105_v23 }
0x10ae   :  { %3857 = vmatpush1.msra.mxu0 %v12108_v24  ;;  %3928 = vmatpush1.msra.mxu1 %v12111_v25 }
0x10af   :  { %3858 = vmatprep.subr.mxu0 %v12114_v26  ;;  %3929 = vmatprep.subr.mxu1 %v12117_v27 }
0x10b0   :  { %3859 = vmatpush1.msra.mxu0 %v12120_v29  ;;  %3930 = vmatpush1.msra.mxu1 %v12123_v32 }
0x10b1   :  { %3860 = vmatprep.subr.mxu0 %v14242_v41  ;;  %3931 = vmatprep.subr.mxu1 %v14243_v61  ;;  %v4091_v41 = vld [vmem:[#allocation13 + $0x1f0] sm:$0xff]  ;;  %v4086_v61 = vld [vmem:[#allocation13 + $0x1c8] sm:$0xff] }
0x10b2   :  { %3861 = vmatpush1.msra.mxu0 %v14244_v4  ;;  %3932 = vmatpush1.msra.mxu1 %v14245_v31  ;;  %v4088_v4 = vld [vmem:[#allocation13 + $0x1d8] sm:$0xff]  ;;  %v4085_v31 = vld [vmem:[#allocation13 + $0x1c0] sm:$0xff] }
0x10b3   :  { %3862 = vmatprep.subr.mxu0 %v14246_v11  ;;  %3933 = vmatprep.subr.mxu1 %v14247_v39  ;;  %v4087_v11 = vld [vmem:[#allocation13 + $0x1d0] sm:$0xff]  ;;  %v4082_v39 = vld [vmem:[#allocation13 + $0x1a8] sm:$0xff] }
0x10b4   :  { %3863 = vmatpush1.msra.mxu0 %v14248_v42  ;;  %3934 = vmatpush1.msra.mxu1 %v14249_v51  ;;  %v4084_v42 = vld [vmem:[#allocation13 + $0x1b8] sm:$0xff]  ;;  %v4081_v51 = vld [vmem:[#allocation13 + $0x1a0] sm:$0xff] }
0x10b5   :  { %3864 = vmatprep.subr.mxu0 %v14250_v63  ;;  %3935 = vmatprep.subr.mxu1 %v14251_v28  ;;  %v4078_v63 = vld [vmem:[#allocation13 + $0x188] sm:$0xff]  ;;  %v4080_v28 = vld [vmem:[#allocation13 + $0x198] sm:$0xff] }
0x10b6   :  { %3865 = vmatpush1.msra.mxu0 %v14252_v49  ;;  %3936 = vmatpush1.msra.mxu1 %v14253_v57  ;;  %v4077_v49 = vld [vmem:[#allocation13 + $0x180] sm:$0xff]  ;;  %v4079_v57 = vld [vmem:[#allocation13 + $0x190] sm:$0xff] }
0x10b7   :  { %3866 = vmatprep.subr.mxu0 %v14254_v56  ;;  %3937 = vmatprep.subr.mxu1 %v14255_v5  ;;  %v4074_v56 = vld [vmem:[#allocation13 + $0x168] sm:$0xff]  ;;  %v4076_v5 = vld [vmem:[#allocation13 + $0x178] sm:$0xff] }
0x10b8   :  { %3867 = vmatpush1.msra.mxu0 %v14256_v30  ;;  %3938 = vmatpush1.msra.mxu1 %v14257_v52  ;;  %v4073_v30 = vld [vmem:[#allocation13 + $0x160] sm:$0xff]  ;;  %v4075_v52 = vld [vmem:[#allocation13 + $0x170] sm:$0xff] }
0x10b9   :  { %3868 = vmatprep.subr.mxu0 %v14258_v48  ;;  %3939 = vmatprep.subr.mxu1 %v14259_v46  ;;  %v4070_v48 = vld [vmem:[#allocation13 + $0x148] sm:$0xff]  ;;  %v4072_v46 = vld [vmem:[#allocation13 + $0x158] sm:$0xff] }
0x10ba   :  { %3869 = vmatpush1.msra.mxu0 %v14260_v7  ;;  %3940 = vmatpush1.msra.mxu1 %v14261_v58  ;;  %v4069_v7 = vld [vmem:[#allocation13 + $0x140] sm:$0xff]  ;;  %v4071_v58 = vld [vmem:[#allocation13 + $0x150] sm:$0xff] }
0x10bb   :  { %3902 = vmatprep.mubr.f32.mxu0 %v14262_v55  ;;  %3973 = vmatprep.mubr.f32.mxu1 %v14262_v55 }
0x10bc   :  { %4115 = vmatprep.subr.mxu0 %v4090_v1  ;;  %4192 = vmatprep.subr.mxu1 %v4092_v3  ;;  %v4066_v1 = vld [vmem:[#allocation13 + $0x128] sm:$0xff]  ;;  %v4068_v3 = vld [vmem:[#allocation13 + $0x138] sm:$0xff] }
0x115b   :  { %v3716_v54 = vpop.f32.mrf.mxu0  ;;  %v3787_v12 = vpop.f32.mrf.mxu1 }
0x115c   :  { %v3796_v8 = vrot.slane %v3716_v54, 4  ;;  %v3798_v23 = vrot.slane %v3787_v12, 4  ;;  %v4065_v54 = vld [vmem:[#allocation13 + $0x120] sm:$0xff] }
0x115d   :  { %v3718_v9 = vpop.f32.mrf.mxu0  ;;  %v3789_v19 = vpop.f32.mrf.mxu1  ;;  %v4061_v12 = vld [vmem:[#allocation13 + $0x100] sm:$0xff] }
0x115e   :  { %v3804_v47 = vadd.f32 %v3796_v8, %v14239_v62  ;;  %v3797_v15 = vrot.slane %v3718_v9, 4  ;;  %v3799_v20 = vrot.slane %v3789_v19, 4  ;;  %v3806_v26 = vadd.f32 %v3798_v23, %v12207_v59  ;;  %v4067_v8 = vld [vmem:[#allocation13 + $0x130] sm:$0xff]  ;;  %v4062_v9 = vld [vmem:[#allocation13 + $0x108] sm:$0xff]  ;;  %v4053_v23 = vld [vmem:[#allocation13 + $0xc0] sm:$0xff] }
0x115f   :  { %v4059_v19 = vld [vmem:[#allocation13 + $0xf0] sm:$0xff] }
0x1160   :  { %v8333_v16 = vmul.f32 -1.442695, %v3804_v47  ;;  %v3805_v17 = vadd.f32 %v3797_v15, %v14240_v38  ;;  %v3807_v22 = vadd.f32 %v3799_v20, %v14241_v0  ;;  %v4064_v47 = vld [vmem:[#allocation13 + $0x118] sm:$0xff]  ;;  %v4063_v15 = vld [vmem:[#allocation13 + $0x110] sm:$0xff]  ;;  %v4054_v20 = vld [vmem:[#allocation13 + $0xc8] sm:$0xff] }
0x1162   :  { %9208 = vpow2.f32 %v8333_v16  ;;  %v8334_v18 = vmul.f32 -1.442695, %v3805_v17  ;;  %v8335_v24 = vmul.f32 -1.442695, %v3807_v22  ;;  %v4058_v16 = vld [vmem:[#allocation13 + $0xe8] sm:$0xff]  ;;  %v4060_v17 = vld [vmem:[#allocation13 + $0xf8] sm:$0xff] }
0x1163   :  { %v4056_v22 = vld [vmem:[#allocation13 + $0xd8] sm:$0xff] }
0x1164   :  { %9210 = vpow2.f32 %v8334_v18  ;;  %v4057_v18 = vld [vmem:[#allocation13 + $0xe0] sm:$0xff] }
0x1165   :  { %9212 = vpow2.f32 %v8335_v24  ;;  %v4055_v24 = vld [vmem:[#allocation13 + $0xd0] sm:$0xff] }
0x116f   :  { %v9209_v25 = vpop.eup %9208 }
0x1170   :  { %v3811_v27 = vadd.f32 1.0, %v9209_v25  ;;  %v4050_v25 = vld [vmem:[#allocation13 + $0xa8] sm:$0xff] }
0x1171   :  { %v9211_v29 = vpop.eup %9210 }
0x1172   :  { %9214 = vrcp.f32 %v3811_v27  ;;  %v3817_v32 = vadd.f32 1.0, %v9211_v29  ;;  %v9213_v60 = vpop.eup %9212  ;;  %v4049_v27 = vld [vmem:[#allocation13 + $0xa0] sm:$0xff]  ;;  %v4051_v29 = vld [vmem:[#allocation13 + $0xb0] sm:$0xff] }
0x1173   :  { %9216 = vtanh.f32 %v3806_v26  ;;  %v3824_v40 = vadd.f32 1.0, %v9213_v60  ;;  %v4052_v26 = vld [vmem:[#allocation13 + $0xb8] sm:$0xff] }
0x1174   :  { %9218 = vrcp.f32 %v3817_v32  ;;  %v4046_v32 = vld [vmem:[#allocation13 + $0x88] sm:$0xff]  ;;  %v4048_v60 = vld [vmem:[#allocation13 + $0x98] sm:$0xff] }
0x1175   :  { %9220 = vrcp.f32 %v3824_v40  ;;  %v4041_v40 = vld [vmem:[#allocation13 + $0x60] sm:$0xff] }
0x117f   :  { %v9215_v44 = vpop.eup %9214 }
0x1180   :  { %v9217_v6 = vpop.eup %9216 }
0x1181   :  { %v9219_v13 = vpop.eup %9218  ;;  %v3831_v50 = vmul.f32 %v9217_v6, %v9215_v44  ;;  %v4045_v44 = vld [vmem:[#allocation13 + $0x80] sm:$0xff]  ;;  %v4047_v6 = vld [vmem:[#allocation13 + $0x90] sm:$0xff] }
0x1182   :  { %v3830_v14 = vmul.f32 %v9219_v13, %v3828_v36  ;;  %v9221_v53 = vpop.eup %9220  ;;  %v4042_v36 = vld [vmem:[#allocation13 + $0x68] sm:$0xff]  ;;  %v4044_v13 = vld [vmem:[#allocation13 + $0x78] sm:$0xff] }
0x1184   :  { %v12364_v45 = vadd.f32 %v3831_v50, %v3830_v14  ;;  %v4043_v50 = vld [vmem:[#allocation13 + $0x70] sm:$0xff]  ;;  %v4038_v14 = vld [vmem:[#allocation13 + $0x48] sm:$0xff] }
0x1186   :  { %9222 = vtanh.f32 %v12364_v45 }
0x1193   :  { %v9223_v10 = vpop.eup %9222 }
0x1194   :  { %v3834_v2 = vmul.f32 %v9223_v10, %v9221_v53  ;;  %v4040_v53 = vld [vmem:[#allocation13 + $0x58] sm:$0xff]  ;;  %v4037_v10 = vld [vmem:[#allocation13 + $0x40] sm:$0xff] }
0x1196   :  { %v3836_v35 = vrot.slane %v3834_v2, 4  ;;  %v12371_v21 = vsel %vm2203_vm2, %v4026_v37, %v3834_v2  ;;  %v4039_v2 = vld [vmem:[#allocation13 + $0x50] sm:$0xff]  ;;  %v4036_v37 = vld [vmem:[#allocation13 + $0x38] sm:$0xff] }
0x1198   :  { %3903 = vmatmul.mubr.f32.vlgmr.msra.gmra.mxu0 %v3836_v35  ;;  %3974 = vmatmul.mubr.f32.vlgmr.msra.gmra.mxu1 %v3836_v35  ;;  %v4033_v35 = vld [vmem:[#allocation13 + $0x20] sm:$0xff] }
0x1199   :  { %4116 = vmatpush1.msra.mxu0 %v4089_v33  ;;  %4193 = vmatpush1.msra.mxu1 %v4091_v41  ;;  %v4035_v33 = vld [vmem:[#allocation13 + $0x30] sm:$0xff]  ;;  %v4030_v41 = vld [vmem:[#allocation13 + $0x8] sm:$0xff] }
0x119a   :  { %4117 = vmatprep.subr.mxu0 %v4086_v61  ;;  %4194 = vmatprep.subr.mxu1 %v4088_v4  ;;  %v4032_v61 = vld [vmem:[#allocation13 + $0x18] sm:$0xff]  ;;  %v4029_v4 = vld [vmem:[#allocation13] sm:$0xff] }
0x119b   :  { %4118 = vmatpush1.msra.mxu0 %v4085_v31  ;;  %4195 = vmatpush1.msra.mxu1 %v4087_v11  ;;  %v4031_v31 = vld [vmem:[#allocation13 + $0x10] sm:$0xff] }
0x119c   :  { %4119 = vmatprep.subr.mxu0 %v4082_v39  ;;  %4196 = vmatprep.subr.mxu1 %v4084_v42  ;;  %v14264_v11 = vld [vmem:[#allocation105_spill] sm:$0xff]  ;;  %v12379_v39 = vld [vmem:[#allocation15 + $0x1e8] sm:$0xff]  ;;  %v12381_v42 = vld [vmem:[#allocation15 + $0x1f8] sm:$0xff] }
0x119d   :  { %4120 = vmatpush1.msra.mxu0 %v4081_v51  ;;  %4197 = vmatpush1.msra.mxu1 %v4083_v34  ;;  %14265 = vst [vmem:[#allocation94_spill] sm:$0xff] %v12379_v39  ;;  %14266 = vst [vmem:[#allocation95_spill] sm:$0xff] %v12381_v42  ;;  %v12385_v51 = vld [vmem:[#allocation15 + $0x1e0] sm:$0xff]  ;;  %v12387_v34 = vld [vmem:[#allocation15 + $0x1f0] sm:$0xff] }
0x119e   :  { %4121 = vmatprep.subr.mxu0 %v4078_v63  ;;  %4198 = vmatprep.subr.mxu1 %v4080_v28  ;;  %v12391_v63 = vld [vmem:[#allocation15 + $0x1c8] sm:$0xff]  ;;  %v12393_v28 = vld [vmem:[#allocation15 + $0x1d8] sm:$0xff] }
0x119f   :  { %4122 = vmatpush1.msra.mxu0 %v4077_v49  ;;  %4199 = vmatpush1.msra.mxu1 %v4079_v57  ;;  %v12397_v49 = vld [vmem:[#allocation15 + $0x1c0] sm:$0xff]  ;;  %v12399_v57 = vld [vmem:[#allocation15 + $0x1d0] sm:$0xff] }
0x11a0   :  { %4123 = vmatprep.subr.mxu0 %v4074_v56  ;;  %4200 = vmatprep.subr.mxu1 %v4076_v5  ;;  %v12403_v56 = vld [vmem:[#allocation15 + $0x1a8] sm:$0xff]  ;;  %v12405_v5 = vld [vmem:[#allocation15 + $0x1b8] sm:$0xff] }
0x11a1   :  { %4124 = vmatpush1.msra.mxu0 %v4073_v30  ;;  %4201 = vmatpush1.msra.mxu1 %v4075_v52  ;;  %v12409_v30 = vld [vmem:[#allocation15 + $0x1a0] sm:$0xff]  ;;  %v12411_v52 = vld [vmem:[#allocation15 + $0x1b0] sm:$0xff] }
0x11a2   :  { %4125 = vmatprep.subr.mxu0 %v4070_v48  ;;  %4202 = vmatprep.subr.mxu1 %v4072_v46  ;;  %v12415_v48 = vld [vmem:[#allocation15 + $0x188] sm:$0xff]  ;;  %v12417_v46 = vld [vmem:[#allocation15 + $0x198] sm:$0xff] }
0x11a3   :  { %4126 = vmatpush1.msra.mxu0 %v4069_v7  ;;  %4203 = vmatpush1.msra.mxu1 %v4071_v58  ;;  %v12419_v7 = vld [vmem:[#allocation15 + $0x180] sm:$0xff]  ;;  %v12423_v58 = vld [vmem:[#allocation15 + $0x190] sm:$0xff] }
0x11a4   :  { %4127 = vmatprep.subr.mxu0 %v4066_v1  ;;  %4204 = vmatprep.subr.mxu1 %v4068_v3  ;;  %v12425_v1 = vld [vmem:[#allocation15 + $0x168] sm:$0xff]  ;;  %v12427_v3 = vld [vmem:[#allocation15 + $0x178] sm:$0xff] }
0x11a5   :  { %4128 = vmatpush1.msra.mxu0 %v4065_v54  ;;  %4205 = vmatpush1.msra.mxu1 %v4067_v8  ;;  %v12431_v54 = vld [vmem:[#allocation15 + $0x160] sm:$0xff]  ;;  %v12433_v8 = vld [vmem:[#allocation15 + $0x170] sm:$0xff] }
0x11a6   :  { %4129 = vmatprep.subr.mxu0 %v4062_v9  ;;  %4206 = vmatprep.subr.mxu1 %v4064_v47  ;;  %v12435_v9 = vld [vmem:[#allocation15 + $0x148] sm:$0xff]  ;;  %v12439_v47 = vld [vmem:[#allocation15 + $0x158] sm:$0xff] }
0x11a7   :  { %4130 = vmatpush1.msra.mxu0 %v4061_v12  ;;  %4207 = vmatpush1.msra.mxu1 %v4063_v15  ;;  %v12441_v12 = vld [vmem:[#allocation15 + $0x140] sm:$0xff]  ;;  %v12443_v15 = vld [vmem:[#allocation15 + $0x150] sm:$0xff] }
0x11a8   :  { %4131 = vmatprep.subr.mxu0 %v4058_v16  ;;  %4208 = vmatprep.subr.mxu1 %v4060_v17  ;;  %v12447_v16 = vld [vmem:[#allocation15 + $0x128] sm:$0xff]  ;;  %v12449_v17 = vld [vmem:[#allocation15 + $0x138] sm:$0xff] }
0x11a9   :  { %4132 = vmatpush1.msra.mxu0 %v4057_v18  ;;  %4209 = vmatpush1.msra.mxu1 %v4059_v19  ;;  %v12453_v18 = vld [vmem:[#allocation15 + $0x120] sm:$0xff]  ;;  %v12455_v19 = vld [vmem:[#allocation15 + $0x130] sm:$0xff] }
0x11aa   :  { %4133 = vmatprep.subr.mxu0 %v4054_v20  ;;  %4210 = vmatprep.subr.mxu1 %v4056_v22  ;;  %v12459_v20 = vld [vmem:[#allocation15 + $0x108] sm:$0xff]  ;;  %v12461_v22 = vld [vmem:[#allocation15 + $0x118] sm:$0xff] }
0x11ab   :  { %4134 = vmatpush1.msra.mxu0 %v4053_v23  ;;  %4211 = vmatpush1.msra.mxu1 %v4055_v24  ;;  %v12465_v23 = vld [vmem:[#allocation15 + $0x100] sm:$0xff]  ;;  %v12467_v24 = vld [vmem:[#allocation15 + $0x110] sm:$0xff] }
0x11ac   :  { %4135 = vmatprep.subr.mxu0 %v4050_v25  ;;  %4212 = vmatprep.subr.mxu1 %v4052_v26  ;;  %v12471_v25 = vld [vmem:[#allocation15 + $0xe8] sm:$0xff]  ;;  %v12473_v26 = vld [vmem:[#allocation15 + $0xf8] sm:$0xff] }
0x11ad   :  { %4136 = vmatpush1.msra.mxu0 %v4049_v27  ;;  %4213 = vmatpush1.msra.mxu1 %v4051_v29  ;;  %v12477_v27 = vld [vmem:[#allocation15 + $0xe0] sm:$0xff]  ;;  %v12479_v29 = vld [vmem:[#allocation15 + $0xf0] sm:$0xff] }
0x11ae   :  { %4137 = vmatprep.subr.mxu0 %v4046_v32  ;;  %4214 = vmatprep.subr.mxu1 %v4048_v60  ;;  %v12483_v32 = vld [vmem:[#allocation15 + $0xc8] sm:$0xff]  ;;  %v12485_v60 = vld [vmem:[#allocation15 + $0xd8] sm:$0xff] }
0x11af   :  { %4138 = vmatpush1.msra.mxu0 %v4045_v44  ;;  %4215 = vmatpush1.msra.mxu1 %v4047_v6  ;;  %v12489_v44 = vld [vmem:[#allocation15 + $0xc0] sm:$0xff]  ;;  %v12491_v6 = vld [vmem:[#allocation15 + $0xd0] sm:$0xff] }
0x11b0   :  { %4139 = vmatprep.subr.mxu0 %v4042_v36  ;;  %4216 = vmatprep.subr.mxu1 %v4044_v13  ;;  %v12495_v36 = vld [vmem:[#allocation15 + $0xa8] sm:$0xff]  ;;  %v12497_v13 = vld [vmem:[#allocation15 + $0xb8] sm:$0xff] }
0x11b1   :  { %4140 = vmatpush1.msra.mxu0 %v4041_v40  ;;  %4217 = vmatpush1.msra.mxu1 %v4043_v50  ;;  %v12501_v40 = vld [vmem:[#allocation15 + $0xa0] sm:$0xff]  ;;  %v12503_v50 = vld [vmem:[#allocation15 + $0xb0] sm:$0xff] }
0x11b2   :  { %4141 = vmatprep.subr.mxu0 %v4038_v14  ;;  %4218 = vmatprep.subr.mxu1 %v4040_v53  ;;  %14267 = vst [vmem:[#allocation96_spill] sm:$0xff] %v12501_v40  ;;  %14268 = vst [vmem:[#allocation109_spill] sm:$0xff] %v12503_v50  ;;  %v12507_v14 = vld [vmem:[#allocation15 + $0x88] sm:$0xff]  ;;  %v12509_v53 = vld [vmem:[#allocation15 + $0x98] sm:$0xff] }
0x11b3   :  { %4142 = vmatpush1.msra.mxu0 %v4037_v10  ;;  %4219 = vmatpush1.msra.mxu1 %v4039_v2  ;;  %14269 = vst [vmem:[#allocation108_spill] sm:$0xff] %v12507_v14  ;;  %14270 = vst [vmem:[#allocation111_spill] sm:$0xff] %v12509_v53  ;;  %v12513_v10 = vld [vmem:[#allocation15 + $0x80] sm:$0xff]  ;;  %v12515_v2 = vld [vmem:[#allocation15 + $0x90] sm:$0xff] }
0x11b4   :  { %4143 = vmatprep.subr.mxu0 %v4034_v43  ;;  %4220 = vmatprep.subr.mxu1 %v4036_v37  ;;  %14271 = vst [vmem:[#allocation97_spill] sm:$0xff] %v12513_v10  ;;  %14272 = vst [vmem:[#allocation107_spill] sm:$0xff] %v12515_v2  ;;  %v12519_v43 = vld [vmem:[#allocation15 + $0x68] sm:$0xff]  ;;  %v12521_v37 = vld [vmem:[#allocation15 + $0x78] sm:$0xff] }
0x11b5   :  { %4144 = vmatpush1.msra.mxu0 %v4033_v35  ;;  %4221 = vmatpush1.msra.mxu1 %v4035_v33  ;;  %14273 = vst [vmem:[#allocation110_spill] sm:$0xff] %v12519_v43  ;;  %14274 = vst [vmem:[#allocation90_spill] sm:$0xff] %v12521_v37  ;;  %v12525_v35 = vld [vmem:[#allocation15 + $0x60] sm:$0xff]  ;;  %v12527_v33 = vld [vmem:[#allocation15 + $0x70] sm:$0xff] }
0x11b6   :  { %4145 = vmatprep.subr.mxu0 %v4030_v41  ;;  %4222 = vmatprep.subr.mxu1 %v4032_v61  ;;  %14275 = vst [vmem:[#allocation91_spill] sm:$0xff] %v12525_v35  ;;  %14276 = vst [vmem:[#allocation92_spill] sm:$0xff] %v12527_v33  ;;  %v12531_v41 = vld [vmem:[#allocation15 + $0x48] sm:$0xff]  ;;  %v12533_v61 = vld [vmem:[#allocation15 + $0x58] sm:$0xff] }
0x11b7   :  { %4146 = vmatpush1.msra.mxu0 %v4029_v4  ;;  %4179 = vmatprep.mubr.f32.mxu0 %v14262_v55  ;;  %14277 = vst [vmem:[#allocation104_spill] sm:$0xff] %v12531_v41  ;;  %14278 = vst [vmem:[#allocation112_spill] sm:$0xff] %v12533_v61  ;;  %v12537_v4 = vld [vmem:[#allocation15 + $0x40] sm:$0xff] }
0x11b8   :  { %4223 = vmatpush1.msra.mxu1 %v4031_v31  ;;  %4256 = vmatprep.mubr.f32.mxu1 %v14262_v55  ;;  %14279 = vst [vmem:[#allocation75_spill] sm:$0xff] %v12537_v4  ;;  %v12539_v31 = vld [vmem:[#allocation15 + $0x50] sm:$0xff] }
0x11b9   :  { %4180 = vmatmul.mubr.f32.vlgmr.msra.gmra.mxu0 %v14264_v11  ;;  %4257 = vmatmul.mubr.f32.vlgmr.msra.gmra.mxu1 %v14264_v11  ;;  %14280 = vst [vmem:[#allocation76_spill] sm:$0xff] %v12539_v31  ;;  %v12545_v11 = vld [vmem:[#allocation15 + $0x28] sm:$0xff] }
0x11ba   :  { %4185 = vmatprep.mubr.f32.mxu0 %v14262_v55  ;;  %4262 = vmatprep.mubr.f32.mxu1 %v14262_v55  ;;  %14281 = vst [vmem:[#allocation102_spill] sm:$0xff] %v12545_v11 }
0x11bb   :  { %4333 = vmatprep.subr.mxu0 %v12379_v39  ;;  %4404 = vmatprep.subr.mxu1 %v12381_v42 }
0x11bc   :  { %4334 = vmatpush1.msra.mxu0 %v12385_v51  ;;  %4405 = vmatpush1.msra.mxu1 %v12387_v34 }
0x11bd   :  { %4335 = vmatprep.subr.mxu0 %v12391_v63  ;;  %4406 = vmatprep.subr.mxu1 %v12393_v28 }
0x11be   :  { %4336 = vmatpush1.msra.mxu0 %v12397_v49  ;;  %4407 = vmatpush1.msra.mxu1 %v12399_v57 }
0x11bf   :  { %4337 = vmatprep.subr.mxu0 %v12403_v56  ;;  %4408 = vmatprep.subr.mxu1 %v12405_v5 }
0x11c0   :  { %4338 = vmatpush1.msra.mxu0 %v12409_v30  ;;  %4409 = vmatpush1.msra.mxu1 %v12411_v52 }
0x11c1   :  { %4339 = vmatprep.subr.mxu0 %v12415_v48  ;;  %4410 = vmatprep.subr.mxu1 %v12417_v46 }
0x11c2   :  { %4340 = vmatpush1.msra.mxu0 %v12419_v7  ;;  %4411 = vmatpush1.msra.mxu1 %v12423_v58 }
0x11c3   :  { %4341 = vmatprep.subr.mxu0 %v12425_v1  ;;  %4412 = vmatprep.subr.mxu1 %v12427_v3 }
0x11c4   :  { %4342 = vmatpush1.msra.mxu0 %v12431_v54  ;;  %4413 = vmatpush1.msra.mxu1 %v12433_v8 }
0x11c5   :  { %4343 = vmatprep.subr.mxu0 %v12435_v9  ;;  %4414 = vmatprep.subr.mxu1 %v12439_v47 }
0x11c6   :  { %4344 = vmatpush1.msra.mxu0 %v12441_v12  ;;  %4415 = vmatpush1.msra.mxu1 %v12443_v15 }
0x11c7   :  { %4345 = vmatprep.subr.mxu0 %v12447_v16  ;;  %4416 = vmatprep.subr.mxu1 %v12449_v17 }
0x11c8   :  { %4346 = vmatpush1.msra.mxu0 %v12453_v18  ;;  %4417 = vmatpush1.msra.mxu1 %v12455_v19 }
0x11c9   :  { %4347 = vmatprep.subr.mxu0 %v12459_v20  ;;  %4418 = vmatprep.subr.mxu1 %v12461_v22 }
0x11ca   :  { %4348 = vmatpush1.msra.mxu0 %v12465_v23  ;;  %4419 = vmatpush1.msra.mxu1 %v12467_v24 }
0x11cb   :  { %4349 = vmatprep.subr.mxu0 %v12471_v25  ;;  %4420 = vmatprep.subr.mxu1 %v12473_v26 }
0x11cc   :  { %4350 = vmatpush1.msra.mxu0 %v12477_v27  ;;  %4421 = vmatpush1.msra.mxu1 %v12479_v29 }
0x11cd   :  { %4351 = vmatprep.subr.mxu0 %v12483_v32  ;;  %4422 = vmatprep.subr.mxu1 %v12485_v60 }
0x11ce   :  { %4352 = vmatpush1.msra.mxu0 %v12489_v44  ;;  %4423 = vmatpush1.msra.mxu1 %v12491_v6 }
0x11cf   :  { %4353 = vmatprep.subr.mxu0 %v12495_v36  ;;  %4424 = vmatprep.subr.mxu1 %v12497_v13 }
0x11d0   :  { %4354 = vmatpush1.msra.mxu0 %v12501_v40  ;;  %4425 = vmatpush1.msra.mxu1 %v12503_v50 }
0x11d1   :  { %4355 = vmatprep.subr.mxu0 %v12507_v14  ;;  %4426 = vmatprep.subr.mxu1 %v12509_v53 }
0x11d2   :  { %4356 = vmatpush1.msra.mxu0 %v12513_v10  ;;  %4427 = vmatpush1.msra.mxu1 %v12515_v2  ;;  %v12547_v2 = vld [vmem:[#allocation15 + $0x38] sm:$0xff]  ;;  %v12549_v10 = vld [vmem:[#allocation15 + $0x20] sm:$0xff] }
0x11d3   :  { %4357 = vmatprep.subr.mxu0 %v12519_v43  ;;  %4428 = vmatprep.subr.mxu1 %v12521_v37  ;;  %14282 = vst [vmem:[#allocation103_spill] sm:$0xff] %v12547_v2  ;;  %14283 = vst [vmem:[#allocation106_spill] sm:$0xff] %v12549_v10  ;;  %v12553_v37 = vld [vmem:[#allocation15 + $0x30] sm:$0xff]  ;;  %v12555_v43 = vld [vmem:[#allocation15 + $0x8] sm:$0xff] }
0x11d4   :  { %4358 = vmatpush1.msra.mxu0 %v12525_v35  ;;  %4429 = vmatpush1.msra.mxu1 %v12527_v33  ;;  %14284 = vst [vmem:[#allocation77_spill] sm:$0xff] %v12553_v37  ;;  %14285 = vst [vmem:[#allocation78_spill] sm:$0xff] %v12555_v43  ;;  %v12557_v35 = vld [vmem:[#allocation15 + $0x18] sm:$0xff] }
0x11d5   :  { %4359 = vmatprep.subr.mxu0 %v12531_v41  ;;  %4430 = vmatprep.subr.mxu1 %v12533_v61  ;;  %14286 = vst [vmem:[#allocation79_spill] sm:$0xff] %v12557_v35  ;;  %v12561_v61 = vld [vmem:[#allocation15] sm:$0xff]  ;;  %v12563_v41 = vld [vmem:[#allocation15 + $0x10] sm:$0xff] }
0x11d6   :  { %4360 = vmatpush1.msra.mxu0 %v12537_v4  ;;  %4431 = vmatpush1.msra.mxu1 %v12539_v31  ;;  %14287 = vst [vmem:[#allocation80_spill] sm:$0xff] %v12561_v61  ;;  %14288 = vst [vmem:[#allocation81_spill] sm:$0xff] %v12563_v41 }
0x11d7   :  { %4361 = vmatprep.subr.mxu0 %v12545_v11  ;;  %4432 = vmatprep.subr.mxu1 %v12547_v2 }
0x11d8   :  { %4362 = vmatpush1.msra.mxu0 %v12549_v10  ;;  %4433 = vmatpush1.msra.mxu1 %v12553_v37 }
0x11d9   :  { %4363 = vmatprep.subr.mxu0 %v12555_v43  ;;  %4434 = vmatprep.subr.mxu1 %v12557_v35 }
0x11da   :  { %4364 = vmatpush1.msra.mxu0 %v12561_v61  ;;  %4435 = vmatpush1.msra.mxu1 %v12563_v41 }
0x11db   :  { %4503 = vmatprep.subr.mxu0 %v12379_v39  ;;  %4574 = vmatprep.subr.mxu1 %v12381_v42 }
0x1258   :  { %v3904_v2 = vpop.f32.mrf.mxu0  ;;  %v3975_v10 = vpop.f32.mrf.mxu1 }
0x1259   :  { %v3984_v11 = vrot.slane %v3904_v2, 2  ;;  %v3986_v39 = vrot.slane %v3975_v10, 2 }
0x125a   :  { %v3906_v31 = vpop.f32.mrf.mxu0  ;;  %v3977_v53 = vpop.f32.mrf.mxu1 }
0x125b   :  { %v3992_v4 = vadd.f32 %v3984_v11, %v14239_v62  ;;  %v3985_v33 = vrot.slane %v3906_v31, 2  ;;  %v3987_v61 = vrot.slane %v3977_v53, 2  ;;  %v3994_v2 = vadd.f32 %v3986_v39, %v12207_v59  ;;  %v14295_v31 = vld [vmem:[#allocation110_spill] sm:$0xff] }
0x125c   :  { %v14296_v11 = vld [vmem:[#allocation90_spill] sm:$0xff] }
0x125d   :  { %v8336_v37 = vmul.f32 -1.442695, %v3992_v4  ;;  %v3993_v43 = vadd.f32 %v3985_v33, %v14240_v38  ;;  %v3995_v41 = vadd.f32 %v3987_v61, %v14241_v0  ;;  %v14293_v61 = vld [vmem:[#allocation97_spill] sm:$0xff]  ;;  %v14294_v4 = vld [vmem:[#allocation107_spill] sm:$0xff] }
0x125f   :  { %9224 = vpow2.f32 %v8336_v37  ;;  %v8337_v35 = vmul.f32 -1.442695, %v3993_v43  ;;  %v8338_v14 = vmul.f32 -1.442695, %v3995_v41 }
0x1261   :  { %9226 = vpow2.f32 %v8337_v35  ;;  %v4016_v35 = vrot.slane %v12364_v45, 6  ;;  %v14289_v45 = vld [vmem:[#allocation96_spill] sm:$0xff] }
0x1262   :  { %9228 = vpow2.f32 %v8338_v14  ;;  %v14292_v14 = vld [vmem:[#allocation111_spill] sm:$0xff] }
0x126c   :  { %v9225_v42 = vpop.eup %9224 }
0x126d   :  { %v3999_v50 = vadd.f32 1.0, %v9225_v42 }
0x126e   :  { %v9227_v40 = vpop.eup %9226 }
0x126f   :  { %9230 = vrcp.f32 %v3999_v50  ;;  %v4005_v62 = vadd.f32 1.0, %v9227_v40  ;;  %v9229_v38 = vpop.eup %9228  ;;  %v14291_v50 = vld [vmem:[#allocation108_spill] sm:$0xff] }
0x1270   :  { %9232 = vtanh.f32 %v3994_v2  ;;  %v4012_v33 = vadd.f32 1.0, %v9229_v38  ;;  %v14297_v2 = vld [vmem:[#allocation91_spill] sm:$0xff]  ;;  %v14299_v38 = vld [vmem:[#allocation104_spill] sm:$0xff] }
0x1271   :  { %9234 = vrcp.f32 %v4005_v62  ;;  %v14298_v62 = vld [vmem:[#allocation92_spill] sm:$0xff] }
0x1272   :  { %9236 = vrcp.f32 %v4012_v33  ;;  %v14304_v33 = vld [vmem:[#allocation103_spill] sm:$0xff] }
0x127c   :  { %v9231_v37 = vpop.eup %9230 }
0x127d   :  { %v9233_v43 = vpop.eup %9232 }
0x127e   :  { %v9235_v53 = vpop.eup %9234  ;;  %v4019_v0 = vmul.f32 %v9233_v43, %v9231_v37  ;;  %v14300_v37 = vld [vmem:[#allocation112_spill] sm:$0xff]  ;;  %v14301_v43 = vld [vmem:[#allocation75_spill] sm:$0xff] }
0x127f   :  { %v4018_v10 = vmul.f32 %v9235_v53, %v4016_v35  ;;  %v9237_v59 = vpop.eup %9236  ;;  %v14302_v35 = vld [vmem:[#allocation76_spill] sm:$0xff]  ;;  %v14303_v53 = vld [vmem:[#allocation102_spill] sm:$0xff] }
0x1281   :  { %v4020_v41 = vadd.f32 %v4019_v0, %v4018_v10  ;;  %v14305_v0 = vld [vmem:[#allocation106_spill] sm:$0xff]  ;;  %v14306_v10 = vld [vmem:[#allocation77_spill] sm:$0xff] }
0x1283   :  { %9238 = vtanh.f32 %v4020_v41  ;;  %v14307_v41 = vld [vmem:[#allocation78_spill] sm:$0xff] }
0x1290   :  { %v9239_v39 = vpop.eup %9238 }
0x1291   :  { %v4022_v42 = vmul.f32 %v9239_v39, %v9237_v59  ;;  %v14308_v59 = vld [vmem:[#allocation79_spill] sm:$0xff]  ;;  %v14309_v39 = vld [vmem:[#allocation80_spill] sm:$0xff] }
0x1293   :  { %v4028_v40 = vsel %vm2205_vm3, %v12371_v21, %v4022_v42  ;;  %v14290_v21 = vld [vmem:[#allocation109_spill] sm:$0xff] }
0x1294   :  { %4186 = vmatmul.mubr.f32.gmra.mxu0 %v4028_v40  ;;  %4263 = vmatmul.mubr.f32.gmra.mxu1 %v4028_v40  ;;  %v14310_v42 = vld [vmem:[#allocation81_spill] sm:$0xff]  ;;  %v14311_v40 = vld [vmem:[#allocation94_spill] sm:$0xff] }
0x1295   :  { %4397 = vmatprep.mubr.f32.mxu0 %v14262_v55  ;;  %4468 = vmatprep.mubr.f32.mxu1 %v14262_v55 }
0x1298   :  { %4398 = vmatmul.mubr.f32.vlgmr.msra.gmra.mxu0 %v14262_v55  ;;  %4469 = vmatmul.mubr.f32.vlgmr.msra.gmra.mxu1 %v14262_v55 }
0x1299   :  { %4504 = vmatpush1.msra.mxu0 %v12385_v51  ;;  %4575 = vmatpush1.msra.mxu1 %v12387_v34 }
0x129a   :  { %4505 = vmatprep.subr.mxu0 %v12391_v63  ;;  %4576 = vmatprep.subr.mxu1 %v12393_v28 }
0x129b   :  { %4506 = vmatpush1.msra.mxu0 %v12397_v49  ;;  %4577 = vmatpush1.msra.mxu1 %v12399_v57 }
0x129c   :  { %4507 = vmatprep.subr.mxu0 %v12403_v56  ;;  %4578 = vmatprep.subr.mxu1 %v12405_v5 }
0x129d   :  { %4508 = vmatpush1.msra.mxu0 %v12409_v30  ;;  %4579 = vmatpush1.msra.mxu1 %v12411_v52 }
0x129e   :  { %4509 = vmatprep.subr.mxu0 %v12415_v48  ;;  %4580 = vmatprep.subr.mxu1 %v12417_v46 }
0x129f   :  { %4510 = vmatpush1.msra.mxu0 %v12419_v7  ;;  %4581 = vmatpush1.msra.mxu1 %v12423_v58 }
0x12a0   :  { %4511 = vmatprep.subr.mxu0 %v12425_v1  ;;  %4582 = vmatprep.subr.mxu1 %v12427_v3 }
0x12a1   :  { %4512 = vmatpush1.msra.mxu0 %v12431_v54  ;;  %4583 = vmatpush1.msra.mxu1 %v12433_v8 }
0x12a2   :  { %4513 = vmatprep.subr.mxu0 %v12435_v9  ;;  %4584 = vmatprep.subr.mxu1 %v12439_v47 }
0x12a3   :  { %4514 = vmatpush1.msra.mxu0 %v12441_v12  ;;  %4585 = vmatpush1.msra.mxu1 %v12443_v15 }
0x12a4   :  { %4515 = vmatprep.subr.mxu0 %v12447_v16  ;;  %4586 = vmatprep.subr.mxu1 %v12449_v17 }
0x12a5   :  { %4516 = vmatpush1.msra.mxu0 %v12453_v18  ;;  %4587 = vmatpush1.msra.mxu1 %v12455_v19 }
0x12a6   :  { %4517 = vmatprep.subr.mxu0 %v12459_v20  ;;  %4588 = vmatprep.subr.mxu1 %v12461_v22 }
0x12a7   :  { %4518 = vmatpush1.msra.mxu0 %v12465_v23  ;;  %4589 = vmatpush1.msra.mxu1 %v12467_v24 }
0x12a8   :  { %4519 = vmatprep.subr.mxu0 %v12471_v25  ;;  %4590 = vmatprep.subr.mxu1 %v12473_v26 }
0x12a9   :  { %4520 = vmatpush1.msra.mxu0 %v12477_v27  ;;  %4591 = vmatpush1.msra.mxu1 %v12479_v29 }
0x12aa   :  { %4521 = vmatprep.subr.mxu0 %v12483_v32  ;;  %4592 = vmatprep.subr.mxu1 %v12485_v60 }
0x12ab   :  { %4522 = vmatpush1.msra.mxu0 %v12489_v44  ;;  %4593 = vmatpush1.msra.mxu1 %v12491_v6 }
0x12ac   :  { %4523 = vmatprep.subr.mxu0 %v12495_v36  ;;  %4594 = vmatprep.subr.mxu1 %v12497_v13 }
0x12ad   :  { %4524 = vmatpush1.msra.mxu0 %v14289_v45  ;;  %4595 = vmatpush1.msra.mxu1 %v14290_v21 }
0x12ae   :  { %4525 = vmatprep.subr.mxu0 %v14291_v50  ;;  %4596 = vmatprep.subr.mxu1 %v14292_v14 }
0x12af   :  { %4526 = vmatpush1.msra.mxu0 %v14293_v61  ;;  %4597 = vmatpush1.msra.mxu1 %v14294_v4  ;;  %v14322_v4 = vld [vmem:[#allocation101_spill] sm:$0xff] }
0x12b0   :  { %4527 = vmatprep.subr.mxu0 %v14295_v31  ;;  %4598 = vmatprep.subr.mxu1 %v14296_v11 }
0x12b1   :  { %4528 = vmatpush1.msra.mxu0 %v14297_v2  ;;  %4599 = vmatpush1.msra.mxu1 %v14298_v62 }
0x12b2   :  { %4529 = vmatprep.subr.mxu0 %v14299_v38  ;;  %4600 = vmatprep.subr.mxu1 %v14300_v37 }
0x12b3   :  { %4530 = vmatpush1.msra.mxu0 %v14301_v43  ;;  %4601 = vmatpush1.msra.mxu1 %v14302_v35  ;;  %v4093_v35 = vld [vmem:[#allocation16] sm:$0xf]  ;;  %v14313_v43 = vld [vmem:[#allocation98_spill] sm:$0xff] }
0x12b4   :  { %4531 = vmatprep.subr.mxu0 %v14303_v53  ;;  %4602 = vmatprep.subr.mxu1 %v14304_v33  ;;  %v14312_v53 = vld [vmem:[#allocation95_spill] sm:$0xff]  ;;  %v4181_v33 = vpop.f32.mrf.mxu0 }
0x12b5   :  { %4532 = vmatpush1.msra.mxu0 %v14305_v0  ;;  %4603 = vmatpush1.msra.mxu1 %v14306_v10  ;;  %v4258_v0 = vpop.f32.mrf.mxu1 }
0x12b6   :  { %4533 = vmatprep.subr.mxu0 %v14307_v41  ;;  %4604 = vmatprep.subr.mxu1 %v14308_v59  ;;  %v4183_v10 = vpop.f32.mrf.mxu0  ;;  %v12651_v41 = vrot.slane %v4093_v35, %v14313_v43 }
0x12b7   :  { %4534 = vmatpush1.msra.mxu0 %v14309_v39  ;;  %4567 = vmatprep.mubr.f32.mxu0 %v14262_v55  ;;  %v4260_v59 = vpop.f32.mrf.mxu1  ;;  %v14316_v39 = vld [vmem:[#allocation99_spill] sm:$0xff] }
0x12b8   :  { %4605 = vmatpush1.msra.mxu1 %v14310_v42  ;;  %4638 = vmatprep.mubr.f32.mxu1 %v14262_v55  ;;  %14314 = vst [vmem:[#allocation82_spill] sm:$0xff] %v12651_v41  ;;  %v12656_v38 = vrot.slane %v4093_v35, %v14316_v39 }
0x12b9   :  { %4691 = vmatprep.subr.mxu0 %v14311_v40  ;;  %4762 = vmatprep.subr.mxu1 %v14312_v53  ;;  %v12663_v40 = vadd.f32 %v4181_v33, %v12651_v41 }
0x12ba   :  { %14317 = vst [vmem:[#allocation84_spill] sm:$0xff] %v12656_v38  ;;  %v12666_v62 = vadd.f32 %v4183_v10, %v12656_v38  ;;  %v14325_v10 = vld [vmem:[#allocation100_spill] sm:$0xff] }
0x12bb   :  { %v12679_v38 = vrot.slane %v4093_v35, %v14325_v10 }
0x12bc   :  { %14320 = vst [vmem:[#allocation87_spill] sm:$0xff] %v12666_v62 }
0x12bd   :  { %14326 = vst [vmem:[#allocation105_spill] sm:$0xff] %v12679_v38 }
0x1354   :  { %v12653_v37 = vpop.f32.mrf.mxu0  ;;  %v12658_v42 = vpop.f32.mrf.mxu1 }
0x1355   :  { %14315 = vst [vmem:[#allocation83_spill] sm:$0xff] %v12653_v37  ;;  %14318 = vst [vmem:[#allocation85_spill] sm:$0xff] %v12658_v42 }
0x1356   :  { %v12660_v55 = vpop.f32.mrf.mxu0  ;;  %v12668_v2 = vpop.f32.mrf.mxu1 }
0x1357   :  { %14319 = vst [vmem:[#allocation86_spill] sm:$0xff] %v12660_v55  ;;  %14321 = vst [vmem:[#allocation88_spill] sm:$0xff] %v12668_v2  ;;  %v12673_v55 = vrot.slane %v4093_v35, %v14322_v4 }
0x1358   :  { %v4399_v53 = vpop.f32.mrf.mxu0  ;;  %v4470_v31 = vpop.f32.mrf.mxu1 }
0x1359   :  { %v4475_v43 = vadd.f32 %v4399_v53, %v12663_v40  ;;  %14323 = vst [vmem:[#allocation89_spill] sm:$0xff] %v12673_v55  ;;  %v12676_v41 = vadd.f32 %v4260_v59, %v12673_v55 }
0x135a   :  { %v4401_v11 = vpop.f32.mrf.mxu0  ;;  %v4472_v33 = vpop.f32.mrf.mxu1 }
0x135b   :  { %v8339_v37 = vmul.f32 -1.442695, %v4475_v43  ;;  %v4476_v39 = vadd.f32 %v4401_v11, %v12666_v62  ;;  %14324 = vst [vmem:[#allocation93_spill] sm:$0xff] %v12676_v41  ;;  %v4478_v53 = vadd.f32 %v4472_v33, %v12676_v41  ;;  %v12683_v43 = vadd.f32 %v4258_v0, %v12679_v38  ;;  %v14342_v38 = vld [vmem:[#allocation80_spill] sm:$0xff] }
0x135d   :  { %9240 = vpow2.f32 %v8339_v37  ;;  %v8340_v42 = vmul.f32 -1.442695, %v4476_v39  ;;  %v8341_v11 = vmul.f32 -1.442695, %v4478_v53  ;;  %v4477_v39 = vadd.f32 %v4470_v31, %v12683_v43 }
0x135f   :  { %9242 = vpow2.f32 %v8340_v42 }
0x1360   :  { %9244 = vpow2.f32 %v8341_v11  ;;  %v14333_v11 = vld [vmem:[#allocation112_spill] sm:$0xff] }
0x136a   :  { %v9241_v37 = vpop.eup %9240 }
0x136b   :  { %v4482_v2 = vadd.f32 1.0, %v9241_v37 }
0x136c   :  { %v9243_v4 = vpop.eup %9242 }
0x136d   :  { %9246 = vrcp.f32 %v4482_v2  ;;  %v4488_v42 = vadd.f32 1.0, %v9243_v4  ;;  %v9245_v59 = vpop.eup %9244  ;;  %v14328_v4 = vld [vmem:[#allocation110_spill] sm:$0xff] }
0x136e   :  { %9248 = vtanh.f32 %v4477_v39  ;;  %v4495_v62 = vadd.f32 1.0, %v9245_v59  ;;  %v14329_v2 = vld [vmem:[#allocation90_spill] sm:$0xff]  ;;  %v14334_v39 = vld [vmem:[#allocation75_spill] sm:$0xff] }
0x136f   :  { %9250 = vrcp.f32 %v4488_v42  ;;  %v14335_v42 = vld [vmem:[#allocation76_spill] sm:$0xff]  ;;  %v14336_v59 = vld [vmem:[#allocation102_spill] sm:$0xff] }
0x1370   :  { %9252 = vrcp.f32 %v4495_v62  ;;  %v14330_v62 = vld [vmem:[#allocation91_spill] sm:$0xff] }
0x137a   :  { %v9247_v55 = vpop.eup %9246 }
0x137b   :  { %v9249_v35 = vpop.eup %9248 }
0x137c   :  { %v9251_v10 = vpop.eup %9250  ;;  %v4499_v41 = vmul.f32 %v9249_v35, %v9247_v55  ;;  %v14327_v55 = vld [vmem:[#allocation107_spill] sm:$0xff] }
0x137d   :  { %v4498_v33 = vmul.f32 0.0, %v9251_v10  ;;  %v9253_v31 = vpop.eup %9252  ;;  %v14332_v10 = vld [vmem:[#allocation104_spill] sm:$0xff]  ;;  %v14337_v35 = vld [vmem:[#allocation103_spill] sm:$0xff] }
0x137f   :  { %v12686_v0 = vadd.f32 %v4499_v41, %v4498_v33  ;;  %v14331_v41 = vld [vmem:[#allocation92_spill] sm:$0xff]  ;;  %v14338_v33 = vld [vmem:[#allocation106_spill] sm:$0xff] }
0x1381   :  { %9254 = vtanh.f32 %v12686_v0 }
0x138e   :  { %v9255_v53 = vpop.eup %9254 }
0x138f   :  { %v4502_v37 = vmul.f32 %v9255_v53, %v9253_v31  ;;  %v14339_v31 = vld [vmem:[#allocation77_spill] sm:$0xff]  ;;  %v14340_v53 = vld [vmem:[#allocation78_spill] sm:$0xff] }
0x1391   :  { %4568 = vmatmul.mubr.f32.vlgmr.msra.gmra.mxu0 %v4502_v37  ;;  %4639 = vmatmul.mubr.f32.vlgmr.msra.gmra.mxu1 %v4502_v37  ;;  %v14341_v37 = vld [vmem:[#allocation79_spill] sm:$0xff] }
0x1392   :  { %4692 = vmatpush1.msra.mxu0 %v12385_v51  ;;  %4763 = vmatpush1.msra.mxu1 %v12387_v34 }
0x1393   :  { %4693 = vmatprep.subr.mxu0 %v12391_v63  ;;  %4764 = vmatprep.subr.mxu1 %v12393_v28 }
0x1394   :  { %4694 = vmatpush1.msra.mxu0 %v12397_v49  ;;  %4765 = vmatpush1.msra.mxu1 %v12399_v57 }
0x1395   :  { %4695 = vmatprep.subr.mxu0 %v12403_v56  ;;  %4766 = vmatprep.subr.mxu1 %v12405_v5 }
0x1396   :  { %4696 = vmatpush1.msra.mxu0 %v12409_v30  ;;  %4767 = vmatpush1.msra.mxu1 %v12411_v52 }
0x1397   :  { %4697 = vmatprep.subr.mxu0 %v12415_v48  ;;  %4768 = vmatprep.subr.mxu1 %v12417_v46 }
0x1398   :  { %4698 = vmatpush1.msra.mxu0 %v12419_v7  ;;  %4769 = vmatpush1.msra.mxu1 %v12423_v58 }
0x1399   :  { %4699 = vmatprep.subr.mxu0 %v12425_v1  ;;  %4770 = vmatprep.subr.mxu1 %v12427_v3 }
0x139a   :  { %4700 = vmatpush1.msra.mxu0 %v12431_v54  ;;  %4771 = vmatpush1.msra.mxu1 %v12433_v8 }
0x139b   :  { %4701 = vmatprep.subr.mxu0 %v12435_v9  ;;  %4772 = vmatprep.subr.mxu1 %v12439_v47 }
0x139c   :  { %4702 = vmatpush1.msra.mxu0 %v12441_v12  ;;  %4773 = vmatpush1.msra.mxu1 %v12443_v15 }
0x139d   :  { %4703 = vmatprep.subr.mxu0 %v12447_v16  ;;  %4774 = vmatprep.subr.mxu1 %v12449_v17 }
0x139e   :  { %4704 = vmatpush1.msra.mxu0 %v12453_v18  ;;  %4775 = vmatpush1.msra.mxu1 %v12455_v19 }
0x139f   :  { %4705 = vmatprep.subr.mxu0 %v12459_v20  ;;  %4776 = vmatprep.subr.mxu1 %v12461_v22 }
0x13a0   :  { %4706 = vmatpush1.msra.mxu0 %v12465_v23  ;;  %4777 = vmatpush1.msra.mxu1 %v12467_v24 }
0x13a1   :  { %4707 = vmatprep.subr.mxu0 %v12471_v25  ;;  %4778 = vmatprep.subr.mxu1 %v12473_v26 }
0x13a2   :  { %4708 = vmatpush1.msra.mxu0 %v12477_v27  ;;  %4779 = vmatpush1.msra.mxu1 %v12479_v29 }
0x13a3   :  { %4709 = vmatprep.subr.mxu0 %v12483_v32  ;;  %4780 = vmatprep.subr.mxu1 %v12485_v60 }
0x13a4   :  { %4710 = vmatpush1.msra.mxu0 %v12489_v44  ;;  %4781 = vmatpush1.msra.mxu1 %v12491_v6 }
0x13a5   :  { %4711 = vmatprep.subr.mxu0 %v12495_v36  ;;  %4782 = vmatprep.subr.mxu1 %v12497_v13 }
0x13a6   :  { %4712 = vmatpush1.msra.mxu0 %v14289_v45  ;;  %4783 = vmatpush1.msra.mxu1 %v14290_v21 }
0x13a7   :  { %4713 = vmatprep.subr.mxu0 %v14291_v50  ;;  %4784 = vmatprep.subr.mxu1 %v14292_v14 }
0x13a8   :  { %4714 = vmatpush1.msra.mxu0 %v14293_v61  ;;  %4785 = vmatpush1.msra.mxu1 %v14327_v55 }
0x13a9   :  { %4715 = vmatprep.subr.mxu0 %v14328_v4  ;;  %4786 = vmatprep.subr.mxu1 %v14329_v2 }
0x13aa   :  { %4716 = vmatpush1.msra.mxu0 %v14330_v62  ;;  %4787 = vmatpush1.msra.mxu1 %v14331_v41  ;;  %v14347_v62 = vld [vmem:[#allocation87_spill] sm:$0xff] }
0x13ab   :  { %4717 = vmatprep.subr.mxu0 %v14332_v10  ;;  %4788 = vmatprep.subr.mxu1 %v14333_v11  ;;  %v14343_v10 = vmov 0.0   ;;  %v14344_v11 = vld [vmem:[#allocation81_spill] sm:$0xff] }
0x13ac   :  { %4718 = vmatpush1.msra.mxu0 %v14334_v39  ;;  %4789 = vmatpush1.msra.mxu1 %v14335_v42  ;;  %v14345_v42 = vld [vmem:[#allocation94_spill] sm:$0xff] }
0x13ad   :  { %4719 = vmatprep.subr.mxu0 %v14336_v59  ;;  %4790 = vmatprep.subr.mxu1 %v14337_v35  ;;  %v14346_v59 = vld [vmem:[#allocation95_spill] sm:$0xff] }
0x13ae   :  { %4720 = vmatpush1.msra.mxu0 %v14338_v33  ;;  %4791 = vmatpush1.msra.mxu1 %v14339_v31 }
0x13af   :  { %4721 = vmatprep.subr.mxu0 %v14340_v53  ;;  %4792 = vmatprep.subr.mxu1 %v14341_v37 }
0x13b0   :  { %4722 = vmatpush1.msra.mxu0 %v14342_v38  ;;  %4755 = vmatprep.mubr.f32.mxu0 %v14343_v10 }
0x13b1   :  { %4793 = vmatpush1.msra.mxu1 %v14344_v11  ;;  %4826 = vmatprep.mubr.f32.mxu1 %v14343_v10  ;;  %v14348_v10 = vld [vmem:[#allocation93_spill] sm:$0xff] }
0x13b2   :  { %4879 = vmatprep.subr.mxu0 %v14345_v42  ;;  %4950 = vmatprep.subr.mxu1 %v14346_v59 }
0x1451   :  { %v4569_v35 = vpop.f32.mrf.mxu0  ;;  %v4640_v53 = vpop.f32.mrf.mxu1 }
0x1452   :  { %v4649_v33 = vrot.slane %v4569_v35, 6  ;;  %v4651_v42 = vrot.slane %v4640_v53, 6 }
0x1453   :  { %v4571_v39 = vpop.f32.mrf.mxu0  ;;  %v4642_v4 = vpop.f32.mrf.mxu1 }
0x1454   :  { %v4657_v31 = vadd.f32 %v4649_v33, %v12663_v40  ;;  %v4650_v41 = vrot.slane %v4571_v39, 6  ;;  %v4652_v11 = vrot.slane %v4642_v4, 6  ;;  %v4659_v35 = vadd.f32 %v4651_v42, %v12683_v43 }
0x1456   :  { %v8342_v37 = vmul.f32 -1.442695, %v4657_v31  ;;  %v4658_v38 = vadd.f32 %v4650_v41, %v14347_v62  ;;  %v4660_v55 = vadd.f32 %v4652_v11, %v14348_v10 }
0x1458   :  { %9256 = vpow2.f32 %v8342_v37  ;;  %v8343_v2 = vmul.f32 -1.442695, %v4658_v38  ;;  %v8344_v61 = vmul.f32 -1.442695, %v4660_v55  ;;  %v14351_v37 = vld [vmem:[#allocation97_spill] sm:$0xff] }
0x145a   :  { %9258 = vpow2.f32 %v8343_v2  ;;  %v4681_v2 = vrot.slane %v12686_v0, 6  ;;  %v14349_v0 = vld [vmem:[#allocation108_spill] sm:$0xff] }
0x145b   :  { %9260 = vpow2.f32 %v8344_v61 }
0x1465   :  { %v9257_v59 = vpop.eup %9256 }
0x1466   :  { %v4664_v14 = vadd.f32 1.0, %v9257_v59  ;;  %v14350_v59 = vld [vmem:[#allocation111_spill] sm:$0xff] }
0x1467   :  { %v9259_v50 = vpop.eup %9258 }
0x1468   :  { %9262 = vrcp.f32 %v4664_v14  ;;  %v4670_v39 = vadd.f32 1.0, %v9259_v50  ;;  %v9261_v41 = vpop.eup %9260 }
0x1469   :  { %9264 = vtanh.f32 %v4659_v35  ;;  %v4677_v31 = vadd.f32 1.0, %v9261_v41  ;;  %v14352_v35 = vld [vmem:[#allocation107_spill] sm:$0xff]  ;;  %v14354_v41 = vld [vmem:[#allocation90_spill] sm:$0xff] }
0x146a   :  { %9266 = vrcp.f32 %v4670_v39  ;;  %v14353_v39 = vld [vmem:[#allocation110_spill] sm:$0xff] }
0x146b   :  { %9268 = vrcp.f32 %v4677_v31  ;;  %v14359_v31 = vld [vmem:[#allocation75_spill] sm:$0xff] }
0x1475   :  { %v9263_v33 = vpop.eup %9262 }
0x1476   :  { %v9265_v38 = vpop.eup %9264 }
0x1477   :  { %v9267_v4 = vpop.eup %9266  ;;  %v4684_v11 = vmul.f32 %v9265_v38, %v9263_v33  ;;  %v14355_v33 = vld [vmem:[#allocation91_spill] sm:$0xff]  ;;  %v14356_v38 = vld [vmem:[#allocation92_spill] sm:$0xff] }
0x1478   :  { %v4683_v53 = vmul.f32 %v9267_v4, %v4681_v2  ;;  %v9269_v42 = vpop.eup %9268  ;;  %v14357_v2 = vld [vmem:[#allocation104_spill] sm:$0xff] }
0x1479   :  { %v14358_v4 = vld [vmem:[#allocation112_spill] sm:$0xff] }
0x147a   :  { %v12760_v55 = vadd.f32 %v4684_v11, %v4683_v53  ;;  %v14360_v11 = vld [vmem:[#allocation76_spill] sm:$0xff]  ;;  %v14361_v53 = vld [vmem:[#allocation102_spill] sm:$0xff] }
0x147c   :  { %9270 = vtanh.f32 %v12760_v55 }
0x1489   :  { %v9271_v61 = vpop.eup %9270 }
0x148a   :  { %v4687_v14 = vmul.f32 %v9271_v61, %v9269_v42  ;;  %v14362_v42 = vld [vmem:[#allocation103_spill] sm:$0xff]  ;;  %v14363_v61 = vld [vmem:[#allocation106_spill] sm:$0xff] }
0x148c   :  { %v4689_v50 = vrot.slane %v4687_v14, 2  ;;  %v14364_v14 = vld [vmem:[#allocation77_spill] sm:$0xff] }
0x148e   :  { %4756 = vmatmul.mubr.f32.vlgmr.msra.gmra.mxu0 %v4689_v50  ;;  %4827 = vmatmul.mubr.f32.vlgmr.msra.gmra.mxu1 %v4689_v50  ;;  %v14365_v50 = vld [vmem:[#allocation78_spill] sm:$0xff] }
0x148f   :  { %4880 = vmatpush1.msra.mxu0 %v12385_v51  ;;  %4951 = vmatpush1.msra.mxu1 %v12387_v34 }
0x1490   :  { %4881 = vmatprep.subr.mxu0 %v12391_v63  ;;  %4952 = vmatprep.subr.mxu1 %v12393_v28 }
0x1491   :  { %4882 = vmatpush1.msra.mxu0 %v12397_v49  ;;  %4953 = vmatpush1.msra.mxu1 %v12399_v57 }
0x1492   :  { %4883 = vmatprep.subr.mxu0 %v12403_v56  ;;  %4954 = vmatprep.subr.mxu1 %v12405_v5 }
0x1493   :  { %4884 = vmatpush1.msra.mxu0 %v12409_v30  ;;  %4955 = vmatpush1.msra.mxu1 %v12411_v52 }
0x1494   :  { %4885 = vmatprep.subr.mxu0 %v12415_v48  ;;  %4956 = vmatprep.subr.mxu1 %v12417_v46 }
0x1495   :  { %4886 = vmatpush1.msra.mxu0 %v12419_v7  ;;  %4957 = vmatpush1.msra.mxu1 %v12423_v58 }
0x1496   :  { %4887 = vmatprep.subr.mxu0 %v12425_v1  ;;  %4958 = vmatprep.subr.mxu1 %v12427_v3 }
0x1497   :  { %4888 = vmatpush1.msra.mxu0 %v12431_v54  ;;  %4959 = vmatpush1.msra.mxu1 %v12433_v8 }
0x1498   :  { %4889 = vmatprep.subr.mxu0 %v12435_v9  ;;  %4960 = vmatprep.subr.mxu1 %v12439_v47 }
0x1499   :  { %4890 = vmatpush1.msra.mxu0 %v12441_v12  ;;  %4961 = vmatpush1.msra.mxu1 %v12443_v15 }
0x149a   :  { %4891 = vmatprep.subr.mxu0 %v12447_v16  ;;  %4962 = vmatprep.subr.mxu1 %v12449_v17 }
0x149b   :  { %4892 = vmatpush1.msra.mxu0 %v12453_v18  ;;  %4963 = vmatpush1.msra.mxu1 %v12455_v19 }
0x149c   :  { %4893 = vmatprep.subr.mxu0 %v12459_v20  ;;  %4964 = vmatprep.subr.mxu1 %v12461_v22 }
0x149d   :  { %4894 = vmatpush1.msra.mxu0 %v12465_v23  ;;  %4965 = vmatpush1.msra.mxu1 %v12467_v24 }
0x149e   :  { %4895 = vmatprep.subr.mxu0 %v12471_v25  ;;  %4966 = vmatprep.subr.mxu1 %v12473_v26 }
0x149f   :  { %4896 = vmatpush1.msra.mxu0 %v12477_v27  ;;  %4967 = vmatpush1.msra.mxu1 %v12479_v29 }
0x14a0   :  { %4897 = vmatprep.subr.mxu0 %v12483_v32  ;;  %4968 = vmatprep.subr.mxu1 %v12485_v60 }
0x14a1   :  { %4898 = vmatpush1.msra.mxu0 %v12489_v44  ;;  %4969 = vmatpush1.msra.mxu1 %v12491_v6 }
0x14a2   :  { %4899 = vmatprep.subr.mxu0 %v12495_v36  ;;  %4970 = vmatprep.subr.mxu1 %v12497_v13 }
0x14a3   :  { %4900 = vmatpush1.msra.mxu0 %v14289_v45  ;;  %4971 = vmatpush1.msra.mxu1 %v14290_v21 }
0x14a4   :  { %4901 = vmatprep.subr.mxu0 %v14349_v0  ;;  %4972 = vmatprep.subr.mxu1 %v14350_v59 }
0x14a5   :  { %4902 = vmatpush1.msra.mxu0 %v14351_v37  ;;  %4973 = vmatpush1.msra.mxu1 %v14352_v35 }
0x14a6   :  { %4903 = vmatprep.subr.mxu0 %v14353_v39  ;;  %4974 = vmatprep.subr.mxu1 %v14354_v41 }
0x14a7   :  { %4904 = vmatpush1.msra.mxu0 %v14355_v33  ;;  %4975 = vmatpush1.msra.mxu1 %v14356_v38  ;;  %v14366_v33 = vld [vmem:[#allocation79_spill] sm:$0xff]  ;;  %v14367_v38 = vld [vmem:[#allocation80_spill] sm:$0xff] }
0x14a8   :  { %4905 = vmatprep.subr.mxu0 %v14357_v2  ;;  %4976 = vmatprep.subr.mxu1 %v14358_v4  ;;  %v14368_v2 = vmov 0.0   ;;  %v14369_v4 = vld [vmem:[#allocation81_spill] sm:$0xff] }
0x14a9   :  { %4906 = vmatpush1.msra.mxu0 %v14359_v31  ;;  %4977 = vmatpush1.msra.mxu1 %v14360_v11  ;;  %v14370_v11 = vld [vmem:[#allocation94_spill] sm:$0xff] }
0x14aa   :  { %4907 = vmatprep.subr.mxu0 %v14361_v53  ;;  %4978 = vmatprep.subr.mxu1 %v14362_v42  ;;  %v14371_v53 = vld [vmem:[#allocation95_spill] sm:$0xff] }
0x14ab   :  { %4908 = vmatpush1.msra.mxu0 %v14363_v61  ;;  %4979 = vmatpush1.msra.mxu1 %v14364_v14 }
0x14ac   :  { %4909 = vmatprep.subr.mxu0 %v14365_v50  ;;  %4980 = vmatprep.subr.mxu1 %v14366_v33 }
0x14ad   :  { %4910 = vmatpush1.msra.mxu0 %v14367_v38  ;;  %4943 = vmatprep.mubr.f32.mxu0 %v14368_v2 }
0x14ae   :  { %4981 = vmatpush1.msra.mxu1 %v14369_v4  ;;  %5014 = vmatprep.mubr.f32.mxu1 %v14368_v2 }
0x14af   :  { %5067 = vmatprep.subr.mxu0 %v14370_v11  ;;  %5138 = vmatprep.subr.mxu1 %v14371_v53 }
0x154e   :  { %v4757_v42 = vpop.f32.mrf.mxu0  ;;  %v4828_v50 = vpop.f32.mrf.mxu1 }
0x154f   :  { %v4837_v61 = vrot.slane %v4757_v42, 4  ;;  %v4839_v11 = vrot.slane %v4828_v50, 4 }
0x1550   :  { %v4759_v31 = vpop.f32.mrf.mxu0  ;;  %v4830_v35 = vpop.f32.mrf.mxu1 }
0x1551   :  { %v4845_v14 = vadd.f32 %v4837_v61, %v12663_v40  ;;  %v4838_v41 = vrot.slane %v4759_v31, 4  ;;  %v4840_v4 = vrot.slane %v4830_v35, 4  ;;  %v4847_v42 = vadd.f32 %v4839_v11, %v12683_v43 }
0x1553   :  { %v8345_v33 = vmul.f32 -1.442695, %v4845_v14  ;;  %v4846_v38 = vadd.f32 %v4838_v41, %v14347_v62  ;;  %v4848_v2 = vadd.f32 %v4840_v4, %v14348_v10 }
0x1555   :  { %9272 = vpow2.f32 %v8345_v33  ;;  %v8346_v39 = vmul.f32 -1.442695, %v4846_v38  ;;  %v8347_v37 = vmul.f32 -1.442695, %v4848_v2 }
0x1557   :  { %9274 = vpow2.f32 %v8346_v39  ;;  %v4869_v39 = vrot.slane %v12760_v55, 6 }
0x1558   :  { %9276 = vpow2.f32 %v8347_v37 }
0x1562   :  { %v9273_v53 = vpop.eup %9272 }
0x1563   :  { %v4852_v59 = vadd.f32 1.0, %v9273_v53 }
0x1564   :  { %v9275_v0 = vpop.eup %9274 }
0x1565   :  { %9278 = vrcp.f32 %v4852_v59  ;;  %v4858_v31 = vadd.f32 1.0, %v9275_v0  ;;  %v9277_v41 = vpop.eup %9276 }
0x1566   :  { %9280 = vtanh.f32 %v4847_v42  ;;  %v4865_v61 = vadd.f32 1.0, %v9277_v41 }
0x1567   :  { %9282 = vrcp.f32 %v4858_v31 }
0x1568   :  { %9284 = vrcp.f32 %v4865_v61  ;;  %v12918_v61 = vld [vmem:[#allocation15 + $0x1f0] sm:$0xff] }
0x1572   :  { %v9279_v33 = vpop.eup %9278 }
0x1573   :  { %v9281_v38 = vpop.eup %9280 }
0x1574   :  { %v9283_v35 = vpop.eup %9282  ;;  %v4872_v4 = vmul.f32 %v9281_v38, %v9279_v33 }
0x1575   :  { %v4871_v14 = vmul.f32 %v9283_v35, %v4869_v39  ;;  %v9285_v50 = vpop.eup %9284  ;;  %v12915_v35 = vld [vmem:[#allocation15 + $0x1e0] sm:$0xff] }
0x1577   :  { %v12834_v2 = vadd.f32 %v4872_v4, %v4871_v14  ;;  %v12921_v4 = vld [vmem:[#allocation15 + $0x1c8] sm:$0xff]  ;;  %v12924_v14 = vld [vmem:[#allocation15 + $0x1d8] sm:$0xff] }
0x1579   :  { %9286 = vtanh.f32 %v12834_v2  ;;  %v5057_v11 = vrot.slane %v12834_v2, 6  ;;  %v12927_v2 = vld [vmem:[#allocation15 + $0x1c0] sm:$0xff] }
0x1586   :  { %v9287_v37 = vpop.eup %9286 }
0x1587   :  { %v4875_v59 = vmul.f32 %v9287_v37, %v9285_v50  ;;  %v12930_v50 = vld [vmem:[#allocation15 + $0x1d0] sm:$0xff]  ;;  %v12933_v37 = vld [vmem:[#allocation15 + $0x1a8] sm:$0xff] }
0x1589   :  { %v4877_v0 = vrot.slane %v4875_v59, 4  ;;  %v12936_v59 = vld [vmem:[#allocation15 + $0x1b8] sm:$0xff] }
0x158b   :  { %4944 = vmatmul.mubr.f32.vlgmr.msra.gmra.mxu0 %v4877_v0  ;;  %5015 = vmatmul.mubr.f32.vlgmr.msra.gmra.mxu1 %v4877_v0  ;;  %v12939_v0 = vld [vmem:[#allocation15 + $0x1a0] sm:$0xff] }
0x158c   :  { %5068 = vmatpush1.msra.mxu0 %v12385_v51  ;;  %5139 = vmatpush1.msra.mxu1 %v12387_v34  ;;  %v14372_v51 = vld [vmem:[#allocation108_spill] sm:$0xff]  ;;  %v14373_v34 = vld [vmem:[#allocation111_spill] sm:$0xff] }
0x158d   :  { %5069 = vmatprep.subr.mxu0 %v12391_v63  ;;  %5140 = vmatprep.subr.mxu1 %v12393_v28  ;;  %v14374_v63 = vld [vmem:[#allocation97_spill] sm:$0xff]  ;;  %v14375_v28 = vld [vmem:[#allocation107_spill] sm:$0xff] }
0x158e   :  { %5070 = vmatpush1.msra.mxu0 %v12397_v49  ;;  %5141 = vmatpush1.msra.mxu1 %v12399_v57  ;;  %v14376_v49 = vld [vmem:[#allocation110_spill] sm:$0xff] }
0x158f   :  { %5071 = vmatprep.subr.mxu0 %v12403_v56  ;;  %5142 = vmatprep.subr.mxu1 %v12405_v5  ;;  %v14377_v57 = vld [vmem:[#allocation90_spill] sm:$0xff]  ;;  %v14378_v56 = vld [vmem:[#allocation91_spill] sm:$0xff]  ;;  %v14379_v5 = vld [vmem:[#allocation92_spill] sm:$0xff] }
0x1590   :  { %5072 = vmatpush1.msra.mxu0 %v12409_v30  ;;  %5143 = vmatpush1.msra.mxu1 %v12411_v52  ;;  %v14380_v30 = vld [vmem:[#allocation104_spill] sm:$0xff] }
0x1591   :  { %5073 = vmatprep.subr.mxu0 %v12415_v48  ;;  %5144 = vmatprep.subr.mxu1 %v12417_v46  ;;  %v14381_v52 = vld [vmem:[#allocation112_spill] sm:$0xff]  ;;  %v14382_v48 = vld [vmem:[#allocation75_spill] sm:$0xff] }
0x1592   :  { %5074 = vmatpush1.msra.mxu0 %v12419_v7  ;;  %5145 = vmatpush1.msra.mxu1 %v12423_v58  ;;  %v14383_v46 = vld [vmem:[#allocation76_spill] sm:$0xff]  ;;  %v14384_v7 = vld [vmem:[#allocation102_spill] sm:$0xff]  ;;  %v14385_v58 = vld [vmem:[#allocation103_spill] sm:$0xff] }
0x1593   :  { %5075 = vmatprep.subr.mxu0 %v12425_v1  ;;  %5146 = vmatprep.subr.mxu1 %v12427_v3  ;;  %v14386_v1 = vld [vmem:[#allocation106_spill] sm:$0xff]  ;;  %v14387_v3 = vld [vmem:[#allocation77_spill] sm:$0xff] }
0x1594   :  { %5076 = vmatpush1.msra.mxu0 %v12431_v54  ;;  %5147 = vmatpush1.msra.mxu1 %v12433_v8  ;;  %v14388_v54 = vld [vmem:[#allocation78_spill] sm:$0xff]  ;;  %v14389_v8 = vld [vmem:[#allocation79_spill] sm:$0xff] }
0x1595   :  { %5077 = vmatprep.subr.mxu0 %v12435_v9  ;;  %5148 = vmatprep.subr.mxu1 %v12439_v47  ;;  %v14390_v9 = vld [vmem:[#allocation80_spill] sm:$0xff]  ;;  %v14391_v47 = vmov 0.0  }
0x1596   :  { %5078 = vmatpush1.msra.mxu0 %v12441_v12  ;;  %5149 = vmatpush1.msra.mxu1 %v12443_v15  ;;  %v14392_v12 = vld [vmem:[#allocation81_spill] sm:$0xff]  ;;  %v12901_v15 = vld [vmem:[#allocation15 + $0x1e8] sm:$0xff] }
0x1597   :  { %5079 = vmatprep.subr.mxu0 %v12447_v16  ;;  %5150 = vmatprep.subr.mxu1 %v12449_v17  ;;  %14393 = vst [vmem:[#allocation96_spill] sm:$0xff] %v12901_v15  ;;  %v12904_v16 = vld [vmem:[#allocation15 + $0x1f8] sm:$0xff] }
0x1598   :  { %5080 = vmatpush1.msra.mxu0 %v12453_v18  ;;  %5151 = vmatpush1.msra.mxu1 %v12455_v19  ;;  %14394 = vst [vmem:[#allocation109_spill] sm:$0xff] %v12904_v16 }
0x1599   :  { %5081 = vmatprep.subr.mxu0 %v12459_v20  ;;  %5152 = vmatprep.subr.mxu1 %v12461_v22 }
0x159a   :  { %5082 = vmatpush1.msra.mxu0 %v12465_v23  ;;  %5153 = vmatpush1.msra.mxu1 %v12467_v24 }
0x159b   :  { %5083 = vmatprep.subr.mxu0 %v12471_v25  ;;  %5154 = vmatprep.subr.mxu1 %v12473_v26 }
0x159c   :  { %5084 = vmatpush1.msra.mxu0 %v12477_v27  ;;  %5155 = vmatpush1.msra.mxu1 %v12479_v29 }
0x159d   :  { %5085 = vmatprep.subr.mxu0 %v12483_v32  ;;  %5156 = vmatprep.subr.mxu1 %v12485_v60 }
0x159e   :  { %5086 = vmatpush1.msra.mxu0 %v12489_v44  ;;  %5157 = vmatpush1.msra.mxu1 %v12491_v6 }
0x159f   :  { %5087 = vmatprep.subr.mxu0 %v12495_v36  ;;  %5158 = vmatprep.subr.mxu1 %v12497_v13 }
0x15a0   :  { %5088 = vmatpush1.msra.mxu0 %v14289_v45  ;;  %5159 = vmatpush1.msra.mxu1 %v14290_v21 }
0x15a1   :  { %5089 = vmatprep.subr.mxu0 %v14372_v51  ;;  %5160 = vmatprep.subr.mxu1 %v14373_v34  ;;  %v12942_v51 = vld [vmem:[#allocation15 + $0x1b0] sm:$0xff]  ;;  %v12945_v34 = vld [vmem:[#allocation15 + $0x188] sm:$0xff] }
0x15a2   :  { %5090 = vmatpush1.msra.mxu0 %v14374_v63  ;;  %5161 = vmatpush1.msra.mxu1 %v14375_v28  ;;  %v12948_v63 = vld [vmem:[#allocation15 + $0x198] sm:$0xff]  ;;  %v12951_v28 = vld [vmem:[#allocation15 + $0x180] sm:$0xff] }
0x15a3   :  { %5091 = vmatprep.subr.mxu0 %v14376_v49  ;;  %5162 = vmatprep.subr.mxu1 %v14377_v57  ;;  %v12954_v49 = vld [vmem:[#allocation15 + $0x190] sm:$0xff]  ;;  %v12957_v57 = vld [vmem:[#allocation15 + $0x168] sm:$0xff] }
0x15a4   :  { %5092 = vmatpush1.msra.mxu0 %v14378_v56  ;;  %5163 = vmatpush1.msra.mxu1 %v14379_v5  ;;  %v12960_v56 = vld [vmem:[#allocation15 + $0x178] sm:$0xff]  ;;  %v12963_v5 = vld [vmem:[#allocation15 + $0x160] sm:$0xff] }
0x15a5   :  { %5093 = vmatprep.subr.mxu0 %v14380_v30  ;;  %5164 = vmatprep.subr.mxu1 %v14381_v52  ;;  %v12966_v30 = vld [vmem:[#allocation15 + $0x170] sm:$0xff]  ;;  %v12969_v52 = vld [vmem:[#allocation15 + $0x148] sm:$0xff] }
0x15a6   :  { %5094 = vmatpush1.msra.mxu0 %v14382_v48  ;;  %5165 = vmatpush1.msra.mxu1 %v14383_v46  ;;  %v12972_v48 = vld [vmem:[#allocation15 + $0x158] sm:$0xff]  ;;  %v12975_v46 = vld [vmem:[#allocation15 + $0x140] sm:$0xff] }
0x15a7   :  { %5095 = vmatprep.subr.mxu0 %v14384_v7  ;;  %5166 = vmatprep.subr.mxu1 %v14385_v58  ;;  %v12978_v7 = vld [vmem:[#allocation15 + $0x150] sm:$0xff]  ;;  %v12981_v58 = vld [vmem:[#allocation15 + $0x128] sm:$0xff] }
0x15a8   :  { %5096 = vmatpush1.msra.mxu0 %v14386_v1  ;;  %5167 = vmatpush1.msra.mxu1 %v14387_v3  ;;  %v12984_v1 = vld [vmem:[#allocation15 + $0x138] sm:$0xff]  ;;  %v12987_v3 = vld [vmem:[#allocation15 + $0x120] sm:$0xff] }
0x15a9   :  { %5097 = vmatprep.subr.mxu0 %v14388_v54  ;;  %5168 = vmatprep.subr.mxu1 %v14389_v8  ;;  %v12990_v54 = vld [vmem:[#allocation15 + $0x130] sm:$0xff]  ;;  %v12993_v8 = vld [vmem:[#allocation15 + $0x108] sm:$0xff] }
0x15aa   :  { %5098 = vmatpush1.msra.mxu0 %v14390_v9  ;;  %5131 = vmatprep.mubr.f32.mxu0 %v14391_v47  ;;  %v12996_v9 = vld [vmem:[#allocation15 + $0x118] sm:$0xff] }
0x15ab   :  { %5169 = vmatpush1.msra.mxu1 %v14392_v12  ;;  %5202 = vmatprep.mubr.f32.mxu1 %v14391_v47  ;;  %v12999_v12 = vld [vmem:[#allocation15 + $0x100] sm:$0xff] }
0x15ac   :  { %5240 = vmatprep.subr.mxu0 %v12901_v15  ;;  %5311 = vmatprep.subr.mxu1 %v12904_v16 }
0x164b   :  { %v4945_v17 = vpop.f32.mrf.mxu0  ;;  %v5016_v22 = vpop.f32.mrf.mxu1 }
0x164c   :  { %v5025_v18 = vrot.slane %v4945_v17, 2  ;;  %v5027_v60 = vrot.slane %v5016_v22, 2  ;;  %v13002_v17 = vld [vmem:[#allocation15 + $0x110] sm:$0xff] }
0x164d   :  { %v4947_v19 = vpop.f32.mrf.mxu0  ;;  %v5018_v27 = vpop.f32.mrf.mxu1  ;;  %v13014_v22 = vld [vmem:[#allocation15 + $0xf0] sm:$0xff] }
0x164e   :  { %v5033_v20 = vadd.f32 %v5025_v18, %v12663_v40  ;;  %v5026_v23 = vrot.slane %v4947_v19, 2  ;;  %v5028_v29 = vrot.slane %v5018_v27, 2  ;;  %v5035_v36 = vadd.f32 %v5027_v60, %v12683_v43  ;;  %v13005_v18 = vld [vmem:[#allocation15 + $0xe8] sm:$0xff]  ;;  %v13008_v19 = vld [vmem:[#allocation15 + $0xf8] sm:$0xff]  ;;  %v13038_v60 = vld [vmem:[#allocation15 + $0xb0] sm:$0xff] }
0x164f   :  { %v13029_v27 = vld [vmem:[#allocation15 + $0xa8] sm:$0xff] }
0x1650   :  { %v8348_v24 = vmul.f32 -1.442695, %v5033_v20  ;;  %v5034_v25 = vadd.f32 %v5026_v23, %v14347_v62  ;;  %v5036_v32 = vadd.f32 %v5028_v29, %v14348_v10  ;;  %v13011_v20 = vld [vmem:[#allocation15 + $0xe0] sm:$0xff]  ;;  %v13017_v23 = vld [vmem:[#allocation15 + $0xc8] sm:$0xff]  ;;  %v13032_v29 = vld [vmem:[#allocation15 + $0xb8] sm:$0xff] }
0x1652   :  { %9288 = vpow2.f32 %v8348_v24  ;;  %v8349_v26 = vmul.f32 -1.442695, %v5034_v25  ;;  %v8350_v44 = vmul.f32 -1.442695, %v5036_v32  ;;  %v13020_v24 = vld [vmem:[#allocation15 + $0xd8] sm:$0xff]  ;;  %v13023_v25 = vld [vmem:[#allocation15 + $0xc0] sm:$0xff] }
0x1653   :  { %v13035_v32 = vld [vmem:[#allocation15 + $0xa0] sm:$0xff] }
0x1654   :  { %9290 = vpow2.f32 %v8349_v26  ;;  %v13026_v26 = vld [vmem:[#allocation15 + $0xd0] sm:$0xff] }
0x1655   :  { %9292 = vpow2.f32 %v8350_v44  ;;  %v13041_v44 = vld [vmem:[#allocation15 + $0x88] sm:$0xff] }
0x1656   :  { %14395 = vst [vmem:[#allocation87_spill] sm:$0xff] %v13041_v44 }
0x165f   :  { %v9289_v6 = vpop.eup %9288 }
0x1660   :  { %v5040_v13 = vadd.f32 1.0, %v9289_v6  ;;  %v13044_v6 = vld [vmem:[#allocation15 + $0x98] sm:$0xff] }
0x1661   :  { %v9291_v45 = vpop.eup %9290  ;;  %14396 = vst [vmem:[#allocation93_spill] sm:$0xff] %v13044_v6 }
0x1662   :  { %9294 = vrcp.f32 %v5040_v13  ;;  %v5046_v21 = vadd.f32 1.0, %v9291_v45  ;;  %v9293_v40 = vpop.eup %9292  ;;  %v13050_v13 = vld [vmem:[#allocation15 + $0x90] sm:$0xff]  ;;  %v13053_v45 = vld [vmem:[#allocation15 + $0x68] sm:$0xff] }
0x1663   :  { %9296 = vtanh.f32 %v5035_v36  ;;  %v5053_v42 = vadd.f32 1.0, %v9293_v40  ;;  %v13047_v36 = vld [vmem:[#allocation15 + $0x80] sm:$0xff]  ;;  %14398 = vst [vmem:[#allocation95_spill] sm:$0xff] %v13050_v13  ;;  %14399 = vst [vmem:[#allocation108_spill] sm:$0xff] %v13053_v45 }
0x1664   :  { %9298 = vrcp.f32 %v5046_v21  ;;  %14397 = vst [vmem:[#allocation94_spill] sm:$0xff] %v13047_v36  ;;  %v13056_v21 = vld [vmem:[#allocation15 + $0x78] sm:$0xff]  ;;  %v13059_v40 = vld [vmem:[#allocation15 + $0x60] sm:$0xff] }
0x1665   :  { %9300 = vrcp.f32 %v5053_v42  ;;  %14400 = vst [vmem:[#allocation111_spill] sm:$0xff] %v13056_v21  ;;  %14401 = vst [vmem:[#allocation97_spill] sm:$0xff] %v13059_v40  ;;  %v13074_v42 = vld [vmem:[#allocation15 + $0x50] sm:$0xff] }
0x1666   :  { %14406 = vst [vmem:[#allocation92_spill] sm:$0xff] %v13074_v42 }
0x166f   :  { %v9295_v62 = vpop.eup %9294 }
0x1670   :  { %v9297_v55 = vpop.eup %9296 }
0x1671   :  { %v9299_v53 = vpop.eup %9298  ;;  %v5060_v10 = vmul.f32 %v9297_v55, %v9295_v62  ;;  %v13062_v62 = vld [vmem:[#allocation15 + $0x70] sm:$0xff]  ;;  %v13065_v55 = vld [vmem:[#allocation15 + $0x48] sm:$0xff] }
0x1672   :  { %v5059_v31 = vmul.f32 %v9299_v53, %v5057_v11  ;;  %v9301_v43 = vpop.eup %9300  ;;  %14402 = vst [vmem:[#allocation107_spill] sm:$0xff] %v13062_v62  ;;  %14403 = vst [vmem:[#allocation110_spill] sm:$0xff] %v13065_v55  ;;  %v13068_v11 = vld [vmem:[#allocation15 + $0x58] sm:$0xff]  ;;  %v13071_v53 = vld [vmem:[#allocation15 + $0x40] sm:$0xff] }
0x1673   :  { %14404 = vst [vmem:[#allocation90_spill] sm:$0xff] %v13068_v11  ;;  %14405 = vst [vmem:[#allocation91_spill] sm:$0xff] %v13071_v53 }
0x1674   :  { %v12912_v41 = vadd.f32 %v5060_v10, %v5059_v31  ;;  %v13077_v10 = vld [vmem:[#allocation15 + $0x28] sm:$0xff]  ;;  %v13080_v31 = vld [vmem:[#allocation15 + $0x38] sm:$0xff] }
0x1675   :  { %14407 = vst [vmem:[#allocation104_spill] sm:$0xff] %v13077_v10  ;;  %14408 = vst [vmem:[#allocation112_spill] sm:$0xff] %v13080_v31 }
0x1676   :  { %9302 = vtanh.f32 %v12912_v41 }
0x1683   :  { %v9303_v33 = vpop.eup %9302 }
0x1684   :  { %v5063_v38 = vmul.f32 %v9303_v33, %v9301_v43  ;;  %v13083_v43 = vld [vmem:[#allocation15 + $0x20] sm:$0xff]  ;;  %v13086_v33 = vld [vmem:[#allocation15 + $0x30] sm:$0xff] }
0x1685   :  { %14409 = vst [vmem:[#allocation75_spill] sm:$0xff] %v13083_v43  ;;  %14410 = vst [vmem:[#allocation76_spill] sm:$0xff] %v13086_v33 }
0x1686   :  { %v5065_v39 = vrot.slane %v5063_v38, 6  ;;  %v13089_v38 = vld [vmem:[#allocation15 + $0x8] sm:$0xff] }
0x1687   :  { %14411 = vst [vmem:[#allocation102_spill] sm:$0xff] %v13089_v38 }
0x1688   :  { %5132 = vmatmul.mubr.f32.vlgmr.msra.gmra.mxu0 %v5065_v39  ;;  %5203 = vmatmul.mubr.f32.vlgmr.msra.gmra.mxu1 %v5065_v39  ;;  %v13092_v39 = vld [vmem:[#allocation15 + $0x18] sm:$0xff] }
0x1689   :  { %5241 = vmatpush1.msra.mxu0 %v12915_v35  ;;  %5312 = vmatpush1.msra.mxu1 %v12918_v61  ;;  %14412 = vst [vmem:[#allocation103_spill] sm:$0xff] %v13092_v39 }
0x168a   :  { %5242 = vmatprep.subr.mxu0 %v12921_v4  ;;  %5313 = vmatprep.subr.mxu1 %v12924_v14 }
0x168b   :  { %5243 = vmatpush1.msra.mxu0 %v12927_v2  ;;  %5314 = vmatpush1.msra.mxu1 %v12930_v50 }
0x168c   :  { %5244 = vmatprep.subr.mxu0 %v12933_v37  ;;  %5315 = vmatprep.subr.mxu1 %v12936_v59 }
0x168d   :  { %5245 = vmatpush1.msra.mxu0 %v12939_v0  ;;  %5316 = vmatpush1.msra.mxu1 %v12942_v51 }
0x168e   :  { %5246 = vmatprep.subr.mxu0 %v12945_v34  ;;  %5317 = vmatprep.subr.mxu1 %v12948_v63 }
0x168f   :  { %5247 = vmatpush1.msra.mxu0 %v12951_v28  ;;  %5318 = vmatpush1.msra.mxu1 %v12954_v49 }
0x1690   :  { %5248 = vmatprep.subr.mxu0 %v12957_v57  ;;  %5319 = vmatprep.subr.mxu1 %v12960_v56 }
0x1691   :  { %5249 = vmatpush1.msra.mxu0 %v12963_v5  ;;  %5320 = vmatpush1.msra.mxu1 %v12966_v30 }
0x1692   :  { %5250 = vmatprep.subr.mxu0 %v12969_v52  ;;  %5321 = vmatprep.subr.mxu1 %v12972_v48 }
0x1693   :  { %5251 = vmatpush1.msra.mxu0 %v12975_v46  ;;  %5322 = vmatpush1.msra.mxu1 %v12978_v7 }
0x1694   :  { %5252 = vmatprep.subr.mxu0 %v12981_v58  ;;  %5323 = vmatprep.subr.mxu1 %v12984_v1 }
0x1695   :  { %5253 = vmatpush1.msra.mxu0 %v12987_v3  ;;  %5324 = vmatpush1.msra.mxu1 %v12990_v54 }
0x1696   :  { %5254 = vmatprep.subr.mxu0 %v12993_v8  ;;  %5325 = vmatprep.subr.mxu1 %v12996_v9 }
0x1697   :  { %5255 = vmatpush1.msra.mxu0 %v12999_v12  ;;  %5326 = vmatpush1.msra.mxu1 %v13002_v17 }
0x1698   :  { %5256 = vmatprep.subr.mxu0 %v13005_v18  ;;  %5327 = vmatprep.subr.mxu1 %v13008_v19 }
0x1699   :  { %5257 = vmatpush1.msra.mxu0 %v13011_v20  ;;  %5328 = vmatpush1.msra.mxu1 %v13014_v22 }
0x169a   :  { %5258 = vmatprep.subr.mxu0 %v13017_v23  ;;  %5329 = vmatprep.subr.mxu1 %v13020_v24 }
0x169b   :  { %5259 = vmatpush1.msra.mxu0 %v13023_v25  ;;  %5330 = vmatpush1.msra.mxu1 %v13026_v26 }
0x169c   :  { %5260 = vmatprep.subr.mxu0 %v13029_v27  ;;  %5331 = vmatprep.subr.mxu1 %v13032_v29 }
0x169d   :  { %5261 = vmatpush1.msra.mxu0 %v13035_v32  ;;  %5332 = vmatpush1.msra.mxu1 %v13038_v60 }
0x169e   :  { %5262 = vmatprep.subr.mxu0 %v13041_v44  ;;  %5333 = vmatprep.subr.mxu1 %v13044_v6 }
0x169f   :  { %5263 = vmatpush1.msra.mxu0 %v13047_v36  ;;  %5334 = vmatpush1.msra.mxu1 %v13050_v13 }
0x16a0   :  { %5264 = vmatprep.subr.mxu0 %v13053_v45  ;;  %5335 = vmatprep.subr.mxu1 %v13056_v21  ;;  %v14422_v21 = vld [vmem:[#allocation88_spill] sm:$0xff]  ;;  %v14424_v45 = vld [vmem:[#allocation105_spill] sm:$0xff] }
0x16a1   :  { %5265 = vmatpush1.msra.mxu0 %v13059_v40  ;;  %5336 = vmatpush1.msra.mxu1 %v13062_v62  ;;  %v14421_v40 = vld [vmem:[#allocation89_spill] sm:$0xff] }
0x16a2   :  { %5266 = vmatprep.subr.mxu0 %v13065_v55  ;;  %5337 = vmatprep.subr.mxu1 %v13068_v11 }
0x16a3   :  { %5267 = vmatpush1.msra.mxu0 %v13071_v53  ;;  %5338 = vmatpush1.msra.mxu1 %v13074_v42  ;;  %v14418_v42 = vld [vmem:[#allocation84_spill] sm:$0xff]  ;;  %v14419_v53 = vld [vmem:[#allocation86_spill] sm:$0xff] }
0x16a4   :  { %5268 = vmatprep.subr.mxu0 %v13077_v10  ;;  %5339 = vmatprep.subr.mxu1 %v13080_v31  ;;  %v13095_v10 = vld [vmem:[#allocation15] sm:$0xff]  ;;  %v13099_v31 = vld [vmem:[#allocation15 + $0x10] sm:$0xff] }
0x16a5   :  { %5269 = vmatpush1.msra.mxu0 %v13083_v43  ;;  %5340 = vmatpush1.msra.mxu1 %v13086_v33  ;;  %14413 = vst [vmem:[#allocation106_spill] sm:$0xff] %v13095_v10  ;;  %14414 = vst [vmem:[#allocation77_spill] sm:$0xff] %v13099_v31  ;;  %v14416_v33 = vld [vmem:[#allocation83_spill] sm:$0xff] }
0x16a6   :  { %5270 = vmatprep.subr.mxu0 %v13089_v38  ;;  %5341 = vmatprep.subr.mxu1 %v13092_v39  ;;  %v14415_v38 = vld [vmem:[#allocation82_spill] sm:$0xff] }
0x16a7   :  { %5271 = vmatpush1.msra.mxu0 %v13095_v10  ;;  %5304 = vmatprep.mubr.f32.mxu0 %v14391_v47  ;;  %v13107_v43 = vadd.f32 %v14416_v33, %v14415_v38  ;;  %v13111_v10 = vadd.f32 %v14419_v53, %v14418_v42  ;;  %v13117_v33 = vadd.f32 %v14422_v21, %v14421_v40  ;;  %v14425_v53 = vld [vmem:[#allocation85_spill] sm:$0xff] }
0x16a8   :  { %5342 = vmatpush1.msra.mxu1 %v13099_v31  ;;  %5375 = vmatprep.mubr.f32.mxu1 %v14391_v47  ;;  %v13122_v42 = vadd.f32 %v14425_v53, %v14424_v45 }
0x16a9   :  { %5428 = vmatprep.subr.mxu0 %v12901_v15  ;;  %5499 = vmatprep.subr.mxu1 %v12904_v16  ;;  %14417 = vst [vmem:[#allocation78_spill] sm:$0xff] %v13107_v43  ;;  %14420 = vst [vmem:[#allocation79_spill] sm:$0xff] %v13111_v10 }
0x16aa   :  { %14423 = vst [vmem:[#allocation80_spill] sm:$0xff] %v13117_v33 }
0x1748   :  { %v5133_v39 = vpop.f32.mrf.mxu0  ;;  %v5204_v47 = vpop.f32.mrf.mxu1 }
0x1749   :  { %v5209_v11 = vadd.f32 %v5133_v39, %v13107_v43 }
0x174a   :  { %v5135_v55 = vpop.f32.mrf.mxu0  ;;  %v5206_v16 = vpop.f32.mrf.mxu1 }
0x174b   :  { %v8351_v62 = vmul.f32 -1.442695, %v5209_v11  ;;  %v5210_v31 = vadd.f32 %v5135_v55, %v13111_v10  ;;  %v5212_v38 = vadd.f32 %v5206_v16, %v13117_v33  ;;  %v5211_v11 = vadd.f32 %v5204_v47, %v13122_v42 }
0x174c   :  { %v5233_v16 = vrot.slane %v12912_v41, 6  ;;  %v14426_v41 = vld [vmem:[#allocation108_spill] sm:$0xff] }
0x174d   :  { %9304 = vpow2.f32 %v8351_v62  ;;  %v8352_v15 = vmul.f32 -1.442695, %v5210_v31  ;;  %v8353_v39 = vmul.f32 -1.442695, %v5212_v38 }
0x174f   :  { %9306 = vpow2.f32 %v8352_v15 }
0x1750   :  { %9308 = vpow2.f32 %v8353_v39 }
0x175a   :  { %v9305_v43 = vpop.eup %9304 }
0x175b   :  { %v5216_v55 = vadd.f32 1.0, %v9305_v43 }
0x175c   :  { %v9307_v62 = vpop.eup %9306 }
0x175d   :  { %9310 = vrcp.f32 %v5216_v55  ;;  %v5222_v15 = vadd.f32 1.0, %v9307_v62  ;;  %v9309_v31 = vpop.eup %9308  ;;  %v14430_v55 = vld [vmem:[#allocation110_spill] sm:$0xff] }
0x175e   :  { %9312 = vtanh.f32 %v5211_v11  ;;  %v5229_v10 = vadd.f32 1.0, %v9309_v31  ;;  %v14429_v11 = vld [vmem:[#allocation107_spill] sm:$0xff]  ;;  %v14431_v62 = vld [vmem:[#allocation90_spill] sm:$0xff]  ;;  %v14433_v31 = vld [vmem:[#allocation92_spill] sm:$0xff] }
0x175f   :  { %9314 = vrcp.f32 %v5222_v15  ;;  %v14432_v15 = vld [vmem:[#allocation91_spill] sm:$0xff] }
0x1760   :  { %9316 = vrcp.f32 %v5229_v10  ;;  %v14427_v10 = vld [vmem:[#allocation111_spill] sm:$0xff] }
0x176a   :  { %v9311_v21 = vpop.eup %9310 }
0x176b   :  { %v9313_v40 = vpop.eup %9312 }
0x176c   :  { %v9315_v33 = vpop.eup %9314  ;;  %v5236_v45 = vmul.f32 %v9313_v40, %v9311_v21  ;;  %v14434_v21 = vld [vmem:[#allocation104_spill] sm:$0xff] }
0x176d   :  { %v5235_v53 = vmul.f32 %v9315_v33, %v5233_v16  ;;  %v9317_v47 = vpop.eup %9316  ;;  %v14428_v33 = vld [vmem:[#allocation97_spill] sm:$0xff]  ;;  %v14435_v40 = vld [vmem:[#allocation112_spill] sm:$0xff]  ;;  %v14436_v16 = vld [vmem:[#allocation75_spill] sm:$0xff] }
0x176f   :  { %v13126_v38 = vadd.f32 %v5236_v45, %v5235_v53  ;;  %v14437_v45 = vld [vmem:[#allocation76_spill] sm:$0xff]  ;;  %v14438_v53 = vld [vmem:[#allocation102_spill] sm:$0xff] }
0x1771   :  { %9318 = vtanh.f32 %v13126_v38 }
0x177e   :  { %v9319_v43 = vpop.eup %9318 }
0x177f   :  { %v5239_v39 = vmul.f32 %v9319_v43, %v9317_v47  ;;  %v14439_v47 = vld [vmem:[#allocation103_spill] sm:$0xff]  ;;  %v14440_v43 = vld [vmem:[#allocation106_spill] sm:$0xff] }
0x1781   :  { %5305 = vmatmul.mubr.f32.vlgmr.msra.gmra.mxu0 %v5239_v39  ;;  %5376 = vmatmul.mubr.f32.vlgmr.msra.gmra.mxu1 %v5239_v39  ;;  %v14441_v39 = vmov 0.0  }
0x1782   :  { %5429 = vmatpush1.msra.mxu0 %v12915_v35  ;;  %5500 = vmatpush1.msra.mxu1 %v12918_v61 }
0x1783   :  { %5430 = vmatprep.subr.mxu0 %v12921_v4  ;;  %5501 = vmatprep.subr.mxu1 %v12924_v14 }
0x1784   :  { %5431 = vmatpush1.msra.mxu0 %v12927_v2  ;;  %5502 = vmatpush1.msra.mxu1 %v12930_v50 }
0x1785   :  { %5432 = vmatprep.subr.mxu0 %v12933_v37  ;;  %5503 = vmatprep.subr.mxu1 %v12936_v59 }
0x1786   :  { %5433 = vmatpush1.msra.mxu0 %v12939_v0  ;;  %5504 = vmatpush1.msra.mxu1 %v12942_v51 }
0x1787   :  { %5434 = vmatprep.subr.mxu0 %v12945_v34  ;;  %5505 = vmatprep.subr.mxu1 %v12948_v63 }
0x1788   :  { %5435 = vmatpush1.msra.mxu0 %v12951_v28  ;;  %5506 = vmatpush1.msra.mxu1 %v12954_v49 }
0x1789   :  { %5436 = vmatprep.subr.mxu0 %v12957_v57  ;;  %5507 = vmatprep.subr.mxu1 %v12960_v56 }
0x178a   :  { %5437 = vmatpush1.msra.mxu0 %v12963_v5  ;;  %5508 = vmatpush1.msra.mxu1 %v12966_v30 }
0x178b   :  { %5438 = vmatprep.subr.mxu0 %v12969_v52  ;;  %5509 = vmatprep.subr.mxu1 %v12972_v48 }
0x178c   :  { %5439 = vmatpush1.msra.mxu0 %v12975_v46  ;;  %5510 = vmatpush1.msra.mxu1 %v12978_v7 }
0x178d   :  { %5440 = vmatprep.subr.mxu0 %v12981_v58  ;;  %5511 = vmatprep.subr.mxu1 %v12984_v1 }
0x178e   :  { %5441 = vmatpush1.msra.mxu0 %v12987_v3  ;;  %5512 = vmatpush1.msra.mxu1 %v12990_v54 }
0x178f   :  { %5442 = vmatprep.subr.mxu0 %v12993_v8  ;;  %5513 = vmatprep.subr.mxu1 %v12996_v9 }
0x1790   :  { %5443 = vmatpush1.msra.mxu0 %v12999_v12  ;;  %5514 = vmatpush1.msra.mxu1 %v13002_v17 }
0x1791   :  { %5444 = vmatprep.subr.mxu0 %v13005_v18  ;;  %5515 = vmatprep.subr.mxu1 %v13008_v19 }
0x1792   :  { %5445 = vmatpush1.msra.mxu0 %v13011_v20  ;;  %5516 = vmatpush1.msra.mxu1 %v13014_v22 }
0x1793   :  { %5446 = vmatprep.subr.mxu0 %v13017_v23  ;;  %5517 = vmatprep.subr.mxu1 %v13020_v24 }
0x1794   :  { %5447 = vmatpush1.msra.mxu0 %v13023_v25  ;;  %5518 = vmatpush1.msra.mxu1 %v13026_v26 }
0x1795   :  { %5448 = vmatprep.subr.mxu0 %v13029_v27  ;;  %5519 = vmatprep.subr.mxu1 %v13032_v29 }
0x1796   :  { %5449 = vmatpush1.msra.mxu0 %v13035_v32  ;;  %5520 = vmatpush1.msra.mxu1 %v13038_v60 }
0x1797   :  { %5450 = vmatprep.subr.mxu0 %v13041_v44  ;;  %5521 = vmatprep.subr.mxu1 %v13044_v6 }
0x1798   :  { %5451 = vmatpush1.msra.mxu0 %v13047_v36  ;;  %5522 = vmatpush1.msra.mxu1 %v13050_v13 }
0x1799   :  { %5452 = vmatprep.subr.mxu0 %v14426_v41  ;;  %5523 = vmatprep.subr.mxu1 %v14427_v10 }
0x179a   :  { %5453 = vmatpush1.msra.mxu0 %v14428_v33  ;;  %5524 = vmatpush1.msra.mxu1 %v14429_v11  ;;  %v14446_v33 = vld [vmem:[#allocation79_spill] sm:$0xff] }
0x179b   :  { %5454 = vmatprep.subr.mxu0 %v14430_v55  ;;  %5525 = vmatprep.subr.mxu1 %v14431_v62  ;;  %v14442_v62 = vld [vmem:[#allocation77_spill] sm:$0xff] }
0x179c   :  { %5455 = vmatpush1.msra.mxu0 %v14432_v15  ;;  %5526 = vmatpush1.msra.mxu1 %v14433_v31  ;;  %v14443_v31 = vld [vmem:[#allocation96_spill] sm:$0xff] }
0x179d   :  { %5456 = vmatprep.subr.mxu0 %v14434_v21  ;;  %5527 = vmatprep.subr.mxu1 %v14435_v40  ;;  %v14444_v21 = vld [vmem:[#allocation109_spill] sm:$0xff] }
0x179e   :  { %5457 = vmatpush1.msra.mxu0 %v14436_v16  ;;  %5528 = vmatpush1.msra.mxu1 %v14437_v45  ;;  %v14445_v45 = vld [vmem:[#allocation78_spill] sm:$0xff] }
0x179f   :  { %5458 = vmatprep.subr.mxu0 %v14438_v53  ;;  %5529 = vmatprep.subr.mxu1 %v14439_v47 }
0x17a0   :  { %5459 = vmatpush1.msra.mxu0 %v14440_v43  ;;  %5492 = vmatprep.mubr.f32.mxu0 %v14441_v39 }
0x17a1   :  { %5530 = vmatpush1.msra.mxu1 %v14442_v62  ;;  %5563 = vmatprep.mubr.f32.mxu1 %v14441_v39  ;;  %v14447_v39 = vld [vmem:[#allocation80_spill] sm:$0xff] }
0x17a2   :  { %5616 = vmatprep.subr.mxu0 %v14443_v31  ;;  %5687 = vmatprep.subr.mxu1 %v14444_v21 }
0x1841   :  { %v5306_v40 = vpop.f32.mrf.mxu0  ;;  %v5377_v53 = vpop.f32.mrf.mxu1 }
0x1842   :  { %v5386_v16 = vrot.slane %v5306_v40, 6  ;;  %v5388_v31 = vrot.slane %v5377_v53, 6 }
0x1843   :  { %v5308_v15 = vpop.f32.mrf.mxu0  ;;  %v5379_v41 = vpop.f32.mrf.mxu1 }
0x1844   :  { %v5394_v55 = vadd.f32 %v5386_v16, %v14445_v45  ;;  %v5387_v11 = vrot.slane %v5308_v15, 6  ;;  %v5389_v62 = vrot.slane %v5379_v41, 6  ;;  %v5396_v40 = vadd.f32 %v5388_v31, %v13122_v42 }
0x1846   :  { %v8354_v47 = vmul.f32 -1.442695, %v5394_v55  ;;  %v5395_v43 = vadd.f32 %v5387_v11, %v14446_v33  ;;  %v5397_v13 = vadd.f32 %v5389_v62, %v14447_v39 }
0x1848   :  { %9320 = vpow2.f32 %v8354_v47  ;;  %v8355_v10 = vmul.f32 -1.442695, %v5395_v43  ;;  %v8356_v36 = vmul.f32 -1.442695, %v5397_v13 }
0x184a   :  { %9322 = vpow2.f32 %v8355_v10  ;;  %v5418_v10 = vrot.slane %v13126_v38, 6 }
0x184b   :  { %9324 = vpow2.f32 %v8356_v36 }
0x1855   :  { %v9321_v21 = vpop.eup %9320 }
0x1856   :  { %v5401_v6 = vadd.f32 1.0, %v9321_v21 }
0x1857   :  { %v9323_v44 = vpop.eup %9322 }
0x1858   :  { %9326 = vrcp.f32 %v5401_v6  ;;  %v5407_v15 = vadd.f32 1.0, %v9323_v44  ;;  %v9325_v11 = vpop.eup %9324 }
0x1859   :  { %9328 = vtanh.f32 %v5396_v40  ;;  %v5414_v47 = vadd.f32 1.0, %v9325_v11 }
0x185a   :  { %9330 = vrcp.f32 %v5407_v15 }
0x185b   :  { %9332 = vrcp.f32 %v5414_v47  ;;  %v5798_v47 = vld [vmem:[#allocation18 + $0x48] sm:$0x1] }
0x1865   :  { %v9327_v55 = vpop.eup %9326 }
0x1866   :  { %v9329_v16 = vpop.eup %9328 }
0x1867   :  { %v9331_v41 = vpop.eup %9330  ;;  %v5421_v62 = vmul.f32 %v9329_v16, %v9327_v55 }
0x1868   :  { %v5420_v53 = vmul.f32 %v9331_v41, %v5418_v10  ;;  %v9333_v43 = vpop.eup %9332 }
0x186a   :  { %v13200_v13 = vadd.f32 %v5421_v62, %v5420_v53  ;;  %v5797_v62 = vld [vmem:[#allocation18 + $0x40] sm:$0xff]  ;;  %v5796_v53 = vld [vmem:[#allocation18 + $0x38] sm:$0xff] }
0x186c   :  { %9334 = vtanh.f32 %v13200_v13  ;;  %v5606_v31 = vrot.slane %v13200_v13, 6  ;;  %v5795_v13 = vld [vmem:[#allocation18 + $0x30] sm:$0xff] }
0x1879   :  { %v9335_v36 = vpop.eup %9334 }
0x187a   :  { %v5424_v6 = vmul.f32 %v9335_v36, %v9333_v43  ;;  %v5794_v43 = vld [vmem:[#allocation18 + $0x28] sm:$0xff]  ;;  %v5793_v36 = vld [vmem:[#allocation18 + $0x20] sm:$0xff] }
0x187c   :  { %v5426_v44 = vrot.slane %v5424_v6, 2  ;;  %v5792_v6 = vld [vmem:[#allocation18 + $0x18] sm:$0xff] }
0x187e   :  { %5493 = vmatmul.mubr.f32.vlgmr.msra.gmra.mxu0 %v5426_v44  ;;  %5564 = vmatmul.mubr.f32.vlgmr.msra.gmra.mxu1 %v5426_v44  ;;  %v5791_v44 = vld [vmem:[#allocation18 + $0x10] sm:$0xff] }
0x187f   :  { %5617 = vmatpush1.msra.mxu0 %v12915_v35  ;;  %5688 = vmatpush1.msra.mxu1 %v12918_v61  ;;  %v14448_v35 = vld [vmem:[#allocation87_spill] sm:$0xff]  ;;  %v14449_v61 = vld [vmem:[#allocation93_spill] sm:$0xff] }
0x1880   :  { %5618 = vmatprep.subr.mxu0 %v12921_v4  ;;  %5689 = vmatprep.subr.mxu1 %v12924_v14  ;;  %v14450_v4 = vld [vmem:[#allocation94_spill] sm:$0xff]  ;;  %v14451_v14 = vld [vmem:[#allocation95_spill] sm:$0xff] }
0x1881   :  { %5619 = vmatpush1.msra.mxu0 %v12927_v2  ;;  %5690 = vmatpush1.msra.mxu1 %v12930_v50  ;;  %v14452_v2 = vld [vmem:[#allocation108_spill] sm:$0xff]  ;;  %v14453_v50 = vld [vmem:[#allocation111_spill] sm:$0xff] }
0x1882   :  { %5620 = vmatprep.subr.mxu0 %v12933_v37  ;;  %5691 = vmatprep.subr.mxu1 %v12936_v59  ;;  %v14454_v37 = vld [vmem:[#allocation97_spill] sm:$0xff]  ;;  %v14455_v59 = vld [vmem:[#allocation107_spill] sm:$0xff] }
0x1883   :  { %5621 = vmatpush1.msra.mxu0 %v12939_v0  ;;  %5692 = vmatpush1.msra.mxu1 %v12942_v51  ;;  %v14456_v0 = vld [vmem:[#allocation110_spill] sm:$0xff] }
0x1884   :  { %5622 = vmatprep.subr.mxu0 %v12945_v34  ;;  %5693 = vmatprep.subr.mxu1 %v12948_v63  ;;  %v14457_v51 = vld [vmem:[#allocation90_spill] sm:$0xff]  ;;  %v14458_v34 = vld [vmem:[#allocation91_spill] sm:$0xff]  ;;  %v14459_v63 = vld [vmem:[#allocation92_spill] sm:$0xff] }
0x1885   :  { %5623 = vmatpush1.msra.mxu0 %v12951_v28  ;;  %5694 = vmatpush1.msra.mxu1 %v12954_v49  ;;  %v14460_v28 = vld [vmem:[#allocation104_spill] sm:$0xff] }
0x1886   :  { %5624 = vmatprep.subr.mxu0 %v12957_v57  ;;  %5695 = vmatprep.subr.mxu1 %v12960_v56  ;;  %v14461_v49 = vld [vmem:[#allocation112_spill] sm:$0xff]  ;;  %v14462_v57 = vld [vmem:[#allocation75_spill] sm:$0xff] }
0x1887   :  { %5625 = vmatpush1.msra.mxu0 %v12963_v5  ;;  %5696 = vmatpush1.msra.mxu1 %v12966_v30  ;;  %v14463_v56 = vld [vmem:[#allocation76_spill] sm:$0xff]  ;;  %v14464_v5 = vld [vmem:[#allocation102_spill] sm:$0xff]  ;;  %v14465_v30 = vld [vmem:[#allocation103_spill] sm:$0xff] }
0x1888   :  { %5626 = vmatprep.subr.mxu0 %v12969_v52  ;;  %5697 = vmatprep.subr.mxu1 %v12972_v48  ;;  %v14466_v52 = vld [vmem:[#allocation106_spill] sm:$0xff]  ;;  %v14467_v48 = vmov 0.0  }
0x1889   :  { %5627 = vmatpush1.msra.mxu0 %v12975_v46  ;;  %5698 = vmatpush1.msra.mxu1 %v12978_v7  ;;  %v14468_v46 = vld [vmem:[#allocation77_spill] sm:$0xff] }
0x188a   :  { %5628 = vmatprep.subr.mxu0 %v12981_v58  ;;  %5699 = vmatprep.subr.mxu1 %v12984_v1 }
0x188b   :  { %5629 = vmatpush1.msra.mxu0 %v12987_v3  ;;  %5700 = vmatpush1.msra.mxu1 %v12990_v54 }
0x188c   :  { %5630 = vmatprep.subr.mxu0 %v12993_v8  ;;  %5701 = vmatprep.subr.mxu1 %v12996_v9 }
0x188d   :  { %5631 = vmatpush1.msra.mxu0 %v12999_v12  ;;  %5702 = vmatpush1.msra.mxu1 %v13002_v17 }
0x188e   :  { %5632 = vmatprep.subr.mxu0 %v13005_v18  ;;  %5703 = vmatprep.subr.mxu1 %v13008_v19 }
0x188f   :  { %5633 = vmatpush1.msra.mxu0 %v13011_v20  ;;  %5704 = vmatpush1.msra.mxu1 %v13014_v22 }
0x1890   :  { %5634 = vmatprep.subr.mxu0 %v13017_v23  ;;  %5705 = vmatprep.subr.mxu1 %v13020_v24 }
0x1891   :  { %5635 = vmatpush1.msra.mxu0 %v13023_v25  ;;  %5706 = vmatpush1.msra.mxu1 %v13026_v26 }
0x1892   :  { %5636 = vmatprep.subr.mxu0 %v13029_v27  ;;  %5707 = vmatprep.subr.mxu1 %v13032_v29 }
0x1893   :  { %5637 = vmatpush1.msra.mxu0 %v13035_v32  ;;  %5708 = vmatpush1.msra.mxu1 %v13038_v60 }
0x1894   :  { %5638 = vmatprep.subr.mxu0 %v14448_v35  ;;  %5709 = vmatprep.subr.mxu1 %v14449_v61  ;;  %v5790_v35 = vld [vmem:[#allocation18 + $0x8] sm:$0xff]  ;;  %v5789_v61 = vld [vmem:[#allocation18] sm:$0xff] }
0x1895   :  { %5639 = vmatpush1.msra.mxu0 %v14450_v4  ;;  %5710 = vmatpush1.msra.mxu1 %v14451_v14  ;;  %v5788_v4 = vld [vmem:[#allocation2] sm:$0x3]  ;;  %v5892_v14 = vld [vmem:[%s14469_s9 + $0x38] sm:$0xff] }
0x1896   :  { %5640 = vmatprep.subr.mxu0 %v14452_v2  ;;  %5711 = vmatprep.subr.mxu1 %v14453_v50  ;;  %v5891_v2 = vld [vmem:[%s14469_s9 + $0x30] sm:$0xff]  ;;  %v5890_v50 = vld [vmem:[%s14469_s9 + $0x28] sm:$0xff] }
0x1897   :  { %5641 = vmatpush1.msra.mxu0 %v14454_v37  ;;  %5712 = vmatpush1.msra.mxu1 %v14455_v59  ;;  %v5889_v37 = vld [vmem:[%s14469_s9 + $0x20] sm:$0xff]  ;;  %v5888_v59 = vld [vmem:[%s14469_s9 + $0x18] sm:$0xff] }
0x1898   :  { %5642 = vmatprep.subr.mxu0 %v14456_v0  ;;  %5713 = vmatprep.subr.mxu1 %v14457_v51  ;;  %v5887_v0 = vld [vmem:[%s14469_s9 + $0x10] sm:$0xff]  ;;  %v5886_v51 = vld [vmem:[%s14469_s9 + $0x8] sm:$0xff] }
0x1899   :  { %5643 = vmatpush1.msra.mxu0 %v14458_v34  ;;  %5714 = vmatpush1.msra.mxu1 %v14459_v63  ;;  %v5885_v34 = vld [vmem:[%s14469_s9] sm:$0xff] }
0x189a   :  { %5644 = vmatprep.subr.mxu0 %v14460_v28  ;;  %5715 = vmatprep.subr.mxu1 %v14461_v49  ;;  %v6089_v63 = vld [vmem:[#allocation25 + $0x78] sm:$0xff]  ;;  %v6088_v28 = vld [vmem:[#allocation25 + $0x70] sm:$0xff]  ;;  %v6087_v49 = vld [vmem:[#allocation25 + $0x68] sm:$0xff] }
0x189b   :  { %5645 = vmatpush1.msra.mxu0 %v14462_v57  ;;  %5716 = vmatpush1.msra.mxu1 %v14463_v56  ;;  %v6086_v57 = vld [vmem:[#allocation25 + $0x60] sm:$0xff]  ;;  %v6085_v56 = vld [vmem:[#allocation25 + $0x58] sm:$0xff] }
0x189c   :  { %5646 = vmatprep.subr.mxu0 %v14464_v5  ;;  %5717 = vmatprep.subr.mxu1 %v14465_v30  ;;  %v6084_v5 = vld [vmem:[#allocation25 + $0x50] sm:$0xff]  ;;  %v6083_v30 = vld [vmem:[#allocation25 + $0x48] sm:$0xff] }
0x189d   :  { %5647 = vmatpush1.msra.mxu0 %v14466_v52  ;;  %5680 = vmatprep.mubr.f32.mxu0 %v14467_v48  ;;  %v6082_v52 = vld [vmem:[#allocation25 + $0x40] sm:$0xff] }
0x189e   :  { %5718 = vmatpush1.msra.mxu1 %v14468_v46  ;;  %5751 = vmatprep.mubr.f32.mxu1 %v14467_v48  ;;  %v6081_v46 = vld [vmem:[#allocation25 + $0x38] sm:$0xff] }
0x189f   :  { %8650 = vmatprep.subr.mxu0 %v14467_v48  ;;  %8673 = vmatprep.subr.mxu1 %v14467_v48 }
0x193e   :  { %v5494_v7 = vpop.f32.mrf.mxu0  ;;  %v5565_v54 = vpop.f32.mrf.mxu1 }
0x193f   :  { %v5574_v58 = vrot.slane %v5494_v7, 4  ;;  %v5576_v22 = vrot.slane %v5565_v54, 4  ;;  %v6080_v7 = vld [vmem:[#allocation25 + $0x30] sm:$0xff] }
0x1940   :  { %v5496_v1 = vpop.f32.mrf.mxu0  ;;  %v5567_v18 = vpop.f32.mrf.mxu1 }
0x1941   :  { %v5582_v3 = vadd.f32 %v5574_v58, %v14445_v45  ;;  %v5575_v8 = vrot.slane %v5496_v1, 4  ;;  %v5577_v19 = vrot.slane %v5567_v18, 4  ;;  %v5584_v25 = vadd.f32 %v5576_v22, %v13122_v42  ;;  %v6079_v58 = vld [vmem:[#allocation25 + $0x28] sm:$0xff]  ;;  %v6078_v1 = vld [vmem:[#allocation25 + $0x20] sm:$0xff] }
0x1943   :  { %v8357_v9 = vmul.f32 -1.442695, %v5582_v3  ;;  %v5583_v12 = vadd.f32 %v5575_v8, %v14446_v33  ;;  %v5585_v20 = vadd.f32 %v5577_v19, %v14447_v39  ;;  %v6077_v3 = vld [vmem:[#allocation25 + $0x18] sm:$0xff] }
0x1945   :  { %9336 = vpow2.f32 %v8357_v9  ;;  %v8358_v17 = vmul.f32 -1.442695, %v5583_v12  ;;  %v8359_v23 = vmul.f32 -1.442695, %v5585_v20 }
0x1947   :  { %9338 = vpow2.f32 %v8358_v17 }
0x1948   :  { %9340 = vpow2.f32 %v8359_v23 }
0x1952   :  { %v9337_v24 = vpop.eup %9336 }
0x1953   :  { %v5589_v26 = vadd.f32 1.0, %v9337_v24 }
0x1954   :  { %v9339_v27 = vpop.eup %9338 }
0x1955   :  { %9342 = vrcp.f32 %v5589_v26  ;;  %v5595_v29 = vadd.f32 1.0, %v9339_v27  ;;  %v9341_v32 = vpop.eup %9340  ;;  %v8362_v26 = vld [vmem:[#allocation19] ss:$0 sm:$0xff] }
0x1956   :  { %9344 = vtanh.f32 %v5584_v25  ;;  %v5602_v40 = vadd.f32 1.0, %v9341_v32 }
0x1957   :  { %9346 = vrcp.f32 %v5595_v29 }
0x1958   :  { %9348 = vrcp.f32 %v5602_v40  ;;  %v5996_v40 = vld [vmem:[#allocation22 + $0x78] sm:$0xff] }
0x1962   :  { %v9343_v60 = vpop.eup %9342 }
0x1963   :  { %v9345_v38 = vpop.eup %9344 }
0x1964   :  { %v9347_v21 = vpop.eup %9346  ;;  %v5609_v39 = vmul.f32 %v9345_v38, %v9343_v60 }
0x1965   :  { %v5608_v15 = vmul.f32 %v9347_v21, %v5606_v31  ;;  %v9349_v55 = vpop.eup %9348 }
0x1967   :  { %v13274_v11 = vadd.f32 %v5609_v39, %v5608_v15  ;;  %v5993_v39 = vld [vmem:[#allocation22 + $0x60] sm:$0xff]  ;;  %v5992_v15 = vld [vmem:[#allocation22 + $0x58] sm:$0xff] }
0x1969   :  { %9350 = vtanh.f32 %v13274_v11 }
0x1976   :  { %v9351_v16 = vpop.eup %9350 }
0x1977   :  { %v5612_v10 = vmul.f32 %v9351_v16, %v9349_v55  ;;  %v5991_v55 = vld [vmem:[#allocation22 + $0x50] sm:$0xff] }
0x1979   :  { %v5614_v41 = vrot.slane %v5612_v10, 4  ;;  %v5990_v10 = vld [vmem:[#allocation22 + $0x48] sm:$0xff] }
0x197b   :  { %5681 = vmatmul.mubr.f32.vlgmr.msra.gmra.mxu0 %v5614_v41  ;;  %5752 = vmatmul.mubr.f32.vlgmr.msra.gmra.mxu1 %v5614_v41 }
0x197c   :  { %8651 = vmatpush3.msk.msra.mxu0 %vm5810_vm4, %v5798_v47  ;;  %8670 = vmatprep.mubr.msk.f32.mxu0 %vm10245_vm5, %v14467_v48  ;;  %v5989_v47 = vld [vmem:[#allocation22 + $0x40] sm:$0xff] }
0x197d   :  { %8652 = vmatprep.subr.mxu0 %v14467_v48  ;;  %8689 = vmatprep.mubr.msk.f32.mxu1 %vm10245_vm5, %v14467_v48 }
0x197e   :  { %8653 = vmatpush3.msra.mxu0 %v5797_v62  ;;  %8674 = vmatpush3.msra.mxu1 %v5892_v14  ;;  %v5783_v62 = vrot.slane %v13274_v11, 6  ;;  %v5985_v11 = vld [vmem:[#allocation22 + $0x20] sm:$0xff]  ;;  %v6076_v14 = vld [vmem:[#allocation25 + $0x10] sm:$0xff] }
0x197f   :  { %8654 = vmatprep.subr.mxu0 %v14467_v48  ;;  %8675 = vmatprep.subr.mxu1 %v14467_v48 }
0x1980   :  { %8655 = vmatpush3.msra.mxu0 %v5796_v53  ;;  %8676 = vmatpush3.msra.mxu1 %v5891_v2  ;;  %v5982_v2 = vld [vmem:[#allocation22 + $0x8] sm:$0xff] }
0x1981   :  { %8656 = vmatprep.subr.mxu0 %v14467_v48  ;;  %8677 = vmatprep.subr.mxu1 %v14467_v48 }
0x1982   :  { %8657 = vmatpush3.msra.mxu0 %v5795_v13  ;;  %8678 = vmatpush3.msra.mxu1 %v5890_v50  ;;  %v6075_v50 = vld [vmem:[#allocation25 + $0x8] sm:$0xff] }
0x1983   :  { %8658 = vmatprep.subr.mxu0 %v14467_v48  ;;  %8679 = vmatprep.subr.mxu1 %v14467_v48 }
0x1984   :  { %8659 = vmatpush3.msra.mxu0 %v5794_v43  ;;  %8680 = vmatpush3.msra.mxu1 %v5889_v37  ;;  %v5988_v43 = vld [vmem:[#allocation22 + $0x38] sm:$0xff]  ;;  %v5981_v37 = vld [vmem:[#allocation22] sm:$0xff] }
0x1985   :  { %8660 = vmatprep.subr.mxu0 %v14467_v48  ;;  %8681 = vmatprep.subr.mxu1 %v14467_v48 }
0x1986   :  { %8661 = vmatpush3.msra.mxu0 %v5793_v36  ;;  %8682 = vmatpush3.msra.mxu1 %v5888_v59  ;;  %v6074_v59 = vld [vmem:[#allocation25] sm:$0xff] }
0x1987   :  { %8662 = vmatprep.subr.mxu0 %v14467_v48  ;;  %8683 = vmatprep.subr.mxu1 %v14467_v48 }
0x1988   :  { %8663 = vmatpush3.msra.mxu0 %v5792_v6  ;;  %8684 = vmatpush3.msra.mxu1 %v5887_v0  ;;  %v5987_v6 = vld [vmem:[#allocation22 + $0x30] sm:$0xff]  ;;  %v8365_v0 = vld [vmem:[#allocation21] ss:$0 sm:$0xff] }
0x1989   :  { %8664 = vmatprep.subr.mxu0 %v14467_v48  ;;  %8685 = vmatprep.subr.mxu1 %v14467_v48 }
0x198a   :  { %8665 = vmatpush3.msra.mxu0 %v5791_v44  ;;  %8686 = vmatpush3.msra.mxu1 %v5886_v51 }
0x198b   :  { %8666 = vmatprep.subr.mxu0 %v14467_v48  ;;  %8687 = vmatprep.subr.mxu1 %v14467_v48 }
0x198c   :  { %8667 = vmatpush3.msra.mxu0 %v5790_v35  ;;  %8688 = vmatpush3.msra.mxu1 %v5885_v34  ;;  %v5986_v35 = vld [vmem:[#allocation22 + $0x28] sm:$0xff] }
0x198d   :  { %8668 = vmatprep.subr.mxu0 %v14467_v48  ;;  %8692 = vmatprep.subr.mxu1 %v14467_v48 }
0x198e   :  { %8669 = vmatpush3.msra.mxu0 %v5789_v61  ;;  %v5984_v61 = vld [vmem:[#allocation22 + $0x18] sm:$0xff] }
0x198f   :  { %8671 = vmatmul.mubr.msk.f32.vlgmr.msra.gmra.mxu0 %vm5806_vm6, %v5788_v4  ;;  %8727 = vmatprep.subr.mxu0 %v14467_v48  ;;  %v5983_v4 = vld [vmem:[#allocation22 + $0x10] sm:$0xff] }
0x1990   :  { %8759 = vmatprep.mubr.msk.f32.mxu0 %vm10245_vm5, %v14467_v48  ;;  %8728 = vmatpush3.msra.mxu0 %v6089_v63 }
0x1991   :  { %8729 = vmatprep.subr.mxu0 %v14467_v48 }
0x1992   :  { %8730 = vmatpush3.msra.mxu0 %v6088_v28 }
0x1993   :  { %8731 = vmatprep.subr.mxu0 %v14467_v48 }
0x1994   :  { %8732 = vmatpush3.msra.mxu0 %v6087_v49 }
0x1995   :  { %8733 = vmatprep.subr.mxu0 %v14467_v48 }
0x1996   :  { %8734 = vmatpush3.msra.mxu0 %v6086_v57  ;;  %v6182_v57 = vld [vmem:[#allocation28 + $0x78] sm:$0xff] }
0x1997   :  { %8735 = vmatprep.subr.mxu0 %v14467_v48 }
0x1998   :  { %8736 = vmatpush3.msra.mxu0 %v6085_v56 }
0x1999   :  { %8737 = vmatprep.subr.mxu0 %v14467_v48 }
0x199a   :  { %8738 = vmatpush3.msra.mxu0 %v6084_v5  ;;  %v6181_v5 = vld [vmem:[#allocation28 + $0x70] sm:$0xff] }
0x199b   :  { %8739 = vmatprep.subr.mxu0 %v14467_v48 }
0x199c   :  { %8740 = vmatpush3.msra.mxu0 %v6083_v30  ;;  %v6180_v30 = vld [vmem:[#allocation28 + $0x68] sm:$0xff] }
0x199d   :  { %8741 = vmatprep.subr.mxu0 %v14467_v48 }
0x199e   :  { %8742 = vmatpush3.msra.mxu0 %v6082_v52  ;;  %v6179_v52 = vld [vmem:[#allocation28 + $0x60] sm:$0xff] }
0x199f   :  { %8743 = vmatprep.subr.mxu0 %v14467_v48 }
0x19a0   :  { %8744 = vmatpush3.msra.mxu0 %v6081_v46  ;;  %v6178_v46 = vld [vmem:[#allocation28 + $0x58] sm:$0xff] }
0x19a1   :  { %8745 = vmatprep.subr.mxu0 %v14467_v48 }
0x19a2   :  { %8746 = vmatpush3.msra.mxu0 %v6080_v7  ;;  %v6177_v7 = vld [vmem:[#allocation28 + $0x50] sm:$0xff] }
0x19a3   :  { %8747 = vmatprep.subr.mxu0 %v14467_v48 }
0x19a4   :  { %8748 = vmatpush3.msra.mxu0 %v6079_v58  ;;  %v6176_v58 = vld [vmem:[#allocation28 + $0x48] sm:$0xff] }
0x19a5   :  { %8749 = vmatprep.subr.mxu0 %v14467_v48 }
0x19a6   :  { %8750 = vmatpush3.msra.mxu0 %v6078_v1  ;;  %v6175_v1 = vld [vmem:[#allocation28 + $0x40] sm:$0xff] }
0x19a7   :  { %8751 = vmatprep.subr.mxu0 %v14467_v48 }
0x19a8   :  { %8752 = vmatpush3.msra.mxu0 %v6077_v3  ;;  %v6174_v3 = vld [vmem:[#allocation28 + $0x38] sm:$0xff] }
0x19a9   :  { %8753 = vmatprep.subr.mxu0 %v14467_v48 }
0x19aa   :  { %8754 = vmatpush3.msra.mxu0 %v6076_v14  ;;  %v6475_v14 = vld [vmem:[#allocation34 + $0x1e8] sm:$0xff] }
0x19ab   :  { %8755 = vmatprep.subr.mxu0 %v14467_v48 }
0x19ac   :  { %8756 = vmatpush3.msra.mxu0 %v6075_v50  ;;  %v6474_v50 = vld [vmem:[#allocation34 + $0x1e0] sm:$0xff] }
0x19ad   :  { %8757 = vmatprep.subr.mxu0 %v14467_v48 }
0x19ae   :  { %8758 = vmatpush3.msra.mxu0 %v6074_v59  ;;  %v6470_v59 = vld [vmem:[#allocation34 + $0x1c0] sm:$0xff] }
0x19af   :  { %8797 = vmatprep.subr.mxu0 %v14467_v48 }
0x1a3b   :  { %v5682_v54 = vpop.f32.mrf.mxu0  ;;  %v5753_v8 = vpop.f32.mrf.mxu1 }
0x1a3c   :  { %v5760_v9 = vrot.slane %v5682_v54, 2  ;;  %v5762_v24 = vrot.slane %v5753_v8, 2  ;;  %v6173_v54 = vld [vmem:[#allocation28 + $0x30] sm:$0xff]  ;;  %v6172_v8 = vld [vmem:[#allocation28 + $0x28] sm:$0xff] }
0x1a3d   :  { %v5684_v12 = vpop.f32.mrf.mxu0  ;;  %v5755_v17 = vpop.f32.mrf.mxu1 }
0x1a3e   :  { %v5766_v18 = vadd.f32 %v5760_v9, %v14445_v45  ;;  %v5761_v19 = vrot.slane %v5684_v12, 2  ;;  %v5768_v25 = vadd.f32 %v5762_v24, %v13122_v42  ;;  %v5994_v42 = vld [vmem:[#allocation22 + $0x68] sm:$0xff]  ;;  %v6170_v12 = vld [vmem:[#allocation28 + $0x18] sm:$0xff]  ;;  %v6169_v17 = vld [vmem:[#allocation28 + $0x10] sm:$0xff] }
0x1a3f   :  { %v6171_v9 = vld [vmem:[#allocation28 + $0x20] sm:$0xff] }
0x1a40   :  { %v8360_v20 = vmul.f32 -1.442695, %v5766_v18  ;;  %v5767_v22 = vadd.f32 %v5761_v19, %v14446_v33  ;;  %v5995_v33 = vld [vmem:[#allocation22 + $0x70] sm:$0xff]  ;;  %v6167_v19 = vld [vmem:[#allocation28] sm:$0xff] }
0x1a41   :  { %v6168_v18 = vld [vmem:[#allocation28 + $0x8] sm:$0xff] }
0x1a42   :  { %9352 = vpow2.f32 %v8360_v20  ;;  %v8361_v23 = vmul.f32 -1.442695, %v5767_v22  ;;  %v8367_v20 = vld [vmem:[#allocation24] ss:$0 sm:$0xff]  ;;  %v8368_v22 = vld [vmem:[#allocation27] ss:$0 sm:$0xff] }
0x1a44   :  { %9354 = vpow2.f32 %v8361_v23 }
0x1a45   :  { %9356 = vtanh.f32 %v5768_v25 }
0x1a4f   :  { %v9353_v27 = vpop.eup %9352  ;;  %v5880_v29 = vpop.f32.mrf.mxu0 }
0x1a50   :  { %v5772_v32 = vadd.f32 1.0, %v9353_v27  ;;  %v5881_v60 = vadd.f32 %v8362_v26, %v5880_v29 }
0x1a51   :  { %v9355_v38 = vpop.eup %9354  ;;  %v8672_v31 = vpop.f32.mrf.mxu0 }
0x1a52   :  { %9358 = vrcp.f32 %v5772_v32  ;;  %v5778_v45 = vadd.f32 1.0, %v9355_v38  ;;  %v5884_v21 = vmax.f32 %v5881_v60, 0.0  ;;  %v9357_v16 = vpop.eup %9356 }
0x1a54   :  { %9360 = vrcp.f32 %v5778_v45  ;;  %8690 = vmatmul.mubr.msk.f32.vlgmr.msra.gmra.mxu1 %vm5900_vm7, %v5884_v21 }
0x1a55   :  { %8693 = vmatpush3.msra.mxu1 %v5996_v40  ;;  %8724 = vmatprep.mubr.msk.f32.mxu1 %vm10245_vm5, %v14467_v48 }
0x1a56   :  { %8694 = vmatprep.subr.mxu1 %v14467_v48 }
0x1a57   :  { %8695 = vmatpush3.msra.mxu1 %v5995_v33 }
0x1a58   :  { %8696 = vmatprep.subr.mxu1 %v14467_v48 }
0x1a59   :  { %8697 = vmatpush3.msra.mxu1 %v5994_v42 }
0x1a5a   :  { %8698 = vmatprep.subr.mxu1 %v14467_v48 }
0x1a5b   :  { %8699 = vmatpush3.msra.mxu1 %v5993_v39 }
0x1a5c   :  { %8700 = vmatprep.subr.mxu1 %v14467_v48 }
0x1a5d   :  { %8701 = vmatpush3.msra.mxu1 %v5992_v15 }
0x1a5e   :  { %8702 = vmatprep.subr.mxu1 %v14467_v48 }
0x1a5f   :  { %v9359_v41 = vpop.eup %9358  ;;  %8703 = vmatpush3.msra.mxu1 %v5991_v55  ;;  %v6336_v55 = vld [vmem:[#allocation31 + $0x78] sm:$0xff] }
0x1a60   :  { %8704 = vmatprep.subr.mxu1 %v14467_v48  ;;  %v5786_v53 = vmul.f32 %v9359_v41, %v9357_v16  ;;  %v6335_v16 = vld [vmem:[#allocation31 + $0x70] sm:$0xff]  ;;  %v6333_v41 = vld [vmem:[#allocation31 + $0x60] sm:$0xff] }
0x1a61   :  { %v9361_v13 = vpop.eup %9360  ;;  %8705 = vmatpush3.msra.mxu1 %v5990_v10  ;;  %v6334_v10 = vld [vmem:[#allocation31 + $0x68] sm:$0xff] }
0x1a62   :  { %8706 = vmatprep.subr.mxu1 %v14467_v48  ;;  %v5785_v36 = vmul.f32 %v9361_v13, %v5783_v62  ;;  %v6331_v62 = vld [vmem:[#allocation31 + $0x50] sm:$0xff]  ;;  %v6329_v13 = vld [vmem:[#allocation31 + $0x40] sm:$0xff] }
0x1a63   :  { %8707 = vmatpush3.msra.mxu1 %v5989_v47  ;;  %v6332_v47 = vld [vmem:[#allocation31 + $0x58] sm:$0xff] }
0x1a64   :  { %8708 = vmatprep.subr.mxu1 %v14467_v48  ;;  %v5787_v44 = vadd.f32 %v5786_v53, %v5785_v36  ;;  %v6330_v53 = vld [vmem:[#allocation31 + $0x48] sm:$0xff]  ;;  %v6327_v36 = vld [vmem:[#allocation31 + $0x30] sm:$0xff] }
0x1a65   :  { %8709 = vmatpush3.msra.mxu1 %v5988_v43  ;;  %v6328_v43 = vld [vmem:[#allocation31 + $0x38] sm:$0xff] }
0x1a66   :  { %8710 = vmatprep.subr.mxu1 %v14467_v48  ;;  %v5975_v49 = vrot.slane %v5787_v44, 6  ;;  %v6325_v44 = vld [vmem:[#allocation31 + $0x20] sm:$0xff] }
0x1a67   :  { %8711 = vmatpush3.msra.mxu1 %v5987_v6  ;;  %v6326_v6 = vld [vmem:[#allocation31 + $0x28] sm:$0xff] }
0x1a68   :  { %8712 = vmatprep.subr.mxu1 %v14467_v48 }
0x1a69   :  { %8713 = vmatpush3.msra.mxu1 %v5986_v35  ;;  %v6324_v35 = vld [vmem:[#allocation31 + $0x18] sm:$0xff] }
0x1a6a   :  { %8714 = vmatprep.subr.mxu1 %v14467_v48 }
0x1a6b   :  { %8715 = vmatpush3.msra.mxu1 %v5985_v11  ;;  %v6323_v11 = vld [vmem:[#allocation31 + $0x10] sm:$0xff] }
0x1a6c   :  { %8716 = vmatprep.subr.mxu1 %v14467_v48 }
0x1a6d   :  { %8717 = vmatpush3.msra.mxu1 %v5984_v61  ;;  %v6322_v61 = vld [vmem:[#allocation31 + $0x8] sm:$0xff] }
0x1a6e   :  { %8718 = vmatprep.subr.mxu1 %v14467_v48 }
0x1a6f   :  { %8719 = vmatpush3.msra.mxu1 %v5983_v4  ;;  %v6321_v4 = vld [vmem:[#allocation31] sm:$0xff] }
0x1a70   :  { %8720 = vmatprep.subr.mxu1 %v14467_v48 }
0x1a71   :  { %8721 = vmatpush3.msra.mxu1 %v5982_v2  ;;  %v6477_v2 = vld [vmem:[#allocation34 + $0x1f8] sm:$0xff] }
0x1a72   :  { %8722 = vmatprep.subr.mxu1 %v14467_v48 }
0x1a73   :  { %8723 = vmatpush3.msra.mxu1 %v5981_v37  ;;  %v6471_v37 = vld [vmem:[#allocation34 + $0x1c8] sm:$0xff] }
0x1a74   :  { %8762 = vmatprep.subr.mxu1 %v14467_v48 }
0x1b14   :  { %v5970_v51 = vpop.f32.mrf.mxu1 }
0x1b15   :  { %v5971_v34 = vadd.f32 %v8365_v0, %v5970_v51  ;;  %v6467_v0 = vld [vmem:[#allocation34 + $0x1a8] sm:$0xff]  ;;  %v6466_v51 = vld [vmem:[#allocation34 + $0x1a0] sm:$0xff] }
0x1b16   :  { %v8691_v63 = vpop.f32.mrf.mxu1 }
0x1b17   :  { %v5978_v28 = vrot.slane %v5971_v34, 6  ;;  %v6463_v34 = vld [vmem:[#allocation34 + $0x188] sm:$0xff]  ;;  %v6462_v63 = vld [vmem:[#allocation34 + $0x180] sm:$0xff] }
0x1b19   :  { %v5980_v56 = vsel %vm2201_vm1, %v5975_v49, %v5978_v28  ;;  %v6459_v28 = vld [vmem:[#allocation34 + $0x168] sm:$0xff]  ;;  %v6458_v49 = vld [vmem:[#allocation34 + $0x160] sm:$0xff] }
0x1b1a   :  { %8725 = vmatmul.mubr.f32.vlgmr.msra.gmra.mxu1 %v5980_v56  ;;  %8760 = vmatmul.mubr.f32.vlgmr.msra.gmra.mxu0 %v5980_v56 }
0x1b1b   :  { %8763 = vmatpush3.msra.mxu1 %v6182_v57  ;;  %8794 = vmatprep.mubr.msk.f32.mxu1 %vm10245_vm5, %v14467_v48  ;;  %v6455_v57 = vld [vmem:[#allocation34 + $0x148] sm:$0xff] }
0x1b1c   :  { %8764 = vmatprep.subr.mxu1 %v14467_v48  ;;  %8829 = vmatprep.mubr.msk.f32.mxu0 %vm10245_vm5, %v14467_v48 }
0x1b1d   :  { %8765 = vmatpush3.msra.mxu1 %v6181_v5  ;;  %8798 = vmatpush3.msra.mxu0 %v6336_v55  ;;  %v6451_v5 = vld [vmem:[#allocation34 + $0x128] sm:$0xff] }
0x1b1e   :  { %8766 = vmatprep.subr.mxu1 %v14467_v48  ;;  %8799 = vmatprep.subr.mxu0 %v14467_v48 }
0x1b1f   :  { %8767 = vmatpush3.msra.mxu1 %v6180_v30  ;;  %8800 = vmatpush3.msra.mxu0 %v6335_v16  ;;  %v6450_v30 = vld [vmem:[#allocation34 + $0x120] sm:$0xff] }
0x1b20   :  { %8768 = vmatprep.subr.mxu1 %v14467_v48  ;;  %8801 = vmatprep.subr.mxu0 %v14467_v48 }
0x1b21   :  { %8769 = vmatpush3.msra.mxu1 %v6179_v52  ;;  %8802 = vmatpush3.msra.mxu0 %v6334_v10  ;;  %v6447_v52 = vld [vmem:[#allocation34 + $0x108] sm:$0xff] }
0x1b22   :  { %8770 = vmatprep.subr.mxu1 %v14467_v48  ;;  %8803 = vmatprep.subr.mxu0 %v14467_v48 }
0x1b23   :  { %8771 = vmatpush3.msra.mxu1 %v6178_v46  ;;  %8804 = vmatpush3.msra.mxu0 %v6333_v41  ;;  %v6446_v46 = vld [vmem:[#allocation34 + $0x100] sm:$0xff] }
0x1b24   :  { %8772 = vmatprep.subr.mxu1 %v14467_v48  ;;  %8805 = vmatprep.subr.mxu0 %v14467_v48 }
0x1b25   :  { %8773 = vmatpush3.msra.mxu1 %v6177_v7  ;;  %8806 = vmatpush3.msra.mxu0 %v6332_v47  ;;  %v6443_v7 = vld [vmem:[#allocation34 + $0xe8] sm:$0xff] }
0x1b26   :  { %8774 = vmatprep.subr.mxu1 %v14467_v48  ;;  %8807 = vmatprep.subr.mxu0 %v14467_v48 }
0x1b27   :  { %8775 = vmatpush3.msra.mxu1 %v6176_v58  ;;  %8808 = vmatpush3.msra.mxu0 %v6331_v62  ;;  %v6442_v58 = vld [vmem:[#allocation34 + $0xe0] sm:$0xff] }
0x1b28   :  { %8776 = vmatprep.subr.mxu1 %v14467_v48  ;;  %8809 = vmatprep.subr.mxu0 %v14467_v48 }
0x1b29   :  { %8777 = vmatpush3.msra.mxu1 %v6175_v1  ;;  %8810 = vmatpush3.msra.mxu0 %v6330_v53  ;;  %v6439_v1 = vld [vmem:[#allocation34 + $0xc8] sm:$0xff] }
0x1b2a   :  { %8778 = vmatprep.subr.mxu1 %v14467_v48  ;;  %8811 = vmatprep.subr.mxu0 %v14467_v48 }
0x1b2b   :  { %8779 = vmatpush3.msra.mxu1 %v6174_v3  ;;  %8812 = vmatpush3.msra.mxu0 %v6329_v13  ;;  %v6438_v3 = vld [vmem:[#allocation34 + $0xc0] sm:$0xff] }
0x1b2c   :  { %8780 = vmatprep.subr.mxu1 %v14467_v48  ;;  %8813 = vmatprep.subr.mxu0 %v14467_v48 }
0x1b2d   :  { %8781 = vmatpush3.msra.mxu1 %v6173_v54  ;;  %8814 = vmatpush3.msra.mxu0 %v6328_v43  ;;  %v6435_v54 = vld [vmem:[#allocation34 + $0xa8] sm:$0xff]  ;;  %v8369_v43 = vld [vmem:[#allocation30] ss:$0 sm:$0xff] }
0x1b2e   :  { %8782 = vmatprep.subr.mxu1 %v14467_v48  ;;  %8815 = vmatprep.subr.mxu0 %v14467_v48 }
0x1b2f   :  { %8783 = vmatpush3.msra.mxu1 %v6172_v8  ;;  %8816 = vmatpush3.msra.mxu0 %v6327_v36  ;;  %v6434_v8 = vld [vmem:[#allocation34 + $0xa0] sm:$0xff] }
0x1b30   :  { %8784 = vmatprep.subr.mxu1 %v14467_v48  ;;  %8817 = vmatprep.subr.mxu0 %v14467_v48 }
0x1b31   :  { %8785 = vmatpush3.msra.mxu1 %v6171_v9  ;;  %8818 = vmatpush3.msra.mxu0 %v6326_v6  ;;  %v6431_v9 = vld [vmem:[#allocation34 + $0x88] sm:$0xff] }
0x1b32   :  { %8786 = vmatprep.subr.mxu1 %v14467_v48  ;;  %8819 = vmatprep.subr.mxu0 %v14467_v48 }
0x1b33   :  { %8787 = vmatpush3.msra.mxu1 %v6170_v12  ;;  %8820 = vmatpush3.msra.mxu0 %v6325_v44  ;;  %v6430_v12 = vld [vmem:[#allocation34 + $0x80] sm:$0xff] }
0x1b34   :  { %8788 = vmatprep.subr.mxu1 %v14467_v48  ;;  %8821 = vmatprep.subr.mxu0 %v14467_v48 }
0x1b35   :  { %8789 = vmatpush3.msra.mxu1 %v6169_v17  ;;  %8822 = vmatpush3.msra.mxu0 %v6324_v35  ;;  %v6427_v17 = vld [vmem:[#allocation34 + $0x68] sm:$0xff] }
0x1b36   :  { %8790 = vmatprep.subr.mxu1 %v14467_v48  ;;  %8823 = vmatprep.subr.mxu0 %v14467_v48 }
0x1b37   :  { %8791 = vmatpush3.msra.mxu1 %v6168_v18  ;;  %8824 = vmatpush3.msra.mxu0 %v6323_v11  ;;  %v6426_v18 = vld [vmem:[#allocation34 + $0x60] sm:$0xff] }
0x1b38   :  { %8792 = vmatprep.subr.mxu1 %v14467_v48  ;;  %8825 = vmatprep.subr.mxu0 %v14467_v48 }
0x1b39   :  { %8793 = vmatpush3.msra.mxu1 %v6167_v19  ;;  %8826 = vmatpush3.msra.mxu0 %v6322_v61  ;;  %v6423_v19 = vld [vmem:[#allocation34 + $0x48] sm:$0xff] }
0x1b3a   :  { %8795 = vmatmul.mubr.f32.vlgmr.msra.gmra.mxu1 %v5980_v56  ;;  %8827 = vmatprep.subr.mxu0 %v14467_v48  ;;  %v6454_v56 = vld [vmem:[#allocation34 + $0x140] sm:$0xff] }
0x1b3b   :  { %6564 = vmatprep.mubr.f32.mxu1 %v14467_v48  ;;  %8828 = vmatpush3.msra.mxu0 %v6321_v4 }
0x1b3c   :  { %6500 = vmatprep.subr.mxu1 %v6475_v14  ;;  %6571 = vmatprep.subr.mxu0 %v6477_v2 }
0x1b3d   :  { %6501 = vmatpush1.msra.mxu1 %v6474_v50 }
0x1b3e   :  { %6502 = vmatprep.subr.mxu1 %v6471_v37 }
0x1b3f   :  { %6503 = vmatpush1.msra.mxu1 %v6470_v59 }
0x1b40   :  { %6504 = vmatprep.subr.mxu1 %v6467_v0 }
0x1b41   :  { %6505 = vmatpush1.msra.mxu1 %v6466_v51 }
0x1b42   :  { %6506 = vmatprep.subr.mxu1 %v6463_v34 }
0x1b43   :  { %6507 = vmatpush1.msra.mxu1 %v6462_v63  ;;  %v6476_v63 = vld [vmem:[#allocation34 + $0x1f0] sm:$0xff] }
0x1b44   :  { %6508 = vmatprep.subr.mxu1 %v6459_v28 }
0x1b45   :  { %6509 = vmatpush1.msra.mxu1 %v6458_v49  ;;  %v6473_v49 = vld [vmem:[#allocation34 + $0x1d8] sm:$0xff] }
0x1b46   :  { %6510 = vmatprep.subr.mxu1 %v6455_v57  ;;  %v6469_v57 = vld [vmem:[#allocation34 + $0x1b8] sm:$0xff] }
0x1b47   :  { %6511 = vmatpush1.msra.mxu1 %v6454_v56  ;;  %v6468_v56 = vld [vmem:[#allocation34 + $0x1b0] sm:$0xff] }
0x1b48   :  { %6512 = vmatprep.subr.mxu1 %v6451_v5  ;;  %v6465_v5 = vld [vmem:[#allocation34 + $0x198] sm:$0xff] }
0x1b49   :  { %6513 = vmatpush1.msra.mxu1 %v6450_v30  ;;  %v6464_v30 = vld [vmem:[#allocation34 + $0x190] sm:$0xff] }
0x1b4a   :  { %6514 = vmatprep.subr.mxu1 %v6447_v52  ;;  %v6461_v52 = vld [vmem:[#allocation34 + $0x178] sm:$0xff] }
0x1b4b   :  { %6515 = vmatpush1.msra.mxu1 %v6446_v46  ;;  %v6460_v46 = vld [vmem:[#allocation34 + $0x170] sm:$0xff] }
0x1b4c   :  { %6516 = vmatprep.subr.mxu1 %v6443_v7  ;;  %v6457_v7 = vld [vmem:[#allocation34 + $0x158] sm:$0xff] }
0x1b4d   :  { %6517 = vmatpush1.msra.mxu1 %v6442_v58  ;;  %v6456_v58 = vld [vmem:[#allocation34 + $0x150] sm:$0xff] }
0x1b4e   :  { %6518 = vmatprep.subr.mxu1 %v6439_v1  ;;  %v6453_v1 = vld [vmem:[#allocation34 + $0x138] sm:$0xff] }
0x1b4f   :  { %6519 = vmatpush1.msra.mxu1 %v6438_v3  ;;  %v6452_v3 = vld [vmem:[#allocation34 + $0x130] sm:$0xff] }
0x1b50   :  { %6520 = vmatprep.subr.mxu1 %v6435_v54  ;;  %v6449_v54 = vld [vmem:[#allocation34 + $0x118] sm:$0xff] }
0x1b51   :  { %6521 = vmatpush1.msra.mxu1 %v6434_v8  ;;  %v6448_v8 = vld [vmem:[#allocation34 + $0x110] sm:$0xff] }
0x1b52   :  { %6522 = vmatprep.subr.mxu1 %v6431_v9  ;;  %v6445_v9 = vld [vmem:[#allocation34 + $0xf8] sm:$0xff] }
0x1b53   :  { %6523 = vmatpush1.msra.mxu1 %v6430_v12  ;;  %v6444_v12 = vld [vmem:[#allocation34 + $0xf0] sm:$0xff] }
0x1b54   :  { %6524 = vmatprep.subr.mxu1 %v6427_v17  ;;  %v6441_v17 = vld [vmem:[#allocation34 + $0xd8] sm:$0xff] }
0x1b55   :  { %6525 = vmatpush1.msra.mxu1 %v6426_v18  ;;  %v6440_v18 = vld [vmem:[#allocation34 + $0xd0] sm:$0xff] }
0x1b56   :  { %6526 = vmatprep.subr.mxu1 %v6423_v19  ;;  %v6437_v19 = vld [vmem:[#allocation34 + $0xb8] sm:$0xff] }
0x1bda   :  { %v6070_v23 = vpop.f32.mrf.mxu1  ;;  %v6163_v24 = vpop.f32.mrf.mxu0 }
0x1bdb   :  { %v6071_v25 = vadd.f32 %v8367_v20, %v6070_v23  ;;  %v6164_v26 = vadd.f32 %v8368_v22, %v6163_v24  ;;  %v6422_v20 = vld [vmem:[#allocation34 + $0x40] sm:$0xff]  ;;  %v6419_v22 = vld [vmem:[#allocation34 + $0x28] sm:$0xff] }
0x1bdc   :  { %v8726_v27 = vpop.f32.mrf.mxu1  ;;  %v8761_v29 = vpop.f32.mrf.mxu0  ;;  %6527 = vmatpush1.msra.mxu1 %v6422_v20  ;;  %v6436_v20 = vld [vmem:[#allocation34 + $0xb0] sm:$0xff] }
0x1bdd   :  { %v6260_v32 = vmul.f32 %v6164_v26, %v6071_v25  ;;  %v6266_v60 = vrot.slane %v6164_v26, 2  ;;  %v6273_v38 = vrot.slane %v6164_v26, 6  ;;  %6528 = vmatprep.subr.mxu1 %v6419_v22  ;;  %v6433_v22 = vld [vmem:[#allocation34 + $0x98] sm:$0xff] }
0x1bdf   :  { %v6261_v31 = vsel %vm2201_vm1, %v6260_v32, 0.0  ;;  %v6268_v45 = vmul.f32 %v6266_v60, %v6071_v25  ;;  %v6275_v21 = vmul.f32 %v6273_v38, %v6071_v25  ;;  %v6281_v42 = vsel %vm6276_vm8, %v6260_v32, 0.0 }
0x1be0   :  { %6262 = vadd.xlane.f32.xlu0 %v6261_v31 }
0x1be1   :  { %v6269_v40 = vsel %vm2201_vm1, %v6268_v45, 0.0  ;;  %v6277_v33 = vsel %vm6276_vm8, %v6275_v21, 0.0 }
0x1be2   :  { %6270 = vadd.xlane.f32.xlu1 %v6269_v40 }
0x1be4   :  { %6278 = vadd.xlane.f32.xlu0 %v6277_v33 }
0x1be6   :  { %6282 = vadd.xlane.f32.xlu1 %v6281_v42 }
0x1bfa   :  { %v13370_v39 = vpop.f32.mrf.mxu1 }
0x1bfb   :  { %v6257_v36 = vadd.f32 %v8369_v43, %v13370_v39  ;;  %v6472_v39 = vld [vmem:[#allocation34 + $0x1d0] sm:$0xff]  ;;  %v6675_v43 = vld [vmem:[#allocation36 + $0xe8] sm:$0xff] }
0x1bfc   :  { %v8796_v15 = vpop.f32.mrf.mxu1 }
0x1bfd   :  { %v6309_v11 = vrot.slane %v6257_v36, 2  ;;  %v6314_v4 = vrot.slane %v6257_v36, 6 }
0x1c69   :  { %v6263_v23 = vpop.xlane.xlu0 %6262 }
0x1c6a   :  { %v6264_v25 = vmul.f32 0.088388346, %v6263_v23  ;;  %v6432_v23 = vld [vmem:[#allocation34 + $0x90] sm:$0xff] }
0x1c6b   :  { %v6271_v24 = vpop.xlane.xlu1 %6270 }
0x1c6c   :  { %v6272_v26 = vmul.f32 0.088388346, %v6271_v24  ;;  %v6429_v24 = vld [vmem:[#allocation34 + $0x78] sm:$0xff] }
0x1c6d   :  { %v6279_v27 = vpop.xlane.xlu0 %6278 }
0x1c6e   :  { %v6285_v29 = vmax.f32 %v6264_v25, %v6272_v26  ;;  %v6280_v31 = vmul.f32 0.088388346, %v6279_v27  ;;  %v6424_v27 = vld [vmem:[#allocation34 + $0x50] sm:$0xff] }
0x1c6f   :  { %v6283_v32 = vpop.xlane.xlu1 %6282 }
0x1c70   :  { %v6286_v60 = vsub.f32 %v6264_v25, %v6285_v29  ;;  %v6289_v38 = vsub.f32 %v6272_v26, %v6285_v29  ;;  %v6284_v45 = vmul.f32 0.088388346, %v6283_v32  ;;  %v6428_v25 = vld [vmem:[#allocation34 + $0x70] sm:$0xff]  ;;  %v6425_v26 = vld [vmem:[#allocation34 + $0x58] sm:$0xff]  ;;  %v6418_v32 = vld [vmem:[#allocation34 + $0x20] sm:$0xff] }
0x1c71   :  { %v6421_v29 = vld [vmem:[#allocation34 + $0x38] sm:$0xff]  ;;  %6529 = vmatpush1.msra.mxu1 %v6418_v32  ;;  %v6696_v32 = vld [vmem:[#allocation36 + $0x190] sm:$0xff] }
0x1c72   :  { %v6287_v21 = vmul.f32 1.442695, %v6286_v60  ;;  %v6290_v40 = vmul.f32 1.442695, %v6289_v38  ;;  %v6295_v33 = vmax.f32 %v6280_v31, %v6284_v45  ;;  %v6420_v60 = vld [vmem:[#allocation34 + $0x30] sm:$0xff]  ;;  %v6415_v38 = vld [vmem:[#allocation34 + $0x8] sm:$0xff] }
0x1c73   :  { %6530 = vmatprep.subr.mxu1 %v6415_v38  ;;  %v6680_v38 = vld [vmem:[#allocation36 + $0x110] sm:$0xff] }
0x1c74   :  { %9362 = vpow2.f32 %v6287_v21  ;;  %v6296_v42 = vsub.f32 %v6280_v31, %v6295_v33  ;;  %v6299_v15 = vsub.f32 %v6284_v45, %v6295_v33  ;;  %v6417_v31 = vld [vmem:[#allocation34 + $0x18] sm:$0xff]  ;;  %v6414_v45 = vld [vmem:[#allocation34] sm:$0xff]  ;;  %v6416_v21 = vld [vmem:[#allocation34 + $0x10] sm:$0xff] }
0x1c75   :  { %9364 = vpow2.f32 %v6290_v40  ;;  %6531 = vmatpush1.msra.mxu1 %v6414_v45  ;;  %v6677_v40 = vld [vmem:[#allocation36 + $0xf8] sm:$0xff]  ;;  %v6695_v45 = vld [vmem:[#allocation36 + $0x188] sm:$0xff] }
0x1c76   :  { %v6297_v55 = vmul.f32 1.442695, %v6296_v42  ;;  %v6300_v16 = vmul.f32 1.442695, %v6299_v15  ;;  %v6709_v33 = vld [vmem:[#allocation36 + $0x1f8] sm:$0xff]  ;;  %8477 = vmatprep.subr.mxu1 %v6677_v40  ;;  %v6679_v40 = vld [vmem:[#allocation36 + $0x108] sm:$0xff] }
0x1c77   :  { %v8370_v42 = vld [vmem:[#allocation33] ss:$0 sm:$0xff] }
0x1c78   :  { %9366 = vpow2.f32 %v6297_v55 }
0x1c79   :  { %9368 = vpow2.f32 %v6300_v16  ;;  %v6661_v16 = vld [vmem:[#allocation36 + $0x78] sm:$0xff] }
0x1c81   :  { %v9363_v10 = vpop.eup %9362 }
0x1c82   :  { %v9365_v41 = vpop.eup %9364 }
0x1c83   :  { %v6292_v47 = vadd.f32 %v9365_v41, %v9363_v10 }
0x1c85   :  { %v9367_v62 = vpop.eup %9366  ;;  %9370 = vrcp.f32 %v6292_v47  ;;  %v6676_v47 = vld [vmem:[#allocation36 + $0xf0] sm:$0xff] }
0x1c86   :  { %v9369_v53 = vpop.eup %9368 }
0x1c87   :  { %v6302_v13 = vadd.f32 %v9369_v53, %v9367_v62 }
0x1c89   :  { %9372 = vrcp.f32 %v6302_v13  ;;  %v6692_v13 = vld [vmem:[#allocation36 + $0x170] sm:$0xff] }
0x1c92   :  { %v9371_v6 = vpop.eup %9370 }
0x1c93   :  { %v6305_v44 = vmul.f32 %v9371_v6, %v9363_v10  ;;  %v6307_v35 = vmul.f32 %v9371_v6, %v9365_v41  ;;  %v6693_v10 = vld [vmem:[#allocation36 + $0x178] sm:$0xff]  ;;  %v6659_v6 = vld [vmem:[#allocation36 + $0x68] sm:$0xff] }
0x1c95   :  { %v6306_v14 = vmul.f32 %v6305_v44, %v6257_v36  ;;  %v6311_v2 = vmul.f32 %v6309_v11, %v6307_v35  ;;  %v6691_v44 = vld [vmem:[#allocation36 + $0x168] sm:$0xff]  ;;  %v6674_v35 = vld [vmem:[#allocation36 + $0xe0] sm:$0xff] }
0x1c96   :  { %v9373_v61 = vpop.eup %9372  ;;  %v6706_v11 = vld [vmem:[#allocation36 + $0x1e0] sm:$0xff] }
0x1c97   :  { %v6313_v50 = vmul.f32 %v9373_v61, %v9367_v62  ;;  %v6317_v37 = vmul.f32 %v9373_v61, %v9369_v53  ;;  %v6312_v51 = vadd.f32 %v6311_v2, %v6306_v14  ;;  %v6708_v62 = vld [vmem:[#allocation36 + $0x1f0] sm:$0xff]  ;;  %v6658_v61 = vld [vmem:[#allocation36 + $0x60] sm:$0xff]  ;;  %v6673_v14 = vld [vmem:[#allocation36 + $0xd8] sm:$0xff] }
0x1c98   :  { %v6660_v53 = vld [vmem:[#allocation36 + $0x70] sm:$0xff]  ;;  %v6705_v2 = vld [vmem:[#allocation36 + $0x1d8] sm:$0xff] }
0x1c99   :  { %v6316_v59 = vmul.f32 %v6314_v4, %v6313_v50  ;;  %v6318_v0 = vmul.f32 %v6317_v37, %v6257_v36  ;;  %v6707_v36 = vld [vmem:[#allocation36 + $0x1e8] sm:$0xff]  ;;  %v6690_v4 = vld [vmem:[#allocation36 + $0x160] sm:$0xff]  ;;  %v6657_v50 = vld [vmem:[#allocation36 + $0x58] sm:$0xff] }
0x1c9a   :  { %v6689_v37 = vld [vmem:[#allocation36 + $0x158] sm:$0xff] }
0x1c9b   :  { %v6319_v34 = vadd.f32 %v6318_v0, %v6316_v59  ;;  %v6672_v59 = vld [vmem:[#allocation36 + $0xd0] sm:$0xff] }
0x1c9c   :  { %v6704_v0 = vld [vmem:[#allocation36 + $0x1d0] sm:$0xff] }
0x1c9d   :  { %v6320_v28 = vsel %vm2201_vm1, %v6312_v51, %v6319_v34  ;;  %v6656_v51 = vld [vmem:[#allocation36 + $0x50] sm:$0xff] }
0x1c9e   :  { %8830 = vmatmul.mubr.f32.vlgmr.msra.gmra.mxu0 %v6320_v28  ;;  %v6688_v34 = vld [vmem:[#allocation36 + $0x150] sm:$0xff]  ;;  %v6703_v28 = vld [vmem:[#allocation36 + $0x1c8] sm:$0xff] }
0x1c9f   :  { %6572 = vmatpush1.msra.mxu0 %v6476_v63  ;;  %6635 = vmatprep.mubr.f32.mxu0 %v14467_v48  ;;  %v6671_v63 = vld [vmem:[#allocation36 + $0xc8] sm:$0xff] }
0x1ca0   :  { %6573 = vmatprep.subr.mxu0 %v6473_v49  ;;  %v6655_v49 = vld [vmem:[#allocation36 + $0x48] sm:$0xff] }
0x1ca1   :  { %6574 = vmatpush1.msra.mxu0 %v6472_v39  ;;  %v6687_v39 = vld [vmem:[#allocation36 + $0x148] sm:$0xff] }
0x1ca2   :  { %6575 = vmatprep.subr.mxu0 %v6469_v57  ;;  %v6670_v57 = vld [vmem:[#allocation36 + $0xc0] sm:$0xff] }
0x1ca3   :  { %6576 = vmatpush1.msra.mxu0 %v6468_v56  ;;  %v6702_v56 = vld [vmem:[#allocation36 + $0x1c0] sm:$0xff] }
0x1ca4   :  { %6577 = vmatprep.subr.mxu0 %v6465_v5  ;;  %v6654_v5 = vld [vmem:[#allocation36 + $0x40] sm:$0xff] }
0x1ca5   :  { %6578 = vmatpush1.msra.mxu0 %v6464_v30  ;;  %v6686_v30 = vld [vmem:[#allocation36 + $0x140] sm:$0xff] }
0x1ca6   :  { %6579 = vmatprep.subr.mxu0 %v6461_v52  ;;  %v6669_v52 = vld [vmem:[#allocation36 + $0xb8] sm:$0xff] }
0x1ca7   :  { %6580 = vmatpush1.msra.mxu0 %v6460_v46  ;;  %v6701_v46 = vld [vmem:[#allocation36 + $0x1b8] sm:$0xff] }
0x1ca8   :  { %6581 = vmatprep.subr.mxu0 %v6457_v7  ;;  %v6653_v7 = vld [vmem:[#allocation36 + $0x38] sm:$0xff] }
0x1ca9   :  { %6582 = vmatpush1.msra.mxu0 %v6456_v58  ;;  %v6685_v58 = vld [vmem:[#allocation36 + $0x138] sm:$0xff] }
0x1caa   :  { %6583 = vmatprep.subr.mxu0 %v6453_v1  ;;  %v6668_v1 = vld [vmem:[#allocation36 + $0xb0] sm:$0xff] }
0x1cab   :  { %6584 = vmatpush1.msra.mxu0 %v6452_v3  ;;  %v6700_v3 = vld [vmem:[#allocation36 + $0x1b0] sm:$0xff] }
0x1cac   :  { %6585 = vmatprep.subr.mxu0 %v6449_v54  ;;  %v6652_v54 = vld [vmem:[#allocation36 + $0x30] sm:$0xff] }
0x1cad   :  { %6586 = vmatpush1.msra.mxu0 %v6448_v8  ;;  %v6684_v8 = vld [vmem:[#allocation36 + $0x130] sm:$0xff] }
0x1cae   :  { %6587 = vmatprep.subr.mxu0 %v6445_v9  ;;  %v6667_v9 = vld [vmem:[#allocation36 + $0xa8] sm:$0xff] }
0x1caf   :  { %6588 = vmatpush1.msra.mxu0 %v6444_v12  ;;  %v6699_v12 = vld [vmem:[#allocation36 + $0x1a8] sm:$0xff] }
0x1cb0   :  { %6589 = vmatprep.subr.mxu0 %v6441_v17  ;;  %v6651_v17 = vld [vmem:[#allocation36 + $0x28] sm:$0xff] }
0x1cb1   :  { %6590 = vmatpush1.msra.mxu0 %v6440_v18  ;;  %v6683_v18 = vld [vmem:[#allocation36 + $0x128] sm:$0xff] }
0x1cb2   :  { %6591 = vmatprep.subr.mxu0 %v6437_v19  ;;  %v6666_v19 = vld [vmem:[#allocation36 + $0xa0] sm:$0xff] }
0x1cb3   :  { %6592 = vmatpush1.msra.mxu0 %v6436_v20  ;;  %v6698_v20 = vld [vmem:[#allocation36 + $0x1a0] sm:$0xff] }
0x1cb4   :  { %6593 = vmatprep.subr.mxu0 %v6433_v22  ;;  %v6650_v22 = vld [vmem:[#allocation36 + $0x20] sm:$0xff] }
0x1cb5   :  { %6594 = vmatpush1.msra.mxu0 %v6432_v23  ;;  %v6682_v23 = vld [vmem:[#allocation36 + $0x120] sm:$0xff] }
0x1cb6   :  { %6595 = vmatprep.subr.mxu0 %v6429_v24  ;;  %v6665_v24 = vld [vmem:[#allocation36 + $0x98] sm:$0xff] }
0x1cb7   :  { %6596 = vmatpush1.msra.mxu0 %v6428_v25  ;;  %v6697_v25 = vld [vmem:[#allocation36 + $0x198] sm:$0xff] }
0x1cb8   :  { %6597 = vmatprep.subr.mxu0 %v6425_v26  ;;  %v6649_v26 = vld [vmem:[#allocation36 + $0x18] sm:$0xff] }
0x1cb9   :  { %6598 = vmatpush1.msra.mxu0 %v6424_v27  ;;  %v6681_v27 = vld [vmem:[#allocation36 + $0x118] sm:$0xff] }
0x1cba   :  { %6599 = vmatprep.subr.mxu0 %v6421_v29  ;;  %v6664_v29 = vld [vmem:[#allocation36 + $0x90] sm:$0xff] }
0x1cbb   :  { %6600 = vmatpush1.msra.mxu0 %v6420_v60  ;;  %v6648_v60 = vld [vmem:[#allocation36 + $0x10] sm:$0xff] }
0x1cbc   :  { %6601 = vmatprep.subr.mxu0 %v6417_v31  ;;  %v6663_v31 = vld [vmem:[#allocation36 + $0x88] sm:$0xff] }
0x1cbd   :  { %6602 = vmatpush1.msra.mxu0 %v6416_v21  ;;  %v6647_v21 = vld [vmem:[#allocation36 + $0x8] sm:$0xff] }
0x1cbe   :  { %8512 = vmatprep.subr.mxu0 %v6709_v33  ;;  %v6662_v33 = vld [vmem:[#allocation36 + $0x80] sm:$0xff] }
0x1d5e   :  { %v6410_v15 = vpop.f32.mrf.mxu0 }
0x1d5f   :  { %v6411_v55 = vadd.f32 %v8370_v42, %v6410_v15  ;;  %v6694_v42 = vld [vmem:[#allocation36 + $0x180] sm:$0xff] }
0x1d60   :  { %v8831_v41 = vpop.f32.mrf.mxu0  ;;  %v6646_v15 = vld [vmem:[#allocation36] sm:$0xff] }
0x1d61   :  { %6565 = vmatmul.mubr.f32.vlgmr.msra.gmra.mxu1 %v6411_v55  ;;  %6636 = vmatmul.mubr.f32.vlgmr.msra.gmra.mxu0 %v6411_v55  ;;  %v6678_v55 = vld [vmem:[#allocation36 + $0x100] sm:$0xff]  ;;  %v6478_v41 = vld [vmem:[%s14470_s26] sm:$0xf] }
0x1d62   :  { %8478 = vmatpush3.msra.mxu1 %v6661_v16  ;;  %8513 = vmatpush3.msra.mxu0 %v6693_v10  ;;  %v6922_v16 = vld [vmem:[#allocation37 + $0x1e8] sm:$0xff]  ;;  %v6924_v10 = vld [vmem:[#allocation37 + $0x1f8] sm:$0xff] }
0x1d63   :  { %8479 = vmatprep.subr.mxu1 %v6676_v47  ;;  %8514 = vmatprep.subr.mxu0 %v6708_v62  ;;  %v14471_v47 = vld [vmem:[#allocation98_spill] sm:$0xff] }
0x1d64   :  { %8480 = vmatpush3.msra.mxu1 %v6660_v53  ;;  %8515 = vmatpush3.msra.mxu0 %v6692_v13  ;;  %v6483_v62 = vrot.slane %v6478_v41, %v14471_v47  ;;  %v14472_v53 = vld [vmem:[#allocation100_spill] sm:$0xff] }
0x1d65   :  { %8481 = vmatprep.subr.mxu1 %v6675_v43  ;;  %8516 = vmatprep.subr.mxu0 %v6707_v36  ;;  %v6491_v13 = vrot.slane %v6478_v41, %v14472_v53  ;;  %v14473_v43 = vld [vmem:[#allocation99_spill] sm:$0xff] }
0x1d66   :  { %8482 = vmatpush3.msra.mxu1 %v6659_v6  ;;  %8517 = vmatpush3.msra.mxu0 %v6691_v44  ;;  %v6487_v36 = vrot.slane %v6478_v41, %v14473_v43  ;;  %v14474_v6 = vld [vmem:[#allocation101_spill] sm:$0xff] }
0x1d67   :  { %8483 = vmatprep.subr.mxu1 %v6674_v35  ;;  %8518 = vmatprep.subr.mxu0 %v6706_v11  ;;  %v6495_v44 = vrot.slane %v6478_v41, %v14474_v6  ;;  %v6878_v41 = vld [vmem:[#allocation37 + $0x88] sm:$0xff] }
0x1d68   :  { %8484 = vmatpush3.msra.mxu1 %v6658_v61  ;;  %8519 = vmatpush3.msra.mxu0 %v6690_v4 }
0x1d69   :  { %8485 = vmatprep.subr.mxu1 %v6673_v14  ;;  %8520 = vmatprep.subr.mxu0 %v6705_v2 }
0x1d6a   :  { %8486 = vmatpush3.msra.mxu1 %v6657_v50  ;;  %8521 = vmatpush3.msra.mxu0 %v6689_v37 }
0x1d6b   :  { %8487 = vmatprep.subr.mxu1 %v6672_v59  ;;  %8522 = vmatprep.subr.mxu0 %v6704_v0 }
0x1d6c   :  { %8488 = vmatpush3.msra.mxu1 %v6656_v51  ;;  %8523 = vmatpush3.msra.mxu0 %v6688_v34 }
0x1d6d   :  { %8489 = vmatprep.subr.mxu1 %v6671_v63  ;;  %8524 = vmatprep.subr.mxu0 %v6703_v28  ;;  %v6921_v63 = vld [vmem:[#allocation37 + $0x1e0] sm:$0xff]  ;;  %v6923_v28 = vld [vmem:[#allocation37 + $0x1f0] sm:$0xff] }
0x1d6e   :  { %8490 = vmatpush3.msra.mxu1 %v6655_v49  ;;  %8525 = vmatpush3.msra.mxu0 %v6687_v39  ;;  %v6918_v49 = vld [vmem:[#allocation37 + $0x1c8] sm:$0xff]  ;;  %v6920_v39 = vld [vmem:[#allocation37 + $0x1d8] sm:$0xff] }
0x1d6f   :  { %8491 = vmatprep.subr.mxu1 %v6670_v57  ;;  %8526 = vmatprep.subr.mxu0 %v6702_v56  ;;  %v6917_v57 = vld [vmem:[#allocation37 + $0x1c0] sm:$0xff]  ;;  %v6919_v56 = vld [vmem:[#allocation37 + $0x1d0] sm:$0xff] }
0x1d70   :  { %8492 = vmatpush3.msra.mxu1 %v6654_v5  ;;  %8527 = vmatpush3.msra.mxu0 %v6686_v30  ;;  %v6914_v5 = vld [vmem:[#allocation37 + $0x1a8] sm:$0xff]  ;;  %v6916_v30 = vld [vmem:[#allocation37 + $0x1b8] sm:$0xff] }
0x1d71   :  { %8493 = vmatprep.subr.mxu1 %v6669_v52  ;;  %8528 = vmatprep.subr.mxu0 %v6701_v46  ;;  %v6913_v52 = vld [vmem:[#allocation37 + $0x1a0] sm:$0xff]  ;;  %v6915_v46 = vld [vmem:[#allocation37 + $0x1b0] sm:$0xff] }
0x1d72   :  { %8494 = vmatpush3.msra.mxu1 %v6653_v7  ;;  %8529 = vmatpush3.msra.mxu0 %v6685_v58  ;;  %v6910_v7 = vld [vmem:[#allocation37 + $0x188] sm:$0xff]  ;;  %v6912_v58 = vld [vmem:[#allocation37 + $0x198] sm:$0xff] }
0x1d73   :  { %8495 = vmatprep.subr.mxu1 %v6668_v1  ;;  %8530 = vmatprep.subr.mxu0 %v6700_v3  ;;  %v6909_v1 = vld [vmem:[#allocation37 + $0x180] sm:$0xff]  ;;  %v6911_v3 = vld [vmem:[#allocation37 + $0x190] sm:$0xff] }
0x1d74   :  { %8496 = vmatpush3.msra.mxu1 %v6652_v54  ;;  %8531 = vmatpush3.msra.mxu0 %v6684_v8  ;;  %v6906_v54 = vld [vmem:[#allocation37 + $0x168] sm:$0xff]  ;;  %v6908_v8 = vld [vmem:[#allocation37 + $0x178] sm:$0xff] }
0x1d75   :  { %8497 = vmatprep.subr.mxu1 %v6667_v9  ;;  %8532 = vmatprep.subr.mxu0 %v6699_v12  ;;  %v6905_v9 = vld [vmem:[#allocation37 + $0x160] sm:$0xff]  ;;  %v6907_v12 = vld [vmem:[#allocation37 + $0x170] sm:$0xff] }
0x1d76   :  { %8498 = vmatpush3.msra.mxu1 %v6651_v17  ;;  %8533 = vmatpush3.msra.mxu0 %v6683_v18  ;;  %v6902_v17 = vld [vmem:[#allocation37 + $0x148] sm:$0xff]  ;;  %v6904_v18 = vld [vmem:[#allocation37 + $0x158] sm:$0xff] }
0x1d77   :  { %8499 = vmatprep.subr.mxu1 %v6666_v19  ;;  %8534 = vmatprep.subr.mxu0 %v6698_v20  ;;  %v6901_v19 = vld [vmem:[#allocation37 + $0x140] sm:$0xff]  ;;  %v6903_v20 = vld [vmem:[#allocation37 + $0x150] sm:$0xff] }
0x1d78   :  { %8500 = vmatpush3.msra.mxu1 %v6650_v22  ;;  %8535 = vmatpush3.msra.mxu0 %v6682_v23  ;;  %v6898_v22 = vld [vmem:[#allocation37 + $0x128] sm:$0xff]  ;;  %v6900_v23 = vld [vmem:[#allocation37 + $0x138] sm:$0xff] }
0x1d79   :  { %8501 = vmatprep.subr.mxu1 %v6665_v24  ;;  %8536 = vmatprep.subr.mxu0 %v6697_v25  ;;  %v6897_v24 = vld [vmem:[#allocation37 + $0x120] sm:$0xff]  ;;  %v6899_v25 = vld [vmem:[#allocation37 + $0x130] sm:$0xff] }
0x1d7a   :  { %8502 = vmatpush3.msra.mxu1 %v6649_v26  ;;  %8537 = vmatpush3.msra.mxu0 %v6681_v27  ;;  %v6894_v26 = vld [vmem:[#allocation37 + $0x108] sm:$0xff]  ;;  %v6896_v27 = vld [vmem:[#allocation37 + $0x118] sm:$0xff] }
0x1d7b   :  { %8503 = vmatprep.subr.mxu1 %v6664_v29  ;;  %8538 = vmatprep.subr.mxu0 %v6696_v32  ;;  %v6893_v29 = vld [vmem:[#allocation37 + $0x100] sm:$0xff]  ;;  %v6895_v32 = vld [vmem:[#allocation37 + $0x110] sm:$0xff] }
0x1d7c   :  { %8504 = vmatpush3.msra.mxu1 %v6648_v60  ;;  %8539 = vmatpush3.msra.mxu0 %v6680_v38  ;;  %v6890_v60 = vld [vmem:[#allocation37 + $0xe8] sm:$0xff]  ;;  %v6892_v38 = vld [vmem:[#allocation37 + $0xf8] sm:$0xff] }
0x1d7d   :  { %8505 = vmatprep.subr.mxu1 %v6663_v31  ;;  %8540 = vmatprep.subr.mxu0 %v6695_v45  ;;  %v6889_v31 = vld [vmem:[#allocation37 + $0xe0] sm:$0xff]  ;;  %v6891_v45 = vld [vmem:[#allocation37 + $0xf0] sm:$0xff] }
0x1d7e   :  { %8506 = vmatpush3.msra.mxu1 %v6647_v21  ;;  %8541 = vmatpush3.msra.mxu0 %v6679_v40  ;;  %v6886_v21 = vld [vmem:[#allocation37 + $0xc8] sm:$0xff]  ;;  %v6888_v40 = vld [vmem:[#allocation37 + $0xd8] sm:$0xff] }
0x1d7f   :  { %8507 = vmatprep.subr.mxu1 %v6662_v33  ;;  %8542 = vmatprep.subr.mxu0 %v6694_v42  ;;  %v6885_v33 = vld [vmem:[#allocation37 + $0xc0] sm:$0xff]  ;;  %v6887_v42 = vld [vmem:[#allocation37 + $0xd0] sm:$0xff] }
0x1d80   :  { %8508 = vmatpush3.msra.mxu1 %v6646_v15  ;;  %8543 = vmatpush3.msra.mxu0 %v6678_v55  ;;  %v6882_v15 = vld [vmem:[#allocation37 + $0xa8] sm:$0xff]  ;;  %v6884_v55 = vld [vmem:[#allocation37 + $0xb8] sm:$0xff] }
0x1d81   :  { %6947 = vmatprep.subr.mxu1 %v6922_v16  ;;  %7018 = vmatprep.subr.mxu0 %v6924_v10  ;;  %v6881_v16 = vld [vmem:[#allocation37 + $0xa0] sm:$0xff]  ;;  %v6883_v10 = vld [vmem:[#allocation37 + $0xb0] sm:$0xff] }
0x1e21   :  { %v6566_v35 = vpop.f32.mrf.mxu1  ;;  %v6637_v11 = vpop.f32.mrf.mxu0 }
0x1e22   :  { %v6567_v61 = vadd.f32 %v6566_v35, %v6483_v62  ;;  %v6638_v4 = vadd.f32 %v6637_v11, %v6491_v13  ;;  %v6880_v62 = vld [vmem:[#allocation37 + $0x98] sm:$0xff]  ;;  %v6877_v13 = vld [vmem:[#allocation37 + $0x80] sm:$0xff] }
0x1e23   :  { %v6568_v14 = vpop.f32.mrf.mxu1  ;;  %v6639_v2 = vpop.f32.mrf.mxu0  ;;  %v6876_v35 = vld [vmem:[#allocation37 + $0x78] sm:$0xff]  ;;  %v6873_v11 = vld [vmem:[#allocation37 + $0x60] sm:$0xff] }
0x1e24   :  { %v6569_v50 = vadd.f32 %v6568_v14, %v6487_v36  ;;  %v6640_v37 = vadd.f32 %v6639_v2, %v6495_v44  ;;  %v6642_v51 = vmax.f32 %v6567_v61, 0.0  ;;  %v6644_v34 = vmax.f32 %v6638_v4, 0.0  ;;  %v6879_v36 = vld [vmem:[#allocation37 + $0x90] sm:$0xff]  ;;  %v6874_v44 = vld [vmem:[#allocation37 + $0x68] sm:$0xff]  ;;  %v6872_v14 = vld [vmem:[#allocation37 + $0x58] sm:$0xff] }
0x1e25   :  { %v6875_v61 = vld [vmem:[#allocation37 + $0x70] sm:$0xff]  ;;  %v6870_v4 = vld [vmem:[#allocation37 + $0x48] sm:$0xff]  ;;  %v6869_v2 = vld [vmem:[#allocation37 + $0x40] sm:$0xff] }
0x1e26   :  { %v6643_v59 = vmax.f32 %v6569_v50, 0.0  ;;  %v6645_v0 = vmax.f32 %v6640_v37, 0.0  ;;  %v6871_v50 = vld [vmem:[#allocation37 + $0x50] sm:$0xff]  ;;  %v6866_v37 = vld [vmem:[#allocation37 + $0x28] sm:$0xff] }
0x1e28   :  { %6781 = vmatprep.mubr.f32.mxu1 %v6643_v59  ;;  %6851 = vmatprep.mubr.f32.mxu0 %v6645_v0  ;;  %v6868_v59 = vld [vmem:[#allocation37 + $0x38] sm:$0xff]  ;;  %v6865_v0 = vld [vmem:[#allocation37 + $0x20] sm:$0xff] }
0x1e29   :  { %6782 = vmatmul.mubr.f32.vlgmr.msra.gmra.mxu1 %v6642_v51  ;;  %6852 = vmatmul.mubr.f32.vlgmr.msra.gmra.mxu0 %v6644_v34  ;;  %v6867_v51 = vld [vmem:[#allocation37 + $0x30] sm:$0xff]  ;;  %v6862_v34 = vld [vmem:[#allocation37 + $0x8] sm:$0xff] }
0x1e2a   :  { %6948 = vmatpush1.msra.mxu1 %v6921_v63  ;;  %7019 = vmatpush1.msra.mxu0 %v6923_v28  ;;  %v6864_v63 = vld [vmem:[#allocation37 + $0x18] sm:$0xff]  ;;  %v6861_v28 = vld [vmem:[#allocation37] sm:$0xff] }
0x1e2b   :  { %6949 = vmatprep.subr.mxu1 %v6918_v49  ;;  %7020 = vmatprep.subr.mxu0 %v6920_v39  ;;  %v6863_v49 = vld [vmem:[#allocation37 + $0x10] sm:$0xff]  ;;  %v7124_v39 = vld [vmem:[#allocation39 + $0xf8] sm:$0xff] }
0x1e2c   :  { %6950 = vmatpush1.msra.mxu1 %v6917_v57  ;;  %7021 = vmatpush1.msra.mxu0 %v6919_v56  ;;  %v7156_v57 = vld [vmem:[#allocation39 + $0x1f8] sm:$0xff] }
0x1e2d   :  { %6951 = vmatprep.subr.mxu1 %v6914_v5  ;;  %7022 = vmatprep.subr.mxu0 %v6916_v30  ;;  %v8371_v30 = vld [vmem:[%s14475_s17] ss:$0 sm:$0xff] }
0x1e2e   :  { %6952 = vmatpush1.msra.mxu1 %v6913_v52  ;;  %7023 = vmatpush1.msra.mxu0 %v6915_v46 }
0x1e2f   :  { %6953 = vmatprep.subr.mxu1 %v6910_v7  ;;  %7024 = vmatprep.subr.mxu0 %v6912_v58 }
0x1e30   :  { %6954 = vmatpush1.msra.mxu1 %v6909_v1  ;;  %7025 = vmatpush1.msra.mxu0 %v6911_v3 }
0x1e31   :  { %6955 = vmatprep.subr.mxu1 %v6906_v54  ;;  %7026 = vmatprep.subr.mxu0 %v6908_v8 }
0x1e32   :  { %6956 = vmatpush1.msra.mxu1 %v6905_v9  ;;  %7027 = vmatpush1.msra.mxu0 %v6907_v12  ;;  %v7108_v9 = vld [vmem:[#allocation39 + $0x78] sm:$0xff] }
0x1e33   :  { %6957 = vmatprep.subr.mxu1 %v6902_v17  ;;  %7028 = vmatprep.subr.mxu0 %v6904_v18  ;;  %v7140_v12 = vld [vmem:[#allocation39 + $0x178] sm:$0xff]  ;;  %v7123_v17 = vld [vmem:[#allocation39 + $0xf0] sm:$0xff] }
0x1e34   :  { %6958 = vmatpush1.msra.mxu1 %v6901_v19  ;;  %7029 = vmatpush1.msra.mxu0 %v6903_v20  ;;  %v7155_v18 = vld [vmem:[#allocation39 + $0x1f0] sm:$0xff] }
0x1e35   :  { %6959 = vmatprep.subr.mxu1 %v6898_v22  ;;  %7030 = vmatprep.subr.mxu0 %v6900_v23  ;;  %v7107_v19 = vld [vmem:[#allocation39 + $0x70] sm:$0xff]  ;;  %v7122_v22 = vld [vmem:[#allocation39 + $0xe8] sm:$0xff] }
0x1e36   :  { %6960 = vmatpush1.msra.mxu1 %v6897_v24  ;;  %7031 = vmatpush1.msra.mxu0 %v6899_v25  ;;  %v7139_v20 = vld [vmem:[#allocation39 + $0x170] sm:$0xff]  ;;  %v7154_v23 = vld [vmem:[#allocation39 + $0x1e8] sm:$0xff] }
0x1e37   :  { %6961 = vmatprep.subr.mxu1 %v6894_v26  ;;  %7032 = vmatprep.subr.mxu0 %v6896_v27  ;;  %v7106_v24 = vld [vmem:[#allocation39 + $0x68] sm:$0xff]  ;;  %v7121_v26 = vld [vmem:[#allocation39 + $0xe0] sm:$0xff] }
0x1e38   :  { %6962 = vmatpush1.msra.mxu1 %v6893_v29  ;;  %7033 = vmatpush1.msra.mxu0 %v6895_v32  ;;  %v7138_v25 = vld [vmem:[#allocation39 + $0x168] sm:$0xff]  ;;  %v7153_v27 = vld [vmem:[#allocation39 + $0x1e0] sm:$0xff] }
0x1e39   :  { %6963 = vmatprep.subr.mxu1 %v6890_v60  ;;  %7034 = vmatprep.subr.mxu0 %v6892_v38  ;;  %v7105_v29 = vld [vmem:[#allocation39 + $0x60] sm:$0xff]  ;;  %v7120_v60 = vld [vmem:[#allocation39 + $0xd8] sm:$0xff] }
0x1e3a   :  { %6964 = vmatpush1.msra.mxu1 %v6889_v31  ;;  %7035 = vmatpush1.msra.mxu0 %v6891_v45  ;;  %v7137_v32 = vld [vmem:[#allocation39 + $0x160] sm:$0xff]  ;;  %v7152_v38 = vld [vmem:[#allocation39 + $0x1d8] sm:$0xff] }
0x1e3b   :  { %6965 = vmatprep.subr.mxu1 %v6886_v21  ;;  %7036 = vmatprep.subr.mxu0 %v6888_v40  ;;  %v7104_v31 = vld [vmem:[#allocation39 + $0x58] sm:$0xff]  ;;  %v7119_v21 = vld [vmem:[#allocation39 + $0xd0] sm:$0xff] }
0x1e3c   :  { %7011 = vmatprep.mubr.f32.mxu1 %v14467_v48  ;;  %7082 = vmatprep.mubr.f32.mxu0 %v14467_v48  ;;  %v7136_v45 = vld [vmem:[#allocation39 + $0x158] sm:$0xff]  ;;  %v7151_v40 = vld [vmem:[#allocation39 + $0x1d0] sm:$0xff] }
0x1e3d   :  { %6966 = vmatpush1.msra.mxu1 %v6885_v33  ;;  %7037 = vmatpush1.msra.mxu0 %v6887_v42  ;;  %v7103_v33 = vld [vmem:[#allocation39 + $0x50] sm:$0xff] }
0x1e3e   :  { %6967 = vmatprep.subr.mxu1 %v6882_v15  ;;  %7038 = vmatprep.subr.mxu0 %v6884_v55  ;;  %v7135_v42 = vld [vmem:[#allocation39 + $0x150] sm:$0xff]  ;;  %v7118_v15 = vld [vmem:[#allocation39 + $0xc8] sm:$0xff] }
0x1e3f   :  { %6968 = vmatpush1.msra.mxu1 %v6881_v16  ;;  %7039 = vmatpush1.msra.mxu0 %v6883_v10  ;;  %v7150_v55 = vld [vmem:[#allocation39 + $0x1c8] sm:$0xff] }
0x1e40   :  { %6969 = vmatprep.subr.mxu1 %v6878_v41  ;;  %7040 = vmatprep.subr.mxu0 %v6880_v62  ;;  %v7102_v16 = vld [vmem:[#allocation39 + $0x48] sm:$0xff]  ;;  %v7117_v41 = vld [vmem:[#allocation39 + $0xc0] sm:$0xff] }
0x1e41   :  { %6970 = vmatpush1.msra.mxu1 %v6877_v13  ;;  %7041 = vmatpush1.msra.mxu0 %v6879_v36  ;;  %v7134_v10 = vld [vmem:[#allocation39 + $0x148] sm:$0xff]  ;;  %v7149_v62 = vld [vmem:[#allocation39 + $0x1c0] sm:$0xff] }
0x1e42   :  { %6971 = vmatprep.subr.mxu1 %v6874_v44  ;;  %7042 = vmatprep.subr.mxu0 %v6876_v35  ;;  %v7101_v13 = vld [vmem:[#allocation39 + $0x40] sm:$0xff]  ;;  %v7116_v44 = vld [vmem:[#allocation39 + $0xb8] sm:$0xff] }
0x1e43   :  { %6972 = vmatpush1.msra.mxu1 %v6873_v11  ;;  %7043 = vmatpush1.msra.mxu0 %v6875_v61  ;;  %v7133_v36 = vld [vmem:[#allocation39 + $0x140] sm:$0xff]  ;;  %v7148_v35 = vld [vmem:[#allocation39 + $0x1b8] sm:$0xff] }
0x1e44   :  { %6973 = vmatprep.subr.mxu1 %v6870_v4  ;;  %7044 = vmatprep.subr.mxu0 %v6872_v14  ;;  %v7100_v11 = vld [vmem:[#allocation39 + $0x38] sm:$0xff]  ;;  %v7115_v4 = vld [vmem:[#allocation39 + $0xb0] sm:$0xff] }
0x1e45   :  { %6974 = vmatpush1.msra.mxu1 %v6869_v2  ;;  %7045 = vmatpush1.msra.mxu0 %v6871_v50  ;;  %v7132_v61 = vld [vmem:[#allocation39 + $0x138] sm:$0xff]  ;;  %v7147_v14 = vld [vmem:[#allocation39 + $0x1b0] sm:$0xff] }
0x1e46   :  { %6975 = vmatprep.subr.mxu1 %v6866_v37  ;;  %7046 = vmatprep.subr.mxu0 %v6868_v59  ;;  %v7099_v2 = vld [vmem:[#allocation39 + $0x30] sm:$0xff]  ;;  %v7114_v37 = vld [vmem:[#allocation39 + $0xa8] sm:$0xff] }
0x1e47   :  { %6976 = vmatpush1.msra.mxu1 %v6865_v0  ;;  %7047 = vmatpush1.msra.mxu0 %v6867_v51  ;;  %v7131_v50 = vld [vmem:[#allocation39 + $0x130] sm:$0xff]  ;;  %v7146_v59 = vld [vmem:[#allocation39 + $0x1a8] sm:$0xff] }
0x1e48   :  { %6977 = vmatprep.subr.mxu1 %v6862_v34  ;;  %7048 = vmatprep.subr.mxu0 %v6864_v63  ;;  %v7098_v0 = vld [vmem:[#allocation39 + $0x28] sm:$0xff]  ;;  %v7113_v34 = vld [vmem:[#allocation39 + $0xa0] sm:$0xff] }
0x1e49   :  { %6978 = vmatpush1.msra.mxu1 %v6861_v28  ;;  %7049 = vmatpush1.msra.mxu0 %v6863_v49  ;;  %v7130_v51 = vld [vmem:[#allocation39 + $0x128] sm:$0xff]  ;;  %v7145_v63 = vld [vmem:[#allocation39 + $0x1a0] sm:$0xff] }
0x1e4a   :  { %8547 = vmatprep.subr.mxu1 %v7124_v39  ;;  %8582 = vmatprep.subr.mxu0 %v7156_v57  ;;  %v7097_v28 = vld [vmem:[#allocation39 + $0x20] sm:$0xff]  ;;  %v7112_v39 = vld [vmem:[#allocation39 + $0x98] sm:$0xff] }
0x1e4b   :  { %v7129_v49 = vld [vmem:[#allocation39 + $0x120] sm:$0xff]  ;;  %v7144_v57 = vld [vmem:[#allocation39 + $0x198] sm:$0xff] }
0x1ee9   :  { %v8509_v56 = vpop.f32.mrf.mxu1  ;;  %v8544_v5 = vpop.f32.mrf.mxu0 }
0x1eeb   :  { %v8510_v52 = vpop.f32.mrf.mxu1  ;;  %v8545_v46 = vpop.f32.mrf.mxu0 }
0x1eec   :  { %v8511_v7 = vadd.f32 %v8510_v52, %v8509_v56  ;;  %v8546_v1 = vadd.f32 %v8545_v46, %v8544_v5  ;;  %v7096_v56 = vld [vmem:[#allocation39 + $0x18] sm:$0xff]  ;;  %v7143_v52 = vld [vmem:[#allocation39 + $0x190] sm:$0xff] }
0x1eed   :  { %v7128_v5 = vld [vmem:[#allocation39 + $0x118] sm:$0xff]  ;;  %v7095_v46 = vld [vmem:[#allocation39 + $0x10] sm:$0xff] }
0x1eee   :  { %v6784_v58 = vadd.f32 %v8511_v7, %v8371_v30  ;;  %v7111_v30 = vld [vmem:[#allocation39 + $0x90] sm:$0xff] }
0x1eef   :  { %v7127_v7 = vld [vmem:[#allocation39 + $0x110] sm:$0xff] }
0x1ef0   :  { %v6854_v3 = vadd.f32 %v8546_v1, %v6784_v58  ;;  %v7110_v58 = vld [vmem:[#allocation39 + $0x88] sm:$0xff] }
0x1ef1   :  { %v7142_v1 = vld [vmem:[#allocation39 + $0x188] sm:$0xff] }
0x1ef2   :  { %v6858_v54 = vrot.slane %v6854_v3, 2 }
0x1ef4   :  { %v6860_v8 = vmax.f32 %v6854_v3, %v6858_v54  ;;  %v7094_v3 = vld [vmem:[#allocation39 + $0x8] sm:$0xff] }
0x1ef5   :  { %v7126_v54 = vld [vmem:[#allocation39 + $0x108] sm:$0xff] }
0x1ef6   :  { %7012 = vmatmul.mubr.f32.vlgmr.msra.gmra.mxu1 %v6860_v8  ;;  %7083 = vmatmul.mubr.f32.vlgmr.msra.gmra.mxu0 %v6860_v8  ;;  %v7109_v8 = vld [vmem:[#allocation39 + $0x80] sm:$0xff] }
0x1ef7   :  { %8548 = vmatpush3.msra.mxu1 %v7108_v9  ;;  %8583 = vmatpush3.msra.mxu0 %v7140_v12  ;;  %v7141_v9 = vld [vmem:[#allocation39 + $0x180] sm:$0xff] }
0x1ef8   :  { %8549 = vmatprep.subr.mxu1 %v7123_v17  ;;  %8584 = vmatprep.subr.mxu0 %v7155_v18  ;;  %v7093_v12 = vld [vmem:[#allocation39] sm:$0xff]  ;;  %v6925_v18 = vld [vmem:[%s14476_s28] sm:$0xf] }
0x1ef9   :  { %8550 = vmatpush3.msra.mxu1 %v7107_v19  ;;  %8585 = vmatpush3.msra.mxu0 %v7139_v20  ;;  %v7125_v17 = vld [vmem:[#allocation39 + $0x100] sm:$0xff]  ;;  %v6930_v19 = vrot.slane %v6925_v18, %v14471_v47  ;;  %v6938_v20 = vrot.slane %v6925_v18, %v14472_v53  ;;  %v7319_v47 = vld [vmem:[#allocation40 + $0x70] sm:$0xff]  ;;  %v7318_v53 = vld [vmem:[#allocation40 + $0x68] sm:$0xff] }
0x1efa   :  { %8551 = vmatprep.subr.mxu1 %v7122_v22  ;;  %8586 = vmatprep.subr.mxu0 %v7154_v23  ;;  %v6934_v22 = vrot.slane %v6925_v18, %v14473_v43  ;;  %v6942_v23 = vrot.slane %v6925_v18, %v14474_v6  ;;  %v7317_v43 = vld [vmem:[#allocation40 + $0x60] sm:$0xff]  ;;  %v7316_v6 = vld [vmem:[#allocation40 + $0x58] sm:$0xff] }
0x1efb   :  { %8552 = vmatpush3.msra.mxu1 %v7106_v24  ;;  %8587 = vmatpush3.msra.mxu0 %v7138_v25 }
0x1efc   :  { %8553 = vmatprep.subr.mxu1 %v7121_v26  ;;  %8588 = vmatprep.subr.mxu0 %v7153_v27 }
0x1efd   :  { %8554 = vmatpush3.msra.mxu1 %v7105_v29  ;;  %8589 = vmatpush3.msra.mxu0 %v7137_v32 }
0x1efe   :  { %8555 = vmatprep.subr.mxu1 %v7120_v60  ;;  %8590 = vmatprep.subr.mxu0 %v7152_v38 }
0x1eff   :  { %8556 = vmatpush3.msra.mxu1 %v7104_v31  ;;  %8591 = vmatpush3.msra.mxu0 %v7136_v45 }
0x1f00   :  { %8557 = vmatprep.subr.mxu1 %v7119_v21  ;;  %8592 = vmatprep.subr.mxu0 %v7151_v40 }
0x1f01   :  { %8558 = vmatpush3.msra.mxu1 %v7103_v33  ;;  %8593 = vmatpush3.msra.mxu0 %v7135_v42  ;;  %v7320_v33 = vld [vmem:[#allocation40 + $0x78] sm:$0xff]  ;;  %v7315_v42 = vld [vmem:[#allocation40 + $0x50] sm:$0xff] }
0x1f02   :  { %8559 = vmatprep.subr.mxu1 %v7118_v15  ;;  %8594 = vmatprep.subr.mxu0 %v7150_v55  ;;  %v7314_v15 = vld [vmem:[#allocation40 + $0x48] sm:$0xff]  ;;  %v7313_v55 = vld [vmem:[#allocation40 + $0x40] sm:$0xff] }
0x1f03   :  { %8560 = vmatpush3.msra.mxu1 %v7102_v16  ;;  %8595 = vmatpush3.msra.mxu0 %v7134_v10  ;;  %v7312_v16 = vld [vmem:[#allocation40 + $0x38] sm:$0xff]  ;;  %v7311_v10 = vld [vmem:[#allocation40 + $0x30] sm:$0xff] }
0x1f04   :  { %8561 = vmatprep.subr.mxu1 %v7117_v41  ;;  %8596 = vmatprep.subr.mxu0 %v7149_v62  ;;  %v7310_v41 = vld [vmem:[#allocation40 + $0x28] sm:$0xff]  ;;  %v7309_v62 = vld [vmem:[#allocation40 + $0x20] sm:$0xff] }
0x1f05   :  { %8562 = vmatpush3.msra.mxu1 %v7101_v13  ;;  %8597 = vmatpush3.msra.mxu0 %v7133_v36  ;;  %v7308_v13 = vld [vmem:[#allocation40 + $0x18] sm:$0xff]  ;;  %v7307_v36 = vld [vmem:[#allocation40 + $0x10] sm:$0xff] }
0x1f06   :  { %8563 = vmatprep.subr.mxu1 %v7116_v44  ;;  %8598 = vmatprep.subr.mxu0 %v7148_v35  ;;  %v7306_v44 = vld [vmem:[#allocation40 + $0x8] sm:$0xff]  ;;  %v13425_v35 = vld [vmem:[%s10429_s29] sm:$0xff]  ;;  %s10246_s29 = smov 112  }
0x1f07   :  { %8564 = vmatpush3.msra.mxu1 %v7100_v11  ;;  %8599 = vmatpush3.msra.mxu0 %v7132_v61  ;;  %v7305_v11 = vld [vmem:[#allocation40] sm:$0xff] }
0x1f08   :  { %8565 = vmatprep.subr.mxu1 %v7115_v4  ;;  %8600 = vmatprep.subr.mxu0 %v7147_v14  ;;  %v8372_v14 = vld [vmem:[%s14477_s1] ss:$0 sm:$0xff] }
0x1f09   :  { %8566 = vmatpush3.msra.mxu1 %v7099_v2  ;;  %8601 = vmatpush3.msra.mxu0 %v7131_v50 }
0x1f0a   :  { %8567 = vmatprep.subr.mxu1 %v7114_v37  ;;  %8602 = vmatprep.subr.mxu0 %v7146_v59 }
0x1f0b   :  { %8568 = vmatpush3.msra.mxu1 %v7098_v0  ;;  %8603 = vmatpush3.msra.mxu0 %v7130_v51 }
0x1f0c   :  { %8569 = vmatprep.subr.mxu1 %v7113_v34  ;;  %8604 = vmatprep.subr.mxu0 %v7145_v63 }
0x1f0d   :  { %8570 = vmatpush3.msra.mxu1 %v7097_v28  ;;  %8605 = vmatpush3.msra.mxu0 %v7129_v49  ;;  %v13436_v28 = vld [vmem:[%s10434_s24] ss:$0 sm:$0xff]  ;;  %s10247_s24 = smov 16  }
0x1f0e   :  { %8571 = vmatprep.subr.mxu1 %v7112_v39  ;;  %8606 = vmatprep.subr.mxu0 %v7144_v57 }
0x1f0f   :  { %8572 = vmatpush3.msra.mxu1 %v7096_v56  ;;  %8607 = vmatpush3.msra.mxu0 %v7128_v5 }
0x1f10   :  { %8573 = vmatprep.subr.mxu1 %v7111_v30  ;;  %8608 = vmatprep.subr.mxu0 %v7143_v52 }
0x1f11   :  { %8574 = vmatpush3.msra.mxu1 %v7095_v46  ;;  %8609 = vmatpush3.msra.mxu0 %v7127_v7 }
0x1f12   :  { %8575 = vmatprep.subr.mxu1 %v7110_v58  ;;  %8610 = vmatprep.subr.mxu0 %v7142_v1 }
0x1f13   :  { %8576 = vmatpush3.msra.mxu1 %v7094_v3  ;;  %8611 = vmatpush3.msra.mxu0 %v7126_v54 }
0x1f14   :  { %8577 = vmatprep.subr.mxu1 %v7109_v8  ;;  %8612 = vmatprep.subr.mxu0 %v7141_v9 }
0x1f15   :  { %8578 = vmatpush3.msra.mxu1 %v7093_v12  ;;  %8613 = vmatpush3.msra.mxu0 %v7125_v17 }
0x1f16   :  { %8832 = vmatprep.subr.mxu1 %v14467_v48  ;;  %8867 = vmatprep.subr.mxu0 %v14467_v48 }
0x1fb6   :  { %v7013_v24 = vpop.f32.mrf.mxu1  ;;  %v7084_v25 = vpop.f32.mrf.mxu0 }
0x1fb7   :  { %v7014_v26 = vadd.f32 %v7013_v24, %v6930_v19  ;;  %v7085_v27 = vadd.f32 %v7084_v25, %v6938_v20 }
0x1fb8   :  { %v7015_v29 = vpop.f32.mrf.mxu1  ;;  %v7086_v32 = vpop.f32.mrf.mxu0 }
0x1fb9   :  { %v7016_v60 = vadd.f32 %v7015_v29, %v6934_v22  ;;  %v7087_v38 = vadd.f32 %v7086_v32, %v6942_v23  ;;  %v7089_v21 = vmax.f32 %v7014_v26, 0.0  ;;  %v7091_v40 = vmax.f32 %v7085_v27, 0.0 }
0x1fbb   :  { %v7090_v31 = vmax.f32 %v7016_v60, 0.0  ;;  %v7092_v45 = vmax.f32 %v7087_v38, 0.0 }
0x1fbd   :  { %7228 = vmatprep.mubr.f32.mxu1 %v7090_v31  ;;  %7298 = vmatprep.mubr.f32.mxu0 %v7092_v45 }
0x1fbe   :  { %7229 = vmatmul.mubr.f32.vlgmr.msra.gmra.mxu1 %v7089_v21  ;;  %7299 = vmatmul.mubr.f32.vlgmr.msra.gmra.mxu0 %v7091_v40 }
0x1fbf   :  { %8833 = vmatpush3.msra.mxu1 %v7320_v33  ;;  %8864 = vmatprep.mubr.msk.f32.mxu1 %vm10245_vm5, %v14467_v48 }
0x1fc0   :  { %8834 = vmatprep.subr.mxu1 %v14467_v48  ;;  %8869 = vmatprep.mubr.msk.f32.mxu0 %vm10245_vm5, %v14467_v48 }
0x1fc1   :  { %8835 = vmatpush3.msra.mxu1 %v7319_v47  ;;  %8868 = vmatpush3.msra.mxu0 %v13425_v35 }
0x1fc2   :  { %8836 = vmatprep.subr.mxu1 %v14467_v48  ;;  %8870 = vmatmul.mubr.f32.vlgmr.msra.gmra.mxu0 %v14467_v48 }
0x1fc3   :  { %8837 = vmatpush3.msra.mxu1 %v7318_v53  ;;  %8872 = vmatprep.subr.mxu0 %v14467_v48 }
0x1fc4   :  { %8838 = vmatprep.subr.mxu1 %v14467_v48  ;;  %8873 = vmatpush3.msra.mxu0 %v13425_v35 }
0x1fc5   :  { %8839 = vmatpush3.msra.mxu1 %v7317_v43  ;;  %8874 = vmatprep.mubr.msk.f32.mxu0 %vm10245_vm5, %v14467_v48 }
0x1fc6   :  { %8840 = vmatprep.subr.mxu1 %v14467_v48  ;;  %8877 = vmatprep.subr.mxu0 %v14467_v48 }
0x1fc7   :  { %8841 = vmatpush3.msra.mxu1 %v7316_v6 }
0x1fc8   :  { %8842 = vmatprep.subr.mxu1 %v14467_v48 }
0x1fc9   :  { %8843 = vmatpush3.msra.mxu1 %v7315_v42 }
0x1fca   :  { %8844 = vmatprep.subr.mxu1 %v14467_v48 }
0x1fcb   :  { %8845 = vmatpush3.msra.mxu1 %v7314_v15 }
0x1fcc   :  { %8846 = vmatprep.subr.mxu1 %v14467_v48 }
0x1fcd   :  { %8847 = vmatpush3.msra.mxu1 %v7313_v55 }
0x1fce   :  { %8848 = vmatprep.subr.mxu1 %v14467_v48 }
0x1fcf   :  { %8849 = vmatpush3.msra.mxu1 %v7312_v16 }
0x1fd0   :  { %8850 = vmatprep.subr.mxu1 %v14467_v48 }
0x1fd1   :  { %8851 = vmatpush3.msra.mxu1 %v7311_v10 }
0x1fd2   :  { %8852 = vmatprep.subr.mxu1 %v14467_v48 }
0x1fd3   :  { %8853 = vmatpush3.msra.mxu1 %v7310_v41 }
0x1fd4   :  { %8854 = vmatprep.subr.mxu1 %v14467_v48 }
0x1fd5   :  { %8855 = vmatpush3.msra.mxu1 %v7309_v62 }
0x1fd6   :  { %8856 = vmatprep.subr.mxu1 %v14467_v48 }
0x1fd7   :  { %8857 = vmatpush3.msra.mxu1 %v7308_v13 }
0x1fd8   :  { %8858 = vmatprep.subr.mxu1 %v14467_v48 }
0x1fd9   :  { %8859 = vmatpush3.msra.mxu1 %v7307_v36 }
0x1fda   :  { %8860 = vmatprep.subr.mxu1 %v14467_v48 }
0x1fdb   :  { %8861 = vmatpush3.msra.mxu1 %v7306_v44 }
0x1fdc   :  { %8862 = vmatprep.subr.mxu1 %v14467_v48 }
0x1fdd   :  { %8863 = vmatpush3.msra.mxu1 %v7305_v11 }
0x207e   :  { %v8579_v61 = vpop.f32.mrf.mxu1  ;;  %v8614_v4 = vpop.f32.mrf.mxu0 }
0x2080   :  { %v8580_v2 = vpop.f32.mrf.mxu1  ;;  %v8615_v50 = vpop.f32.mrf.mxu0 }
0x2081   :  { %v8581_v37 = vadd.f32 %v8580_v2, %v8579_v61  ;;  %v8616_v0 = vadd.f32 %v8615_v50, %v8614_v4 }
0x2082   :  { %v7467_v34 = vpop.f32.mrf.mxu0 }
0x2083   :  { %v7231_v59 = vadd.f32 %v8581_v37, %v8372_v14 }
0x2084   :  { %v8871_v63 = vpop.f32.mrf.mxu0 }
0x2085   :  { %v7301_v51 = vadd.f32 %v8616_v0, %v7231_v59 }
0x2087   :  { %8865 = vmatmul.mubr.f32.vlgmr.msra.gmra.mxu1 %v7301_v51 }
0x2147   :  { %v7394_v49 = vpop.f32.mrf.mxu1 }
0x2148   :  { %v7395_v39 = vadd.f32 %v13436_v28, %v7394_v49 }
0x2149   :  { %v8866_v57 = vpop.f32.mrf.mxu1 }
0x214a   :  { %v7471_v56 = vadd.f32 %v7467_v34, %v7395_v39 }
0x214c   :  { %9374 = vtanh.f32 %v7471_v56  ;;  %v8374_v30 = vmul.f32 -1.442695, %v7471_v56 }
0x214e   :  { %9376 = vpow2.f32 %v8374_v30 }
0x2159   :  { %v9375_v5 = vpop.eup %9374 }
0x215a   :  { %7481 = vrot.lane.b32.xlu0 %v9375_v5, %s10246_s29 }
0x215b   :  { %v9377_v52 = vpop.eup %9376 }
0x215c   :  { %v7475_v46 = vadd.f32 1.0, %v9377_v52 }
0x215e   :  { %9378 = vrcp.f32 %v7475_v46 }
0x216b   :  { %v9379_v7 = vpop.eup %9378 }
0x216c   :  { %v7479_v3 = vmul.f32 0.0, %v9379_v7 }
0x21cc   :  { %v7482_v58 = vpop.permute.xlu0 %7481 }
0x21cd   :  { %v7484_v1 = vmul.f32 %v9379_v7, %v7482_v58 }
0x21cf   :  { %7486 = vrot.lane.b32.xlu1 %v7484_v1, %s10225_s18 }
0x2241   :  { %v7487_v54 = vpop.permute.xlu1 %7486 }
0x2242   :  { %v7489_v8 = vadd.f32 %v7487_v54, %v7479_v3 }
0x2244   :  { %9380 = vtanh.f32 %v7489_v8 }
0x2251   :  { %v9381_v9 = vpop.eup %9380 }
0x2252   :  { %7492 = vrot.lane.b32.xlu1 %v9381_v9, %s10247_s24 }
0x22c4   :  { %v7493_v12 = vpop.permute.xlu1 %7492 }
0x22c5   :  { %v7495_v17 = vmul.f32 %v9379_v7, %v7493_v12 }
0x22c7   :  { %7497 = vrot.lane.b32.xlu1 %v7495_v17, %s10248_s4 }
0x2339   :  { %v13443_v18 = vpop.permute.xlu1 %7497 }
0x233a   :  { %8875 = vmatmul.mubr.msk.f32.vlgmr.msra.gmra.mxu0 %vm508_vm0, %v13443_v18 }
0x233b   :  { %8878 = vmatpush3.msra.mxu0 %v13425_v35  ;;  %8879 = vmatprep.mubr.msk.f32.mxu0 %vm10245_vm5, %v14467_v48 }
0x233c   :  { %8882 = vmatprep.subr.mxu0 %v14467_v48 }
0x23fa   :  { %v7567_v19 = vpop.f32.mrf.mxu0 }
0x23fb   :  { %v7571_v20 = vadd.f32 %v13436_v28, %v7567_v19 }
0x23fc   :  { %v8876_v22 = vpop.f32.mrf.mxu0 }
0x23fd   :  { %9382 = vtanh.f32 %v7571_v20  ;;  %v8376_v24 = vmul.f32 -1.442695, %v7571_v20 }
0x23ff   :  { %9384 = vpow2.f32 %v8376_v24 }
0x240a   :  { %v9383_v23 = vpop.eup %9382 }
0x240b   :  { %7581 = vrot.lane.b32.xlu0 %v9383_v23, %s10246_s29 }
0x240c   :  { %v9385_v25 = vpop.eup %9384 }
0x240d   :  { %v7575_v26 = vadd.f32 1.0, %v9385_v25 }
0x240f   :  { %9386 = vrcp.f32 %v7575_v26 }
0x241c   :  { %v9387_v27 = vpop.eup %9386 }
0x241d   :  { %v7579_v60 = vmul.f32 %v9387_v27, %v7489_v8 }
0x247d   :  { %v7582_v29 = vpop.permute.xlu0 %7581 }
0x247e   :  { %v7584_v32 = vmul.f32 %v9387_v27, %v7582_v29 }
0x2480   :  { %7586 = vrot.lane.b32.xlu1 %v7584_v32, %s10225_s18 }
0x24f2   :  { %v7587_v38 = vpop.permute.xlu1 %7586 }
0x24f3   :  { %v7589_v31 = vadd.f32 %v7587_v38, %v7579_v60 }
0x24f5   :  { %9388 = vtanh.f32 %v7589_v31 }
0x2502   :  { %v9389_v45 = vpop.eup %9388 }
0x2503   :  { %7592 = vrot.lane.b32.xlu0 %v9389_v45, %s10247_s24 }
0x2575   :  { %v7593_v21 = vpop.permute.xlu0 %7592 }
0x2576   :  { %v13455_v40 = vmul.f32 %v9387_v27, %v7593_v21 }
0x2578   :  { %7597 = vrot.lane.b32.xlu1 %v13455_v40, %s10248_s4 }
0x25ea   :  { %v7598_v33 = vpop.permute.xlu1 %7597 }
0x25eb   :  { %8880 = vmatmul.mubr.msk.f32.vlgmr.msra.gmra.mxu0 %vm508_vm0, %v7598_v33 }
0x25ec   :  { %8883 = vmatpush3.msra.mxu0 %v13425_v35  ;;  %8884 = vmatprep.mubr.msk.f32.mxu0 %vm10245_vm5, %v14467_v48 }
0x25ed   :  { %8887 = vmatprep.subr.mxu0 %v14467_v48 }
0x26ab   :  { %v7667_v47 = vpop.f32.mrf.mxu0 }
0x26ac   :  { %v7671_v53 = vadd.f32 %v13436_v28, %v7667_v47 }
0x26ad   :  { %v8881_v43 = vpop.f32.mrf.mxu0 }
0x26ae   :  { %9390 = vtanh.f32 %v7671_v53  ;;  %v8378_v42 = vmul.f32 -1.442695, %v7671_v53 }
0x26b0   :  { %9392 = vpow2.f32 %v8378_v42 }
0x26bb   :  { %v9391_v6 = vpop.eup %9390 }
0x26bc   :  { %7681 = vrot.lane.b32.xlu0 %v9391_v6, %s10246_s29 }
0x26bd   :  { %v9393_v15 = vpop.eup %9392 }
0x26be   :  { %v7675_v55 = vadd.f32 1.0, %v9393_v15 }
0x26c0   :  { %9394 = vrcp.f32 %v7675_v55 }
0x26cd   :  { %v9395_v16 = vpop.eup %9394 }
0x26ce   :  { %v7679_v62 = vmul.f32 %v9395_v16, %v7589_v31 }
0x272e   :  { %v7682_v10 = vpop.permute.xlu0 %7681 }
0x272f   :  { %v7684_v41 = vmul.f32 %v9395_v16, %v7682_v10 }
0x2731   :  { %7686 = vrot.lane.b32.xlu1 %v7684_v41, %s10225_s18 }
0x27a3   :  { %v7687_v13 = vpop.permute.xlu1 %7686 }
0x27a4   :  { %v7689_v36 = vadd.f32 %v7687_v13, %v7679_v62 }
0x27a6   :  { %9396 = vtanh.f32 %v7689_v36 }
0x27b3   :  { %v9397_v44 = vpop.eup %9396 }
0x27b4   :  { %7692 = vrot.lane.b32.xlu0 %v9397_v44, %s10247_s24 }
0x2826   :  { %v7693_v11 = vpop.permute.xlu0 %7692 }
0x2827   :  { %v13468_v61 = vmul.f32 %v9395_v16, %v7693_v11 }
0x2829   :  { %7697 = vrot.lane.b32.xlu1 %v13468_v61, %s10248_s4 }
0x289b   :  { %v7698_v4 = vpop.permute.xlu1 %7697 }
0x289c   :  { %8885 = vmatmul.mubr.msk.f32.vlgmr.msra.gmra.mxu0 %vm508_vm0, %v7698_v4 }
0x289d   :  { %8888 = vmatpush3.msra.mxu0 %v13425_v35  ;;  %8889 = vmatprep.mubr.msk.f32.mxu0 %vm10245_vm5, %v14467_v48 }
0x289e   :  { %8892 = vmatprep.subr.mxu0 %v14467_v48 }
0x295c   :  { %v7767_v14 = vpop.f32.mrf.mxu0 }
0x295d   :  { %v7771_v2 = vadd.f32 %v13436_v28, %v7767_v14 }
0x295e   :  { %v8886_v50 = vpop.f32.mrf.mxu0 }
0x295f   :  { %9398 = vtanh.f32 %v7771_v2  ;;  %v8380_v59 = vmul.f32 -1.442695, %v7771_v2 }
0x2961   :  { %9400 = vpow2.f32 %v8380_v59 }
0x296c   :  { %v9399_v37 = vpop.eup %9398 }
0x296d   :  { %7781 = vrot.lane.b32.xlu0 %v9399_v37, %s10246_s29 }
0x296e   :  { %v9401_v0 = vpop.eup %9400 }
0x296f   :  { %v7775_v51 = vadd.f32 1.0, %v9401_v0 }
0x2971   :  { %9402 = vrcp.f32 %v7775_v51 }
0x297e   :  { %v9403_v34 = vpop.eup %9402 }
0x297f   :  { %v7779_v39 = vmul.f32 %v9403_v34, %v7689_v36 }
0x29df   :  { %v7782_v63 = vpop.permute.xlu0 %7781 }
0x29e0   :  { %v7784_v49 = vmul.f32 %v9403_v34, %v7782_v63 }
0x29e2   :  { %7786 = vrot.lane.b32.xlu1 %v7784_v49, %s10225_s18 }
0x2a54   :  { %v7787_v57 = vpop.permute.xlu1 %7786 }
0x2a55   :  { %v7789_v56 = vadd.f32 %v7787_v57, %v7779_v39 }
0x2a57   :  { %9404 = vtanh.f32 %v7789_v56 }
0x2a64   :  { %v9405_v5 = vpop.eup %9404 }
0x2a65   :  { %7792 = vrot.lane.b32.xlu0 %v9405_v5, %s10247_s24 }
0x2ad7   :  { %v7793_v30 = vpop.permute.xlu0 %7792 }
0x2ad8   :  { %v13481_v52 = vmul.f32 %v9403_v34, %v7793_v30 }
0x2ada   :  { %7797 = vrot.lane.b32.xlu1 %v13481_v52, %s10248_s4 }
0x2b4c   :  { %v7798_v46 = vpop.permute.xlu1 %7797 }
0x2b4d   :  { %8890 = vmatmul.mubr.msk.f32.vlgmr.msra.gmra.mxu0 %vm508_vm0, %v7798_v46 }
0x2b4e   :  { %8893 = vmatpush3.msra.mxu0 %v13425_v35  ;;  %8894 = vmatprep.mubr.msk.f32.mxu0 %vm10245_vm5, %v14467_v48 }
0x2b4f   :  { %8897 = vmatprep.subr.mxu0 %v14467_v48 }
0x2c0d   :  { %v7867_v7 = vpop.f32.mrf.mxu0 }
0x2c0e   :  { %v7871_v58 = vadd.f32 %v13436_v28, %v7867_v7 }
0x2c0f   :  { %v8891_v1 = vpop.f32.mrf.mxu0 }
0x2c10   :  { %9406 = vtanh.f32 %v7871_v58  ;;  %v8382_v54 = vmul.f32 -1.442695, %v7871_v58 }
0x2c12   :  { %9408 = vpow2.f32 %v8382_v54 }
0x2c1d   :  { %v9407_v3 = vpop.eup %9406 }
0x2c1e   :  { %7881 = vrot.lane.b32.xlu0 %v9407_v3, %s10246_s29 }
0x2c1f   :  { %v9409_v8 = vpop.eup %9408 }
0x2c20   :  { %v7875_v9 = vadd.f32 1.0, %v9409_v8 }
0x2c22   :  { %9410 = vrcp.f32 %v7875_v9 }
0x2c2f   :  { %v9411_v12 = vpop.eup %9410 }
0x2c30   :  { %v7879_v20 = vmul.f32 %v9411_v12, %v7789_v56 }
0x2c90   :  { %v7882_v17 = vpop.permute.xlu0 %7881 }
0x2c91   :  { %v7884_v19 = vmul.f32 %v9411_v12, %v7882_v17 }
0x2c93   :  { %7886 = vrot.lane.b32.xlu1 %v7884_v19, %s10225_s18 }
0x2d05   :  { %v7887_v22 = vpop.permute.xlu1 %7886 }
0x2d06   :  { %v7889_v23 = vadd.f32 %v7887_v22, %v7879_v20 }
0x2d08   :  { %9412 = vtanh.f32 %v7889_v23 }
0x2d15   :  { %v9413_v24 = vpop.eup %9412 }
0x2d16   :  { %7892 = vrot.lane.b32.xlu0 %v9413_v24, %s10247_s24 }
0x2d88   :  { %v7893_v25 = vpop.permute.xlu0 %7892 }
0x2d89   :  { %v13494_v26 = vmul.f32 %v9411_v12, %v7893_v25 }
0x2d8b   :  { %7897 = vrot.lane.b32.xlu1 %v13494_v26, %s10248_s4 }
0x2dfd   :  { %v7898_v27 = vpop.permute.xlu1 %7897 }
0x2dfe   :  { %8895 = vmatmul.mubr.msk.f32.vlgmr.msra.gmra.mxu0 %vm508_vm0, %v7898_v27 }
0x2dff   :  { %8898 = vmatpush3.msra.mxu0 %v13425_v35  ;;  %8899 = vmatprep.mubr.msk.f32.mxu0 %vm10245_vm5, %v14467_v48 }
0x2e00   :  { %8902 = vmatprep.subr.mxu0 %v14467_v48 }
0x2ebe   :  { %v7967_v29 = vpop.f32.mrf.mxu0 }
0x2ebf   :  { %v7971_v32 = vadd.f32 %v13436_v28, %v7967_v29 }
0x2ec0   :  { %v8896_v60 = vpop.f32.mrf.mxu0 }
0x2ec1   :  { %9414 = vtanh.f32 %v7971_v32  ;;  %v8384_v31 = vmul.f32 -1.442695, %v7971_v32 }
0x2ec3   :  { %9416 = vpow2.f32 %v8384_v31 }
0x2ece   :  { %v9415_v38 = vpop.eup %9414 }
0x2ecf   :  { %7981 = vrot.lane.b32.xlu0 %v9415_v38, %s10246_s29 }
0x2ed0   :  { %v9417_v45 = vpop.eup %9416 }
0x2ed1   :  { %v7975_v21 = vadd.f32 1.0, %v9417_v45 }
0x2ed3   :  { %9418 = vrcp.f32 %v7975_v21 }
0x2ee0   :  { %v9419_v33 = vpop.eup %9418 }
0x2ee1   :  { %v7979_v43 = vmul.f32 %v9419_v33, %v7889_v23 }
0x2f41   :  { %v7982_v47 = vpop.permute.xlu0 %7981 }
0x2f42   :  { %v7984_v53 = vmul.f32 %v9419_v33, %v7982_v47 }
0x2f44   :  { %7986 = vrot.lane.b32.xlu1 %v7984_v53, %s10225_s18 }
0x2fb6   :  { %v7987_v6 = vpop.permute.xlu1 %7986 }
0x2fb7   :  { %v7989_v42 = vadd.f32 %v7987_v6, %v7979_v43 }
0x2fb9   :  { %9420 = vtanh.f32 %v7989_v42 }
0x2fc6   :  { %v9421_v15 = vpop.eup %9420 }
0x2fc7   :  { %7992 = vrot.lane.b32.xlu0 %v9421_v15, %s10247_s24 }
0x3039   :  { %v7993_v55 = vpop.permute.xlu0 %7992 }
0x303a   :  { %v7995_v16 = vmul.f32 %v9419_v33, %v7993_v55 }
0x303c   :  { %7997 = vrot.lane.b32.xlu1 %v7995_v16, %s10248_s4 }
0x30ae   :  { %v7998_v10 = vpop.permute.xlu1 %7997 }
0x30af   :  { %8900 = vmatmul.mubr.msk.f32.vlgmr.msra.gmra.mxu0 %vm508_vm0, %v7998_v10 }
0x30b0   :  { %8903 = vmatpush3.msra.mxu0 %v13425_v35  ;;  %8904 = vmatprep.mubr.msk.f32.mxu0 %vm10245_vm5, %v14467_v48 }
0x316f   :  { %v8067_v41 = vpop.f32.mrf.mxu0 }
0x3170   :  { %v8071_v62 = vadd.f32 %v13436_v28, %v8067_v41 }
0x3171   :  { %v8901_v13 = vpop.f32.mrf.mxu0 }
0x3172   :  { %9422 = vtanh.f32 %v8071_v62  ;;  %v8386_v44 = vmul.f32 -1.442695, %v8071_v62 }
0x3174   :  { %9424 = vpow2.f32 %v8386_v44 }
0x317f   :  { %v9423_v36 = vpop.eup %9422 }
0x3180   :  { %8081 = vrot.lane.b32.xlu0 %v9423_v36, %s10246_s29 }
0x3181   :  { %v9425_v11 = vpop.eup %9424 }
0x3182   :  { %v8075_v4 = vadd.f32 1.0, %v9425_v11 }
0x3184   :  { %9426 = vrcp.f32 %v8075_v4 }
0x3191   :  { %v9427_v14 = vpop.eup %9426 }
0x3192   :  { %v8079_v35 = vmul.f32 %v9427_v14, %v7989_v42 }
0x31f2   :  { %v8082_v2 = vpop.permute.xlu0 %8081 }
0x31f3   :  { %v8084_v50 = vmul.f32 %v9427_v14, %v8082_v2 }
0x31f5   :  { %8086 = vrot.lane.b32.xlu1 %v8084_v50, %s10225_s18 }
0x3267   :  { %v8087_v48 = vpop.permute.xlu1 %8086 }
0x3268   :  { %v8089_v37 = vadd.f32 %v8087_v48, %v8079_v35 }
0x326a   :  { %9428 = vtanh.f32 %v8089_v37 }
0x3277   :  { %v9429_v59 = vpop.eup %9428 }
0x3278   :  { %8092 = vrot.lane.b32.xlu0 %v9429_v59, %s10247_s24 }
0x32ea   :  { %v8093_v0 = vpop.permute.xlu0 %8092 }
0x32eb   :  { %v8095_v51 = vmul.f32 %v9427_v14, %v8093_v0 }
0x32ed   :  { %8097 = vrot.lane.b32.xlu1 %v8095_v51, %s10248_s4 }
0x335f   :  { %v8098_v34 = vpop.permute.xlu1 %8097 }
0x3360   :  { %8905 = vmatmul.mubr.msk.f32.vlgmr.msra.gmra.mxu0 %vm508_vm0, %v8098_v34 }
0x3420   :  { %v8167_v63 = vpop.f32.mrf.mxu0 }
0x3421   :  { %v8171_v49 = vadd.f32 %v13436_v28, %v8167_v63 }
0x3422   :  { %v8906_v39 = vpop.f32.mrf.mxu0 }
0x3423   :  { %9430 = vtanh.f32 %v8171_v49  ;;  %v8388_v56 = vmul.f32 -1.442695, %v8171_v49 }
0x3425   :  { %9432 = vpow2.f32 %v8388_v56 }
0x3430   :  { %v9431_v57 = vpop.eup %9430 }
0x3431   :  { %8181 = vrot.lane.b32.xlu0 %v9431_v57, %s10246_s29 }
0x3432   :  { %v9433_v5 = vpop.eup %9432 }
0x3433   :  { %v8175_v30 = vadd.f32 1.0, %v9433_v5 }
0x3435   :  { %9434 = vrcp.f32 %v8175_v30 }
0x3442   :  { %v9435_v46 = vpop.eup %9434 }
0x3443   :  { %v8179_v28 = vmul.f32 %v9435_v46, %v8089_v37 }
0x34a3   :  { %v8182_v7 = vpop.permute.xlu0 %8181 }
0x34a4   :  { %v8184_v58 = vmul.f32 %v9435_v46, %v8182_v7 }
0x34a6   :  { %8186 = vrot.lane.b32.xlu1 %v8184_v58, %s10225_s18 }
0x34aa   :  { %8197 = vrot.lane.b32.xlu1 %v13455_v40, %s10246_s29 }
0x34ae   :  { %8203 = vrot.lane.b32.xlu1 %v13494_v26, %s10225_s18 }
0x34b2   :  { %8209 = vrot.lane.b32.xlu1 %v8095_v51, %s10249_s20 }
0x3518   :  { %v8187_v1 = vpop.permute.xlu1 %8186 }
0x3519   :  { %v8189_v3 = vadd.f32 %v8187_v1, %v8179_v28 }
0x351b   :  { %9436 = vtanh.f32 %v8189_v3 }
0x351c   :  { %v8198_v40 = vpop.permute.xlu1 %8197 }
0x351d   :  { %v8216_v17 = vsel %vm508_vm0, %v13443_v18, %v8198_v40 }
0x3520   :  { %v8204_v22 = vpop.permute.xlu1 %8203 }
0x3524   :  { %v8210_v25 = vpop.permute.xlu1 %8209 }
0x3528   :  { %v9437_v54 = vpop.eup %9436 }
0x3529   :  { %8192 = vrot.lane.b32.xlu0 %v9437_v54, %s10247_s24 }
0x352d   :  { %8200 = vrot.lane.b32.xlu0 %v13468_v61, %s10250_s2 }
0x3531   :  { %8206 = vrot.lane.b32.xlu0 %v7995_v16, %s10247_s24 }
0x359b   :  { %v8193_v8 = vpop.permute.xlu0 %8192 }
0x359c   :  { %v8195_v9 = vmul.f32 %v9435_v46, %v8193_v8 }
0x359e   :  { %8213 = vrot.lane.b32.xlu0 %v8195_v9, %s10219_s23 }
0x359f   :  { %v8201_v12 = vpop.permute.xlu0 %8200 }
0x35a0   :  { %v8218_v19 = vsel %vm8217_vm9, %v8216_v17, %v8201_v12 }
0x35a1   :  { %v8220_v20 = vsel %vm8219_vm10, %v8218_v19, %v13481_v52 }
0x35a2   :  { %v8222_v61 = vsel %vm8221_vm11, %v8220_v20, %v8204_v22 }
0x35a3   :  { %v8207_v23 = vpop.permute.xlu0 %8206 }
0x35a4   :  { %v8224_v24 = vsel %vm8223_vm12, %v8222_v61, %v8207_v23 }
0x35a5   :  { %v8226_v26 = vsel %vm8225_vm13, %v8224_v24, %v8210_v25 }
0x3610   :  { %v8214_v27 = vpop.permute.xlu0 %8213 }
0x3611   :  { %v8228_v29 = vsel %vm8227_vm14, %v8226_v26, %v8214_v27 }
0x3612   :  { %8230 = vst.msk [vmem:[%s10439_s25] sm:$0x3] %vm8229_vm15, %v8228_v29 }
0x3613   :  { %8235 = vsyncpa [#allocation3], 1 }
0x3614   :  { %8236 = vsyncpa [#allocation5], 1 }
0x3615   :  { %8237 = vsyncpa [#allocation8], 1 }
0x3616   :  { %8238 = vsyncpa [#allocation11], 1 }
0x3617   :  { %8239 = vsyncpa [#allocation14], 1 }
0x3618   :  { %8240 = vsyncpa [#allocation17], 1 }
0x3619   :  { %8241 = vsyncpa [#allocation20], 1 }
0x361a   :  { %8242 = vsyncpa [#allocation23], 1 }
0x361b   :  { %8243 = vsyncpa [#allocation26], 1 }
0x361c   :  { %8244 = vsyncpa [#allocation29], 1 }
0x361d   :  { %8245 = vsyncpa [#allocation32], 1 }
0x361e   :  { %8246 = vsyncpa [#allocation35], 1 }
0x361f   :  { %8247 = vsyncpa [#allocation38], 1 }
0x3620   :  { %8248 = vsyncpa [#allocation41], 1 }

</bundles_post_ra>
